<compile_context>
chip_gen: v6e
topology: v6e:2x2x1
jax: 0.10.0
libtpu: 0.0.40
codegen_flags: <defaults>
</compile_context>

<pallas_src>
import numpy as np
import jax
import jax.numpy as jnp
from jax import lax
from jax.experimental import pallas as pl
from jax.experimental.pallas import tpu as pltpu

# ---------------- model hyper-parameters (small, consistent with the module) ----
CONV_SLICES = 4        # conv_slices
KSIZE       = 3        # kernel_size
NUM_CLASSES = 10       # num_classes
IMAGE_DIM   = (16, 16) # image_dim
BATCH       = 2

H0, W0 = IMAGE_DIM
H1, W1 = H0 - KSIZE + 1, W0 - KSIZE + 1          # after conv1: 14 x 14
H2, W2 = H1 - KSIZE + 1, W1 - KSIZE + 1          # after conv2: 12 x 12
HP, WP = H2 // 2, W2 // 2                        # after maxpool: 6 x 6
INPUT_SIZE = CONV_SLICES * HP * WP               # 144 (matches PyTorch self.input_size)
HIDDEN     = 512


def _tree_sum(terms):
    """Pairwise tree reduction -> independent partial sums (better VALU ILP
    than a single serial `acc = acc + ...` chain)."""
    terms = list(terms)
    while len(terms) > 1:
        nxt = [terms[i] + terms[i + 1] for i in range(0, len(terms) - 1, 2)]
        if len(terms) % 2:
            nxt.append(terms[-1])
        terms = nxt
    return terms[0]


# ------------------------------- Fused kernel ------------------------------------
def fused_kernel(x_ref, w1_ref, b1_ref, w2_ref, b2_ref,
                 fw1_ref, fb1_ref, fw2_ref, fb2_ref, o_ref):
    """conv1+ReLU -> conv2+ReLU -> 2x2 maxpool -> FC1+ReLU -> FC2 -> softmax.

    x_ref  : (B, 16, 16)        VMEM  (single input channel, squeezed in wrapper)
    w1_ref : (C*K*K,)           SMEM  conv1 weights, flat (oc, ic=0, dy, dx)
    b1_ref : (C,)               SMEM
    w2_ref : (C*C*K*K,)         SMEM  conv2 weights, flat (oc, ic, dy, dx)
    b2_ref : (C,)               SMEM
    fw1_ref: (144, 512)         VMEM  FC1 weight (in, out) -- NOT zero-expanded
    fb1_ref: (1, 512)           VMEM
    fw2_ref: (512, NUM_CLASSES) VMEM
    fb2_ref: (1, NUM_CLASSES)   VMEM
    o_ref  : (B, NUM_CLASSES)   VMEM  softmax probabilities
    """
    C, K = CONV_SLICES, KSIZE
    Bsz = x_ref.shape[0]
    x = x_ref[...]                                              # (B, 16, 16)

    # ---- conv1 + ReLU: shifted-slice products, tree-summed; views hoisted ------
    xs = [[x[:, dy:dy + H1, dx:dx + W1] for dx in range(K)] for dy in range(K)]
    h1 = []
    for oc in range(C):
        terms = [xs[dy][dx] * w1_ref[oc * K * K + dy * K + dx]
                 for dy in range(K) for dx in range(K)]
        h1.append(jnp.maximum(_tree_sum(terms) + b1_ref[oc], 0.0))      # (B, 14, 14)

    # ---- conv2 + ReLU: shifted views of h1 hoisted & shared; tree-summed -------
    # TODO(synk): conv taps still run at ~W/128 lane occupancy on the VPU; an
    # im2col/roll-based repack would raise occupancy but was left out to keep
    # the lowering simple (kernel is launch/latency bound at this size).
    h1s = [[[h1[ic][:, dy:dy + H2, dx:dx + W2] for dx in range(K)]
            for dy in range(K)] for ic in range(C)]
    h2 = []
    for oc in range(C):
        terms = []
        for ic in range(C):
            base = (oc * C + ic) * K * K
            for dy in range(K):
                for dx in range(K):
                    terms.append(h1s[ic][dy][dx] * w2_ref[base + dy * K + dx])
        h2.append(jnp.maximum(_tree_sum(terms) + b2_ref[oc], 0.0))      # (B, 12, 12)

    # ---- 2x2 stride-2 max-pool, fully batched over (batch, channel) ------------
    # Stack channels along the sublane axis: rows ordered (c, r) -> matches the
    # NCHW .view() flatten order later.
    h2cat = jnp.concatenate(h2, axis=1)                         # (B, C*12, 12)
    cmax = jnp.maximum(h2cat[:, :, 0:W2 - 1], h2cat[:, :, 1:W2])        # (B, 48, 11)

    # Even-column subsample as ONE batched selection matmul (0/1 matrix from iota).
    sel = (lax.broadcasted_iota(jnp.int32, (W2 - 1, WP), 0) ==
           2 * lax.broadcasted_iota(jnp.int32, (W2 - 1, WP), 1)).astype(jnp.float32)
    selb = jnp.broadcast_to(sel, (Bsz, W2 - 1, WP))             # (B, 11, 6)
    csel = jnp.einsum('bkw,bwc->bkc', cmax, selb,
                      preferred_element_type=jnp.float32)       # (B, 48, 6)

    # Row pair-max once on the stacked array (overlapping sublane slices); the
    # even-row subsample is folded into the flatten slices below.
    rmax = jnp.maximum(csel[:, 0:C * H2 - 1, :], csel[:, 1:C * H2, :])  # (B, 47, 6)

    # ---- flatten (NCHW .view order) : batched lane-concat of 24 pieces ---------
    pieces = [rmax[:, c * H2 + 2 * r:c * H2 + 2 * r + 1, :]     # (B, 1, 6)
              for c in range(C) for r in range(HP)]
    flat3 = jnp.concatenate(pieces, axis=2)                     # (B, 1, 144)
    feat = jnp.concatenate([flat3[b] for b in range(Bsz)], axis=0)      # (B, 144)

    # ---- FC1 + ReLU + FC2 + softmax (MXU matmuls) -------------------------------
    h = jnp.dot(feat, fw1_ref[...], preferred_element_type=jnp.float32) + fb1_ref[...]
    h = jnp.maximum(h, 0.0)
    logits = jnp.dot(h, fw2_ref[...], preferred_element_type=jnp.float32) + fb2_ref[...]
    mx = jnp.max(logits, axis=-1, keepdims=True)
    e = jnp.exp(logits - mx)
    s = jnp.sum(e, axis=-1, keepdims=True)
    o_ref[...] = e / s                                          # exact normalization


# ------------------------------- Wrapper ------------------------------------------
def init_params(key):
    ks = jax.random.split(key, 8)
    p = {}
    # conv filters (deterministic stand-in for the KF_Layer fixed filters)
    # TODO(synk): KF_Layer's actual fixed filter values are not provided; using
    # deterministic random filters with the same shapes.
    p["w1"]  = jax.random.normal(ks[0], (CONV_SLICES, 1, KSIZE, KSIZE), jnp.float32) * 0.3
    p["b1"]  = jax.random.normal(ks[1], (CONV_SLICES,), jnp.float32) * 0.1
    p["w2"]  = jax.random.normal(ks[2], (CONV_SLICES, CONV_SLICES, KSIZE, KSIZE), jnp.float32) * 0.1
    p["b2"]  = jax.random.normal(ks[3], (CONV_SLICES,), jnp.float32) * 0.1
    # FC layers (stored as (in, out), i.e. transposed nn.Linear weight)
    p["fw1"] = jax.random.normal(ks[4], (INPUT_SIZE, HIDDEN), jnp.float32) * 0.05
    p["fb1"] = jax.random.normal(ks[5], (HIDDEN,), jnp.float32) * 0.1
    p["fw2"] = jax.random.normal(ks[6], (HIDDEN, NUM_CLASSES), jnp.float32) * 0.05
    p["fb2"] = jax.random.normal(ks[7], (NUM_CLASSES,), jnp.float32) * 0.1
    # flat conv weights for cheap SMEM scalar reads (prepared once, not per call)
    p["w1_flat"] = p["w1"].reshape(-1)
    p["w2_flat"] = p["w2"].reshape(-1)
    return p


@jax.jit
def kf_kf_pool_forward(x, params):
    """x: (B, 1, H0, W0) float32 (NCHW, single channel). Returns (B, num_classes)."""
    B = x.shape[0]
    x2d = x[:, 0, :, :]                                          # squeeze channel -> (B, 16, 16)

    smem = pltpu.MemorySpace.SMEM
    vmem = pltpu.MemorySpace.VMEM
    return pl.pallas_call(
        fused_kernel,
        out_shape=jax.ShapeDtypeStruct((B, NUM_CLASSES), jnp.float32),
        in_specs=[
            pl.BlockSpec(memory_space=vmem),   # x
            pl.BlockSpec(memory_space=smem),   # w1 (flat)
            pl.BlockSpec(memory_space=smem),   # b1
            pl.BlockSpec(memory_space=smem),   # w2 (flat)
            pl.BlockSpec(memory_space=smem),   # b2
            pl.BlockSpec(memory_space=vmem),   # fw1
            pl.BlockSpec(memory_space=vmem),   # fb1
            pl.BlockSpec(memory_space=vmem),   # fw2
            pl.BlockSpec(memory_space=vmem),   # fb2
        ],
        out_specs=pl.BlockSpec(memory_space=vmem),
    )(x2d, params["w1_flat"], params["b1"], params["w2_flat"], params["b2"],
      params["fw1"], params["fb1"][None, :], params["fw2"], params["fb2"][None, :])


# ------------------------------- Pure-JAX reference ------------------------------
def reference_forward(x, p):
    dn = ("NCHW", "OIHW", "NCHW")
    h = lax.conv_general_dilated(x, p["w1"], (1, 1), "VALID", dimension_numbers=dn,
                                 precision=lax.Precision.HIGHEST)
    h = jnp.maximum(h + p["b1"][None, :, None, None], 0.0)
    h = lax.conv_general_dilated(h, p["w2"], (1, 1), "VALID", dimension_numbers=dn,
                                 precision=lax.Precision.HIGHEST)
    h = jnp.maximum(h + p["b2"][None, :, None, None], 0.0)
    h = lax.reduce_window(h, -jnp.inf, lax.max, (1, 1, 2, 2), (1, 1, 2, 2), "VALID")
    flat = h.reshape(x.shape[0], INPUT_SIZE)
    z = jnp.maximum(jnp.dot(flat, p["fw1"], precision=lax.Precision.HIGHEST) + p["fb1"], 0.0)
    logits = jnp.dot(z, p["fw2"], precision=lax.Precision.HIGHEST) + p["fb2"]
    return jax.nn.softmax(logits, axis=1)


# ------------------------------- Main ---------------------------------------------
if __name__ == "__main__":
    key = jax.random.PRNGKey(0)
    k_x, k_p = jax.random.split(key)
    params = init_params(k_p)
    x = jax.random.normal(k_x, (BATCH, 1, H0, W0), jnp.float32)

    out = jax.block_until_ready(kf_kf_pool_forward(x, params))
    ref = jax.block_until_ready(reference_forward(x, params))

    np.testing.assert_allclose(np.asarray(out), np.asarray(ref), rtol=1e-3, atol=1e-4)
    assert out.shape == (BATCH, NUM_CLASSES)
    # exact softmax normalization -> rows sum to 1 to fp32 rounding
    np.testing.assert_allclose(np.asarray(out).sum(axis=1), np.ones(BATCH), rtol=0, atol=1e-5)

    print("KERNEL_OK")
</pallas_src>

<mosaic_0001>
module attributes {stable_mosaic.version = 11 : i64} {
  func.func @fused_kernel(%arg0: memref<2x16x16xf32, #tpu.memory_space<vmem>>, %arg1: memref<36xf32, #tpu.memory_space<smem>>, %arg2: memref<4xf32, #tpu.memory_space<smem>>, %arg3: memref<144xf32, #tpu.memory_space<smem>>, %arg4: memref<4xf32, #tpu.memory_space<smem>>, %arg5: memref<144x512xf32, #tpu.memory_space<vmem>>, %arg6: memref<1x512xf32, #tpu.memory_space<vmem>>, %arg7: memref<512x10xf32, #tpu.memory_space<vmem>>, %arg8: memref<1x10xf32, #tpu.memory_space<vmem>>, %arg9: memref<2x10xf32, #tpu.memory_space<vmem>>) attributes {dimension_semantics = [], scalar_prefetch = 0 : i64, scratch_operands = 0 : i64, tpu.core_type = #tpu.core_type<tc>} {
    %c0 = arith.constant 0 : index
    %c0_0 = arith.constant 0 : index
    %c0_1 = arith.constant 0 : index
    %0 = vector.load %arg0[%c0, %c0_0, %c0_1] : memref<2x16x16xf32, #tpu.memory_space<vmem>>, vector<2x16x16xf32>
    %1 = vector.extract_strided_slice %0 {offsets = [0, 0, 0], sizes = [2, 14, 14], strides = [1, 1, 1]} : vector<2x16x16xf32> to vector<2x14x14xf32>
    %2 = vector.extract_strided_slice %0 {offsets = [0, 0, 1], sizes = [2, 14, 14], strides = [1, 1, 1]} : vector<2x16x16xf32> to vector<2x14x14xf32>
    %3 = vector.extract_strided_slice %0 {offsets = [0, 0, 2], sizes = [2, 14, 14], strides = [1, 1, 1]} : vector<2x16x16xf32> to vector<2x14x14xf32>
    %4 = vector.extract_strided_slice %0 {offsets = [0, 1, 0], sizes = [2, 14, 14], strides = [1, 1, 1]} : vector<2x16x16xf32> to vector<2x14x14xf32>
    %5 = vector.extract_strided_slice %0 {offsets = [0, 1, 1], sizes = [2, 14, 14], strides = [1, 1, 1]} : vector<2x16x16xf32> to vector<2x14x14xf32>
    %6 = vector.extract_strided_slice %0 {offsets = [0, 1, 2], sizes = [2, 14, 14], strides = [1, 1, 1]} : vector<2x16x16xf32> to vector<2x14x14xf32>
    %7 = vector.extract_strided_slice %0 {offsets = [0, 2, 0], sizes = [2, 14, 14], strides = [1, 1, 1]} : vector<2x16x16xf32> to vector<2x14x14xf32>
    %8 = vector.extract_strided_slice %0 {offsets = [0, 2, 1], sizes = [2, 14, 14], strides = [1, 1, 1]} : vector<2x16x16xf32> to vector<2x14x14xf32>
    %9 = vector.extract_strided_slice %0 {offsets = [0, 2, 2], sizes = [2, 14, 14], strides = [1, 1, 1]} : vector<2x16x16xf32> to vector<2x14x14xf32>
    %c0_2 = arith.constant 0 : index
    %10 = memref.load %arg1[%c0_2] : memref<36xf32, #tpu.memory_space<smem>>
    %11 = vector.broadcast %10 : f32 to vector<2x14x14xf32>
    %12 = arith.mulf %1, %11 : vector<2x14x14xf32>
    %c1 = arith.constant 1 : index
    %13 = memref.load %arg1[%c1] : memref<36xf32, #tpu.memory_space<smem>>
    %14 = vector.broadcast %13 : f32 to vector<2x14x14xf32>
    %15 = arith.mulf %2, %14 : vector<2x14x14xf32>
    %c2 = arith.constant 2 : index
    %16 = memref.load %arg1[%c2] : memref<36xf32, #tpu.memory_space<smem>>
    %17 = vector.broadcast %16 : f32 to vector<2x14x14xf32>
    %18 = arith.mulf %3, %17 : vector<2x14x14xf32>
    %c3 = arith.constant 3 : index
    %19 = memref.load %arg1[%c3] : memref<36xf32, #tpu.memory_space<smem>>
    %20 = vector.broadcast %19 : f32 to vector<2x14x14xf32>
    %21 = arith.mulf %4, %20 : vector<2x14x14xf32>
    %c4 = arith.constant 4 : index
    %22 = memref.load %arg1[%c4] : memref<36xf32, #tpu.memory_space<smem>>
    %23 = vector.broadcast %22 : f32 to vector<2x14x14xf32>
    %24 = arith.mulf %5, %23 : vector<2x14x14xf32>
    %c5 = arith.constant 5 : index
    %25 = memref.load %arg1[%c5] : memref<36xf32, #tpu.memory_space<smem>>
    %26 = vector.broadcast %25 : f32 to vector<2x14x14xf32>
    %27 = arith.mulf %6, %26 : vector<2x14x14xf32>
    %c6 = arith.constant 6 : index
    %28 = memref.load %arg1[%c6] : memref<36xf32, #tpu.memory_space<smem>>
    %29 = vector.broadcast %28 : f32 to vector<2x14x14xf32>
    %30 = arith.mulf %7, %29 : vector<2x14x14xf32>
    %c7 = arith.constant 7 : index
    %31 = memref.load %arg1[%c7] : memref<36xf32, #tpu.memory_space<smem>>
    %32 = vector.broadcast %31 : f32 to vector<2x14x14xf32>
    %33 = arith.mulf %8, %32 : vector<2x14x14xf32>
    %c8 = arith.constant 8 : index
    %34 = memref.load %arg1[%c8] : memref<36xf32, #tpu.memory_space<smem>>
    %35 = vector.broadcast %34 : f32 to vector<2x14x14xf32>
    %36 = arith.mulf %9, %35 : vector<2x14x14xf32>
    %37 = arith.addf %12, %15 : vector<2x14x14xf32>
    %38 = arith.addf %18, %21 : vector<2x14x14xf32>
    %39 = arith.addf %24, %27 : vector<2x14x14xf32>
    %40 = arith.addf %30, %33 : vector<2x14x14xf32>
    %41 = arith.addf %37, %38 : vector<2x14x14xf32>
    %42 = arith.addf %39, %40 : vector<2x14x14xf32>
    %43 = arith.addf %41, %42 : vector<2x14x14xf32>
    %44 = arith.addf %43, %36 : vector<2x14x14xf32>
    %c0_3 = arith.constant 0 : index
    %45 = memref.load %arg2[%c0_3] : memref<4xf32, #tpu.memory_space<smem>>
    %46 = vector.broadcast %45 : f32 to vector<2x14x14xf32>
    %47 = arith.addf %44, %46 : vector<2x14x14xf32>
    %cst = arith.constant 0.000000e+00 : f32
    %48 = vector.broadcast %cst : f32 to vector<2x14x14xf32>
    %49 = arith.maximumf %47, %48 : vector<2x14x14xf32>
    %c9 = arith.constant 9 : index
    %50 = memref.load %arg1[%c9] : memref<36xf32, #tpu.memory_space<smem>>
    %51 = vector.broadcast %50 : f32 to vector<2x14x14xf32>
    %52 = arith.mulf %1, %51 : vector<2x14x14xf32>
    %c10 = arith.constant 10 : index
    %53 = memref.load %arg1[%c10] : memref<36xf32, #tpu.memory_space<smem>>
    %54 = vector.broadcast %53 : f32 to vector<2x14x14xf32>
    %55 = arith.mulf %2, %54 : vector<2x14x14xf32>
    %c11 = arith.constant 11 : index
    %56 = memref.load %arg1[%c11] : memref<36xf32, #tpu.memory_space<smem>>
    %57 = vector.broadcast %56 : f32 to vector<2x14x14xf32>
    %58 = arith.mulf %3, %57 : vector<2x14x14xf32>
    %c12 = arith.constant 12 : index
    %59 = memref.load %arg1[%c12] : memref<36xf32, #tpu.memory_space<smem>>
    %60 = vector.broadcast %59 : f32 to vector<2x14x14xf32>
    %61 = arith.mulf %4, %60 : vector<2x14x14xf32>
    %c13 = arith.constant 13 : index
    %62 = memref.load %arg1[%c13] : memref<36xf32, #tpu.memory_space<smem>>
    %63 = vector.broadcast %62 : f32 to vector<2x14x14xf32>
    %64 = arith.mulf %5, %63 : vector<2x14x14xf32>
    %c14 = arith.constant 14 : index
    %65 = memref.load %arg1[%c14] : memref<36xf32, #tpu.memory_space<smem>>
    %66 = vector.broadcast %65 : f32 to vector<2x14x14xf32>
    %67 = arith.mulf %6, %66 : vector<2x14x14xf32>
    %c15 = arith.constant 15 : index
    %68 = memref.load %arg1[%c15] : memref<36xf32, #tpu.memory_space<smem>>
    %69 = vector.broadcast %68 : f32 to vector<2x14x14xf32>
    %70 = arith.mulf %7, %69 : vector<2x14x14xf32>
    %c16 = arith.constant 16 : index
    %71 = memref.load %arg1[%c16] : memref<36xf32, #tpu.memory_space<smem>>
    %72 = vector.broadcast %71 : f32 to vector<2x14x14xf32>
    %73 = arith.mulf %8, %72 : vector<2x14x14xf32>
    %c17 = arith.constant 17 : index
    %74 = memref.load %arg1[%c17] : memref<36xf32, #tpu.memory_space<smem>>
    %75 = vector.broadcast %74 : f32 to vector<2x14x14xf32>
    %76 = arith.mulf %9, %75 : vector<2x14x14xf32>
    %77 = arith.addf %52, %55 : vector<2x14x14xf32>
    %78 = arith.addf %58, %61 : vector<2x14x14xf32>
    %79 = arith.addf %64, %67 : vector<2x14x14xf32>
    %80 = arith.addf %70, %73 : vector<2x14x14xf32>
    %81 = arith.addf %77, %78 : vector<2x14x14xf32>
    %82 = arith.addf %79, %80 : vector<2x14x14xf32>
    %83 = arith.addf %81, %82 : vector<2x14x14xf32>
    %84 = arith.addf %83, %76 : vector<2x14x14xf32>
    %c1_4 = arith.constant 1 : index
    %85 = memref.load %arg2[%c1_4] : memref<4xf32, #tpu.memory_space<smem>>
    %86 = vector.broadcast %85 : f32 to vector<2x14x14xf32>
    %87 = arith.addf %84, %86 : vector<2x14x14xf32>
    %cst_5 = arith.constant 0.000000e+00 : f32
    %88 = vector.broadcast %cst_5 : f32 to vector<2x14x14xf32>
    %89 = arith.maximumf %87, %88 : vector<2x14x14xf32>
    %c18 = arith.constant 18 : index
    %90 = memref.load %arg1[%c18] : memref<36xf32, #tpu.memory_space<smem>>
    %91 = vector.broadcast %90 : f32 to vector<2x14x14xf32>
    %92 = arith.mulf %1, %91 : vector<2x14x14xf32>
    %c19 = arith.constant 19 : index
    %93 = memref.load %arg1[%c19] : memref<36xf32, #tpu.memory_space<smem>>
    %94 = vector.broadcast %93 : f32 to vector<2x14x14xf32>
    %95 = arith.mulf %2, %94 : vector<2x14x14xf32>
    %c20 = arith.constant 20 : index
    %96 = memref.load %arg1[%c20] : memref<36xf32, #tpu.memory_space<smem>>
    %97 = vector.broadcast %96 : f32 to vector<2x14x14xf32>
    %98 = arith.mulf %3, %97 : vector<2x14x14xf32>
    %c21 = arith.constant 21 : index
    %99 = memref.load %arg1[%c21] : memref<36xf32, #tpu.memory_space<smem>>
    %100 = vector.broadcast %99 : f32 to vector<2x14x14xf32>
    %101 = arith.mulf %4, %100 : vector<2x14x14xf32>
    %c22 = arith.constant 22 : index
    %102 = memref.load %arg1[%c22] : memref<36xf32, #tpu.memory_space<smem>>
    %103 = vector.broadcast %102 : f32 to vector<2x14x14xf32>
    %104 = arith.mulf %5, %103 : vector<2x14x14xf32>
    %c23 = arith.constant 23 : index
    %105 = memref.load %arg1[%c23] : memref<36xf32, #tpu.memory_space<smem>>
    %106 = vector.broadcast %105 : f32 to vector<2x14x14xf32>
    %107 = arith.mulf %6, %106 : vector<2x14x14xf32>
    %c24 = arith.constant 24 : index
    %108 = memref.load %arg1[%c24] : memref<36xf32, #tpu.memory_space<smem>>
    %109 = vector.broadcast %108 : f32 to vector<2x14x14xf32>
    %110 = arith.mulf %7, %109 : vector<2x14x14xf32>
    %c25 = arith.constant 25 : index
    %111 = memref.load %arg1[%c25] : memref<36xf32, #tpu.memory_space<smem>>
    %112 = vector.broadcast %111 : f32 to vector<2x14x14xf32>
    %113 = arith.mulf %8, %112 : vector<2x14x14xf32>
    %c26 = arith.constant 26 : index
    %114 = memref.load %arg1[%c26] : memref<36xf32, #tpu.memory_space<smem>>
    %115 = vector.broadcast %114 : f32 to vector<2x14x14xf32>
    %116 = arith.mulf %9, %115 : vector<2x14x14xf32>
    %117 = arith.addf %92, %95 : vector<2x14x14xf32>
    %118 = arith.addf %98, %101 : vector<2x14x14xf32>
    %119 = arith.addf %104, %107 : vector<2x14x14xf32>
    %120 = arith.addf %110, %113 : vector<2x14x14xf32>
    %121 = arith.addf %117, %118 : vector<2x14x14xf32>
    %122 = arith.addf %119, %120 : vector<2x14x14xf32>
    %123 = arith.addf %121, %122 : vector<2x14x14xf32>
    %124 = arith.addf %123, %116 : vector<2x14x14xf32>
    %c2_6 = arith.constant 2 : index
    %125 = memref.load %arg2[%c2_6] : memref<4xf32, #tpu.memory_space<smem>>
    %126 = vector.broadcast %125 : f32 to vector<2x14x14xf32>
    %127 = arith.addf %124, %126 : vector<2x14x14xf32>
    %cst_7 = arith.constant 0.000000e+00 : f32
    %128 = vector.broadcast %cst_7 : f32 to vector<2x14x14xf32>
    %129 = arith.maximumf %127, %128 : vector<2x14x14xf32>
    %c27 = arith.constant 27 : index
    %130 = memref.load %arg1[%c27] : memref<36xf32, #tpu.memory_space<smem>>
    %131 = vector.broadcast %130 : f32 to vector<2x14x14xf32>
    %132 = arith.mulf %1, %131 : vector<2x14x14xf32>
    %c28 = arith.constant 28 : index
    %133 = memref.load %arg1[%c28] : memref<36xf32, #tpu.memory_space<smem>>
    %134 = vector.broadcast %133 : f32 to vector<2x14x14xf32>
    %135 = arith.mulf %2, %134 : vector<2x14x14xf32>
    %c29 = arith.constant 29 : index
    %136 = memref.load %arg1[%c29] : memref<36xf32, #tpu.memory_space<smem>>
    %137 = vector.broadcast %136 : f32 to vector<2x14x14xf32>
    %138 = arith.mulf %3, %137 : vector<2x14x14xf32>
    %c30 = arith.constant 30 : index
    %139 = memref.load %arg1[%c30] : memref<36xf32, #tpu.memory_space<smem>>
    %140 = vector.broadcast %139 : f32 to vector<2x14x14xf32>
    %141 = arith.mulf %4, %140 : vector<2x14x14xf32>
    %c31 = arith.constant 31 : index
    %142 = memref.load %arg1[%c31] : memref<36xf32, #tpu.memory_space<smem>>
    %143 = vector.broadcast %142 : f32 to vector<2x14x14xf32>
    %144 = arith.mulf %5, %143 : vector<2x14x14xf32>
    %c32 = arith.constant 32 : index
    %145 = memref.load %arg1[%c32] : memref<36xf32, #tpu.memory_space<smem>>
    %146 = vector.broadcast %145 : f32 to vector<2x14x14xf32>
    %147 = arith.mulf %6, %146 : vector<2x14x14xf32>
    %c33 = arith.constant 33 : index
    %148 = memref.load %arg1[%c33] : memref<36xf32, #tpu.memory_space<smem>>
    %149 = vector.broadcast %148 : f32 to vector<2x14x14xf32>
    %150 = arith.mulf %7, %149 : vector<2x14x14xf32>
    %c34 = arith.constant 34 : index
    %151 = memref.load %arg1[%c34] : memref<36xf32, #tpu.memory_space<smem>>
    %152 = vector.broadcast %151 : f32 to vector<2x14x14xf32>
    %153 = arith.mulf %8, %152 : vector<2x14x14xf32>
    %c35 = arith.constant 35 : index
    %154 = memref.load %arg1[%c35] : memref<36xf32, #tpu.memory_space<smem>>
    %155 = vector.broadcast %154 : f32 to vector<2x14x14xf32>
    %156 = arith.mulf %9, %155 : vector<2x14x14xf32>
    %157 = arith.addf %132, %135 : vector<2x14x14xf32>
    %158 = arith.addf %138, %141 : vector<2x14x14xf32>
    %159 = arith.addf %144, %147 : vector<2x14x14xf32>
    %160 = arith.addf %150, %153 : vector<2x14x14xf32>
    %161 = arith.addf %157, %158 : vector<2x14x14xf32>
    %162 = arith.addf %159, %160 : vector<2x14x14xf32>
    %163 = arith.addf %161, %162 : vector<2x14x14xf32>
    %164 = arith.addf %163, %156 : vector<2x14x14xf32>
    %c3_8 = arith.constant 3 : index
    %165 = memref.load %arg2[%c3_8] : memref<4xf32, #tpu.memory_space<smem>>
    %166 = vector.broadcast %165 : f32 to vector<2x14x14xf32>
    %167 = arith.addf %164, %166 : vector<2x14x14xf32>
    %cst_9 = arith.constant 0.000000e+00 : f32
    %168 = vector.broadcast %cst_9 : f32 to vector<2x14x14xf32>
    %169 = arith.maximumf %167, %168 : vector<2x14x14xf32>
    %170 = vector.extract_strided_slice %49 {offsets = [0, 0, 0], sizes = [2, 12, 12], strides = [1, 1, 1]} : vector<2x14x14xf32> to vector<2x12x12xf32>
    %171 = vector.extract_strided_slice %49 {offsets = [0, 0, 1], sizes = [2, 12, 12], strides = [1, 1, 1]} : vector<2x14x14xf32> to vector<2x12x12xf32>
    %172 = vector.extract_strided_slice %49 {offsets = [0, 0, 2], sizes = [2, 12, 12], strides = [1, 1, 1]} : vector<2x14x14xf32> to vector<2x12x12xf32>
    %173 = vector.extract_strided_slice %49 {offsets = [0, 1, 0], sizes = [2, 12, 12], strides = [1, 1, 1]} : vector<2x14x14xf32> to vector<2x12x12xf32>
    %174 = vector.extract_strided_slice %49 {offsets = [0, 1, 1], sizes = [2, 12, 12], strides = [1, 1, 1]} : vector<2x14x14xf32> to vector<2x12x12xf32>
    %175 = vector.extract_strided_slice %49 {offsets = [0, 1, 2], sizes = [2, 12, 12], strides = [1, 1, 1]} : vector<2x14x14xf32> to vector<2x12x12xf32>
    %176 = vector.extract_strided_slice %49 {offsets = [0, 2, 0], sizes = [2, 12, 12], strides = [1, 1, 1]} : vector<2x14x14xf32> to vector<2x12x12xf32>
    %177 = vector.extract_strided_slice %49 {offsets = [0, 2, 1], sizes = [2, 12, 12], strides = [1, 1, 1]} : vector<2x14x14xf32> to vector<2x12x12xf32>
    %178 = vector.extract_strided_slice %49 {offsets = [0, 2, 2], sizes = [2, 12, 12], strides = [1, 1, 1]} : vector<2x14x14xf32> to vector<2x12x12xf32>
    %179 = vector.extract_strided_slice %89 {offsets = [0, 0, 0], sizes = [2, 12, 12], strides = [1, 1, 1]} : vector<2x14x14xf32> to vector<2x12x12xf32>
    %180 = vector.extract_strided_slice %89 {offsets = [0, 0, 1], sizes = [2, 12, 12], strides = [1, 1, 1]} : vector<2x14x14xf32> to vector<2x12x12xf32>
    %181 = vector.extract_strided_slice %89 {offsets = [0, 0, 2], sizes = [2, 12, 12], strides = [1, 1, 1]} : vector<2x14x14xf32> to vector<2x12x12xf32>
    %182 = vector.extract_strided_slice %89 {offsets = [0, 1, 0], sizes = [2, 12, 12], strides = [1, 1, 1]} : vector<2x14x14xf32> to vector<2x12x12xf32>
    %183 = vector.extract_strided_slice %89 {offsets = [0, 1, 1], sizes = [2, 12, 12], strides = [1, 1, 1]} : vector<2x14x14xf32> to vector<2x12x12xf32>
    %184 = vector.extract_strided_slice %89 {offsets = [0, 1, 2], sizes = [2, 12, 12], strides = [1, 1, 1]} : vector<2x14x14xf32> to vector<2x12x12xf32>
    %185 = vector.extract_strided_slice %89 {offsets = [0, 2, 0], sizes = [2, 12, 12], strides = [1, 1, 1]} : vector<2x14x14xf32> to vector<2x12x12xf32>
    %186 = vector.extract_strided_slice %89 {offsets = [0, 2, 1], sizes = [2, 12, 12], strides = [1, 1, 1]} : vector<2x14x14xf32> to vector<2x12x12xf32>
    %187 = vector.extract_strided_slice %89 {offsets = [0, 2, 2], sizes = [2, 12, 12], strides = [1, 1, 1]} : vector<2x14x14xf32> to vector<2x12x12xf32>
    %188 = vector.extract_strided_slice %129 {offsets = [0, 0, 0], sizes = [2, 12, 12], strides = [1, 1, 1]} : vector<2x14x14xf32> to vector<2x12x12xf32>
    %189 = vector.extract_strided_slice %129 {offsets = [0, 0, 1], sizes = [2, 12, 12], strides = [1, 1, 1]} : vector<2x14x14xf32> to vector<2x12x12xf32>
    %190 = vector.extract_strided_slice %129 {offsets = [0, 0, 2], sizes = [2, 12, 12], strides = [1, 1, 1]} : vector<2x14x14xf32> to vector<2x12x12xf32>
    %191 = vector.extract_strided_slice %129 {offsets = [0, 1, 0], sizes = [2, 12, 12], strides = [1, 1, 1]} : vector<2x14x14xf32> to vector<2x12x12xf32>
    %192 = vector.extract_strided_slice %129 {offsets = [0, 1, 1], sizes = [2, 12, 12], strides = [1, 1, 1]} : vector<2x14x14xf32> to vector<2x12x12xf32>
    %193 = vector.extract_strided_slice %129 {offsets = [0, 1, 2], sizes = [2, 12, 12], strides = [1, 1, 1]} : vector<2x14x14xf32> to vector<2x12x12xf32>
    %194 = vector.extract_strided_slice %129 {offsets = [0, 2, 0], sizes = [2, 12, 12], strides = [1, 1, 1]} : vector<2x14x14xf32> to vector<2x12x12xf32>
    %195 = vector.extract_strided_slice %129 {offsets = [0, 2, 1], sizes = [2, 12, 12], strides = [1, 1, 1]} : vector<2x14x14xf32> to vector<2x12x12xf32>
    %196 = vector.extract_strided_slice %129 {offsets = [0, 2, 2], sizes = [2, 12, 12], strides = [1, 1, 1]} : vector<2x14x14xf32> to vector<2x12x12xf32>
    %197 = vector.extract_strided_slice %169 {offsets = [0, 0, 0], sizes = [2, 12, 12], strides = [1, 1, 1]} : vector<2x14x14xf32> to vector<2x12x12xf32>
    %198 = vector.extract_strided_slice %169 {offsets = [0, 0, 1], sizes = [2, 12, 12], strides = [1, 1, 1]} : vector<2x14x14xf32> to vector<2x12x12xf32>
    %199 = vector.extract_strided_slice %169 {offsets = [0, 0, 2], sizes = [2, 12, 12], strides = [1, 1, 1]} : vector<2x14x14xf32> to vector<2x12x12xf32>
    %200 = vector.extract_strided_slice %169 {offsets = [0, 1, 0], sizes = [2, 12, 12], strides = [1, 1, 1]} : vector<2x14x14xf32> to vector<2x12x12xf32>
    %201 = vector.extract_strided_slice %169 {offsets = [0, 1, 1], sizes = [2, 12, 12], strides = [1, 1, 1]} : vector<2x14x14xf32> to vector<2x12x12xf32>
    %202 = vector.extract_strided_slice %169 {offsets = [0, 1, 2], sizes = [2, 12, 12], strides = [1, 1, 1]} : vector<2x14x14xf32> to vector<2x12x12xf32>
    %203 = vector.extract_strided_slice %169 {offsets = [0, 2, 0], sizes = [2, 12, 12], strides = [1, 1, 1]} : vector<2x14x14xf32> to vector<2x12x12xf32>
    %204 = vector.extract_strided_slice %169 {offsets = [0, 2, 1], sizes = [2, 12, 12], strides = [1, 1, 1]} : vector<2x14x14xf32> to vector<2x12x12xf32>
    %205 = vector.extract_strided_slice %169 {offsets = [0, 2, 2], sizes = [2, 12, 12], strides = [1, 1, 1]} : vector<2x14x14xf32> to vector<2x12x12xf32>
    %c0_10 = arith.constant 0 : index
    %206 = memref.load %arg3[%c0_10] : memref<144xf32, #tpu.memory_space<smem>>
    %207 = vector.broadcast %206 : f32 to vector<2x12x12xf32>
    %208 = arith.mulf %170, %207 : vector<2x12x12xf32>
    %c1_11 = arith.constant 1 : index
    %209 = memref.load %arg3[%c1_11] : memref<144xf32, #tpu.memory_space<smem>>
    %210 = vector.broadcast %209 : f32 to vector<2x12x12xf32>
    %211 = arith.mulf %171, %210 : vector<2x12x12xf32>
    %c2_12 = arith.constant 2 : index
    %212 = memref.load %arg3[%c2_12] : memref<144xf32, #tpu.memory_space<smem>>
    %213 = vector.broadcast %212 : f32 to vector<2x12x12xf32>
    %214 = arith.mulf %172, %213 : vector<2x12x12xf32>
    %c3_13 = arith.constant 3 : index
    %215 = memref.load %arg3[%c3_13] : memref<144xf32, #tpu.memory_space<smem>>
    %216 = vector.broadcast %215 : f32 to vector<2x12x12xf32>
    %217 = arith.mulf %173, %216 : vector<2x12x12xf32>
    %c4_14 = arith.constant 4 : index
    %218 = memref.load %arg3[%c4_14] : memref<144xf32, #tpu.memory_space<smem>>
    %219 = vector.broadcast %218 : f32 to vector<2x12x12xf32>
    %220 = arith.mulf %174, %219 : vector<2x12x12xf32>
    %c5_15 = arith.constant 5 : index
    %221 = memref.load %arg3[%c5_15] : memref<144xf32, #tpu.memory_space<smem>>
    %222 = vector.broadcast %221 : f32 to vector<2x12x12xf32>
    %223 = arith.mulf %175, %222 : vector<2x12x12xf32>
    %c6_16 = arith.constant 6 : index
    %224 = memref.load %arg3[%c6_16] : memref<144xf32, #tpu.memory_space<smem>>
    %225 = vector.broadcast %224 : f32 to vector<2x12x12xf32>
    %226 = arith.mulf %176, %225 : vector<2x12x12xf32>
    %c7_17 = arith.constant 7 : index
    %227 = memref.load %arg3[%c7_17] : memref<144xf32, #tpu.memory_space<smem>>
    %228 = vector.broadcast %227 : f32 to vector<2x12x12xf32>
    %229 = arith.mulf %177, %228 : vector<2x12x12xf32>
    %c8_18 = arith.constant 8 : index
    %230 = memref.load %arg3[%c8_18] : memref<144xf32, #tpu.memory_space<smem>>
    %231 = vector.broadcast %230 : f32 to vector<2x12x12xf32>
    %232 = arith.mulf %178, %231 : vector<2x12x12xf32>
    %c9_19 = arith.constant 9 : index
    %233 = memref.load %arg3[%c9_19] : memref<144xf32, #tpu.memory_space<smem>>
    %234 = vector.broadcast %233 : f32 to vector<2x12x12xf32>
    %235 = arith.mulf %179, %234 : vector<2x12x12xf32>
    %c10_20 = arith.constant 10 : index
    %236 = memref.load %arg3[%c10_20] : memref<144xf32, #tpu.memory_space<smem>>
    %237 = vector.broadcast %236 : f32 to vector<2x12x12xf32>
    %238 = arith.mulf %180, %237 : vector<2x12x12xf32>
    %c11_21 = arith.constant 11 : index
    %239 = memref.load %arg3[%c11_21] : memref<144xf32, #tpu.memory_space<smem>>
    %240 = vector.broadcast %239 : f32 to vector<2x12x12xf32>
    %241 = arith.mulf %181, %240 : vector<2x12x12xf32>
    %c12_22 = arith.constant 12 : index
    %242 = memref.load %arg3[%c12_22] : memref<144xf32, #tpu.memory_space<smem>>
    %243 = vector.broadcast %242 : f32 to vector<2x12x12xf32>
    %244 = arith.mulf %182, %243 : vector<2x12x12xf32>
    %c13_23 = arith.constant 13 : index
    %245 = memref.load %arg3[%c13_23] : memref<144xf32, #tpu.memory_space<smem>>
    %246 = vector.broadcast %245 : f32 to vector<2x12x12xf32>
    %247 = arith.mulf %183, %246 : vector<2x12x12xf32>
    %c14_24 = arith.constant 14 : index
    %248 = memref.load %arg3[%c14_24] : memref<144xf32, #tpu.memory_space<smem>>
    %249 = vector.broadcast %248 : f32 to vector<2x12x12xf32>
    %250 = arith.mulf %184, %249 : vector<2x12x12xf32>
    %c15_25 = arith.constant 15 : index
    %251 = memref.load %arg3[%c15_25] : memref<144xf32, #tpu.memory_space<smem>>
    %252 = vector.broadcast %251 : f32 to vector<2x12x12xf32>
    %253 = arith.mulf %185, %252 : vector<2x12x12xf32>
    %c16_26 = arith.constant 16 : index
    %254 = memref.load %arg3[%c16_26] : memref<144xf32, #tpu.memory_space<smem>>
    %255 = vector.broadcast %254 : f32 to vector<2x12x12xf32>
    %256 = arith.mulf %186, %255 : vector<2x12x12xf32>
    %c17_27 = arith.constant 17 : index
    %257 = memref.load %arg3[%c17_27] : memref<144xf32, #tpu.memory_space<smem>>
    %258 = vector.broadcast %257 : f32 to vector<2x12x12xf32>
    %259 = arith.mulf %187, %258 : vector<2x12x12xf32>
    %c18_28 = arith.constant 18 : index
    %260 = memref.load %arg3[%c18_28] : memref<144xf32, #tpu.memory_space<smem>>
    %261 = vector.broadcast %260 : f32 to vector<2x12x12xf32>
    %262 = arith.mulf %188, %261 : vector<2x12x12xf32>
    %c19_29 = arith.constant 19 : index
    %263 = memref.load %arg3[%c19_29] : memref<144xf32, #tpu.memory_space<smem>>
    %264 = vector.broadcast %263 : f32 to vector<2x12x12xf32>
    %265 = arith.mulf %189, %264 : vector<2x12x12xf32>
    %c20_30 = arith.constant 20 : index
    %266 = memref.load %arg3[%c20_30] : memref<144xf32, #tpu.memory_space<smem>>
    %267 = vector.broadcast %266 : f32 to vector<2x12x12xf32>
    %268 = arith.mulf %190, %267 : vector<2x12x12xf32>
    %c21_31 = arith.constant 21 : index
    %269 = memref.load %arg3[%c21_31] : memref<144xf32, #tpu.memory_space<smem>>
    %270 = vector.broadcast %269 : f32 to vector<2x12x12xf32>
    %271 = arith.mulf %191, %270 : vector<2x12x12xf32>
    %c22_32 = arith.constant 22 : index
    %272 = memref.load %arg3[%c22_32] : memref<144xf32, #tpu.memory_space<smem>>
    %273 = vector.broadcast %272 : f32 to vector<2x12x12xf32>
    %274 = arith.mulf %192, %273 : vector<2x12x12xf32>
    %c23_33 = arith.constant 23 : index
    %275 = memref.load %arg3[%c23_33] : memref<144xf32, #tpu.memory_space<smem>>
    %276 = vector.broadcast %275 : f32 to vector<2x12x12xf32>
    %277 = arith.mulf %193, %276 : vector<2x12x12xf32>
    %c24_34 = arith.constant 24 : index
    %278 = memref.load %arg3[%c24_34] : memref<144xf32, #tpu.memory_space<smem>>
    %279 = vector.broadcast %278 : f32 to vector<2x12x12xf32>
    %280 = arith.mulf %194, %279 : vector<2x12x12xf32>
    %c25_35 = arith.constant 25 : index
    %281 = memref.load %arg3[%c25_35] : memref<144xf32, #tpu.memory_space<smem>>
    %282 = vector.broadcast %281 : f32 to vector<2x12x12xf32>
    %283 = arith.mulf %195, %282 : vector<2x12x12xf32>
    %c26_36 = arith.constant 26 : index
    %284 = memref.load %arg3[%c26_36] : memref<144xf32, #tpu.memory_space<smem>>
    %285 = vector.broadcast %284 : f32 to vector<2x12x12xf32>
    %286 = arith.mulf %196, %285 : vector<2x12x12xf32>
    %c27_37 = arith.constant 27 : index
    %287 = memref.load %arg3[%c27_37] : memref<144xf32, #tpu.memory_space<smem>>
    %288 = vector.broadcast %287 : f32 to vector<2x12x12xf32>
    %289 = arith.mulf %197, %288 : vector<2x12x12xf32>
    %c28_38 = arith.constant 28 : index
    %290 = memref.load %arg3[%c28_38] : memref<144xf32, #tpu.memory_space<smem>>
    %291 = vector.broadcast %290 : f32 to vector<2x12x12xf32>
    %292 = arith.mulf %198, %291 : vector<2x12x12xf32>
    %c29_39 = arith.constant 29 : index
    %293 = memref.load %arg3[%c29_39] : memref<144xf32, #tpu.memory_space<smem>>
    %294 = vector.broadcast %293 : f32 to vector<2x12x12xf32>
    %295 = arith.mulf %199, %294 : vector<2x12x12xf32>
    %c30_40 = arith.constant 30 : index
    %296 = memref.load %arg3[%c30_40] : memref<144xf32, #tpu.memory_space<smem>>
    %297 = vector.broadcast %296 : f32 to vector<2x12x12xf32>
    %298 = arith.mulf %200, %297 : vector<2x12x12xf32>
    %c31_41 = arith.constant 31 : index
    %299 = memref.load %arg3[%c31_41] : memref<144xf32, #tpu.memory_space<smem>>
    %300 = vector.broadcast %299 : f32 to vector<2x12x12xf32>
    %301 = arith.mulf %201, %300 : vector<2x12x12xf32>
    %c32_42 = arith.constant 32 : index
    %302 = memref.load %arg3[%c32_42] : memref<144xf32, #tpu.memory_space<smem>>
    %303 = vector.broadcast %302 : f32 to vector<2x12x12xf32>
    %304 = arith.mulf %202, %303 : vector<2x12x12xf32>
    %c33_43 = arith.constant 33 : index
    %305 = memref.load %arg3[%c33_43] : memref<144xf32, #tpu.memory_space<smem>>
    %306 = vector.broadcast %305 : f32 to vector<2x12x12xf32>
    %307 = arith.mulf %203, %306 : vector<2x12x12xf32>
    %c34_44 = arith.constant 34 : index
    %308 = memref.load %arg3[%c34_44] : memref<144xf32, #tpu.memory_space<smem>>
    %309 = vector.broadcast %308 : f32 to vector<2x12x12xf32>
    %310 = arith.mulf %204, %309 : vector<2x12x12xf32>
    %c35_45 = arith.constant 35 : index
    %311 = memref.load %arg3[%c35_45] : memref<144xf32, #tpu.memory_space<smem>>
    %312 = vector.broadcast %311 : f32 to vector<2x12x12xf32>
    %313 = arith.mulf %205, %312 : vector<2x12x12xf32>
    %314 = arith.addf %208, %211 : vector<2x12x12xf32>
    %315 = arith.addf %214, %217 : vector<2x12x12xf32>
    %316 = arith.addf %220, %223 : vector<2x12x12xf32>
    %317 = arith.addf %226, %229 : vector<2x12x12xf32>
    %318 = arith.addf %232, %235 : vector<2x12x12xf32>
    %319 = arith.addf %238, %241 : vector<2x12x12xf32>
    %320 = arith.addf %244, %247 : vector<2x12x12xf32>
    %321 = arith.addf %250, %253 : vector<2x12x12xf32>
    %322 = arith.addf %256, %259 : vector<2x12x12xf32>
    %323 = arith.addf %262, %265 : vector<2x12x12xf32>
    %324 = arith.addf %268, %271 : vector<2x12x12xf32>
    %325 = arith.addf %274, %277 : vector<2x12x12xf32>
    %326 = arith.addf %280, %283 : vector<2x12x12xf32>
    %327 = arith.addf %286, %289 : vector<2x12x12xf32>
    %328 = arith.addf %292, %295 : vector<2x12x12xf32>
    %329 = arith.addf %298, %301 : vector<2x12x12xf32>
    %330 = arith.addf %304, %307 : vector<2x12x12xf32>
    %331 = arith.addf %310, %313 : vector<2x12x12xf32>
    %332 = arith.addf %314, %315 : vector<2x12x12xf32>
    %333 = arith.addf %316, %317 : vector<2x12x12xf32>
    %334 = arith.addf %318, %319 : vector<2x12x12xf32>
    %335 = arith.addf %320, %321 : vector<2x12x12xf32>
    %336 = arith.addf %322, %323 : vector<2x12x12xf32>
    %337 = arith.addf %324, %325 : vector<2x12x12xf32>
    %338 = arith.addf %326, %327 : vector<2x12x12xf32>
    %339 = arith.addf %328, %329 : vector<2x12x12xf32>
    %340 = arith.addf %330, %331 : vector<2x12x12xf32>
    %341 = arith.addf %332, %333 : vector<2x12x12xf32>
    %342 = arith.addf %334, %335 : vector<2x12x12xf32>
    %343 = arith.addf %336, %337 : vector<2x12x12xf32>
    %344 = arith.addf %338, %339 : vector<2x12x12xf32>
    %345 = arith.addf %341, %342 : vector<2x12x12xf32>
    %346 = arith.addf %343, %344 : vector<2x12x12xf32>
    %347 = arith.addf %345, %346 : vector<2x12x12xf32>
    %348 = arith.addf %347, %340 : vector<2x12x12xf32>
    %c0_46 = arith.constant 0 : index
    %349 = memref.load %arg4[%c0_46] : memref<4xf32, #tpu.memory_space<smem>>
    %350 = vector.broadcast %349 : f32 to vector<2x12x12xf32>
    %351 = arith.addf %348, %350 : vector<2x12x12xf32>
    %cst_47 = arith.constant 0.000000e+00 : f32
    %352 = vector.broadcast %cst_47 : f32 to vector<2x12x12xf32>
    %353 = arith.maximumf %351, %352 : vector<2x12x12xf32>
    %c36 = arith.constant 36 : index
    %354 = memref.load %arg3[%c36] : memref<144xf32, #tpu.memory_space<smem>>
    %355 = vector.broadcast %354 : f32 to vector<2x12x12xf32>
    %356 = arith.mulf %170, %355 : vector<2x12x12xf32>
    %c37 = arith.constant 37 : index
    %357 = memref.load %arg3[%c37] : memref<144xf32, #tpu.memory_space<smem>>
    %358 = vector.broadcast %357 : f32 to vector<2x12x12xf32>
    %359 = arith.mulf %171, %358 : vector<2x12x12xf32>
    %c38 = arith.constant 38 : index
    %360 = memref.load %arg3[%c38] : memref<144xf32, #tpu.memory_space<smem>>
    %361 = vector.broadcast %360 : f32 to vector<2x12x12xf32>
    %362 = arith.mulf %172, %361 : vector<2x12x12xf32>
    %c39 = arith.constant 39 : index
    %363 = memref.load %arg3[%c39] : memref<144xf32, #tpu.memory_space<smem>>
    %364 = vector.broadcast %363 : f32 to vector<2x12x12xf32>
    %365 = arith.mulf %173, %364 : vector<2x12x12xf32>
    %c40 = arith.constant 40 : index
    %366 = memref.load %arg3[%c40] : memref<144xf32, #tpu.memory_space<smem>>
    %367 = vector.broadcast %366 : f32 to vector<2x12x12xf32>
    %368 = arith.mulf %174, %367 : vector<2x12x12xf32>
    %c41 = arith.constant 41 : index
    %369 = memref.load %arg3[%c41] : memref<144xf32, #tpu.memory_space<smem>>
    %370 = vector.broadcast %369 : f32 to vector<2x12x12xf32>
    %371 = arith.mulf %175, %370 : vector<2x12x12xf32>
    %c42 = arith.constant 42 : index
    %372 = memref.load %arg3[%c42] : memref<144xf32, #tpu.memory_space<smem>>
    %373 = vector.broadcast %372 : f32 to vector<2x12x12xf32>
    %374 = arith.mulf %176, %373 : vector<2x12x12xf32>
    %c43 = arith.constant 43 : index
    %375 = memref.load %arg3[%c43] : memref<144xf32, #tpu.memory_space<smem>>
    %376 = vector.broadcast %375 : f32 to vector<2x12x12xf32>
    %377 = arith.mulf %177, %376 : vector<2x12x12xf32>
    %c44 = arith.constant 44 : index
    %378 = memref.load %arg3[%c44] : memref<144xf32, #tpu.memory_space<smem>>
    %379 = vector.broadcast %378 : f32 to vector<2x12x12xf32>
    %380 = arith.mulf %178, %379 : vector<2x12x12xf32>
    %c45 = arith.constant 45 : index
    %381 = memref.load %arg3[%c45] : memref<144xf32, #tpu.memory_space<smem>>
    %382 = vector.broadcast %381 : f32 to vector<2x12x12xf32>
    %383 = arith.mulf %179, %382 : vector<2x12x12xf32>
    %c46 = arith.constant 46 : index
    %384 = memref.load %arg3[%c46] : memref<144xf32, #tpu.memory_space<smem>>
    %385 = vector.broadcast %384 : f32 to vector<2x12x12xf32>
    %386 = arith.mulf %180, %385 : vector<2x12x12xf32>
    %c47 = arith.constant 47 : index
    %387 = memref.load %arg3[%c47] : memref<144xf32, #tpu.memory_space<smem>>
    %388 = vector.broadcast %387 : f32 to vector<2x12x12xf32>
    %389 = arith.mulf %181, %388 : vector<2x12x12xf32>
    %c48 = arith.constant 48 : index
    %390 = memref.load %arg3[%c48] : memref<144xf32, #tpu.memory_space<smem>>
    %391 = vector.broadcast %390 : f32 to vector<2x12x12xf32>
    %392 = arith.mulf %182, %391 : vector<2x12x12xf32>
    %c49 = arith.constant 49 : index
    %393 = memref.load %arg3[%c49] : memref<144xf32, #tpu.memory_space<smem>>
    %394 = vector.broadcast %393 : f32 to vector<2x12x12xf32>
    %395 = arith.mulf %183, %394 : vector<2x12x12xf32>
    %c50 = arith.constant 50 : index
    %396 = memref.load %arg3[%c50] : memref<144xf32, #tpu.memory_space<smem>>
    %397 = vector.broadcast %396 : f32 to vector<2x12x12xf32>
    %398 = arith.mulf %184, %397 : vector<2x12x12xf32>
    %c51 = arith.constant 51 : index
    %399 = memref.load %arg3[%c51] : memref<144xf32, #tpu.memory_space<smem>>
    %400 = vector.broadcast %399 : f32 to vector<2x12x12xf32>
    %401 = arith.mulf %185, %400 : vector<2x12x12xf32>
    %c52 = arith.constant 52 : index
    %402 = memref.load %arg3[%c52] : memref<144xf32, #tpu.memory_space<smem>>
    %403 = vector.broadcast %402 : f32 to vector<2x12x12xf32>
    %404 = arith.mulf %186, %403 : vector<2x12x12xf32>
    %c53 = arith.constant 53 : index
    %405 = memref.load %arg3[%c53] : memref<144xf32, #tpu.memory_space<smem>>
    %406 = vector.broadcast %405 : f32 to vector<2x12x12xf32>
    %407 = arith.mulf %187, %406 : vector<2x12x12xf32>
    %c54 = arith.constant 54 : index
    %408 = memref.load %arg3[%c54] : memref<144xf32, #tpu.memory_space<smem>>
    %409 = vector.broadcast %408 : f32 to vector<2x12x12xf32>
    %410 = arith.mulf %188, %409 : vector<2x12x12xf32>
    %c55 = arith.constant 55 : index
    %411 = memref.load %arg3[%c55] : memref<144xf32, #tpu.memory_space<smem>>
    %412 = vector.broadcast %411 : f32 to vector<2x12x12xf32>
    %413 = arith.mulf %189, %412 : vector<2x12x12xf32>
    %c56 = arith.constant 56 : index
    %414 = memref.load %arg3[%c56] : memref<144xf32, #tpu.memory_space<smem>>
    %415 = vector.broadcast %414 : f32 to vector<2x12x12xf32>
    %416 = arith.mulf %190, %415 : vector<2x12x12xf32>
    %c57 = arith.constant 57 : index
    %417 = memref.load %arg3[%c57] : memref<144xf32, #tpu.memory_space<smem>>
    %418 = vector.broadcast %417 : f32 to vector<2x12x12xf32>
    %419 = arith.mulf %191, %418 : vector<2x12x12xf32>
    %c58 = arith.constant 58 : index
    %420 = memref.load %arg3[%c58] : memref<144xf32, #tpu.memory_space<smem>>
    %421 = vector.broadcast %420 : f32 to vector<2x12x12xf32>
    %422 = arith.mulf %192, %421 : vector<2x12x12xf32>
    %c59 = arith.constant 59 : index
    %423 = memref.load %arg3[%c59] : memref<144xf32, #tpu.memory_space<smem>>
    %424 = vector.broadcast %423 : f32 to vector<2x12x12xf32>
    %425 = arith.mulf %193, %424 : vector<2x12x12xf32>
    %c60 = arith.constant 60 : index
    %426 = memref.load %arg3[%c60] : memref<144xf32, #tpu.memory_space<smem>>
    %427 = vector.broadcast %426 : f32 to vector<2x12x12xf32>
    %428 = arith.mulf %194, %427 : vector<2x12x12xf32>
    %c61 = arith.constant 61 : index
    %429 = memref.load %arg3[%c61] : memref<144xf32, #tpu.memory_space<smem>>
    %430 = vector.broadcast %429 : f32 to vector<2x12x12xf32>
    %431 = arith.mulf %195, %430 : vector<2x12x12xf32>
    %c62 = arith.constant 62 : index
    %432 = memref.load %arg3[%c62] : memref<144xf32, #tpu.memory_space<smem>>
    %433 = vector.broadcast %432 : f32 to vector<2x12x12xf32>
    %434 = arith.mulf %196, %433 : vector<2x12x12xf32>
    %c63 = arith.constant 63 : index
    %435 = memref.load %arg3[%c63] : memref<144xf32, #tpu.memory_space<smem>>
    %436 = vector.broadcast %435 : f32 to vector<2x12x12xf32>
    %437 = arith.mulf %197, %436 : vector<2x12x12xf32>
    %c64 = arith.constant 64 : index
    %438 = memref.load %arg3[%c64] : memref<144xf32, #tpu.memory_space<smem>>
    %439 = vector.broadcast %438 : f32 to vector<2x12x12xf32>
    %440 = arith.mulf %198, %439 : vector<2x12x12xf32>
    %c65 = arith.constant 65 : index
    %441 = memref.load %arg3[%c65] : memref<144xf32, #tpu.memory_space<smem>>
    %442 = vector.broadcast %441 : f32 to vector<2x12x12xf32>
    %443 = arith.mulf %199, %442 : vector<2x12x12xf32>
    %c66 = arith.constant 66 : index
    %444 = memref.load %arg3[%c66] : memref<144xf32, #tpu.memory_space<smem>>
    %445 = vector.broadcast %444 : f32 to vector<2x12x12xf32>
    %446 = arith.mulf %200, %445 : vector<2x12x12xf32>
    %c67 = arith.constant 67 : index
    %447 = memref.load %arg3[%c67] : memref<144xf32, #tpu.memory_space<smem>>
    %448 = vector.broadcast %447 : f32 to vector<2x12x12xf32>
    %449 = arith.mulf %201, %448 : vector<2x12x12xf32>
    %c68 = arith.constant 68 : index
    %450 = memref.load %arg3[%c68] : memref<144xf32, #tpu.memory_space<smem>>
    %451 = vector.broadcast %450 : f32 to vector<2x12x12xf32>
    %452 = arith.mulf %202, %451 : vector<2x12x12xf32>
    %c69 = arith.constant 69 : index
    %453 = memref.load %arg3[%c69] : memref<144xf32, #tpu.memory_space<smem>>
    %454 = vector.broadcast %453 : f32 to vector<2x12x12xf32>
    %455 = arith.mulf %203, %454 : vector<2x12x12xf32>
    %c70 = arith.constant 70 : index
    %456 = memref.load %arg3[%c70] : memref<144xf32, #tpu.memory_space<smem>>
    %457 = vector.broadcast %456 : f32 to vector<2x12x12xf32>
    %458 = arith.mulf %204, %457 : vector<2x12x12xf32>
    %c71 = arith.constant 71 : index
    %459 = memref.load %arg3[%c71] : memref<144xf32, #tpu.memory_space<smem>>
    %460 = vector.broadcast %459 : f32 to vector<2x12x12xf32>
    %461 = arith.mulf %205, %460 : vector<2x12x12xf32>
    %462 = arith.addf %356, %359 : vector<2x12x12xf32>
    %463 = arith.addf %362, %365 : vector<2x12x12xf32>
    %464 = arith.addf %368, %371 : vector<2x12x12xf32>
    %465 = arith.addf %374, %377 : vector<2x12x12xf32>
    %466 = arith.addf %380, %383 : vector<2x12x12xf32>
    %467 = arith.addf %386, %389 : vector<2x12x12xf32>
    %468 = arith.addf %392, %395 : vector<2x12x12xf32>
    %469 = arith.addf %398, %401 : vector<2x12x12xf32>
    %470 = arith.addf %404, %407 : vector<2x12x12xf32>
    %471 = arith.addf %410, %413 : vector<2x12x12xf32>
    %472 = arith.addf %416, %419 : vector<2x12x12xf32>
    %473 = arith.addf %422, %425 : vector<2x12x12xf32>
    %474 = arith.addf %428, %431 : vector<2x12x12xf32>
    %475 = arith.addf %434, %437 : vector<2x12x12xf32>
    %476 = arith.addf %440, %443 : vector<2x12x12xf32>
    %477 = arith.addf %446, %449 : vector<2x12x12xf32>
    %478 = arith.addf %452, %455 : vector<2x12x12xf32>
    %479 = arith.addf %458, %461 : vector<2x12x12xf32>
    %480 = arith.addf %462, %463 : vector<2x12x12xf32>
    %481 = arith.addf %464, %465 : vector<2x12x12xf32>
    %482 = arith.addf %466, %467 : vector<2x12x12xf32>
    %483 = arith.addf %468, %469 : vector<2x12x12xf32>
    %484 = arith.addf %470, %471 : vector<2x12x12xf32>
    %485 = arith.addf %472, %473 : vector<2x12x12xf32>
    %486 = arith.addf %474, %475 : vector<2x12x12xf32>
    %487 = arith.addf %476, %477 : vector<2x12x12xf32>
    %488 = arith.addf %478, %479 : vector<2x12x12xf32>
    %489 = arith.addf %480, %481 : vector<2x12x12xf32>
    %490 = arith.addf %482, %483 : vector<2x12x12xf32>
    %491 = arith.addf %484, %485 : vector<2x12x12xf32>
    %492 = arith.addf %486, %487 : vector<2x12x12xf32>
    %493 = arith.addf %489, %490 : vector<2x12x12xf32>
    %494 = arith.addf %491, %492 : vector<2x12x12xf32>
    %495 = arith.addf %493, %494 : vector<2x12x12xf32>
    %496 = arith.addf %495, %488 : vector<2x12x12xf32>
    %c1_48 = arith.constant 1 : index
    %497 = memref.load %arg4[%c1_48] : memref<4xf32, #tpu.memory_space<smem>>
    %498 = vector.broadcast %497 : f32 to vector<2x12x12xf32>
    %499 = arith.addf %496, %498 : vector<2x12x12xf32>
    %cst_49 = arith.constant 0.000000e+00 : f32
    %500 = vector.broadcast %cst_49 : f32 to vector<2x12x12xf32>
    %501 = arith.maximumf %499, %500 : vector<2x12x12xf32>
    %c72 = arith.constant 72 : index
    %502 = memref.load %arg3[%c72] : memref<144xf32, #tpu.memory_space<smem>>
    %503 = vector.broadcast %502 : f32 to vector<2x12x12xf32>
    %504 = arith.mulf %170, %503 : vector<2x12x12xf32>
    %c73 = arith.constant 73 : index
    %505 = memref.load %arg3[%c73] : memref<144xf32, #tpu.memory_space<smem>>
    %506 = vector.broadcast %505 : f32 to vector<2x12x12xf32>
    %507 = arith.mulf %171, %506 : vector<2x12x12xf32>
    %c74 = arith.constant 74 : index
    %508 = memref.load %arg3[%c74] : memref<144xf32, #tpu.memory_space<smem>>
    %509 = vector.broadcast %508 : f32 to vector<2x12x12xf32>
    %510 = arith.mulf %172, %509 : vector<2x12x12xf32>
    %c75 = arith.constant 75 : index
    %511 = memref.load %arg3[%c75] : memref<144xf32, #tpu.memory_space<smem>>
    %512 = vector.broadcast %511 : f32 to vector<2x12x12xf32>
    %513 = arith.mulf %173, %512 : vector<2x12x12xf32>
    %c76 = arith.constant 76 : index
    %514 = memref.load %arg3[%c76] : memref<144xf32, #tpu.memory_space<smem>>
    %515 = vector.broadcast %514 : f32 to vector<2x12x12xf32>
    %516 = arith.mulf %174, %515 : vector<2x12x12xf32>
    %c77 = arith.constant 77 : index
    %517 = memref.load %arg3[%c77] : memref<144xf32, #tpu.memory_space<smem>>
    %518 = vector.broadcast %517 : f32 to vector<2x12x12xf32>
    %519 = arith.mulf %175, %518 : vector<2x12x12xf32>
    %c78 = arith.constant 78 : index
    %520 = memref.load %arg3[%c78] : memref<144xf32, #tpu.memory_space<smem>>
    %521 = vector.broadcast %520 : f32 to vector<2x12x12xf32>
    %522 = arith.mulf %176, %521 : vector<2x12x12xf32>
    %c79 = arith.constant 79 : index
    %523 = memref.load %arg3[%c79] : memref<144xf32, #tpu.memory_space<smem>>
    %524 = vector.broadcast %523 : f32 to vector<2x12x12xf32>
    %525 = arith.mulf %177, %524 : vector<2x12x12xf32>
    %c80 = arith.constant 80 : index
    %526 = memref.load %arg3[%c80] : memref<144xf32, #tpu.memory_space<smem>>
    %527 = vector.broadcast %526 : f32 to vector<2x12x12xf32>
    %528 = arith.mulf %178, %527 : vector<2x12x12xf32>
    %c81 = arith.constant 81 : index
    %529 = memref.load %arg3[%c81] : memref<144xf32, #tpu.memory_space<smem>>
    %530 = vector.broadcast %529 : f32 to vector<2x12x12xf32>
    %531 = arith.mulf %179, %530 : vector<2x12x12xf32>
    %c82 = arith.constant 82 : index
    %532 = memref.load %arg3[%c82] : memref<144xf32, #tpu.memory_space<smem>>
    %533 = vector.broadcast %532 : f32 to vector<2x12x12xf32>
    %534 = arith.mulf %180, %533 : vector<2x12x12xf32>
    %c83 = arith.constant 83 : index
    %535 = memref.load %arg3[%c83] : memref<144xf32, #tpu.memory_space<smem>>
    %536 = vector.broadcast %535 : f32 to vector<2x12x12xf32>
    %537 = arith.mulf %181, %536 : vector<2x12x12xf32>
    %c84 = arith.constant 84 : index
    %538 = memref.load %arg3[%c84] : memref<144xf32, #tpu.memory_space<smem>>
    %539 = vector.broadcast %538 : f32 to vector<2x12x12xf32>
    %540 = arith.mulf %182, %539 : vector<2x12x12xf32>
    %c85 = arith.constant 85 : index
    %541 = memref.load %arg3[%c85] : memref<144xf32, #tpu.memory_space<smem>>
    %542 = vector.broadcast %541 : f32 to vector<2x12x12xf32>
    %543 = arith.mulf %183, %542 : vector<2x12x12xf32>
    %c86 = arith.constant 86 : index
    %544 = memref.load %arg3[%c86] : memref<144xf32, #tpu.memory_space<smem>>
    %545 = vector.broadcast %544 : f32 to vector<2x12x12xf32>
    %546 = arith.mulf %184, %545 : vector<2x12x12xf32>
    %c87 = arith.constant 87 : index
    %547 = memref.load %arg3[%c87] : memref<144xf32, #tpu.memory_space<smem>>
    %548 = vector.broadcast %547 : f32 to vector<2x12x12xf32>
    %549 = arith.mulf %185, %548 : vector<2x12x12xf32>
    %c88 = arith.constant 88 : index
    %550 = memref.load %arg3[%c88] : memref<144xf32, #tpu.memory_space<smem>>
    %551 = vector.broadcast %550 : f32 to vector<2x12x12xf32>
    %552 = arith.mulf %186, %551 : vector<2x12x12xf32>
    %c89 = arith.constant 89 : index
    %553 = memref.load %arg3[%c89] : memref<144xf32, #tpu.memory_space<smem>>
    %554 = vector.broadcast %553 : f32 to vector<2x12x12xf32>
    %555 = arith.mulf %187, %554 : vector<2x12x12xf32>
    %c90 = arith.constant 90 : index
    %556 = memref.load %arg3[%c90] : memref<144xf32, #tpu.memory_space<smem>>
    %557 = vector.broadcast %556 : f32 to vector<2x12x12xf32>
    %558 = arith.mulf %188, %557 : vector<2x12x12xf32>
    %c91 = arith.constant 91 : index
    %559 = memref.load %arg3[%c91] : memref<144xf32, #tpu.memory_space<smem>>
    %560 = vector.broadcast %559 : f32 to vector<2x12x12xf32>
    %561 = arith.mulf %189, %560 : vector<2x12x12xf32>
    %c92 = arith.constant 92 : index
    %562 = memref.load %arg3[%c92] : memref<144xf32, #tpu.memory_space<smem>>
    %563 = vector.broadcast %562 : f32 to vector<2x12x12xf32>
    %564 = arith.mulf %190, %563 : vector<2x12x12xf32>
    %c93 = arith.constant 93 : index
    %565 = memref.load %arg3[%c93] : memref<144xf32, #tpu.memory_space<smem>>
    %566 = vector.broadcast %565 : f32 to vector<2x12x12xf32>
    %567 = arith.mulf %191, %566 : vector<2x12x12xf32>
    %c94 = arith.constant 94 : index
    %568 = memref.load %arg3[%c94] : memref<144xf32, #tpu.memory_space<smem>>
    %569 = vector.broadcast %568 : f32 to vector<2x12x12xf32>
    %570 = arith.mulf %192, %569 : vector<2x12x12xf32>
    %c95 = arith.constant 95 : index
    %571 = memref.load %arg3[%c95] : memref<144xf32, #tpu.memory_space<smem>>
    %572 = vector.broadcast %571 : f32 to vector<2x12x12xf32>
    %573 = arith.mulf %193, %572 : vector<2x12x12xf32>
    %c96 = arith.constant 96 : index
    %574 = memref.load %arg3[%c96] : memref<144xf32, #tpu.memory_space<smem>>
    %575 = vector.broadcast %574 : f32 to vector<2x12x12xf32>
    %576 = arith.mulf %194, %575 : vector<2x12x12xf32>
    %c97 = arith.constant 97 : index
    %577 = memref.load %arg3[%c97] : memref<144xf32, #tpu.memory_space<smem>>
    %578 = vector.broadcast %577 : f32 to vector<2x12x12xf32>
    %579 = arith.mulf %195, %578 : vector<2x12x12xf32>
    %c98 = arith.constant 98 : index
    %580 = memref.load %arg3[%c98] : memref<144xf32, #tpu.memory_space<smem>>
    %581 = vector.broadcast %580 : f32 to vector<2x12x12xf32>
    %582 = arith.mulf %196, %581 : vector<2x12x12xf32>
    %c99 = arith.constant 99 : index
    %583 = memref.load %arg3[%c99] : memref<144xf32, #tpu.memory_space<smem>>
    %584 = vector.broadcast %583 : f32 to vector<2x12x12xf32>
    %585 = arith.mulf %197, %584 : vector<2x12x12xf32>
    %c100 = arith.constant 100 : index
    %586 = memref.load %arg3[%c100] : memref<144xf32, #tpu.memory_space<smem>>
    %587 = vector.broadcast %586 : f32 to vector<2x12x12xf32>
    %588 = arith.mulf %198, %587 : vector<2x12x12xf32>
    %c101 = arith.constant 101 : index
    %589 = memref.load %arg3[%c101] : memref<144xf32, #tpu.memory_space<smem>>
    %590 = vector.broadcast %589 : f32 to vector<2x12x12xf32>
    %591 = arith.mulf %199, %590 : vector<2x12x12xf32>
    %c102 = arith.constant 102 : index
    %592 = memref.load %arg3[%c102] : memref<144xf32, #tpu.memory_space<smem>>
    %593 = vector.broadcast %592 : f32 to vector<2x12x12xf32>
    %594 = arith.mulf %200, %593 : vector<2x12x12xf32>
    %c103 = arith.constant 103 : index
    %595 = memref.load %arg3[%c103] : memref<144xf32, #tpu.memory_space<smem>>
    %596 = vector.broadcast %595 : f32 to vector<2x12x12xf32>
    %597 = arith.mulf %201, %596 : vector<2x12x12xf32>
    %c104 = arith.constant 104 : index
    %598 = memref.load %arg3[%c104] : memref<144xf32, #tpu.memory_space<smem>>
    %599 = vector.broadcast %598 : f32 to vector<2x12x12xf32>
    %600 = arith.mulf %202, %599 : vector<2x12x12xf32>
    %c105 = arith.constant 105 : index
    %601 = memref.load %arg3[%c105] : memref<144xf32, #tpu.memory_space<smem>>
    %602 = vector.broadcast %601 : f32 to vector<2x12x12xf32>
    %603 = arith.mulf %203, %602 : vector<2x12x12xf32>
    %c106 = arith.constant 106 : index
    %604 = memref.load %arg3[%c106] : memref<144xf32, #tpu.memory_space<smem>>
    %605 = vector.broadcast %604 : f32 to vector<2x12x12xf32>
    %606 = arith.mulf %204, %605 : vector<2x12x12xf32>
    %c107 = arith.constant 107 : index
    %607 = memref.load %arg3[%c107] : memref<144xf32, #tpu.memory_space<smem>>
    %608 = vector.broadcast %607 : f32 to vector<2x12x12xf32>
    %609 = arith.mulf %205, %608 : vector<2x12x12xf32>
    %610 = arith.addf %504, %507 : vector<2x12x12xf32>
    %611 = arith.addf %510, %513 : vector<2x12x12xf32>
    %612 = arith.addf %516, %519 : vector<2x12x12xf32>
    %613 = arith.addf %522, %525 : vector<2x12x12xf32>
    %614 = arith.addf %528, %531 : vector<2x12x12xf32>
    %615 = arith.addf %534, %537 : vector<2x12x12xf32>
    %616 = arith.addf %540, %543 : vector<2x12x12xf32>
    %617 = arith.addf %546, %549 : vector<2x12x12xf32>
    %618 = arith.addf %552, %555 : vector<2x12x12xf32>
    %619 = arith.addf %558, %561 : vector<2x12x12xf32>
    %620 = arith.addf %564, %567 : vector<2x12x12xf32>
    %621 = arith.addf %570, %573 : vector<2x12x12xf32>
    %622 = arith.addf %576, %579 : vector<2x12x12xf32>
    %623 = arith.addf %582, %585 : vector<2x12x12xf32>
    %624 = arith.addf %588, %591 : vector<2x12x12xf32>
    %625 = arith.addf %594, %597 : vector<2x12x12xf32>
    %626 = arith.addf %600, %603 : vector<2x12x12xf32>
    %627 = arith.addf %606, %609 : vector<2x12x12xf32>
    %628 = arith.addf %610, %611 : vector<2x12x12xf32>
    %629 = arith.addf %612, %613 : vector<2x12x12xf32>
    %630 = arith.addf %614, %615 : vector<2x12x12xf32>
    %631 = arith.addf %616, %617 : vector<2x12x12xf32>
    %632 = arith.addf %618, %619 : vector<2x12x12xf32>
    %633 = arith.addf %620, %621 : vector<2x12x12xf32>
    %634 = arith.addf %622, %623 : vector<2x12x12xf32>
    %635 = arith.addf %624, %625 : vector<2x12x12xf32>
    %636 = arith.addf %626, %627 : vector<2x12x12xf32>
    %637 = arith.addf %628, %629 : vector<2x12x12xf32>
    %638 = arith.addf %630, %631 : vector<2x12x12xf32>
    %639 = arith.addf %632, %633 : vector<2x12x12xf32>
    %640 = arith.addf %634, %635 : vector<2x12x12xf32>
    %641 = arith.addf %637, %638 : vector<2x12x12xf32>
    %642 = arith.addf %639, %640 : vector<2x12x12xf32>
    %643 = arith.addf %641, %642 : vector<2x12x12xf32>
    %644 = arith.addf %643, %636 : vector<2x12x12xf32>
    %c2_50 = arith.constant 2 : index
    %645 = memref.load %arg4[%c2_50] : memref<4xf32, #tpu.memory_space<smem>>
    %646 = vector.broadcast %645 : f32 to vector<2x12x12xf32>
    %647 = arith.addf %644, %646 : vector<2x12x12xf32>
    %cst_51 = arith.constant 0.000000e+00 : f32
    %648 = vector.broadcast %cst_51 : f32 to vector<2x12x12xf32>
    %649 = arith.maximumf %647, %648 : vector<2x12x12xf32>
    %c108 = arith.constant 108 : index
    %650 = memref.load %arg3[%c108] : memref<144xf32, #tpu.memory_space<smem>>
    %651 = vector.broadcast %650 : f32 to vector<2x12x12xf32>
    %652 = arith.mulf %170, %651 : vector<2x12x12xf32>
    %c109 = arith.constant 109 : index
    %653 = memref.load %arg3[%c109] : memref<144xf32, #tpu.memory_space<smem>>
    %654 = vector.broadcast %653 : f32 to vector<2x12x12xf32>
    %655 = arith.mulf %171, %654 : vector<2x12x12xf32>
    %c110 = arith.constant 110 : index
    %656 = memref.load %arg3[%c110] : memref<144xf32, #tpu.memory_space<smem>>
    %657 = vector.broadcast %656 : f32 to vector<2x12x12xf32>
    %658 = arith.mulf %172, %657 : vector<2x12x12xf32>
    %c111 = arith.constant 111 : index
    %659 = memref.load %arg3[%c111] : memref<144xf32, #tpu.memory_space<smem>>
    %660 = vector.broadcast %659 : f32 to vector<2x12x12xf32>
    %661 = arith.mulf %173, %660 : vector<2x12x12xf32>
    %c112 = arith.constant 112 : index
    %662 = memref.load %arg3[%c112] : memref<144xf32, #tpu.memory_space<smem>>
    %663 = vector.broadcast %662 : f32 to vector<2x12x12xf32>
    %664 = arith.mulf %174, %663 : vector<2x12x12xf32>
    %c113 = arith.constant 113 : index
    %665 = memref.load %arg3[%c113] : memref<144xf32, #tpu.memory_space<smem>>
    %666 = vector.broadcast %665 : f32 to vector<2x12x12xf32>
    %667 = arith.mulf %175, %666 : vector<2x12x12xf32>
    %c114 = arith.constant 114 : index
    %668 = memref.load %arg3[%c114] : memref<144xf32, #tpu.memory_space<smem>>
    %669 = vector.broadcast %668 : f32 to vector<2x12x12xf32>
    %670 = arith.mulf %176, %669 : vector<2x12x12xf32>
    %c115 = arith.constant 115 : index
    %671 = memref.load %arg3[%c115] : memref<144xf32, #tpu.memory_space<smem>>
    %672 = vector.broadcast %671 : f32 to vector<2x12x12xf32>
    %673 = arith.mulf %177, %672 : vector<2x12x12xf32>
    %c116 = arith.constant 116 : index
    %674 = memref.load %arg3[%c116] : memref<144xf32, #tpu.memory_space<smem>>
    %675 = vector.broadcast %674 : f32 to vector<2x12x12xf32>
    %676 = arith.mulf %178, %675 : vector<2x12x12xf32>
    %c117 = arith.constant 117 : index
    %677 = memref.load %arg3[%c117] : memref<144xf32, #tpu.memory_space<smem>>
    %678 = vector.broadcast %677 : f32 to vector<2x12x12xf32>
    %679 = arith.mulf %179, %678 : vector<2x12x12xf32>
    %c118 = arith.constant 118 : index
    %680 = memref.load %arg3[%c118] : memref<144xf32, #tpu.memory_space<smem>>
    %681 = vector.broadcast %680 : f32 to vector<2x12x12xf32>
    %682 = arith.mulf %180, %681 : vector<2x12x12xf32>
    %c119 = arith.constant 119 : index
    %683 = memref.load %arg3[%c119] : memref<144xf32, #tpu.memory_space<smem>>
    %684 = vector.broadcast %683 : f32 to vector<2x12x12xf32>
    %685 = arith.mulf %181, %684 : vector<2x12x12xf32>
    %c120 = arith.constant 120 : index
    %686 = memref.load %arg3[%c120] : memref<144xf32, #tpu.memory_space<smem>>
    %687 = vector.broadcast %686 : f32 to vector<2x12x12xf32>
    %688 = arith.mulf %182, %687 : vector<2x12x12xf32>
    %c121 = arith.constant 121 : index
    %689 = memref.load %arg3[%c121] : memref<144xf32, #tpu.memory_space<smem>>
    %690 = vector.broadcast %689 : f32 to vector<2x12x12xf32>
    %691 = arith.mulf %183, %690 : vector<2x12x12xf32>
    %c122 = arith.constant 122 : index
    %692 = memref.load %arg3[%c122] : memref<144xf32, #tpu.memory_space<smem>>
    %693 = vector.broadcast %692 : f32 to vector<2x12x12xf32>
    %694 = arith.mulf %184, %693 : vector<2x12x12xf32>
    %c123 = arith.constant 123 : index
    %695 = memref.load %arg3[%c123] : memref<144xf32, #tpu.memory_space<smem>>
    %696 = vector.broadcast %695 : f32 to vector<2x12x12xf32>
    %697 = arith.mulf %185, %696 : vector<2x12x12xf32>
    %c124 = arith.constant 124 : index
    %698 = memref.load %arg3[%c124] : memref<144xf32, #tpu.memory_space<smem>>
    %699 = vector.broadcast %698 : f32 to vector<2x12x12xf32>
    %700 = arith.mulf %186, %699 : vector<2x12x12xf32>
    %c125 = arith.constant 125 : index
    %701 = memref.load %arg3[%c125] : memref<144xf32, #tpu.memory_space<smem>>
    %702 = vector.broadcast %701 : f32 to vector<2x12x12xf32>
    %703 = arith.mulf %187, %702 : vector<2x12x12xf32>
    %c126 = arith.constant 126 : index
    %704 = memref.load %arg3[%c126] : memref<144xf32, #tpu.memory_space<smem>>
    %705 = vector.broadcast %704 : f32 to vector<2x12x12xf32>
    %706 = arith.mulf %188, %705 : vector<2x12x12xf32>
    %c127 = arith.constant 127 : index
    %707 = memref.load %arg3[%c127] : memref<144xf32, #tpu.memory_space<smem>>
    %708 = vector.broadcast %707 : f32 to vector<2x12x12xf32>
    %709 = arith.mulf %189, %708 : vector<2x12x12xf32>
    %c128 = arith.constant 128 : index
    %710 = memref.load %arg3[%c128] : memref<144xf32, #tpu.memory_space<smem>>
    %711 = vector.broadcast %710 : f32 to vector<2x12x12xf32>
    %712 = arith.mulf %190, %711 : vector<2x12x12xf32>
    %c129 = arith.constant 129 : index
    %713 = memref.load %arg3[%c129] : memref<144xf32, #tpu.memory_space<smem>>
    %714 = vector.broadcast %713 : f32 to vector<2x12x12xf32>
    %715 = arith.mulf %191, %714 : vector<2x12x12xf32>
    %c130 = arith.constant 130 : index
    %716 = memref.load %arg3[%c130] : memref<144xf32, #tpu.memory_space<smem>>
    %717 = vector.broadcast %716 : f32 to vector<2x12x12xf32>
    %718 = arith.mulf %192, %717 : vector<2x12x12xf32>
    %c131 = arith.constant 131 : index
    %719 = memref.load %arg3[%c131] : memref<144xf32, #tpu.memory_space<smem>>
    %720 = vector.broadcast %719 : f32 to vector<2x12x12xf32>
    %721 = arith.mulf %193, %720 : vector<2x12x12xf32>
    %c132 = arith.constant 132 : index
    %722 = memref.load %arg3[%c132] : memref<144xf32, #tpu.memory_space<smem>>
    %723 = vector.broadcast %722 : f32 to vector<2x12x12xf32>
    %724 = arith.mulf %194, %723 : vector<2x12x12xf32>
    %c133 = arith.constant 133 : index
    %725 = memref.load %arg3[%c133] : memref<144xf32, #tpu.memory_space<smem>>
    %726 = vector.broadcast %725 : f32 to vector<2x12x12xf32>
    %727 = arith.mulf %195, %726 : vector<2x12x12xf32>
    %c134 = arith.constant 134 : index
    %728 = memref.load %arg3[%c134] : memref<144xf32, #tpu.memory_space<smem>>
    %729 = vector.broadcast %728 : f32 to vector<2x12x12xf32>
    %730 = arith.mulf %196, %729 : vector<2x12x12xf32>
    %c135 = arith.constant 135 : index
    %731 = memref.load %arg3[%c135] : memref<144xf32, #tpu.memory_space<smem>>
    %732 = vector.broadcast %731 : f32 to vector<2x12x12xf32>
    %733 = arith.mulf %197, %732 : vector<2x12x12xf32>
    %c136 = arith.constant 136 : index
    %734 = memref.load %arg3[%c136] : memref<144xf32, #tpu.memory_space<smem>>
    %735 = vector.broadcast %734 : f32 to vector<2x12x12xf32>
    %736 = arith.mulf %198, %735 : vector<2x12x12xf32>
    %c137 = arith.constant 137 : index
    %737 = memref.load %arg3[%c137] : memref<144xf32, #tpu.memory_space<smem>>
    %738 = vector.broadcast %737 : f32 to vector<2x12x12xf32>
    %739 = arith.mulf %199, %738 : vector<2x12x12xf32>
    %c138 = arith.constant 138 : index
    %740 = memref.load %arg3[%c138] : memref<144xf32, #tpu.memory_space<smem>>
    %741 = vector.broadcast %740 : f32 to vector<2x12x12xf32>
    %742 = arith.mulf %200, %741 : vector<2x12x12xf32>
    %c139 = arith.constant 139 : index
    %743 = memref.load %arg3[%c139] : memref<144xf32, #tpu.memory_space<smem>>
    %744 = vector.broadcast %743 : f32 to vector<2x12x12xf32>
    %745 = arith.mulf %201, %744 : vector<2x12x12xf32>
    %c140 = arith.constant 140 : index
    %746 = memref.load %arg3[%c140] : memref<144xf32, #tpu.memory_space<smem>>
    %747 = vector.broadcast %746 : f32 to vector<2x12x12xf32>
    %748 = arith.mulf %202, %747 : vector<2x12x12xf32>
    %c141 = arith.constant 141 : index
    %749 = memref.load %arg3[%c141] : memref<144xf32, #tpu.memory_space<smem>>
    %750 = vector.broadcast %749 : f32 to vector<2x12x12xf32>
    %751 = arith.mulf %203, %750 : vector<2x12x12xf32>
    %c142 = arith.constant 142 : index
    %752 = memref.load %arg3[%c142] : memref<144xf32, #tpu.memory_space<smem>>
    %753 = vector.broadcast %752 : f32 to vector<2x12x12xf32>
    %754 = arith.mulf %204, %753 : vector<2x12x12xf32>
    %c143 = arith.constant 143 : index
    %755 = memref.load %arg3[%c143] : memref<144xf32, #tpu.memory_space<smem>>
    %756 = vector.broadcast %755 : f32 to vector<2x12x12xf32>
    %757 = arith.mulf %205, %756 : vector<2x12x12xf32>
    %758 = arith.addf %652, %655 : vector<2x12x12xf32>
    %759 = arith.addf %658, %661 : vector<2x12x12xf32>
    %760 = arith.addf %664, %667 : vector<2x12x12xf32>
    %761 = arith.addf %670, %673 : vector<2x12x12xf32>
    %762 = arith.addf %676, %679 : vector<2x12x12xf32>
    %763 = arith.addf %682, %685 : vector<2x12x12xf32>
    %764 = arith.addf %688, %691 : vector<2x12x12xf32>
    %765 = arith.addf %694, %697 : vector<2x12x12xf32>
    %766 = arith.addf %700, %703 : vector<2x12x12xf32>
    %767 = arith.addf %706, %709 : vector<2x12x12xf32>
    %768 = arith.addf %712, %715 : vector<2x12x12xf32>
    %769 = arith.addf %718, %721 : vector<2x12x12xf32>
    %770 = arith.addf %724, %727 : vector<2x12x12xf32>
    %771 = arith.addf %730, %733 : vector<2x12x12xf32>
    %772 = arith.addf %736, %739 : vector<2x12x12xf32>
    %773 = arith.addf %742, %745 : vector<2x12x12xf32>
    %774 = arith.addf %748, %751 : vector<2x12x12xf32>
    %775 = arith.addf %754, %757 : vector<2x12x12xf32>
    %776 = arith.addf %758, %759 : vector<2x12x12xf32>
    %777 = arith.addf %760, %761 : vector<2x12x12xf32>
    %778 = arith.addf %762, %763 : vector<2x12x12xf32>
    %779 = arith.addf %764, %765 : vector<2x12x12xf32>
    %780 = arith.addf %766, %767 : vector<2x12x12xf32>
    %781 = arith.addf %768, %769 : vector<2x12x12xf32>
    %782 = arith.addf %770, %771 : vector<2x12x12xf32>
    %783 = arith.addf %772, %773 : vector<2x12x12xf32>
    %784 = arith.addf %774, %775 : vector<2x12x12xf32>
    %785 = arith.addf %776, %777 : vector<2x12x12xf32>
    %786 = arith.addf %778, %779 : vector<2x12x12xf32>
    %787 = arith.addf %780, %781 : vector<2x12x12xf32>
    %788 = arith.addf %782, %783 : vector<2x12x12xf32>
    %789 = arith.addf %785, %786 : vector<2x12x12xf32>
    %790 = arith.addf %787, %788 : vector<2x12x12xf32>
    %791 = arith.addf %789, %790 : vector<2x12x12xf32>
    %792 = arith.addf %791, %784 : vector<2x12x12xf32>
    %c3_52 = arith.constant 3 : index
    %793 = memref.load %arg4[%c3_52] : memref<4xf32, #tpu.memory_space<smem>>
    %794 = vector.broadcast %793 : f32 to vector<2x12x12xf32>
    %795 = arith.addf %792, %794 : vector<2x12x12xf32>
    %cst_53 = arith.constant 0.000000e+00 : f32
    %796 = vector.broadcast %cst_53 : f32 to vector<2x12x12xf32>
    %797 = arith.maximumf %795, %796 : vector<2x12x12xf32>
    %798 = tpu.concatenate %353, %501, %649, %797 in 1 : vector<2x12x12xf32>, vector<2x12x12xf32>, vector<2x12x12xf32>, vector<2x12x12xf32> -> vector<2x48x12xf32>
    %799 = vector.extract_strided_slice %798 {offsets = [0, 0, 0], sizes = [2, 48, 11], strides = [1, 1, 1]} : vector<2x48x12xf32> to vector<2x48x11xf32>
    %800 = vector.extract_strided_slice %798 {offsets = [0, 0, 1], sizes = [2, 48, 11], strides = [1, 1, 1]} : vector<2x48x12xf32> to vector<2x48x11xf32>
    %801 = arith.maximumf %799, %800 : vector<2x48x11xf32>
    %802 = tpu.iota {dimensions = array<i32: 0>} : vector<11x6xi32>
    %803 = tpu.iota {dimensions = array<i32: 1>} : vector<11x6xi32>
    %c2_i32 = arith.constant 2 : i32
    %804 = vector.broadcast %c2_i32 : i32 to vector<11x6xi32>
    %805 = arith.muli %804, %803 : vector<11x6xi32>
    %806 = arith.cmpi eq, %802, %805 : vector<11x6xi32>
    %807 = arith.extui %806 : vector<11x6xi1> to vector<11x6xi32>
    %808 = arith.sitofp %807 : vector<11x6xi32> to vector<11x6xf32>
    %809 = vector.shape_cast %808 : vector<11x6xf32> to vector<1x11x6xf32>
    %810 = vector.broadcast %809 : vector<1x11x6xf32> to vector<2x11x6xf32>
    "tpu.trace_start"() <{level = 10 : i32, message = "bkw,bwc->bkc"}> : () -> ()
    %cst_54 = arith.constant dense<0.000000e+00> : vector<2x48x6xf32>
    %811 = tpu.matmul %801, %810, %cst_54 {dimension_numbers = #tpu.dot_dimension_numbers<[2], [1], [1], [2], [0, 0, 0, 1, 1, 2], [0], [0]>} : vector<2x48x11xf32>, vector<2x11x6xf32>, vector<2x48x6xf32> -> vector<2x48x6xf32>
    "tpu.trace_stop"() : () -> ()
    %812 = vector.extract_strided_slice %811 {offsets = [0, 0, 0], sizes = [2, 47, 6], strides = [1, 1, 1]} : vector<2x48x6xf32> to vector<2x47x6xf32>
    %813 = vector.extract_strided_slice %811 {offsets = [0, 1, 0], sizes = [2, 47, 6], strides = [1, 1, 1]} : vector<2x48x6xf32> to vector<2x47x6xf32>
    %814 = arith.maximumf %812, %813 : vector<2x47x6xf32>
    %815 = vector.extract_strided_slice %814 {offsets = [0, 0, 0], sizes = [2, 1, 6], strides = [1, 1, 1]} : vector<2x47x6xf32> to vector<2x1x6xf32>
    %816 = vector.extract_strided_slice %814 {offsets = [0, 2, 0], sizes = [2, 1, 6], strides = [1, 1, 1]} : vector<2x47x6xf32> to vector<2x1x6xf32>
    %817 = vector.extract_strided_slice %814 {offsets = [0, 4, 0], sizes = [2, 1, 6], strides = [1, 1, 1]} : vector<2x47x6xf32> to vector<2x1x6xf32>
    %818 = vector.extract_strided_slice %814 {offsets = [0, 6, 0], sizes = [2, 1, 6], strides = [1, 1, 1]} : vector<2x47x6xf32> to vector<2x1x6xf32>
    %819 = vector.extract_strided_slice %814 {offsets = [0, 8, 0], sizes = [2, 1, 6], strides = [1, 1, 1]} : vector<2x47x6xf32> to vector<2x1x6xf32>
    %820 = vector.extract_strided_slice %814 {offsets = [0, 10, 0], sizes = [2, 1, 6], strides = [1, 1, 1]} : vector<2x47x6xf32> to vector<2x1x6xf32>
    %821 = vector.extract_strided_slice %814 {offsets = [0, 12, 0], sizes = [2, 1, 6], strides = [1, 1, 1]} : vector<2x47x6xf32> to vector<2x1x6xf32>
    %822 = vector.extract_strided_slice %814 {offsets = [0, 14, 0], sizes = [2, 1, 6], strides = [1, 1, 1]} : vector<2x47x6xf32> to vector<2x1x6xf32>
    %823 = vector.extract_strided_slice %814 {offsets = [0, 16, 0], sizes = [2, 1, 6], strides = [1, 1, 1]} : vector<2x47x6xf32> to vector<2x1x6xf32>
    %824 = vector.extract_strided_slice %814 {offsets = [0, 18, 0], sizes = [2, 1, 6], strides = [1, 1, 1]} : vector<2x47x6xf32> to vector<2x1x6xf32>
    %825 = vector.extract_strided_slice %814 {offsets = [0, 20, 0], sizes = [2, 1, 6], strides = [1, 1, 1]} : vector<2x47x6xf32> to vector<2x1x6xf32>
    %826 = vector.extract_strided_slice %814 {offsets = [0, 22, 0], sizes = [2, 1, 6], strides = [1, 1, 1]} : vector<2x47x6xf32> to vector<2x1x6xf32>
    %827 = vector.extract_strided_slice %814 {offsets = [0, 24, 0], sizes = [2, 1, 6], strides = [1, 1, 1]} : vector<2x47x6xf32> to vector<2x1x6xf32>
    %828 = vector.extract_strided_slice %814 {offsets = [0, 26, 0], sizes = [2, 1, 6], strides = [1, 1, 1]} : vector<2x47x6xf32> to vector<2x1x6xf32>
    %829 = vector.extract_strided_slice %814 {offsets = [0, 28, 0], sizes = [2, 1, 6], strides = [1, 1, 1]} : vector<2x47x6xf32> to vector<2x1x6xf32>
    %830 = vector.extract_strided_slice %814 {offsets = [0, 30, 0], sizes = [2, 1, 6], strides = [1, 1, 1]} : vector<2x47x6xf32> to vector<2x1x6xf32>
    %831 = vector.extract_strided_slice %814 {offsets = [0, 32, 0], sizes = [2, 1, 6], strides = [1, 1, 1]} : vector<2x47x6xf32> to vector<2x1x6xf32>
    %832 = vector.extract_strided_slice %814 {offsets = [0, 34, 0], sizes = [2, 1, 6], strides = [1, 1, 1]} : vector<2x47x6xf32> to vector<2x1x6xf32>
    %833 = vector.extract_strided_slice %814 {offsets = [0, 36, 0], sizes = [2, 1, 6], strides = [1, 1, 1]} : vector<2x47x6xf32> to vector<2x1x6xf32>
    %834 = vector.extract_strided_slice %814 {offsets = [0, 38, 0], sizes = [2, 1, 6], strides = [1, 1, 1]} : vector<2x47x6xf32> to vector<2x1x6xf32>
    %835 = vector.extract_strided_slice %814 {offsets = [0, 40, 0], sizes = [2, 1, 6], strides = [1, 1, 1]} : vector<2x47x6xf32> to vector<2x1x6xf32>
    %836 = vector.extract_strided_slice %814 {offsets = [0, 42, 0], sizes = [2, 1, 6], strides = [1, 1, 1]} : vector<2x47x6xf32> to vector<2x1x6xf32>
    %837 = vector.extract_strided_slice %814 {offsets = [0, 44, 0], sizes = [2, 1, 6], strides = [1, 1, 1]} : vector<2x47x6xf32> to vector<2x1x6xf32>
    %838 = vector.extract_strided_slice %814 {offsets = [0, 46, 0], sizes = [2, 1, 6], strides = [1, 1, 1]} : vector<2x47x6xf32> to vector<2x1x6xf32>
    %839 = tpu.concatenate %815, %816, %817, %818, %819, %820, %821, %822, %823, %824, %825, %826, %827, %828, %829, %830 in 2 : vector<2x1x6xf32>, vector<2x1x6xf32>, vector<2x1x6xf32>, vector<2x1x6xf32>, vector<2x1x6xf32>, vector<2x1x6xf32>, vector<2x1x6xf32>, vector<2x1x6xf32>, vector<2x1x6xf32>, vector<2x1x6xf32>, vector<2x1x6xf32>, vector<2x1x6xf32>, vector<2x1x6xf32>, vector<2x1x6xf32>, vector<2x1x6xf32>, vector<2x1x6xf32> -> vector<2x1x96xf32>
    %840 = tpu.concatenate %831, %832, %833, %834, %835, %836, %837, %838 in 2 : vector<2x1x6xf32>, vector<2x1x6xf32>, vector<2x1x6xf32>, vector<2x1x6xf32>, vector<2x1x6xf32>, vector<2x1x6xf32>, vector<2x1x6xf32>, vector<2x1x6xf32> -> vector<2x1x48xf32>
    %841 = tpu.concatenate %839, %840 in 2 : vector<2x1x96xf32>, vector<2x1x48xf32> -> vector<2x1x144xf32>
    %842 = vector.extract_strided_slice %841 {offsets = [0, 0, 0], sizes = [1, 1, 144], strides = [1, 1, 1]} : vector<2x1x144xf32> to vector<1x1x144xf32>
    %843 = vector.shape_cast %842 : vector<1x1x144xf32> to vector<1x144xf32>
    %844 = vector.extract_strided_slice %841 {offsets = [1, 0, 0], sizes = [1, 1, 144], strides = [1, 1, 1]} : vector<2x1x144xf32> to vector<1x1x144xf32>
    %845 = vector.shape_cast %844 : vector<1x1x144xf32> to vector<1x144xf32>
    %846 = tpu.concatenate %843, %845 in 0 : vector<1x144xf32>, vector<1x144xf32> -> vector<2x144xf32>
    %c0_55 = arith.constant 0 : index
    %c0_56 = arith.constant 0 : index
    %847 = vector.load %arg5[%c0_55, %c0_56] : memref<144x512xf32, #tpu.memory_space<vmem>>, vector<144x512xf32>
    %cst_57 = arith.constant dense<0.000000e+00> : vector<2x512xf32>
    %848 = tpu.matmul %846, %847, %cst_57 {dimension_numbers = #tpu.dot_dimension_numbers<[1], [0], [0], [1], [0, 0, 1, 1], [], []>} : vector<2x144xf32>, vector<144x512xf32>, vector<2x512xf32> -> vector<2x512xf32>
    %c0_58 = arith.constant 0 : index
    %c0_59 = arith.constant 0 : index
    %849 = vector.load %arg6[%c0_58, %c0_59] : memref<1x512xf32, #tpu.memory_space<vmem>>, vector<1x512xf32>
    %850 = vector.broadcast %849 : vector<1x512xf32> to vector<2x512xf32>
    %851 = arith.addf %848, %850 : vector<2x512xf32>
    %cst_60 = arith.constant 0.000000e+00 : f32
    %852 = vector.broadcast %cst_60 : f32 to vector<2x512xf32>
    %853 = arith.maximumf %851, %852 : vector<2x512xf32>
    %c0_61 = arith.constant 0 : index
    %c0_62 = arith.constant 0 : index
    %854 = vector.load %arg7[%c0_61, %c0_62] : memref<512x10xf32, #tpu.memory_space<vmem>>, vector<512x10xf32>
    %cst_63 = arith.constant dense<0.000000e+00> : vector<2x10xf32>
    %855 = tpu.matmul %853, %854, %cst_63 {dimension_numbers = #tpu.dot_dimension_numbers<[1], [0], [0], [1], [0, 0, 1, 1], [], []>} : vector<2x512xf32>, vector<512x10xf32>, vector<2x10xf32> -> vector<2x10xf32>
    %c0_64 = arith.constant 0 : index
    %c0_65 = arith.constant 0 : index
    %856 = vector.load %arg8[%c0_64, %c0_65] : memref<1x10xf32, #tpu.memory_space<vmem>>, vector<1x10xf32>
    %857 = vector.broadcast %856 : vector<1x10xf32> to vector<2x10xf32>
    %858 = arith.addf %855, %857 : vector<2x10xf32>
    %cst_66 = arith.constant dense<0xFF800000> : vector<2xf32>
    %859 = vector.multi_reduction <maximumf>, %858, %cst_66 [1] : vector<2x10xf32> to vector<2xf32>
    %860 = vector.shape_cast %859 : vector<2xf32> to vector<2x1xf32>
    %861 = vector.broadcast %860 : vector<2x1xf32> to vector<2x10xf32>
    %862 = arith.subf %858, %861 : vector<2x10xf32>
    %863 = math.exp %862 : vector<2x10xf32>
    %cst_67 = arith.constant dense<0.000000e+00> : vector<2xf32>
    %864 = vector.multi_reduction <add>, %863, %cst_67 [1] : vector<2x10xf32> to vector<2xf32>
    %865 = vector.shape_cast %864 : vector<2xf32> to vector<2x1xf32>
    %866 = vector.broadcast %865 : vector<2x1xf32> to vector<2x10xf32>
    %867 = arith.divf %863, %866 : vector<2x10xf32>
    %c0_68 = arith.constant 0 : index
    %c0_69 = arith.constant 0 : index
    %868 = vector.load %arg9[%c0_68, %c0_69] : memref<2x10xf32, #tpu.memory_space<vmem>>, vector<2x10xf32>
    tpu.vector_store %arg9[%c0_68, %c0_69], %867 {strides = array<i32>} : memref<2x10xf32, #tpu.memory_space<vmem>>, vector<2x10xf32>,
    return
  }
}

</mosaic_0001>

<bundles_post_ra>
// kernel: kf_kf_pool_forward.1
= control target key start
LH: loop header
LB: loop body
LE: loop exit
PB: predicated region body
PF: predicated region fallthrough
CT: control target
= control target key end

     0   :  { %14 = vsyncpa [#allocation3], 0  ;;  %s12745_s0 = inlined_call_operand.hbm [shape: f32[2,16,16], index: 0, kind: input, shape index: {}]   ;;  %s12746_s1 = inlined_call_operand.vmem [shape: f32[36], index: 1, kind: input, shape index: {}]   ;;  %s12747_s2 = inlined_call_operand.vmem [shape: f32[4], index: 2, kind: input, shape index: {}]   ;;  %s12748_s3 = inlined_call_operand.vmem [shape: f32[144], index: 3, kind: input, shape index: {}]   ;;  %s12749_s4 = inlined_call_operand.vmem [shape: f32[4], index: 4, kind: input, shape index: {}]   ;;  %s12750_s5 = inlined_call_operand.vmem [shape: f32[144,512], index: 5, kind: input, shape index: {}]   ;;  %s12751_s6 = inlined_call_operand.vmem [shape: f32[1,512], index: 6, kind: input, shape index: {}]   ;;  %s12752_s7 = inlined_call_operand.vmem [shape: f32[512,10], index: 7, kind: input, shape index: {}]   ;;  %s12753_s8 = inlined_call_operand.vmem [shape: f32[1,10], index: 8, kind: input, shape index: {}]   ;;  %s12754_s9 = inlined_call_operand.hbm [shape: f32[2,10], index: 9, kind: output, shape index: {}]  }
   0x1   :  { %15 = vsyncpa [#allocation5], 0 }
   0x2   :  { %16 = vsyncpa [#allocation8], 0 }
   0x3   :  { %17 = vsyncpa [#allocation11], 0  ;;  %s47_s11 = sshll.u32 %s12747_s2, 4  ;;  %s48_s11 = int_to_ptr.vmem [resolvable:$true] %s47_s11 }
   0x4   :  { %18 = vsyncpa [#allocation4], 0  ;;  %s6819_s12 = scalar_lea.vmem %s48_s11, 16  ;;  %p6824_p1 = scmp.lt.s32.totalorder %s48_s11, %s48_s11 }
   0x5   :  { %p6820_p0 = scmp.ne.s32.totalorder %s48_s11, %s6819_s12  ;;  %p6825_p2 = scmp.lt.s32.totalorder %s6819_s12, %s6819_s12 }
   0x7   :  { %p6826_p3 = por %p6825_p2, %p6824_p1 }
   0x9   :  { %p6827_p4 = pnand %p6826_p3, %p6820_p0 }
   0xb   :  { %6830 = shalt.err (!%p6827_p4)
}
   0xc   :  { %s6917_s13 = smov [#allocation7]   ;;  %s6918_s14 = smov [#allocation2]  }
   0xd   :  { %50 = dma.vmem_to_smem %s48_s11, 16, %s6917_s13, [#allocation8]  }
   0xe   :  { %s24_s15 = sshll.u32 %s6918_s14, 4  ;;  %s25_s15 = int_to_ptr.vmem [resolvable:$true] %s24_s15 }
   0xf   :  { %s6839_s16 = scalar_lea.vmem %s25_s15, 512  ;;  %p6844_p6 = scmp.lt.s32.totalorder %s25_s15, %s25_s15 }
  0x10   :  { %p6840_p5 = scmp.ne.s32.totalorder %s25_s15, %s6839_s16  ;;  %p6845_p7 = scmp.lt.s32.totalorder %s6839_s16, %s6839_s16 }
  0x12   :  { %p6846_p8 = por %p6845_p7, %p6844_p6 }
  0x14   :  { %p6847_p9 = pnand %p6846_p8, %p6840_p5 }
  0x16   :  { %6850 = shalt.err (!%p6847_p9)
}
  0x17   :  { %s6919_s2 = smov 128   ;;  %s6920_s17 = smov 8  }
  0x18   :  { %30 = dma.hbm_to_vmem [thread:$0]  %s12745_s0, 512, %s25_s15, [#allocation3], %s6919_s2, %s6919_s2, %s6920_s17  }
  0x19   :  { %s37_s22 = sshll.u32 %s12746_s1, 4  ;;  %s57_s25 = sshll.u32 %s12748_s3, 4  ;;  %s38_s22 = int_to_ptr.vmem [resolvable:$true] %s37_s22  ;;  %s58_s25 = int_to_ptr.vmem [resolvable:$true] %s57_s25 }
  0x1a   :  { %s6851_s26 = scalar_lea.vmem %s38_s22, 16  ;;  %p6856_p11 = scmp.lt.s32.totalorder %s38_s22, %s38_s22 }
  0x1b   :  { %p6852_p10 = scmp.ne.s32.totalorder %s38_s22, %s6851_s26  ;;  %p6857_p12 = scmp.lt.s32.totalorder %s6851_s26, %s6851_s26 }
  0x1d   :  { %p6858_p13 = por %p6857_p12, %p6856_p11 }
  0x1f   :  { %p6859_p0 = pnand %p6858_p13, %p6852_p10 }
  0x21   :  { %6862 = shalt.err (!%p6859_p0)
}
  0x22   :  { %s6921_s27 = smov [#allocation6]   ;;  %s6863_s0 = scalar_lea.vmem %s58_s25, 32 }
  0x23   :  { %40 = dma.vmem_to_smem %s38_s22, 16, %s6921_s27, [#allocation5]  }
  0x24   :  { %p6864_p1 = scmp.ne.s32.totalorder %s58_s25, %s6863_s0  ;;  %p6868_p2 = scmp.lt.s32.totalorder %s58_s25, %s58_s25 }
  0x25   :  { %p6869_p3 = scmp.lt.s32.totalorder %s6863_s0, %s6863_s0 }
  0x27   :  { %p6870_p4 = por %p6869_p3, %p6868_p2 }
  0x29   :  { %p6871_p5 = pnand %p6870_p4, %p6864_p1 }
  0x2b   :  { %6874 = shalt.err (!%p6871_p5)
}
  0x2c   :  { %s6922_s1 = smov [#allocation9]   ;;  %s67_s29 = sshll.u32 %s12749_s4, 4  ;;  %s68_s29 = int_to_ptr.vmem [resolvable:$true] %s67_s29 }
  0x2d   :  { %60 = dma.vmem_to_smem %s58_s25, 32, %s6922_s1, [#allocation8]  }
  0x2e   :  { %s6875_s30 = scalar_lea.vmem %s68_s29, 16  ;;  %p6880_p7 = scmp.lt.s32.totalorder %s68_s29, %s68_s29 }
  0x2f   :  { %p6876_p6 = scmp.ne.s32.totalorder %s68_s29, %s6875_s30  ;;  %p6881_p8 = scmp.lt.s32.totalorder %s6875_s30, %s6875_s30 }
  0x31   :  { %p6882_p9 = por %p6881_p8, %p6880_p7 }
  0x33   :  { %p6883_p10 = pnand %p6882_p9, %p6876_p6 }
  0x35   :  { %6886 = shalt.err (!%p6883_p10)
}
  0x36   :  { %s6923_s10 = smov [#allocation10]  }
  0x37   :  { %70 = dma.vmem_to_smem %s68_s29, 16, %s6923_s10, [#allocation11]  }
  0x38   :  { %6907 = dma.done.wait [#allocation3], 512  }
  0x39   :  { %6908 = vsyncadd [#allocation3], 4294966784 }
  0x3a   :  { %6909 = dma.done.wait [#allocation5], 16  }
  0x3b   :  { %6910 = vsyncadd [#allocation5], 4294967280 }
  0x3c   :  { %6911 = dma.done.wait [#allocation8], 48  }
  0x3d   :  { %6912 = vsyncadd [#allocation8], 4294967248 }
  0x3e   :  { %6913 = dma.done.wait [#allocation11], 16  }
  0x3f   :  { %6914 = vsyncadd [#allocation11], 4294967280 }
  0x40   :  { %94 = sfence }
  0x41   :  { %s6388_s4 = sld [smem:[#allocation6 + $0x1]]  ;;  %v7012_v0 = vld [vmem:[#allocation2 + $0x10] sm:$0xff]  ;;  %v7014_v1 = vld [vmem:[#allocation2] sm:$0xff]  ;;  %v7016_v2 = vld [vmem:[#allocation2 + $0x18] sm:$0xff]  ;;  %s6924_s12 = smov 127   ;;  %vm177_vm0 = vcmask 1046528  }
  0x42   :  { %s6390_s11 = sld [smem:[#allocation6 + $0x3]]  ;;  %v7018_v4 = vld [vmem:[#allocation2 + $0x8] sm:$0xff]  ;;  %s6925_s14 = smov 2   ;;  %vm316_vm1 = vcmask 1045504   ;;  %vm1399_vm2 = vcmask 1041408   ;;  %vm1952_vm3 = vcmask 1040384  }
  0x43   :  { %s6392_s13 = sld [smem:[#allocation6 + $0x5]]  ;;  %s6926_s19 = smov 126   ;;  %vm5375_vm4 = vcmask 1042432   ;;  %vm5259_vm6 = vcmask 1043456   ;;  %vm5356_vm8 = vcmask 89088   ;;  %vm5767_vm9 = vcmask 48128  }
  0x44   :  { %s6423_s15 = sld [smem:[#allocation6 + $0x22]]  ;;  %s6927_s0 = smov 1   ;;  %vm5770_vm10 = vcmask 97280   ;;  %vm5773_vm11 = vcmask 146432   ;;  %vm5776_vm12 = vcmask 195584   ;;  %vm5779_vm13 = vcmask 244736  }
  0x45   :  { %s6394_s16 = sld [smem:[#allocation6 + $0x7]]  ;;  %vm5782_vm14 = vcmask 293888   ;;  %vm5785_vm15 = vcmask 343040  }
  0x46   :  { %s6395_s2 = sld [smem:[#allocation6 + $0x8]] }
  0x47   :  { %v106_v3 = vstv %s6388_s4  ;;  %s6397_s17 = sld [smem:[#allocation6 + $0xa]] }
  0x48   :  { %v109_v5 = vmul.f32 %v106_v3, %v7012_v0  ;;  %v107_v6 = vmul.f32 %v106_v3, %v7014_v1  ;;  %v110_v7 = vmul.f32 %v106_v3, %v7016_v2  ;;  %v118_v8 = vstv %s6390_s11  ;;  %s6399_s18 = sld [smem:[#allocation6 + $0xc]] }
  0x49   :  { %v108_v9 = vmul.f32 %v106_v3, %v7018_v4  ;;  %v120_v10 = vmul.f32 %v118_v8, %v7018_v4  ;;  %v119_v11 = vmul.f32 %v118_v8, %v7014_v1  ;;  %v122_v12 = vmul.f32 %v118_v8, %v7016_v2  ;;  %s6403_s20 = sld [smem:[#allocation6 + $0x10]] }
  0x4a   :  { %161 = vrot.lane.b32.xlu1 %v109_v5, %s6924_s12  ;;  %157 = vrot.lane.b32.xlu0 %v107_v6, %s6924_s12  ;;  %v121_v13 = vmul.f32 %v118_v8, %v7012_v0  ;;  %v130_v20 = vstv %s6392_s13  ;;  %v888_v25 = vstv %s6423_s15  ;;  %s6413_s21 = sld [smem:[#allocation6 + $0x19]] }
  0x4b   :  { %v179_v14 = vrot.slane %v120_v10, 1  ;;  %v178_v15 = vrot.slane %v119_v11, 1  ;;  %v182_v17 = vrot.slane %v122_v12, 1  ;;  %v132_v21 = vmul.f32 %v130_v20, %v7018_v4  ;;  %s6421_s22 = sld [smem:[#allocation6 + $0x20]] }
  0x4c   :  { %v181_v18 = vrot.slane %v121_v13, 1  ;;  %v131_v22 = vmul.f32 %v130_v20, %v7014_v1  ;;  %v134_v23 = vmul.f32 %v130_v20, %v7016_v2  ;;  %v133_v24 = vmul.f32 %v130_v20, %v7012_v0  ;;  %s6419_s23 = sld [smem:[#allocation6 + $0x1e]] }
  0x4d   :  { %v180_v16 = vsel %vm177_vm0, %v178_v15, %v179_v14  ;;  %v892_v26 = vmul.f32 %v888_v25, %v7016_v2  ;;  %v891_v27 = vmul.f32 %v888_v25, %v7012_v0  ;;  %v890_v28 = vmul.f32 %v888_v25, %v7018_v4  ;;  %s6401_s24 = sld [smem:[#allocation6 + $0xe]] }
  0x4e   :  { %163 = vrot.lane.b32.xlu1 %v110_v7, %s6924_s12  ;;  %159 = vrot.lane.b32.xlu0 %v108_v9, %s6924_s12  ;;  %v183_v19 = vsel %vm177_vm0, %v181_v18, %v182_v17  ;;  %v889_v29 = vmul.f32 %v888_v25, %v7014_v1  ;;  %v142_v30 = vstv %s6394_s16  ;;  %v148_v31 = vstv %s6395_s2  ;;  %s6389_s25 = sld [smem:[#allocation6 + $0x2]] }
  0x4f   :  { %v144_v32 = vmul.f32 %v142_v30, %v7018_v4  ;;  %v143_v33 = vmul.f32 %v142_v30, %v7014_v1  ;;  %v150_v34 = vmul.f32 %v148_v31, %v7018_v4  ;;  %v149_v35 = vmul.f32 %v148_v31, %v7014_v1  ;;  %s6422_s26 = sld [smem:[#allocation6 + $0x21]] }
  0x50   :  { %v146_v36 = vmul.f32 %v142_v30, %v7016_v2  ;;  %v145_v37 = vmul.f32 %v142_v30, %v7012_v0  ;;  %v152_v40 = vmul.f32 %v148_v31, %v7016_v2  ;;  %v151_v41 = vmul.f32 %v148_v31, %v7012_v0  ;;  %s6393_s27 = sld [smem:[#allocation6 + $0x6]] }
  0x51   :  { %v318_v38 = vrot.slane %v150_v34, 2  ;;  %v317_v39 = vrot.slane %v149_v35, 2  ;;  %v356_v46 = vstv %s6397_s17  ;;  %v368_v47 = vstv %s6399_s18  ;;  %s6398_s1 = sld [smem:[#allocation6 + $0xb]] }
  0x52   :  { %186 = vrot.lane.b32.xlu1 %v179_v14, %s6925_s14  ;;  %184 = vrot.lane.b32.xlu0 %v180_v16, %s6925_s14  ;;  %v321_v43 = vrot.slane %v152_v40, 2  ;;  %v320_v44 = vrot.slane %v151_v41, 2  ;;  %v358_v48 = vmul.f32 %v356_v46, %v7018_v4  ;;  %v357_v49 = vmul.f32 %v356_v46, %v7014_v1  ;;  %s6402_s3 = sld [smem:[#allocation6 + $0xf]] }
  0x53   :  { %v319_v42 = vsel %vm316_vm1, %v317_v39, %v318_v38  ;;  %v369_v50 = vmul.f32 %v368_v47, %v7014_v1  ;;  %v370_v51 = vmul.f32 %v368_v47, %v7018_v4  ;;  %v360_v52 = vmul.f32 %v356_v46, %v7016_v2  ;;  %s6411_s28 = sld [smem:[#allocation6 + $0x17]] }
  0x54   :  { %v322_v45 = vsel %vm316_vm1, %v320_v44, %v321_v43  ;;  %v359_v53 = vmul.f32 %v356_v46, %v7012_v0  ;;  %v392_v54 = vstv %s6403_s20  ;;  %v640_v59 = vstv %s6413_s21  ;;  %s6412_s29 = sld [smem:[#allocation6 + $0x18]] }
  0x55   :  { %v427_v55 = vrot.slane %v369_v50, 1  ;;  %v428_v56 = vrot.slane %v370_v51, 1  ;;  %v395_v57 = vmul.f32 %v392_v54, %v7012_v0  ;;  %v643_v60 = vmul.f32 %v640_v59, %v7012_v0  ;;  %s6409_s30 = sld [smem:[#allocation6 + $0x15]] }
  0x56   :  { %190 = vrot.lane.b32.xlu1 %v182_v17, %s6925_s14  ;;  %188 = vrot.lane.b32.xlu0 %v183_v19, %s6925_s14  ;;  %v396_v61 = vmul.f32 %v392_v54, %v7016_v2  ;;  %v393_v62 = vmul.f32 %v392_v54, %v7014_v1  ;;  %v644_v63 = vmul.f32 %v640_v59, %v7016_v2  ;;  %v876_v6 = vstv %s6421_s22  ;;  %s6417_s10 = sld [smem:[#allocation6 + $0x1c]] }
  0x57   :  { %v429_v58 = vsel %vm177_vm0, %v427_v55, %v428_v56  ;;  %v641_v3 = vmul.f32 %v640_v59, %v7014_v1  ;;  %v394_v5 = vmul.f32 %v392_v54, %v7018_v4  ;;  %v864_v7 = vstv %s6419_s23  ;;  %s6418_s4 = sld [smem:[#allocation6 + $0x1d]] }
  0x58   :  { %v879_v8 = vmul.f32 %v876_v6, %v7012_v0  ;;  %v642_v9 = vmul.f32 %v640_v59, %v7018_v4  ;;  %v867_v10 = vmul.f32 %v864_v7, %v7012_v0  ;;  %v868_v11 = vmul.f32 %v864_v7, %v7016_v2  ;;  %s6424_s11 = sld [smem:[#allocation6 + $0x23]] }
  0x59   :  { %v877_v12 = vmul.f32 %v876_v6, %v7014_v1  ;;  %v880_v13 = vmul.f32 %v876_v6, %v7016_v2  ;;  %v865_v16 = vmul.f32 %v864_v7, %v7014_v1  ;;  %v866_v17 = vmul.f32 %v864_v7, %v7018_v4  ;;  %s6407_s13 = sld [smem:[#allocation6 + $0x13]] }
  0x5a   :  { %206 = vrot.lane.b32.xlu1 %v132_v21, %s6924_s12  ;;  %204 = vrot.lane.b32.xlu0 %v131_v22, %s6924_s12  ;;  %v926_v14 = vrot.slane %v867_v10, 1  ;;  %v927_v15 = vrot.slane %v868_v11, 1  ;;  %v878_v18 = vmul.f32 %v876_v6, %v7018_v4  ;;  %v112_v35 = vstv %s6389_s25  ;;  %s6408_s15 = sld [smem:[#allocation6 + $0x14]] }
  0x5b   :  { %v923_v20 = vrot.slane %v865_v16, 1  ;;  %v924_v21 = vrot.slane %v866_v17, 1  ;;  %v136_v59 = vstv %s6393_s27  ;;  %s6404_s16 = sld [smem:[#allocation6 + $0x11]] }
  0x5c   :  { %v928_v19 = vsel %vm177_vm0, %v926_v14, %v927_v15  ;;  %v138_v6 = vmul.f32 %v136_v59, %v7018_v4  ;;  %s6414_s2 = sld [smem:[#allocation6 + $0x1a]] }
  0x5d   :  { %v925_v22 = vsel %vm177_vm0, %v923_v20, %v924_v21  ;;  %s6391_s17 = sld [smem:[#allocation6 + $0x4]] }
  0x5e   :  { %210 = vrot.lane.b32.xlu1 %v134_v23, %s6924_s12  ;;  %208 = vrot.lane.b32.xlu0 %v133_v24, %s6924_s12  ;;  %v371_v23 = vmul.f32 %v368_v47, %v7012_v0  ;;  %v372_v24 = vmul.f32 %v368_v47, %v7016_v2  ;;  %s6420_s18 = sld [smem:[#allocation6 + $0x1f]] }
  0x5f   :  { %s6400_s20 = sld [smem:[#allocation6 + $0xd]] }
  0x60   :  { %v430_v25 = vrot.slane %v371_v23, 1  ;;  %s6410_s21 = sld [smem:[#allocation6 + $0x16]] }
  0x61   :  { %s6416_s22 = sld [smem:[#allocation6 + $0x1b]] }
  0x62   :  { %975 = vrot.lane.b32.xlu1 %v892_v26, %s6924_s12  ;;  %973 = vrot.lane.b32.xlu0 %v891_v27, %s6924_s12  ;;  %v431_v26 = vrot.slane %v372_v24, 1  ;;  %s6425_s23 = sld [smem:[#allocation7 + $0x3]] }
  0x63   :  { %s6456_s25 = sld [smem:[#allocation9 + $0x1f]] }
  0x64   :  { %v432_v27 = vsel %vm177_vm0, %v430_v25, %v431_v26  ;;  %s6529_s27 = sld [smem:[#allocation9 + $0x67]] }
  0x66   :  { %971 = vrot.lane.b32.xlu1 %v890_v28, %s6924_s12  ;;  %969 = vrot.lane.b32.xlu0 %v889_v29, %s6924_s12  ;;  %v380_v28 = vstv %s6401_s24  ;;  %s6492_s24 = sld [smem:[#allocation9 + $0x43]] }
  0x67   :  { %v382_v29 = vmul.f32 %v380_v28, %v7018_v4  ;;  %v381_v30 = vmul.f32 %v380_v28, %v7014_v1  ;;  %v384_v31 = vmul.f32 %v380_v28, %v7016_v2 }
  0x6a   :  { %226 = vrot.lane.b32.xlu1 %v144_v32, %s6924_s12  ;;  %224 = vrot.lane.b32.xlu0 %v143_v33, %s6924_s12  ;;  %v383_v32 = vmul.f32 %v380_v28, %v7012_v0 }
  0x6e   :  { %230 = vrot.lane.b32.xlu1 %v146_v36, %s6924_s12  ;;  %228 = vrot.lane.b32.xlu0 %v145_v37, %s6924_s12 }
  0x72   :  { %325 = vrot.lane.b32.xlu1 %v318_v38, %s6926_s19  ;;  %323 = vrot.lane.b32.xlu0 %v319_v42, %s6926_s19  ;;  %v114_v38 = vmul.f32 %v112_v35, %v7018_v4  ;;  %v116_v42 = vmul.f32 %v112_v35, %v7016_v2 }
  0x76   :  { %329 = vrot.lane.b32.xlu1 %v321_v43, %s6926_s19  ;;  %327 = vrot.lane.b32.xlu0 %v322_v45, %s6926_s19 }
  0x7a   :  { %409 = vrot.lane.b32.xlu1 %v358_v48, %s6924_s12  ;;  %407 = vrot.lane.b32.xlu0 %v357_v49, %s6924_s12  ;;  %v882_v48 = vstv %s6422_s26  ;;  %s6406_s26 = sld [smem:[#allocation6 + $0x12]] }
  0x7b   :  { %v886_v51 = vmul.f32 %v882_v48, %v7016_v2 }
  0x7e   :  { %413 = vrot.lane.b32.xlu1 %v360_v52, %s6924_s12  ;;  %411 = vrot.lane.b32.xlu0 %v359_v53, %s6924_s12  ;;  %v885_v52 = vmul.f32 %v882_v48, %v7012_v0 }
  0x82   :  { %477 = vrot.lane.b32.xlu1 %v395_v57, %s6924_s12  ;;  %433 = vrot.lane.b32.xlu0 %v429_v58, %s6925_s14  ;;  %v884_v57 = vmul.f32 %v882_v48, %v7018_v4  ;;  %v883_v58 = vmul.f32 %v882_v48, %v7014_v1 }
  0x86   :  { %725 = vrot.lane.b32.xlu1 %v643_v60, %s6924_s12  ;;  %479 = vrot.lane.b32.xlu0 %v396_v61, %s6924_s12 }
  0x8a   :  { %473 = vrot.lane.b32.xlu1 %v393_v62, %s6924_s12  ;;  %727 = vrot.lane.b32.xlu0 %v644_v63, %s6924_s12 }
  0x8e   :  { %721 = vrot.lane.b32.xlu1 %v641_v3, %s6924_s12  ;;  %475 = vrot.lane.b32.xlu0 %v394_v5, %s6924_s12 }
  0x92   :  { %953 = vrot.lane.b32.xlu1 %v879_v8, %s6924_s12  ;;  %723 = vrot.lane.b32.xlu0 %v642_v9, %s6924_s12  ;;  %v113_v8 = vmul.f32 %v112_v35, %v7014_v1 }
  0x96   :  { %949 = vrot.lane.b32.xlu1 %v877_v12, %s6924_s12  ;;  %955 = vrot.lane.b32.xlu0 %v880_v13, %s6924_s12  ;;  %v137_v12 = vmul.f32 %v136_v59, %v7014_v1 }
  0x9a   :  { %933 = vrot.lane.b32.xlu1 %v928_v19, %s6925_s14  ;;  %951 = vrot.lane.b32.xlu0 %v878_v18, %s6924_s12  ;;  %v115_v18 = vmul.f32 %v112_v35, %v7012_v0 }
  0x9e   :  { %929 = vrot.lane.b32.xlu1 %v925_v22, %s6925_s14  ;;  %935 = vrot.lane.b32.xlu0 %v927_v15, %s6925_s14  ;;  %v140_v15 = vmul.f32 %v136_v59, %v7016_v2  ;;  %v139_v22 = vmul.f32 %v136_v59, %v7012_v0 }
  0xa2   :  { %435 = vrot.lane.b32.xlu1 %v428_v56, %s6925_s14  ;;  %931 = vrot.lane.b32.xlu0 %v924_v21, %s6925_s14 }
  0xa6   :  { %437 = vrot.lane.b32.xlu0 %v432_v27, %s6925_s14  ;;  %439 = vrot.lane.b32.xlu1 %v431_v26, %s6925_s14 }
  0xaa   :  { %455 = vrot.lane.b32.xlu1 %v382_v29, %s6924_s12  ;;  %453 = vrot.lane.b32.xlu0 %v381_v30, %s6924_s12 }
  0xae   :  { %459 = vrot.lane.b32.xlu1 %v384_v31, %s6924_s12  ;;  %457 = vrot.lane.b32.xlu0 %v383_v32, %s6924_s12 }
  0xbc   :  { %v7132_v33 = vpop.permute.xlu1 %161  ;;  %v7134_v34 = vpop.permute.xlu0 %157 }
  0xbd   :  { %12826 = vst [vmem:[#allocation18_spill] sm:$0xff] %v7132_v33  ;;  %12827 = vst [vmem:[#allocation19_spill] sm:$0xff] %v7134_v34  ;;  %v124_v33 = vstv %s6391_s17  ;;  %s6440_s17 = sld [smem:[#allocation9 + $0xf]] }
  0xc0   :  { %v7136_v36 = vpop.permute.xlu1 %163  ;;  %v7138_v37 = vpop.permute.xlu0 %159 }
  0xc1   :  { %12828 = vst [vmem:[#allocation20_spill] sm:$0xff] %v7136_v36  ;;  %12829 = vst [vmem:[#allocation21_spill] sm:$0xff] %v7138_v37 }
  0xc4   :  { %v187_v39 = vpop.permute.xlu1 %186  ;;  %v185_v40 = vpop.permute.xlu0 %184 }
  0xc5   :  { %v197_v41 = vadd.f32 %v187_v39, %v114_v38  ;;  %v196_v17 = vadd.f32 %v185_v40, %v113_v8 }
  0xc7   :  { %246 = vrot.lane.b32.xlu1 %v197_v41, %s6926_s19 }
  0xc8   :  { %v191_v43 = vpop.permute.xlu1 %190  ;;  %v189_v44 = vpop.permute.xlu0 %188 }
  0xc9   :  { %v199_v45 = vadd.f32 %v191_v43, %v116_v42  ;;  %v198_v25 = vadd.f32 %v189_v44, %v115_v18  ;;  %v7190_v42 = vstv %s6398_s1  ;;  %s6566_s1 = sld [smem:[#allocation9 + $0x8b]] }
  0xca   :  { %v364_v8 = vmul.f32 %v7190_v42, %v7018_v4 }
  0xcb   :  { %250 = vrot.lane.b32.xlu1 %v199_v45, %s6926_s19  ;;  %v363_v45 = vmul.f32 %v7190_v42, %v7014_v1 }
  0xcc   :  { %v7144_v46 = vpop.permute.xlu1 %206  ;;  %v7146_v47 = vpop.permute.xlu0 %204 }
  0xd0   :  { %v7148_v49 = vpop.permute.xlu1 %210  ;;  %v7150_v50 = vpop.permute.xlu0 %208 }
  0xd4   :  { %v976_v53 = vpop.permute.xlu1 %975  ;;  %v974_v54 = vpop.permute.xlu0 %973 }
  0xd5   :  { %v984_v55 = vadd.f32 %v976_v53, %v886_v51  ;;  %v983_v56 = vadd.f32 %v974_v54, %v885_v52 }
  0xd7   :  { %v1013_v60 = vrot.slane %v984_v55, 1  ;;  %v1012_v61 = vrot.slane %v983_v56, 1 }
  0xd8   :  { %v972_v62 = vpop.permute.xlu1 %971  ;;  %v970_v63 = vpop.permute.xlu0 %969 }
  0xd9   :  { %v982_v3 = vadd.f32 %v972_v62, %v884_v57  ;;  %v981_v5 = vadd.f32 %v970_v63, %v883_v58  ;;  %1021 = vrot.lane.b32.xlu0 %v1013_v60, %s6927_s0  ;;  %v7159_v7 = vsel %vm177_vm0, %v1012_v61, %v1013_v60 }
  0xdb   :  { %v1010_v9 = vrot.slane %v982_v3, 1  ;;  %v1009_v10 = vrot.slane %v981_v5, 1 }
  0xdc   :  { %v227_v11 = vpop.permute.xlu1 %226  ;;  %v225_v13 = vpop.permute.xlu0 %224 }
  0xdd   :  { %v237_v14 = vadd.f32 %v227_v11, %v138_v6  ;;  %1017 = vrot.lane.b32.xlu0 %v1010_v9, %s6927_s0  ;;  %v7166_v16 = vsel %vm177_vm0, %v1009_v10, %v1010_v9  ;;  %v236_v20 = vadd.f32 %v225_v13, %v137_v12  ;;  %v365_v12 = vmul.f32 %v7190_v42, %v7012_v0 }
  0xde   :  { %v386_v13 = vstv %s6402_s3  ;;  %s6415_s3 = sld [smem:[#allocation7 + $0x2]] }
  0xdf   :  { %v265_v19 = vrot.slane %v237_v14, 1  ;;  %v264_v27 = vrot.slane %v236_v20, 1 }
  0xe0   :  { %v231_v21 = vpop.permute.xlu1 %230  ;;  %v229_v23 = vpop.permute.xlu0 %228 }
  0xe1   :  { %v239_v24 = vadd.f32 %v231_v21, %v140_v15  ;;  %272 = vrot.lane.b32.xlu1 %v265_v19, %s6927_s0  ;;  %244 = vrot.lane.b32.xlu0 %v196_v17, %s6926_s19  ;;  %v238_v28 = vadd.f32 %v229_v23, %v139_v22  ;;  %v266_v38 = vsel %vm177_vm0, %v264_v27, %v265_v19  ;;  %v628_v15 = vstv %s6411_s28  ;;  %s6484_s28 = sld [smem:[#allocation9 + $0x3b]] }
  0xe2   :  { %v390_v17 = vmul.f32 %v386_v13, %v7016_v2  ;;  %v389_v19 = vmul.f32 %v386_v13, %v7012_v0  ;;  %v632_v20 = vmul.f32 %v628_v15, %v7016_v2  ;;  %v634_v23 = vstv %s6412_s29  ;;  %s6448_s29 = sld [smem:[#allocation9 + $0x17]] }
  0xe3   :  { %v268_v26 = vrot.slane %v239_v24, 1  ;;  %v267_v31 = vrot.slane %v238_v28, 1  ;;  %v631_v24 = vmul.f32 %v628_v15, %v7012_v0  ;;  %v630_v28 = vmul.f32 %v628_v15, %v7018_v4 }
  0xe4   :  { %v7172_v29 = vpop.permute.xlu1 %325  ;;  %v7174_v30 = vpop.permute.xlu0 %323 }
  0xe5   :  { %12830 = vst [vmem:[#allocation22_spill] sm:$0xff] %v7172_v29  ;;  %12831 = vst [vmem:[#allocation23_spill] sm:$0xff] %v7174_v30  ;;  %276 = vrot.lane.b32.xlu1 %v268_v26, %s6927_s0  ;;  %248 = vrot.lane.b32.xlu0 %v198_v25, %s6926_s19  ;;  %v269_v41 = vsel %vm177_vm0, %v267_v31, %v268_v26  ;;  %v638_v26 = vmul.f32 %v634_v23, %v7016_v2  ;;  %v616_v31 = vstv %s6409_s30  ;;  %s6490_s30 = sld [smem:[#allocation9 + $0x41]] }
  0xe8   :  { %v7178_v32 = vpop.permute.xlu1 %329  ;;  %v7180_v35 = vpop.permute.xlu0 %327 }
  0xe9   :  { %12832 = vst [vmem:[#allocation24_spill] sm:$0xff] %v7178_v32  ;;  %12833 = vst [vmem:[#allocation25_spill] sm:$0xff] %v7180_v35  ;;  %270 = vrot.lane.b32.xlu0 %v266_v38, %s6927_s0  ;;  %v126_v32 = vmul.f32 %v124_v33, %v7018_v4 }
  0xec   :  { %v7184_v39 = vpop.permute.xlu1 %409  ;;  %v7186_v40 = vpop.permute.xlu0 %407 }
  0xed   :  { %274 = vrot.lane.b32.xlu0 %v269_v41, %s6927_s0 }
  0xf0   :  { %v7192_v43 = vpop.permute.xlu1 %413  ;;  %v7194_v44 = vpop.permute.xlu0 %411 }
  0xf4   :  { %v478_v48 = vpop.permute.xlu1 %477  ;;  %v434_v51 = vpop.permute.xlu0 %433 }
  0xf5   :  { %v445_v52 = vadd.f32 %v434_v51, %v363_v45  ;;  %v487_v22 = vadd.f32 %v478_v48, %v389_v19  ;;  %v629_v45 = vmul.f32 %v628_v15, %v7014_v1  ;;  %v620_v48 = vmul.f32 %v616_v31, %v7016_v2 }
  0xf6   :  { %v619_v51 = vmul.f32 %v616_v31, %v7012_v0 }
  0xf7   :  { %493 = vrot.lane.b32.xlu0 %v445_v52, %s6926_s19  ;;  %v516_v27 = vrot.slane %v487_v22, 1 }
  0xf8   :  { %v726_v53 = vpop.permute.xlu1 %725  ;;  %v480_v54 = vpop.permute.xlu0 %479 }
  0xf9   :  { %v488_v21 = vadd.f32 %v480_v54, %v390_v17 }
  0xfb   :  { %v517_v25 = vrot.slane %v488_v21, 1 }
  0xfc   :  { %v7199_v55 = vpop.permute.xlu1 %473  ;;  %v728_v56 = vpop.permute.xlu0 %727 }
  0xfd   :  { %v736_v38 = vadd.f32 %v728_v56, %v638_v26  ;;  %v518_v41 = vsel %vm177_vm0, %v516_v27, %v517_v25  ;;  %v679_v56 = vrot.slane %v620_v48, 1 }
  0xff   :  { %v765_v52 = vrot.slane %v736_v38, 1 }
 0x100   :  { %v7201_v57 = vpop.permute.xlu1 %721  ;;  %v7203_v58 = vpop.permute.xlu0 %475 }
 0x104   :  { %v7205_v59 = vpop.permute.xlu1 %953  ;;  %v7207_v60 = vpop.permute.xlu0 %723 }
 0x108   :  { %v7209_v61 = vpop.permute.xlu1 %949  ;;  %v7211_v62 = vpop.permute.xlu0 %955 }
 0x10c   :  { %v7213_v63 = vpop.permute.xlu1 %933  ;;  %v7215_v3 = vpop.permute.xlu0 %951 }
 0x110   :  { %v7217_v5 = vpop.permute.xlu1 %929  ;;  %v7219_v6 = vpop.permute.xlu0 %935 }
 0x114   :  { %v436_v9 = vpop.permute.xlu1 %435  ;;  %v7223_v10 = vpop.permute.xlu0 %931 }
 0x115   :  { %v446_v11 = vadd.f32 %v436_v9, %v364_v8  ;;  %v852_v8 = vstv %s6417_s10  ;;  %v388_v9 = vmul.f32 %v386_v13, %v7018_v4  ;;  %s6454_s10 = sld [smem:[#allocation9 + $0x1d]] }
 0x117   :  { %495 = vrot.lane.b32.xlu1 %v446_v11, %s6926_s19  ;;  %v387_v11 = vmul.f32 %v386_v13, %v7014_v1  ;;  %v486_v17 = vadd.f32 %v7203_v58, %v388_v9  ;;  %v855_v13 = vmul.f32 %v852_v8, %v7012_v0  ;;  %v617_v58 = vmul.f32 %v616_v31, %v7014_v1 }
 0x118   :  { %v438_v14 = vpop.permute.xlu0 %437 }
 0x119   :  { %v447_v18 = vadd.f32 %v438_v14, %v365_v12  ;;  %v856_v14 = vmul.f32 %v852_v8, %v7016_v2  ;;  %v485_v19 = vadd.f32 %v7199_v55, %v387_v11  ;;  %v514_v21 = vrot.slane %v486_v17, 1 }
 0x11a   :  { %v618_v55 = vmul.f32 %v616_v31, %v7018_v4  ;;  %v854_v31 = vmul.f32 %v852_v8, %v7018_v4 }
 0x11b   :  { %1019 = vrot.lane.b32.xlu1 %v7159_v7, %s6927_s0  ;;  %497 = vrot.lane.b32.xlu0 %v447_v18, %s6926_s19  ;;  %v637_v7 = vmul.f32 %v634_v23, %v7012_v0  ;;  %v636_v18 = vmul.f32 %v634_v23, %v7018_v4 }
 0x11d   :  { %v734_v22 = vadd.f32 %v7207_v60, %v636_v18  ;;  %v676_v60 = vrot.slane %v618_v55, 1  ;;  %v604_v18 = vstv %s6407_s13  ;;  %s6558_s13 = sld [smem:[#allocation9 + $0x83]] }
 0x11f   :  { %1015 = vrot.lane.b32.xlu1 %v7166_v16, %s6927_s0  ;;  %707 = vrot.lane.b32.xlu0 %v632_v20, %s6924_s12  ;;  %v735_v16 = vadd.f32 %v726_v53, %v637_v7  ;;  %v678_v53 = vrot.slane %v619_v51, 1  ;;  %v635_v20 = vmul.f32 %v634_v23, %v7014_v1  ;;  %v762_v23 = vrot.slane %v734_v22, 1  ;;  %v440_v22 = vpop.permute.xlu1 %439 }
 0x120   :  { %v675_v7 = vrot.slane %v617_v58, 1 }
 0x121   :  { %v764_v54 = vrot.slane %v735_v16, 1  ;;  %v680_v15 = vsel %vm177_vm0, %v678_v53, %v679_v56 }
 0x122   :  { %v677_v38 = vsel %vm177_vm0, %v675_v7, %v676_v60 }
 0x123   :  { %705 = vrot.lane.b32.xlu1 %v631_v24, %s6924_s12  ;;  %525 = vrot.lane.b32.xlu0 %v517_v25, %s6927_s0  ;;  %v766_v12 = vsel %vm177_vm0, %v764_v54, %v765_v52  ;;  %v513_v24 = vrot.slane %v485_v19, 1  ;;  %v733_v25 = vadd.f32 %v7201_v57, %v635_v20  ;;  %v858_v57 = vstv %s6418_s4  ;;  %s6396_s4 = sld [smem:[#allocation6 + $0x9]] }
 0x124   :  { %v862_v16 = vmul.f32 %v858_v57, %v7016_v2  ;;  %v860_v51 = vmul.f32 %v858_v57, %v7018_v4  ;;  %v859_v9 = vmul.f32 %v858_v57, %v7014_v1  ;;  %v608_v19 = vmul.f32 %v604_v18, %v7016_v2 }
 0x125   :  { %v761_v26 = vrot.slane %v733_v25, 1  ;;  %v515_v27 = vsel %vm177_vm0, %v513_v24, %v514_v21  ;;  %v7311_v25 = vpop.permute.xlu0 %453 }
 0x126   :  { %v944_v48 = vadd.f32 %v7219_v6, %v862_v16 }
 0x127   :  { %523 = vrot.lane.b32.xlu1 %v518_v41, %s6927_s0  ;;  %703 = vrot.lane.b32.xlu0 %v630_v28, %s6924_s12  ;;  %v763_v28 = vsel %vm177_vm0, %v761_v26, %v762_v23  ;;  %v853_v41 = vmul.f32 %v852_v8, %v7014_v1  ;;  %v942_v8 = vadd.f32 %v7223_v10, %v860_v51 }
 0x129   :  { %v7317_v55 = vpop.permute.xlu0 %457 }
 0x12b   :  { %701 = vrot.lane.b32.xlu1 %v629_v45, %s6924_s12  ;;  %773 = vrot.lane.b32.xlu0 %v765_v52, %s6927_s0  ;;  %v861_v45 = vmul.f32 %v858_v57, %v7012_v0  ;;  %v894_v52 = vstv %s6424_s11  ;;  %s6521_s11 = sld [smem:[#allocation9 + $0x5f]] }
 0x12c   :  { %v897_v54 = vmul.f32 %v894_v52, %v7012_v0 }
 0x12d   :  { %v943_v53 = vadd.f32 %v7213_v63, %v861_v45 }
 0x12e   :  { %v1064_v6 = vrot.slane %v897_v54, 2 }
 0x12f   :  { %771 = vrot.lane.b32.xlu1 %v766_v12, %s6927_s0  ;;  %687 = vrot.lane.b32.xlu0 %v679_v56, %s6925_s14  ;;  %v898_v56 = vmul.f32 %v894_v52, %v7016_v2  ;;  %v895_v12 = vmul.f32 %v894_v52, %v7014_v1 }
 0x131   :  { %v1065_v11 = vrot.slane %v898_v56, 2  ;;  %v1061_v10 = vrot.slane %v895_v12, 2 }
 0x133   :  { %685 = vrot.lane.b32.xlu1 %v680_v15, %s6925_s14  ;;  %909 = vrot.lane.b32.xlu0 %v856_v14, %s6924_s12  ;;  %v896_v14 = vmul.f32 %v894_v52, %v7018_v4  ;;  %v941_v15 = vadd.f32 %v7217_v5, %v859_v9  ;;  %v1066_v63 = vsel %vm316_vm1, %v1064_v6, %v1065_v11 }
 0x134   :  { %v366_v5 = vmul.f32 %v7190_v42, %v7016_v2  ;;  %v606_v42 = vmul.f32 %v604_v18, %v7018_v4 }
 0x135   :  { %v1062_v17 = vrot.slane %v896_v14, 2 }
 0x136   :  { %v448_v24 = vadd.f32 %v440_v22, %v366_v5 }
 0x137   :  { %907 = vrot.lane.b32.xlu1 %v855_v13, %s6924_s12  ;;  %521 = vrot.lane.b32.xlu0 %v514_v21, %s6927_s0  ;;  %v1063_v20 = vsel %vm316_vm1, %v1061_v10, %v1062_v17  ;;  %v607_v13 = vmul.f32 %v604_v18, %v7012_v0  ;;  %v605_v21 = vmul.f32 %v604_v18, %v7014_v1 }
 0x13b   :  { %519 = vrot.lane.b32.xlu1 %v515_v27, %s6927_s0  ;;  %769 = vrot.lane.b32.xlu0 %v762_v23, %s6927_s0  ;;  %v7322_v23 = vpop.permute.xlu1 %455 }
 0x13f   :  { %767 = vrot.lane.b32.xlu1 %v763_v28, %s6927_s0  ;;  %683 = vrot.lane.b32.xlu0 %v676_v60, %s6925_s14  ;;  %v7326_v27 = vpop.permute.xlu1 %459 }
 0x143   :  { %681 = vrot.lane.b32.xlu1 %v677_v38, %s6925_s14  ;;  %905 = vrot.lane.b32.xlu0 %v854_v31, %s6924_s12  ;;  %v7330_v7 = vpop.permute.xlu1 %246 }
 0x144   :  { %12835 = vst [vmem:[#allocation27_spill] sm:$0xff] %v7330_v7 }
 0x147   :  { %903 = vrot.lane.b32.xlu1 %v853_v41, %s6924_s12  ;;  %995 = vrot.lane.b32.xlu0 %v944_v48, %s6926_s19  ;;  %v7334_v28 = vpop.permute.xlu1 %250 }
 0x148   :  { %12837 = vst [vmem:[#allocation29_spill] sm:$0xff] %v7334_v28 }
 0x14b   :  { %993 = vrot.lane.b32.xlu1 %v943_v53, %s6926_s19  ;;  %991 = vrot.lane.b32.xlu0 %v942_v8, %s6926_s19  ;;  %v7320_v58 = vpop.permute.xlu0 %1021 }
 0x14f   :  { %989 = vrot.lane.b32.xlu1 %v941_v15, %s6926_s19  ;;  %1073 = vrot.lane.b32.xlu0 %v1065_v11, %s6926_s19  ;;  %v7324_v26 = vpop.permute.xlu0 %1017  ;;  %v610_v11 = vstv %s6408_s15  ;;  %s6405_s15 = sld [smem:[#allocation7 + $0x1]] }
 0x150   :  { %v614_v15 = vmul.f32 %v610_v11, %v7016_v2  ;;  %v613_v18 = vmul.f32 %v610_v11, %v7012_v0 }
 0x153   :  { %1071 = vrot.lane.b32.xlu1 %v1066_v63, %s6926_s19  ;;  %1069 = vrot.lane.b32.xlu0 %v1062_v17, %s6926_s19  ;;  %v7328_v60 = vpop.permute.xlu0 %244  ;;  %v7336_v31 = vpop.permute.xlu1 %272 }
 0x154   :  { %12834 = vst [vmem:[#allocation26_spill] sm:$0xff] %v7328_v60  ;;  %v611_v60 = vmul.f32 %v610_v11, %v7014_v1 }
 0x157   :  { %1067 = vrot.lane.b32.xlu1 %v1063_v20, %s6926_s19  ;;  %661 = vrot.lane.b32.xlu0 %v608_v19, %s6924_s12  ;;  %v7332_v57 = vpop.permute.xlu0 %248  ;;  %v7340_v16 = vpop.permute.xlu1 %276 }
 0x158   :  { %12836 = vst [vmem:[#allocation28_spill] sm:$0xff] %v7332_v57 }
 0x15b   :  { %659 = vrot.lane.b32.xlu1 %v607_v13, %s6924_s12  ;;  %655 = vrot.lane.b32.xlu0 %v605_v21, %s6924_s12  ;;  %v7338_v38 = vpop.permute.xlu0 %270 }
 0x15f   :  { %499 = vrot.lane.b32.xlu1 %v448_v24, %s6926_s19  ;;  %v7342_v41 = vpop.permute.xlu0 %274 }
 0x163   :  { %657 = vrot.lane.b32.xlu1 %v606_v42, %s6924_s12  ;;  %v398_v42 = vstv %s6404_s16  ;;  %s6527_s16 = sld [smem:[#allocation9 + $0x65]] }
 0x169   :  { %v7344_v45 = vpop.permute.xlu0 %493 }
 0x189   :  { %v7346_v48 = vpop.permute.xlu1 %495 }
 0x18d   :  { %v7348_v51 = vpop.permute.xlu1 %1019  ;;  %v7350_v52 = vpop.permute.xlu0 %497 }
 0x191   :  { %v7352_v54 = vpop.permute.xlu1 %1015  ;;  %v7354_v56 = vpop.permute.xlu0 %707 }
 0x195   :  { %v7356_v53 = vpop.permute.xlu1 %705  ;;  %v7358_v9 = vpop.permute.xlu0 %525 }
 0x199   :  { %v7360_v8 = vpop.permute.xlu1 %523  ;;  %v7362_v6 = vpop.permute.xlu0 %703 }
 0x19d   :  { %v7364_v12 = vpop.permute.xlu1 %701  ;;  %v7366_v14 = vpop.permute.xlu0 %773 }
 0x1a1   :  { %v7369_v63 = vpop.permute.xlu1 %771  ;;  %v688_v10 = vpop.permute.xlu0 %687 }
 0x1a2   :  { %v696_v17 = vadd.f32 %v688_v10, %v614_v15  ;;  %v612_v15 = vmul.f32 %v610_v11, %v7018_v4  ;;  %v402_v10 = vmul.f32 %v398_v42, %v7016_v2 }
 0x1a4   :  { %747 = vrot.lane.b32.xlu1 %v696_v17, %s6926_s19  ;;  %v569_v34 = vrot.slane %v402_v10, 2 }
 0x1a5   :  { %v686_v19 = vpop.permute.xlu1 %685  ;;  %v7373_v20 = vpop.permute.xlu0 %909 }
 0x1a6   :  { %v695_v5 = vadd.f32 %v686_v19, %v613_v18  ;;  %v401_v19 = vmul.f32 %v398_v42, %v7012_v0 }
 0x1a8   :  { %745 = vrot.lane.b32.xlu0 %v695_v5, %s6926_s19  ;;  %v7389_v5 = vstv %s6414_s2  ;;  %v568_v37 = vrot.slane %v401_v19, 2  ;;  %v399_v19 = vmul.f32 %v398_v42, %v7014_v1  ;;  %s6476_s2 = sld [smem:[#allocation9 + $0x33]] }
 0x1a9   :  { %v7376_v13 = vpop.permute.xlu1 %907  ;;  %v7378_v21 = vpop.permute.xlu0 %521  ;;  %v650_v29 = vmul.f32 %v7389_v5, %v7016_v2  ;;  %v649_v35 = vmul.f32 %v7389_v5, %v7012_v0 }
 0x1aa   :  { %v570_v10 = vsel %vm316_vm1, %v568_v37, %v569_v34  ;;  %v565_v36 = vrot.slane %v399_v19, 2 }
 0x1ab   :  { %v817_v11 = vrot.slane %v650_v29, 2 }
 0x1ad   :  { %v7380_v22 = vpop.permute.xlu1 %519  ;;  %v7382_v24 = vpop.permute.xlu0 %769 }
 0x1b1   :  { %v7386_v17 = vpop.permute.xlu1 %767  ;;  %v684_v18 = vpop.permute.xlu0 %683 }
 0x1b2   :  { %v694_v30 = vadd.f32 %v684_v18, %v612_v15  ;;  %v7401_v15 = vstv %s6420_s18  ;;  %v816_v18 = vrot.slane %v649_v35, 2  ;;  %v374_v35 = vstv %s6400_s20  ;;  %s6513_s18 = sld [smem:[#allocation9 + $0x57]] }
 0x1b3   :  { %v872_v37 = vmul.f32 %v7401_v15, %v7018_v4  ;;  %s6550_s20 = sld [smem:[#allocation9 + $0x7b]] }
 0x1b4   :  { %743 = vrot.lane.b32.xlu1 %v694_v30, %s6926_s19  ;;  %v400_v30 = vmul.f32 %v398_v42, %v7018_v4  ;;  %v818_v28 = vsel %vm316_vm1, %v816_v18, %v817_v11  ;;  %v378_v42 = vmul.f32 %v374_v35, %v7016_v2 }
 0x1b5   :  { %v682_v7 = vpop.permute.xlu1 %681 }
 0x1b6   :  { %v693_v57 = vadd.f32 %v682_v7, %v611_v60  ;;  %v217_v60 = vadd.f32 %v7144_v46, %v126_v32  ;;  %v128_v7 = vmul.f32 %v124_v33, %v7016_v2  ;;  %v566_v29 = vrot.slane %v400_v30, 2 }
 0x1b7   :  { %v125_v30 = vmul.f32 %v124_v33, %v7014_v1 }
 0x1b8   :  { %741 = vrot.lane.b32.xlu0 %v693_v57, %s6926_s19  ;;  %577 = vrot.lane.b32.xlu1 %v569_v34, %s6926_s19  ;;  %v874_v57 = vmul.f32 %v7401_v15, %v7016_v2  ;;  %v283_v34 = vadd.f32 %v7336_v31, %v217_v60  ;;  %v219_v46 = vadd.f32 %v7148_v49, %v128_v7 }
 0x1b9   :  { %v962_v49 = vadd.f32 %v7215_v3, %v872_v37  ;;  %v216_v1 = vadd.f32 %v7146_v47, %v125_v30  ;;  %v377_v47 = vmul.f32 %v374_v35, %v7012_v0 }
 0x1ba   :  { %v964_v32 = vadd.f32 %v7211_v62, %v874_v57  ;;  %v291_v18 = vrot.slane %v283_v34, 1  ;;  %v285_v19 = vadd.f32 %v7340_v16, %v219_v46  ;;  %v468_v62 = vadd.f32 %v7326_v27, %v378_v42  ;;  %v7448_v34 = vld [vmem:[#allocation2 + $0x10] sm:$0xff] }
 0x1bb   :  { %v282_v27 = vadd.f32 %v7338_v38, %v216_v1  ;;  %v873_v37 = vmul.f32 %v7448_v34, %v7401_v15 }
 0x1bc   :  { %575 = vrot.lane.b32.xlu0 %v570_v10, %s6926_s19  ;;  %825 = vrot.lane.b32.xlu1 %v817_v11, %s6926_s19  ;;  %v622_v11 = vstv %s6410_s21  ;;  %v567_v10 = vsel %vm316_vm1, %v565_v36, %v566_v29  ;;  %v7423_v31 = vadd.f32 %v7320_v58, %v964_v32  ;;  %v127_v36 = vmul.f32 %v124_v33, %v7012_v0  ;;  %s6488_s21 = sld [smem:[#allocation9 + $0x3f]] }
 0x1bd   :  { %v626_v60 = vmul.f32 %v622_v11, %v7016_v2  ;;  %v294_v16 = vrot.slane %v285_v19, 1  ;;  %v534_v3 = vadd.f32 %v7358_v9, %v468_v62  ;;  %v376_v2 = vmul.f32 %v374_v35, %v7018_v4 }
 0x1be   :  { %v1039_v58 = vrot.slane %v7423_v31, 1  ;;  %v218_v33 = vadd.f32 %v7150_v50, %v127_v36  ;;  %v290_v9 = vrot.slane %v282_v27, 1  ;;  %v624_v50 = vmul.f32 %v622_v11, %v7018_v4  ;;  %v7463_v31 = vld [vmem:[#allocation2] sm:$0xff] }
 0x1bf   :  { %v716_v7 = vadd.f32 %v7354_v56, %v626_v60  ;;  %v543_v57 = vrot.slane %v534_v3, 1  ;;  %v625_v56 = vmul.f32 %v7448_v34, %v622_v11  ;;  %v466_v46 = vadd.f32 %v7322_v23, %v376_v2 }
 0x1c0   :  { %823 = vrot.lane.b32.xlu0 %v818_v28, %s6926_s19  ;;  %573 = vrot.lane.b32.xlu1 %v566_v29, %s6926_s19  ;;  %v7435_v28 = vadd.f32 %v7324_v26, %v962_v49  ;;  %v284_v38 = vadd.f32 %v7342_v41, %v218_v33  ;;  %v467_v0 = vadd.f32 %v7317_v55, %v377_v47 }
 0x1c1   :  { %v782_v29 = vadd.f32 %v7366_v14, %v716_v7  ;;  %v532_v41 = vadd.f32 %v7378_v21, %v466_v46  ;;  %v715_v42 = vadd.f32 %v7356_v53, %v625_v56  ;;  %v963_v23 = vadd.f32 %v7205_v59, %v873_v37 }
 0x1c2   :  { %v1036_v26 = vrot.slane %v7435_v28, 1  ;;  %v293_v32 = vrot.slane %v284_v38, 1  ;;  %v533_v30 = vadd.f32 %v7360_v8, %v467_v0  ;;  %v871_v4 = vmul.f32 %v7463_v31, %v7401_v15 }
 0x1c3   :  { %v791_v14 = vrot.slane %v782_v29, 1  ;;  %v714_v19 = vadd.f32 %v7362_v6, %v624_v50  ;;  %v375_v55 = vmul.f32 %v7463_v31, %v374_v35  ;;  %v1029_v53 = vadd.f32 %v7348_v51, %v963_v23 }
 0x1c4   :  { %571 = vrot.lane.b32.xlu0 %v567_v10, %s6926_s19  ;;  %298 = vrot.lane.b32.xlu1 %v291_v18, %s6924_s12  ;;  %v292_v10 = vsel %vm177_vm0, %v290_v9, %v291_v18  ;;  %v540_v8 = vrot.slane %v532_v41, 1  ;;  %v542_v18 = vrot.slane %v533_v30, 1  ;;  %v623_v59 = vmul.f32 %v7463_v31, %v622_v11 }
 0x1c5   :  { %v780_v21 = vadd.f32 %v7382_v24, %v714_v19  ;;  %v781_v49 = vadd.f32 %v7369_v63, %v715_v42  ;;  %v295_v15 = vsel %vm177_vm0, %v293_v32, %v294_v16  ;;  %v961_v6 = vadd.f32 %v7209_v61, %v871_v4 }
 0x1c6   :  { %v465_v35 = vadd.f32 %v7311_v25, %v375_v55  ;;  %v1038_v62 = vrot.slane %v1029_v53, 1  ;;  %v713_v24 = vadd.f32 %v7364_v12, %v623_v59  ;;  %v544_v63 = vsel %vm177_vm0, %v542_v18, %v543_v57  ;;  %v7491_v12 = vld [vmem:[#allocation2 + $0x8] sm:$0xff]  ;;  %v7542_v18 = vld [vmem:[#allocation2 + $0x18] sm:$0xff] }
 0x1c7   :  { %v1027_v51 = vadd.f32 %v7352_v54, %v961_v6  ;;  %v788_v60 = vrot.slane %v780_v21, 1  ;;  %v790_v1 = vrot.slane %v781_v49, 1  ;;  %v846_v53 = vstv %s6416_s22  ;;  %s6452_s22 = sld [smem:[#allocation9 + $0x1b]] }
 0x1c8   :  { %1047 = vrot.lane.b32.xlu0 %v1039_v58, %s6924_s12  ;;  %302 = vrot.lane.b32.xlu1 %v294_v16, %s6924_s12  ;;  %v531_v11 = vadd.f32 %v7380_v22, %v465_v35  ;;  %v1040_v61 = vsel %vm177_vm0, %v1038_v62, %v1039_v58  ;;  %v779_v25 = vadd.f32 %v7386_v17, %v713_v24 }
 0x1c9   :  { %v1035_v36 = vrot.slane %v1027_v51, 1  ;;  %v792_v54 = vsel %vm177_vm0, %v790_v1, %v791_v14  ;;  %v648_v22 = vmul.f32 %v7491_v12, %v7389_v5  ;;  %v647_v16 = vmul.f32 %v7463_v31, %v7389_v5  ;;  %v7506_v5 = vpop.permute.xlu1 %903 }
 0x1ca   :  { %v539_v28 = vrot.slane %v531_v11, 1  ;;  %v787_v3 = vrot.slane %v779_v25, 1  ;;  %v850_v59 = vmul.f32 %v7542_v18, %v846_v53  ;;  %v848_v49 = vmul.f32 %v7491_v12, %v846_v53 }
 0x1cb   :  { %v1037_v27 = vsel %vm177_vm0, %v1035_v36, %v1036_v26  ;;  %v814_v17 = vrot.slane %v648_v22, 2  ;;  %v813_v2 = vrot.slane %v647_v16, 2  ;;  %v1084_v11 = vstv %s6425_s23  ;;  %s6564_s23 = sld [smem:[#allocation9 + $0x89]] }
 0x1cc   :  { %1043 = vrot.lane.b32.xlu0 %v1036_v26, %s6924_s12  ;;  %551 = vrot.lane.b32.xlu1 %v543_v57, %s6924_s12  ;;  %v541_v58 = vsel %vm177_vm0, %v539_v28, %v540_v8  ;;  %v789_v7 = vsel %vm177_vm0, %v787_v3, %v788_v60  ;;  %v906_v26 = vpop.permute.xlu0 %905  ;;  %v918_v35 = vadd.f32 %v7373_v20, %v850_v59  ;;  %v7557_v16 = vstv %s6492_s24  ;;  %s99_s24 = sld [smem:[#allocation6]] }
 0x1cd   :  { %v815_v33 = vsel %vm316_vm1, %v813_v2, %v814_v17  ;;  %v7508_v47 = vpop.permute.xlu1 %993  ;;  %v916_v62 = vadd.f32 %v906_v26, %v848_v49  ;;  %v7562_v2 = vstv %s6456_s25  ;;  %s6525_s25 = sld [smem:[#allocation9 + $0x63]] }
 0x1d0   :  { %296 = vrot.lane.b32.xlu0 %v292_v10, %s6924_s12  ;;  %799 = vrot.lane.b32.xlu1 %v791_v14, %s6924_s12  ;;  %v996_v29 = vpop.permute.xlu0 %995 }
 0x1d1   :  { %v7510_v57 = vpop.permute.xlu1 %989  ;;  %v1004_v51 = vadd.f32 %v996_v29, %v918_v35 }
 0x1d4   :  { %300 = vrot.lane.b32.xlu0 %v295_v15, %s6924_s12  ;;  %547 = vrot.lane.b32.xlu1 %v540_v8, %s6924_s12  ;;  %v992_v38 = vpop.permute.xlu0 %991 }
 0x1d5   :  { %v7512_v9 = vpop.permute.xlu1 %1071 }
 0x1d8   :  { %549 = vrot.lane.b32.xlu0 %v544_v63, %s6924_s12  ;;  %795 = vrot.lane.b32.xlu1 %v788_v60, %s6924_s12  ;;  %v1074_v37 = vpop.permute.xlu0 %1073  ;;  %v1002_v63 = vadd.f32 %v992_v38, %v916_v62 }
 0x1d9   :  { %v7514_v56 = vpop.permute.xlu1 %1067 }
 0x1dc   :  { %797 = vrot.lane.b32.xlu0 %v792_v54, %s6924_s12  ;;  %1045 = vrot.lane.b32.xlu1 %v1040_v61, %s6924_s12  ;;  %v1070_v50 = vpop.permute.xlu0 %1069 }
 0x1dd   :  { %v7516_v46 = vpop.permute.xlu1 %659 }
 0x1e0   :  { %545 = vrot.lane.b32.xlu0 %v541_v58, %s6924_s12  ;;  %1041 = vrot.lane.b32.xlu1 %v1037_v27, %s6924_s12  ;;  %v662_v14 = vpop.permute.xlu0 %661 }
 0x1e1   :  { %v7518_v0 = vpop.permute.xlu1 %499 }
 0x1e4   :  { %793 = vrot.lane.b32.xlu0 %v789_v7, %s6924_s12  ;;  %821 = vrot.lane.b32.xlu1 %v814_v17, %s6926_s19  ;;  %v7522_v32 = vpop.permute.xlu0 %655  ;;  %v849_v17 = vmul.f32 %v7448_v34, %v846_v53 }
 0x1e5   :  { %v7520_v41 = vpop.permute.xlu1 %657 }
 0x1e6   :  { %v917_v38 = vadd.f32 %v7376_v13, %v849_v17  ;;  %v7602_v17 = vstv %s6566_s1  ;;  %s6468_s1 = sld [smem:[#allocation9 + $0x2b]] }
 0x1e8   :  { %819 = vrot.lane.b32.xlu0 %v815_v33, %s6926_s19  ;;  %v7567_v33 = vstv %s6406_s26  ;;  %v1003_v62 = vadd.f32 %v7508_v47, %v917_v38  ;;  %s6562_s26 = sld [smem:[#allocation9 + $0x87]] }
 0x216   :  { %v7524_v42 = vpop.permute.xlu1 %747 }
 0x21a   :  { %v7526_v30 = vpop.permute.xlu0 %745 }
 0x226   :  { %v7528_v10 = vpop.permute.xlu1 %743 }
 0x22a   :  { %v7530_v23 = vpop.permute.xlu1 %577  ;;  %v7532_v4 = vpop.permute.xlu0 %741 }
 0x22e   :  { %v7534_v19 = vpop.permute.xlu1 %825  ;;  %v7536_v55 = vpop.permute.xlu0 %575 }
 0x232   :  { %v7538_v8 = vpop.permute.xlu1 %573  ;;  %v7540_v21 = vpop.permute.xlu0 %823 }
 0x236   :  { %v7546_v15 = vpop.permute.xlu1 %298  ;;  %v7548_v6 = vpop.permute.xlu0 %571 }
 0x23a   :  { %v7551_v60 = vpop.permute.xlu1 %302  ;;  %v1048_v24 = vpop.permute.xlu0 %1047 }
 0x23b   :  { %v1056_v1 = vadd.f32 %v1048_v24, %v1004_v51 }
 0x23d   :  { %v1082_v61 = vadd.f32 %v1074_v37, %v1056_v1  ;;  %v847_v37 = vmul.f32 %v7463_v31, %v846_v53 }
 0x23e   :  { %v7553_v36 = vpop.permute.xlu1 %551  ;;  %v1044_v28 = vpop.permute.xlu0 %1043 }
 0x23f   :  { %v1088_v25 = vadd.f32 %v1084_v11, %v1082_v61  ;;  %v1054_v54 = vadd.f32 %v1044_v28, %v1002_v63  ;;  %v915_v35 = vadd.f32 %v7506_v5, %v847_v37  ;;  %v7589_v28 = vstv %s6529_s27  ;;  %s339_s27 = sld [smem:[#allocation7]] }
 0x241   :  { %v7555_v22 = vmax.f32 %v1088_v25, 0.0  ;;  %v1080_v20 = vadd.f32 %v1070_v50, %v1054_v54  ;;  %v602_v50 = vmul.f32 %v7542_v18, %v7567_v33  ;;  %v1001_v63 = vadd.f32 %v7510_v57, %v915_v35 }
 0x242   :  { %v800_v3 = vpop.permute.xlu1 %799  ;;  %v7582_v51 = vpop.permute.xlu0 %296  ;;  %v600_v57 = vmul.f32 %v7491_v12, %v7567_v33 }
 0x243   :  { %v1086_v58 = vadd.f32 %v1084_v11, %v1080_v20  ;;  %v2326_v27 = vmul.f32 %v7557_v16, %v7555_v22  ;;  %v1284_v29 = vmul.f32 %v7562_v2, %v7555_v22  ;;  %v670_v13 = vadd.f32 %v662_v14, %v602_v50 }
 0x244   :  { %v4406_v38 = vmul.f32 %v7602_v17, %v7555_v22  ;;  %v668_v37 = vadd.f32 %v7520_v41, %v600_v57  ;;  %v7611_v50 = vstv %s6415_s3  ;;  %s6472_s3 = sld [smem:[#allocation9 + $0x2f]] }
 0x245   :  { %2691 = vrot.lane.b32.xlu1 %v2326_v27, %s6924_s12  ;;  %v7569_v26 = vmax.f32 %v1086_v58, 0.0  ;;  %v756_v5 = vadd.f32 %v7524_v42, %v670_v13  ;;  %v3366_v58 = vmul.f32 %v7589_v28, %v7555_v22 }
 0x246   :  { %v7565_v7 = vpop.permute.xlu1 %547  ;;  %v7593_v14 = vpop.permute.xlu0 %300 }
 0x247   :  { %12838 = vst [vmem:[#allocation30_spill] sm:$0xff] %v7569_v26  ;;  %v2324_v49 = vmul.f32 %v7557_v16, %v7569_v26  ;;  %v1282_v1 = vmul.f32 %v7562_v2, %v7569_v26  ;;  %v808_v20 = vadd.f32 %v800_v3, %v756_v5  ;;  %v3364_v41 = vmul.f32 %v7589_v28, %v7569_v26 }
 0x248   :  { %v2274_v5 = vstv %s6484_s28  ;;  %s6474_s28 = sld [smem:[#allocation9 + $0x31]] }
 0x249   :  { %1650 = vrot.lane.b32.xlu1 %v1284_v29, %s6924_s12  ;;  %v834_v42 = vadd.f32 %v7534_v19, %v808_v20 }
 0x24a   :  { %v796_v59 = vpop.permute.xlu1 %795 }
 0x24b   :  { %v840_v19 = vadd.f32 %v7611_v50, %v834_v42 }
 0x24d   :  { %2687 = vrot.lane.b32.xlu1 %v2324_v49, %s6924_s12  ;;  %v7613_v49 = vpop.permute.xlu0 %549 }
 0x24e   :  { %v1046_v53 = vpop.permute.xlu1 %1045 }
 0x24f   :  { %v1055_v24 = vadd.f32 %v1046_v53, %v1003_v62 }
 0x251   :  { %v1081_v61 = vadd.f32 %v7512_v9, %v1055_v24  ;;  %1646 = vrot.lane.b32.xlu1 %v1282_v1, %s6924_s12  ;;  %v798_v53 = vpop.permute.xlu0 %797  ;;  %v7629_v24 = vmax.f32 %v840_v19, 0.0 }
 0x252   :  { %v1042_v47 = vpop.permute.xlu1 %1041 }
 0x253   :  { %v1087_v25 = vadd.f32 %v1084_v11, %v1081_v61  ;;  %v1053_v54 = vadd.f32 %v1042_v47, %v1001_v63  ;;  %v4404_v61 = vmul.f32 %v7602_v17, %v7569_v26 }
 0x255   :  { %v7599_v27 = vmax.f32 %v1087_v25, 0.0  ;;  %v1079_v9 = vadd.f32 %v7514_v56, %v1053_v54  ;;  %3731 = vrot.lane.b32.xlu1 %v3366_v58, %s6924_s12  ;;  %v754_v56 = vadd.f32 %v7528_v10, %v668_v37  ;;  %v601_v10 = vmul.f32 %v7448_v34, %v7567_v33  ;;  %v7642_v20 = vpop.permute.xlu0 %545 }
 0x256   :  { %v822_v62 = vpop.permute.xlu1 %821  ;;  %v2278_v54 = vmul.f32 %v2274_v5, %v7629_v24  ;;  %v7664_v37 = vstv %s6490_s30  ;;  %s6482_s30 = sld [smem:[#allocation9 + $0x39]] }
 0x257   :  { %v1085_v29 = vadd.f32 %v1084_v11, %v1079_v9  ;;  %v2325_v3 = vmul.f32 %v7557_v16, %v7599_v27  ;;  %v1283_v35 = vmul.f32 %v7562_v2, %v7599_v27  ;;  %v806_v13 = vadd.f32 %v796_v59, %v754_v56 }
 0x258   :  { %v669_v59 = vadd.f32 %v7516_v46, %v601_v10  ;;  %v599_v46 = vmul.f32 %v7463_v31, %v7567_v33  ;;  %v4405_v33 = vmul.f32 %v7602_v17, %v7599_v27 }
 0x259   :  { %2689 = vrot.lane.b32.xlu0 %v2325_v3, %s6924_s12  ;;  %4771 = vrot.lane.b32.xlu1 %v4406_v38, %s6924_s12  ;;  %v7619_v11 = vmax.f32 %v1085_v29, 0.0  ;;  %v832_v1 = vadd.f32 %v822_v62, %v806_v13 }
 0x25a   :  { %v755_v58 = vadd.f32 %v7526_v30, %v669_v59  ;;  %v794_v30 = vpop.permute.xlu0 %793  ;;  %v667_v29 = vadd.f32 %v7522_v32, %v599_v46  ;;  %v3314_v46 = vstv %s6521_s11  ;;  %s6438_s11 = sld [smem:[#allocation9 + $0xd]] }
 0x25b   :  { %12839 = vst [vmem:[#allocation31_spill] sm:$0xff] %v7619_v11  ;;  %v2323_v63 = vmul.f32 %v7557_v16, %v7619_v11  ;;  %v838_v47 = vadd.f32 %v7611_v50, %v832_v1  ;;  %v1281_v25 = vmul.f32 %v7562_v2, %v7619_v11  ;;  %v7644_v16 = vstv %s6448_s29  ;;  %s6480_s29 = sld [smem:[#allocation9 + $0x37]] }
 0x25c   :  { %v807_v57 = vadd.f32 %v798_v53, %v755_v58  ;;  %v3365_v2 = vmul.f32 %v7589_v28, %v7599_v27  ;;  %v1236_v42 = vmul.f32 %v7644_v16, %v7629_v24  ;;  %v753_v56 = vadd.f32 %v7532_v4, %v667_v29 }
 0x25d   :  { %1648 = vrot.lane.b32.xlu0 %v1283_v35, %s6924_s12  ;;  %3727 = vrot.lane.b32.xlu1 %v3364_v41, %s6924_s12  ;;  %v7651_v9 = vmax.f32 %v838_v47, 0.0  ;;  %v3363_v32 = vmul.f32 %v7589_v28, %v7619_v11  ;;  %v4403_v4 = vmul.f32 %v7602_v17, %v7619_v11  ;;  %v1268_v28 = vstv %s6454_s10  ;;  %s6432_s10 = sld [smem:[#allocation9 + $0x7]] }
 0x25e   :  { %v833_v3 = vadd.f32 %v7540_v21, %v807_v57  ;;  %v2314_v21 = vmul.f32 %v7664_v37, %v7555_v22  ;;  %v820_v35 = vpop.permute.xlu0 %819  ;;  %v805_v41 = vadd.f32 %v794_v30, %v753_v56  ;;  %v1272_v1 = vmul.f32 %v1268_v28, %v7555_v22 }
 0x25f   :  { %v2276_v38 = vmul.f32 %v2274_v5, %v7651_v9  ;;  %v1234_v10 = vmul.f32 %v7644_v16, %v7651_v9  ;;  %v7689_v17 = vstv %s6396_s4  ;;  %v2312_v47 = vmul.f32 %v7664_v37, %v7569_v26  ;;  %s6436_s4 = sld [smem:[#allocation9 + $0xb]] }
 0x260   :  { %v839_v19 = vadd.f32 %v7611_v50, %v833_v3  ;;  %v831_v13 = vadd.f32 %v820_v35, %v805_v41  ;;  %v3318_v30 = vmul.f32 %v3314_v46, %v7629_v24  ;;  %v4354_v29 = vstv %s6558_s13  ;;  %s6444_s13 = sld [smem:[#allocation9 + $0x13]] }
 0x261   :  { %2685 = vrot.lane.b32.xlu0 %v2323_v63, %s6924_s12  ;;  %4767 = vrot.lane.b32.xlu1 %v4404_v61, %s6924_s12  ;;  %v354_v61 = vmul.f32 %v7542_v18, %v7689_v17  ;;  %v4358_v3 = vmul.f32 %v4354_v29, %v7629_v24  ;;  %v7737_v35 = vstv %s6527_s16  ;;  %s6491_s16 = sld [smem:[#allocation9 + $0x42]] }
 0x262   :  { %v7676_v62 = vmax.f32 %v839_v19, 0.0  ;;  %v837_v53 = vadd.f32 %v7611_v50, %v831_v13  ;;  %v1271_v19 = vmul.f32 %v1268_v28, %v7599_v27  ;;  %v3354_v13 = vmul.f32 %v7737_v35, %v7555_v22 }
 0x264   :  { %v2277_v63 = vmul.f32 %v2274_v5, %v7676_v62  ;;  %v7693_v59 = vmax.f32 %v837_v53, 0.0  ;;  %v1235_v50 = vmul.f32 %v7644_v16, %v7676_v62 }
 0x265   :  { %1644 = vrot.lane.b32.xlu0 %v1281_v25, %s6924_s12  ;;  %2605 = vrot.lane.b32.xlu1 %v2278_v54, %s6924_s12  ;;  %v422_v25 = vadd.f32 %v7192_v43, %v354_v61  ;;  %v1270_v54 = vmul.f32 %v1268_v28, %v7569_v26  ;;  %v2313_v43 = vmul.f32 %v7664_v37, %v7599_v27 }
 0x266   :  { %v2275_v58 = vmul.f32 %v2274_v5, %v7693_v59  ;;  %v4357_v61 = vmul.f32 %v4354_v29, %v7676_v62 }
 0x267   :  { %v508_v57 = vadd.f32 %v7518_v0, %v422_v25 }
 0x269   :  { %3729 = vrot.lane.b32.xlu0 %v3365_v2, %s6924_s12  ;;  %1564 = vrot.lane.b32.xlu1 %v1236_v42, %s6924_s12  ;;  %v352_v2 = vmul.f32 %v7491_v12, %v7689_v17  ;;  %v560_v42 = vadd.f32 %v7553_v36, %v508_v57  ;;  %v7720_v36 = vstv %s6405_s15  ;;  %s6446_s15 = sld [smem:[#allocation9 + $0x15]] }
 0x26b   :  { %v420_v0 = vadd.f32 %v7184_v39, %v352_v2  ;;  %v586_v5 = vadd.f32 %v7530_v23, %v560_v42  ;;  %v3316_v23 = vmul.f32 %v3314_v46, %v7651_v9  ;;  %v7786_v2 = vstv %s6513_s18  ;;  %s6565_s18 = sld [smem:[#allocation9 + $0x8a]] }
 0x26d   :  { %4769 = vrot.lane.b32.xlu0 %v4405_v33, %s6924_s12  ;;  %2601 = vrot.lane.b32.xlu1 %v2276_v38, %s6924_s12  ;;  %v1233_v33 = vmul.f32 %v7644_v16, %v7693_v59  ;;  %v506_v38 = vadd.f32 %v7346_v48, %v420_v0  ;;  %v592_v56 = vadd.f32 %v7720_v36, %v586_v5  ;;  %v7802_v5 = vstv %s6550_s20  ;;  %s6483_s20 = sld [smem:[#allocation9 + $0x3a]] }
 0x26f   :  { %v558_v39 = vadd.f32 %v7565_v7, %v506_v38  ;;  %v7731_v16 = vmax.f32 %v592_v56, 0.0  ;;  %v7739_v7 = vstv %s6476_s2  ;;  %s6455_s2 = sld [smem:[#allocation9 + $0x1e]] }
 0x271   :  { %3725 = vrot.lane.b32.xlu0 %v3363_v32, %s6924_s12  ;;  %2671 = vrot.lane.b32.xlu1 %v2314_v21, %s6924_s12  ;;  %v584_v48 = vadd.f32 %v7538_v8, %v558_v39  ;;  %v4356_v32 = vmul.f32 %v4354_v29, %v7651_v9  ;;  %v2311_v21 = vmul.f32 %v7664_v37, %v7619_v11  ;;  %v7751_v37 = vstv %s6440_s17  ;;  %s6528_s17 = sld [smem:[#allocation9 + $0x66]] }
 0x272   :  { %v1269_v8 = vmul.f32 %v1268_v28, %v7619_v11  ;;  %v1256_v39 = vstv %s6452_s22  ;;  %s6486_s22 = sld [smem:[#allocation9 + $0x3d]] }
 0x273   :  { %v590_v41 = vadd.f32 %v7720_v36, %v584_v48  ;;  %v1259_v48 = vmul.f32 %v1256_v39, %v7599_v27 }
 0x275   :  { %4765 = vrot.lane.b32.xlu0 %v4403_v4, %s6924_s12  ;;  %1560 = vrot.lane.b32.xlu1 %v1234_v10, %s6924_s12  ;;  %v7749_v4 = vmul.f32 %v7739_v7, %v7731_v16  ;;  %v7755_v10 = vmax.f32 %v590_v41, 0.0 }
 0x277   :  { %v2511_v53 = vrot.slane %v7749_v4, 1 }
 0x279   :  { %1630 = vrot.lane.b32.xlu1 %v1272_v1, %s6924_s12  ;;  %2603 = vrot.lane.b32.xlu0 %v2277_v63, %s6924_s12  ;;  %v3317_v1 = vmul.f32 %v3314_v46, %v7676_v62  ;;  %v7761_v63 = vmul.f32 %v7751_v37, %v7731_v16 }
 0x27b   :  { %v1470_v28 = vrot.slane %v7761_v63, 1 }
 0x27d   :  { %2667 = vrot.lane.b32.xlu1 %v2312_v47, %s6924_s12  ;;  %1562 = vrot.lane.b32.xlu0 %v1235_v50, %s6924_s12  ;;  %v7771_v47 = vmul.f32 %v7739_v7, %v7755_v10  ;;  %v353_v50 = vmul.f32 %v7448_v34, %v7689_v17 }
 0x27f   :  { %v2508_v25 = vrot.slane %v7771_v47, 1  ;;  %v421_v57 = vadd.f32 %v7194_v44, %v353_v50  ;;  %v351_v44 = vmul.f32 %v7463_v31, %v7689_v17 }
 0x281   :  { %1626 = vrot.lane.b32.xlu1 %v1270_v54, %s6924_s12  ;;  %2599 = vrot.lane.b32.xlu0 %v2275_v58, %s6924_s12  ;;  %v3315_v54 = vmul.f32 %v3314_v46, %v7693_v59  ;;  %v7783_v58 = vmul.f32 %v7751_v37, %v7755_v10  ;;  %v507_v42 = vadd.f32 %v7350_v52, %v421_v57  ;;  %v2298_v52 = vstv %s6488_s21  ;;  %s6475_s21 = sld [smem:[#allocation9 + $0x32]] }
 0x282   :  { %v4355_v46 = vmul.f32 %v4354_v29, %v7693_v59  ;;  %v2301_v31 = vmul.f32 %v2298_v52, %v7599_v27  ;;  %v2302_v56 = vmul.f32 %v2298_v52, %v7555_v22  ;;  %v2299_v41 = vmul.f32 %v2298_v52, %v7619_v11 }
 0x283   :  { %v559_v0 = vadd.f32 %v7613_v49, %v507_v42  ;;  %v419_v49 = vadd.f32 %v7186_v40, %v351_v44  ;;  %v1258_v44 = vmul.f32 %v1256_v39, %v7569_v26 }
 0x284   :  { %v2639_v50 = vrot.slane %v2299_v41, 6 }
 0x285   :  { %3645 = vrot.lane.b32.xlu1 %v3318_v30, %s6924_s12  ;;  %2669 = vrot.lane.b32.xlu0 %v2313_v43, %s6924_s12  ;;  %v1467_v30 = vrot.slane %v7783_v58, 1  ;;  %v7797_v43 = vmul.f32 %v7786_v2, %v7731_v16  ;;  %v585_v17 = vadd.f32 %v7536_v55, %v559_v0  ;;  %v505_v38 = vadd.f32 %v7344_v45, %v419_v49 }
 0x286   :  { %v1260_v45 = vmul.f32 %v1256_v39, %v7555_v22 }
 0x287   :  { %v3551_v29 = vrot.slane %v7797_v43, 1  ;;  %v591_v40 = vadd.f32 %v7720_v36, %v585_v17  ;;  %v557_v55 = vadd.f32 %v7642_v20, %v505_v38  ;;  %v1599_v17 = vrot.slane %v1258_v44, 6 }
 0x288   :  { %v1602_v20 = vrot.slane %v1260_v45, 6  ;;  %v7876_v45 = vmul.f32 %v7786_v2, %v7755_v10 }
 0x289   :  { %4685 = vrot.lane.b32.xlu1 %v4358_v3, %s6924_s12  ;;  %1558 = vrot.lane.b32.xlu0 %v1233_v33, %s6924_s12  ;;  %v3353_v3 = vmul.f32 %v7737_v35, %v7599_v27  ;;  %v7813_v33 = vmul.f32 %v7802_v5, %v7731_v16 }
 0x28a   :  { %v3548_v41 = vrot.slane %v7876_v45, 1 }
 0x28d   :  { %3641 = vrot.lane.b32.xlu1 %v3316_v23, %s6924_s12  ;;  %1628 = vrot.lane.b32.xlu0 %v1271_v19, %s6924_s12  ;;  %v4591_v23 = vrot.slane %v7813_v33, 1  ;;  %v2642_v19 = vrot.slane %v2301_v31, 6 }
 0x291   :  { %4681 = vrot.lane.b32.xlu1 %v4356_v32, %s6924_s12  ;;  %2665 = vrot.lane.b32.xlu0 %v2311_v21, %s6924_s12  ;;  %v2643_v32 = vrot.slane %v2302_v56, 6  ;;  %v1601_v21 = vrot.slane %v1259_v48, 6  ;;  %v7860_v56 = vstv %s6564_s23  ;;  %s6447_s23 = sld [smem:[#allocation9 + $0x16]] }
 0x292   :  { %v4392_v43 = vmul.f32 %v7860_v56, %v7569_v26 }
 0x293   :  { %v1603_v42 = vsel %vm1399_vm2, %v1601_v21, %v1602_v20  ;;  %v7901_v20 = vmul.f32 %v7802_v5, %v7755_v10 }
 0x295   :  { %3711 = vrot.lane.b32.xlu1 %v3354_v13, %s6924_s12  ;;  %1624 = vrot.lane.b32.xlu0 %v1269_v8, %s6924_s12  ;;  %v7834_v13 = vmax.f32 %v591_v40, 0.0  ;;  %v583_v8 = vadd.f32 %v7548_v6, %v557_v55  ;;  %v4588_v58 = vrot.slane %v7901_v20, 1  ;;  %v4391_v20 = vmul.f32 %v7860_v56, %v7619_v11 }
 0x297   :  { %v589_v57 = vadd.f32 %v7720_v36, %v583_v8  ;;  %v2229_v6 = vmul.f32 %v7739_v7, %v7834_v13  ;;  %v1187_v49 = vmul.f32 %v7751_v37, %v7834_v13 }
 0x299   :  { %2519 = vrot.lane.b32.xlu1 %v2511_v53, %s6925_s14  ;;  %3643 = vrot.lane.b32.xlu0 %v3317_v1, %s6924_s12  ;;  %v2644_v1 = vsel %vm1399_vm2, %v2642_v19, %v2643_v32  ;;  %v2510_v36 = vrot.slane %v2229_v6, 1  ;;  %v1469_v48 = vrot.slane %v1187_v49, 1  ;;  %v4394_v32 = vmul.f32 %v7860_v56, %v7555_v22 }
 0x29b   :  { %v1471_v4 = vsel %vm177_vm0, %v1469_v48, %v1470_v28 }
 0x29d   :  { %1478 = vrot.lane.b32.xlu1 %v1470_v28, %s6925_s14  ;;  %4683 = vrot.lane.b32.xlu0 %v4357_v61, %s6924_s12  ;;  %v2300_v61 = vmul.f32 %v2298_v52, %v7569_v26  ;;  %v3269_v28 = vmul.f32 %v7786_v2, %v7834_v13 }
 0x2a1   :  { %2515 = vrot.lane.b32.xlu1 %v2508_v25, %s6925_s14  ;;  %3639 = vrot.lane.b32.xlu0 %v3315_v54, %s6924_s12  ;;  %v1257_v54 = vmul.f32 %v1256_v39, %v7619_v11 }
 0x2a3   :  { %v1598_v52 = vrot.slane %v1257_v54, 6 }
 0x2a5   :  { %1474 = vrot.lane.b32.xlu1 %v1467_v30, %s6925_s14  ;;  %4679 = vrot.lane.b32.xlu0 %v4355_v46, %s6924_s12  ;;  %v2640_v46 = vrot.slane %v2300_v61, 6  ;;  %v1600_v39 = vsel %vm1399_vm2, %v1598_v52, %v1599_v17  ;;  %v4309_v61 = vmul.f32 %v7802_v5, %v7834_v13 }
 0x2a7   :  { %v2641_v31 = vsel %vm1399_vm2, %v2639_v50, %v2640_v46  ;;  %v4590_v46 = vrot.slane %v4309_v61, 1 }
 0x2a9   :  { %3559 = vrot.lane.b32.xlu1 %v3551_v29, %s6925_s14  ;;  %3709 = vrot.lane.b32.xlu0 %v3353_v3, %s6924_s12  ;;  %v7851_v3 = vmax.f32 %v589_v57, 0.0  ;;  %v4592_v17 = vsel %vm177_vm0, %v4590_v46, %v4591_v23 }
 0x2ab   :  { %v2227_v40 = vmul.f32 %v7739_v7, %v7851_v3  ;;  %v1185_v7 = vmul.f32 %v7751_v37, %v7851_v3  ;;  %v3267_v48 = vmul.f32 %v7786_v2, %v7851_v3 }
 0x2ad   :  { %4599 = vrot.lane.b32.xlu1 %v4591_v23, %s6925_s14  ;;  %2649 = vrot.lane.b32.xlu0 %v2642_v19, %s6925_s14  ;;  %v2512_v19 = vsel %vm177_vm0, %v2510_v36, %v2511_v53  ;;  %v2507_v53 = vrot.slane %v2227_v40, 1  ;;  %v1466_v8 = vrot.slane %v1185_v7, 1  ;;  %v12841_v40 = vld [vmem:[#allocation29_spill] sm:$0xff]  ;;  %v4393_v7 = vmul.f32 %v7860_v56, %v7599_v27 }
 0x2ae   :  { %v8037_v56 = vstv %s6474_s28  ;;  %s6509_s28 = sld [smem:[#allocation9 + $0x53]] }
 0x2af   :  { %v2509_v63 = vsel %vm177_vm0, %v2507_v53, %v2508_v25  ;;  %v1468_v47 = vsel %vm177_vm0, %v1466_v8, %v1467_v30  ;;  %v3550_v25 = vrot.slane %v3269_v28, 1  ;;  %v3338_v30 = vstv %s6525_s25  ;;  %s6450_s25 = sld [smem:[#allocation9 + $0x19]] }
 0x2b0   :  { %v7923_v44 = vmul.f32 %v3338_v30, %v7599_v27  ;;  %v7958_v2 = vmul.f32 %v3338_v30, %v7619_v11  ;;  %v3547_v28 = vrot.slane %v3267_v48, 1 }
 0x2b1   :  { %2651 = vrot.lane.b32.xlu1 %v2644_v1, %s6925_s14  ;;  %1608 = vrot.lane.b32.xlu0 %v1601_v21, %s6925_s14  ;;  %v3352_v1 = vmul.f32 %v7737_v35, %v7569_v26  ;;  %v3552_v6 = vsel %vm177_vm0, %v3550_v25, %v3551_v29  ;;  %v4378_v29 = vstv %s6562_s26  ;;  %s6487_s26 = sld [smem:[#allocation9 + $0x3e]] }
 0x2b2   :  { %v4382_v33 = vmul.f32 %v4378_v29, %v7555_v22 }
 0x2b5   :  { %1610 = vrot.lane.b32.xlu1 %v1603_v42, %s6925_s14  ;;  %2645 = vrot.lane.b32.xlu0 %v2639_v50, %s6925_s14  ;;  %v7910_v50 = vstv %s99_s24  ;;  %s6439_s24 = sld [smem:[#allocation9 + $0xe]] }
 0x2b6   :  { %v104_v54 = vmul.f32 %v7542_v18, %v7910_v50  ;;  %v3342_v18 = vmul.f32 %v3338_v30, %v7555_v22 }
 0x2b7   :  { %v7849_v0 = vpop.permute.xlu1 %2691 }
 0x2b8   :  { %v3683_v45 = vrot.slane %v3342_v18, 6  ;;  %v3549_v18 = vsel %vm177_vm0, %v3547_v28, %v3548_v41 }
 0x2b9   :  { %2647 = vrot.lane.b32.xlu1 %v2641_v31, %s6925_s14  ;;  %1604 = vrot.lane.b32.xlu0 %v1598_v52, %s6925_s14  ;;  %v12840_v52 = vld [vmem:[#allocation20_spill] sm:$0xff] }
 0x2ba   :  { %v172_v31 = vadd.f32 %v12840_v52, %v104_v54  ;;  %v7978_v52 = vmul.f32 %v4378_v29, %v7619_v11 }
 0x2bb   :  { %v7858_v38 = vpop.permute.xlu1 %1650 }
 0x2bd   :  { %1606 = vrot.lane.b32.xlu1 %v1600_v39, %s6925_s14  ;;  %2517 = vrot.lane.b32.xlu0 %v2512_v19, %s6925_s14  ;;  %v3682_v39 = vrot.slane %v7923_v44, 6  ;;  %v7942_v19 = vmul.f32 %v4378_v29, %v7599_v27 }
 0x2bf   :  { %v7870_v55 = vpop.permute.xlu1 %2687  ;;  %v4722_v8 = vrot.slane %v7942_v19, 6  ;;  %v102_v19 = vmul.f32 %v7491_v12, %v7910_v50 }
 0x2c1   :  { %4751 = vrot.lane.b32.xlu1 %v4394_v32, %s6924_s12  ;;  %1476 = vrot.lane.b32.xlu0 %v1471_v4, %s6925_s14  ;;  %v259_v32 = vadd.f32 %v12841_v40, %v172_v31  ;;  %v7984_v31 = vstv %s339_s27  ;;  %s6496_s27 = sld [smem:[#allocation9 + $0x47]] }
 0x2c3   :  { %v7885_v21 = vpop.permute.xlu1 %1646  ;;  %v311_v23 = vadd.f32 %v7551_v60, %v259_v32  ;;  %v4723_v60 = vrot.slane %v4382_v33, 6  ;;  %v3351_v32 = vmul.f32 %v7737_v35, %v7619_v11 }
 0x2c5   :  { %3555 = vrot.lane.b32.xlu1 %v3548_v41, %s6925_s14  ;;  %2513 = vrot.lane.b32.xlu0 %v2509_v63, %s6925_s14  ;;  %v3684_v63 = vsel %vm1399_vm2, %v3682_v39, %v3683_v45  ;;  %v4724_v46 = vsel %vm1399_vm2, %v4722_v8, %v4723_v60  ;;  %v4719_v45 = vrot.slane %v7978_v52, 6  ;;  %v12846_v52 = vld [vmem:[#allocation28_spill] sm:$0xff] }
 0x2c7   :  { %v7895_v37 = vpop.permute.xlu1 %3731 }
 0x2c9   :  { %3707 = vrot.lane.b32.xlu1 %v3352_v1, %s6924_s12  ;;  %1472 = vrot.lane.b32.xlu0 %v1468_v47, %s6925_s14  ;;  %v3340_v1 = vmul.f32 %v3338_v30, %v7569_v26  ;;  %v12842_v47 = vld [vmem:[#allocation24_spill] sm:$0xff]  ;;  %v4307_v30 = vmul.f32 %v7802_v5, %v7851_v3 }
 0x2ca   :  { %v338_v25 = vadd.f32 %v12842_v47, %v311_v23  ;;  %v103_v23 = vmul.f32 %v7448_v34, %v7910_v50  ;;  %v12844_v34 = vld [vmem:[#allocation18_spill] sm:$0xff] }
 0x2cb   :  { %v7914_v57 = vpop.permute.xlu1 %4771  ;;  %v7916_v42 = vpop.permute.xlu0 %2689  ;;  %v4587_v33 = vrot.slane %v4307_v30, 1 }
 0x2cc   :  { %v344_v48 = vadd.f32 %v7984_v31, %v338_v25  ;;  %v171_v47 = vadd.f32 %v12844_v34, %v103_v23  ;;  %v2218_v23 = vmul.f32 %v8037_v56, %v7731_v16 }
 0x2cd   :  { %4595 = vrot.lane.b32.xlu1 %v4588_v58, %s6925_s14  ;;  %3557 = vrot.lane.b32.xlu0 %v3552_v6, %s6925_s14  ;;  %v3679_v6 = vrot.slane %v7958_v2, 6  ;;  %v4589_v60 = vsel %vm177_vm0, %v4587_v33, %v4588_v58  ;;  %v8025_v58 = vstv %s6472_s3  ;;  %s6505_s3 = sld [smem:[#allocation9 + $0x4f]] }
 0x2ce   :  { %v258_v30 = vadd.f32 %v12846_v52, %v171_v47 }
 0x2cf   :  { %v7931_v36 = vpop.permute.xlu1 %3727  ;;  %v7933_v49 = vpop.permute.xlu0 %1648 }
 0x2d1   :  { %4747 = vrot.lane.b32.xlu1 %v4392_v43, %s6924_s12  ;;  %4597 = vrot.lane.b32.xlu0 %v4592_v17, %s6925_s14  ;;  %v3680_v43 = vrot.slane %v3340_v1, 6  ;;  %v4380_v17 = vmul.f32 %v4378_v29, %v7569_v26  ;;  %v8014_v1 = vstv %s6468_s1  ;;  %s6451_s1 = sld [smem:[#allocation9 + $0x1a]] }
 0x2d3   :  { %v7951_v4 = vpop.permute.xlu1 %4767  ;;  %v7953_v53 = vpop.permute.xlu0 %2685  ;;  %v3681_v5 = vsel %vm1399_vm2, %v3679_v6, %v3680_v43  ;;  %v4720_v29 = vrot.slane %v4380_v17, 6  ;;  %v310_v43 = vadd.f32 %v7593_v14, %v258_v30 }
 0x2d5   :  { %3691 = vrot.lane.b32.xlu1 %v3684_v63, %s6925_s14  ;;  %4749 = vrot.lane.b32.xlu0 %v4393_v7, %s6924_s12  ;;  %v8002_v7 = vmax.f32 %v344_v48, 0.0  ;;  %v4721_v28 = vsel %vm1399_vm2, %v4719_v45, %v4720_v29 }
 0x2d7   :  { %v7968_v61 = vpop.permute.xlu1 %2605  ;;  %v7970_v54 = vpop.permute.xlu0 %1644  ;;  %12843 = vst [vmem:[#allocation20_spill] sm:$0xff] %v8002_v7 }
 0x2d9   :  { %4731 = vrot.lane.b32.xlu1 %v4724_v46, %s6925_s14  ;;  %3553 = vrot.lane.b32.xlu0 %v3549_v18, %s6925_s14  ;;  %v2182_v18 = vmul.f32 %v8014_v1, %v8002_v7 }
 0x2db   :  { %v7988_v40 = vpop.permute.xlu1 %1564  ;;  %v7990_v41 = vpop.permute.xlu0 %3729 }
 0x2dd   :  { %3687 = vrot.lane.b32.xlu1 %v3681_v5, %s6925_s14  ;;  %3705 = vrot.lane.b32.xlu0 %v3351_v32, %s6924_s12  ;;  %v2206_v32 = vmul.f32 %v8025_v58, %v7731_v16  ;;  %v12848_v5 = vld [vmem:[#allocation25_spill] sm:$0xff] }
 0x2de   :  { %v337_v33 = vadd.f32 %v12848_v5, %v310_v43  ;;  %v8081_v43 = vstv %s6432_s10  ;;  %s6517_s10 = sld [smem:[#allocation9 + $0x5b]] }
 0x2df   :  { %v8004_v63 = vpop.permute.xlu1 %2601  ;;  %v8006_v35 = vpop.permute.xlu0 %4769  ;;  %v1140_v12 = vmul.f32 %v8081_v43, %v8002_v7 }
 0x2e0   :  { %v343_v44 = vadd.f32 %v7984_v31, %v337_v33 }
 0x2e1   :  { %4727 = vrot.lane.b32.xlu1 %v4721_v28, %s6925_s14  ;;  %4593 = vrot.lane.b32.xlu0 %v4589_v60, %s6925_s14  ;;  %v8050_v28 = vstv %s6480_s29  ;;  %v8052_v60 = vstv %s6482_s30  ;;  %s6511_s29 = sld [smem:[#allocation9 + $0x55]] }
 0x2e2   :  { %v2254_v47 = vmul.f32 %v8050_v28, %v7629_v24  ;;  %s6489_s30 = sld [smem:[#allocation9 + $0x40]] }
 0x2e3   :  { %v8017_v25 = vpop.permute.xlu1 %2671  ;;  %v8019_v46 = vpop.permute.xlu0 %3725 }
 0x2e4   :  { %12845 = vst [vmem:[#allocation29_spill] sm:$0xff] %v8017_v25 }
 0x2e5   :  { %2427 = vrot.lane.b32.xlu1 %v2182_v18, %s6924_s12  ;;  %4745 = vrot.lane.b32.xlu0 %v4391_v20, %s6924_s12  ;;  %v2266_v18 = vmul.f32 %v8052_v60, %v7629_v24 }
 0x2e7   :  { %v8031_v17 = vpop.permute.xlu1 %1560  ;;  %v8033_v48 = vpop.permute.xlu0 %4765  ;;  %v2577_v30 = vrot.slane %v2266_v18, 1 }
 0x2e8   :  { %12847 = vst [vmem:[#allocation24_spill] sm:$0xff] %v8031_v17 }
 0x2e9   :  { %2473 = vrot.lane.b32.xlu1 %v2206_v32, %s6924_s12  ;;  %3689 = vrot.lane.b32.xlu0 %v3682_v39, %s6925_s14  ;;  %v12854_v32 = vld [vmem:[#allocation21_spill] sm:$0xff] }
 0x2ea   :  { %v170_v2 = vadd.f32 %v12854_v32, %v102_v19 }
 0x2eb   :  { %v8044_v29 = vpop.permute.xlu1 %1630  ;;  %v8046_v14 = vpop.permute.xlu0 %2603 }
 0x2ec   :  { %12849 = vst [vmem:[#allocation18_spill] sm:$0xff] %v8044_v29  ;;  %v2253_v29 = vmul.f32 %v8050_v28, %v7676_v62 }
 0x2ed   :  { %2493 = vrot.lane.b32.xlu1 %v2218_v23, %s6924_s12  ;;  %4729 = vrot.lane.b32.xlu0 %v4722_v8, %s6925_s14  ;;  %v8073_v8 = vmax.f32 %v343_v44, 0.0  ;;  %v8092_v23 = vstv %s6436_s4  ;;  %v12857_v44 = vld [vmem:[#allocation27_spill] sm:$0xff]  ;;  %s6519_s4 = sld [smem:[#allocation9 + $0x5d]] }
 0x2ee   :  { %v1164_v32 = vmul.f32 %v8092_v23, %v7731_v16 }
 0x2ef   :  { %v8059_v39 = vpop.permute.xlu1 %2667  ;;  %v8061_v34 = vpop.permute.xlu0 %1562  ;;  %12851 = vst [vmem:[#allocation25_spill] sm:$0xff] %v8073_v8  ;;  %v2181_v33 = vmul.f32 %v8014_v1, %v8073_v8 }
 0x2f0   :  { %12850 = vst [vmem:[#allocation28_spill] sm:$0xff] %v8059_v39  ;;  %v8121_v39 = vstv %s6446_s15  ;;  %s6548_s15 = sld [smem:[#allocation9 + $0x79]] }
 0x2f1   :  { %2559 = vrot.lane.b32.xlu1 %v2254_v47, %s6924_s12  ;;  %3685 = vrot.lane.b32.xlu0 %v3679_v6, %s6925_s14 }
 0x2f3   :  { %v8075_v20 = vpop.permute.xlu1 %1626  ;;  %v8077_v52 = vpop.permute.xlu0 %2599 }
 0x2f4   :  { %12852 = vst [vmem:[#allocation32_spill] sm:$0xff] %v8075_v20  ;;  %12853 = vst [vmem:[#allocation33_spill] sm:$0xff] %v8077_v52  ;;  %v2205_v20 = vmul.f32 %v8025_v58, %v7834_v13 }
 0x2f5   :  { %2585 = vrot.lane.b32.xlu1 %v2577_v30, %s6925_s14  ;;  %4725 = vrot.lane.b32.xlu0 %v4719_v45, %s6925_s14  ;;  %v257_v45 = vadd.f32 %v12857_v44, %v170_v2  ;;  %v12860_v2 = vld [vmem:[#allocation22_spill] sm:$0xff] }
 0x2f7   :  { %v8084_v6 = vpop.permute.xlu1 %3645  ;;  %v8086_v5 = vpop.permute.xlu0 %2669  ;;  %v309_v47 = vadd.f32 %v7546_v15, %v257_v45  ;;  %v2217_v45 = vmul.f32 %v8037_v56, %v7834_v13 }
 0x2f8   :  { %12855 = vst [vmem:[#allocation21_spill] sm:$0xff] %v8084_v6  ;;  %12856 = vst [vmem:[#allocation34_spill] sm:$0xff] %v8086_v5  ;;  %v8106_v6 = vstv %s6438_s11  ;;  %s6542_s11 = sld [smem:[#allocation9 + $0x73]] }
 0x2f9   :  { %1385 = vrot.lane.b32.xlu1 %v1140_v12, %s6924_s12  ;;  %2425 = vrot.lane.b32.xlu0 %v2181_v33, %s6924_s12  ;;  %v336_v12 = vadd.f32 %v12860_v2, %v309_v47  ;;  %v1176_v44 = vmul.f32 %v8106_v6, %v7731_v16 }
 0x2fb   :  { %v8098_v18 = vpop.permute.xlu1 %4685  ;;  %v8100_v19 = vpop.permute.xlu0 %1558  ;;  %v342_v47 = vadd.f32 %v7984_v31, %v336_v12  ;;  %v8142_v12 = vstv %s6491_s16  ;;  %s6554_s16 = sld [smem:[#allocation9 + $0x7f]] }
 0x2fc   :  { %12858 = vst [vmem:[#allocation27_spill] sm:$0xff] %v8098_v18  ;;  %12859 = vst [vmem:[#allocation35_spill] sm:$0xff] %v8100_v19  ;;  %v8119_v18 = vstv %s6444_s13  ;;  %s6546_s13 = sld [smem:[#allocation9 + $0x77]] }
 0x2fd   :  { %1432 = vrot.lane.b32.xlu1 %v1164_v32, %s6924_s12  ;;  %2471 = vrot.lane.b32.xlu0 %v2205_v20, %s6924_s12  ;;  %v2265_v20 = vmul.f32 %v8052_v60, %v7676_v62  ;;  %v1211_v17 = vmul.f32 %v8119_v18, %v7676_v62 }
 0x2ff   :  { %v8111_v15 = vpop.permute.xlu1 %3641  ;;  %v8113_v33 = vpop.permute.xlu0 %1628 }
 0x300   :  { %12861 = vst [vmem:[#allocation22_spill] sm:$0xff] %v8111_v15  ;;  %12862 = vst [vmem:[#allocation36_spill] sm:$0xff] %v8113_v33  ;;  %v1212_v15 = vmul.f32 %v8119_v18, %v7629_v24  ;;  %v8138_v33 = vmul.f32 %v8121_v39, %v7629_v24 }
 0x301   :  { %1452 = vrot.lane.b32.xlu1 %v1176_v44, %s6924_s12  ;;  %2491 = vrot.lane.b32.xlu0 %v2217_v45, %s6924_s12  ;;  %v2576_v44 = vrot.slane %v2265_v20, 1  ;;  %v6818_v45 = vld [vmem:[#allocation2] sm:$0xff] }
 0x302   :  { %v1536_v7 = vrot.slane %v8138_v33, 1  ;;  %v1139_v33 = vmul.f32 %v8081_v43, %v8073_v8 }
 0x303   :  { %v8128_v32 = vpop.permute.xlu1 %4681  ;;  %v8130_v2 = vpop.permute.xlu0 %2665  ;;  %v2578_v19 = vsel %vm177_vm0, %v2576_v44, %v2577_v30  ;;  %v12869_v44 = vld [vmem:[#allocation26_spill] sm:$0xff] }
 0x304   :  { %12863 = vst [vmem:[#allocation37_spill] sm:$0xff] %v8128_v32  ;;  %12864 = vst [vmem:[#allocation38_spill] sm:$0xff] %v8130_v2  ;;  %v101_v32 = vmul.f32 %v6818_v45, %v7910_v50  ;;  %v8145_v2 = vmax.f32 %v342_v47, 0.0  ;;  %v12867_v50 = vld [vmem:[#allocation19_spill] sm:$0xff] }
 0x305   :  { %1518 = vrot.lane.b32.xlu1 %v1212_v15, %s6924_s12  ;;  %2557 = vrot.lane.b32.xlu0 %v2253_v29, %s6924_s12  ;;  %v2320_v15 = vmul.f32 %v8142_v12, %v7555_v22  ;;  %v8157_v29 = vstv %s6455_s2  ;;  %s6556_s2 = sld [smem:[#allocation9 + $0x81]] }
 0x306   :  { %v169_v20 = vadd.f32 %v12867_v50, %v101_v32  ;;  %v2180_v30 = vmul.f32 %v8014_v1, %v8145_v2 }
 0x307   :  { %v8147_v25 = vpop.permute.xlu1 %3711  ;;  %v8149_v5 = vpop.permute.xlu0 %1624  ;;  %v8161_v47 = vadd.f32 %v7849_v0, %v2320_v15 }
 0x308   :  { %12865 = vst [vmem:[#allocation39_spill] sm:$0xff] %v8147_v25  ;;  %12866 = vst [vmem:[#allocation40_spill] sm:$0xff] %v8149_v5  ;;  %v256_v5 = vadd.f32 %v12869_v44, %v169_v20  ;;  %v1163_v20 = vmul.f32 %v8092_v23, %v7834_v13 }
 0x309   :  { %1544 = vrot.lane.b32.xlu1 %v1536_v7, %s6925_s14  ;;  %2583 = vrot.lane.b32.xlu0 %v2578_v19, %s6925_s14  ;;  %v1278_v19 = vmul.f32 %v8157_v29, %v7555_v22  ;;  %v12757_v32 = vrot.slane %v8161_v47, 1 }
 0x30a   :  { %v308_v0 = vadd.f32 %v7582_v51, %v256_v5  ;;  %v12871_v51 = vld [vmem:[#allocation23_spill] sm:$0xff] }
 0x30b   :  { %v8163_v45 = vpop.permute.xlu1 %2519  ;;  %v8165_v25 = vpop.permute.xlu0 %3643  ;;  %v8179_v15 = vadd.f32 %v7858_v38, %v1278_v19 }
 0x30c   :  { %12868 = vst [vmem:[#allocation19_spill] sm:$0xff] %v8165_v25  ;;  %v335_v38 = vadd.f32 %v12871_v51, %v308_v0 }
 0x30d   :  { %2423 = vrot.lane.b32.xlu1 %v2180_v30, %s6924_s12  ;;  %1383 = vrot.lane.b32.xlu0 %v1139_v33, %s6924_s12  ;;  %v2318_v30 = vmul.f32 %v8142_v12, %v7569_v26  ;;  %v12760_v5 = vrot.slane %v8179_v15, 1 }
 0x30e   :  { %v341_v0 = vadd.f32 %v7984_v31, %v335_v38  ;;  %v8231_v31 = vstv %s6565_s18  ;;  %s6453_s18 = sld [smem:[#allocation9 + $0x1c]] }
 0x30f   :  { %v8181_v50 = vpop.permute.xlu1 %1478  ;;  %v8183_v25 = vpop.permute.xlu0 %4683  ;;  %v8196_v33 = vadd.f32 %v7870_v55, %v2318_v30  ;;  %v8212_v55 = vstv %s6528_s17  ;;  %s6460_s17 = sld [smem:[#allocation9 + $0x23]] }
 0x310   :  { %12870 = vst [vmem:[#allocation26_spill] sm:$0xff] %v8183_v25  ;;  %v1175_v25 = vmul.f32 %v8106_v6, %v7834_v13 }
 0x311   :  { %2927 = vrot.lane.b32.xlu1 %v12757_v32, %s6927_s0  ;;  %1430 = vrot.lane.b32.xlu0 %v1163_v20, %s6924_s12  ;;  %v1223_v32 = vmul.f32 %v8121_v39, %v7676_v62  ;;  %v1276_v20 = vmul.f32 %v8157_v29, %v7569_v26  ;;  %v12761_v30 = vrot.slane %v8196_v33, 1 }
 0x313   :  { %v8198_v44 = vpop.permute.xlu1 %2515  ;;  %v8200_v19 = vpop.permute.xlu0 %3639  ;;  %v8217_v51 = vadd.f32 %v7885_v21, %v1276_v20  ;;  %v1535_v52 = vrot.slane %v1223_v32, 1  ;;  %v8233_v21 = vmax.f32 %v341_v0, 0.0 }
 0x314   :  { %12872 = vst [vmem:[#allocation23_spill] sm:$0xff] %v8200_v19 }
 0x315   :  { %1886 = vrot.lane.b32.xlu1 %v12760_v5, %s6927_s0  ;;  %1450 = vrot.lane.b32.xlu0 %v1175_v25, %s6924_s12  ;;  %v3360_v25 = vmul.f32 %v8212_v55, %v7555_v22  ;;  %v12762_v38 = vrot.slane %v8217_v51, 1 }
 0x317   :  { %v8219_v19 = vpop.permute.xlu1 %1474  ;;  %v8221_v8 = vpop.permute.xlu0 %4679  ;;  %v8237_v20 = vadd.f32 %v7895_v37, %v3360_v25 }
 0x318   :  { %12873 = vst [vmem:[#allocation41_spill] sm:$0xff] %v8221_v8  ;;  %v1537_v8 = vsel %vm177_vm0, %v1535_v52, %v1536_v7  ;;  %v2179_v52 = vmul.f32 %v8014_v1, %v8233_v21 }
 0x319   :  { %2923 = vrot.lane.b32.xlu1 %v12761_v30, %s6927_s0  ;;  %1516 = vrot.lane.b32.xlu0 %v1211_v17, %s6924_s12  ;;  %v4400_v30 = vmul.f32 %v8231_v31, %v7555_v22  ;;  %v2319_v17 = vmul.f32 %v8142_v12, %v7599_v27  ;;  %v12763_v37 = vrot.slane %v8237_v20, 1 }
 0x31b   :  { %v8239_v5 = vpop.permute.xlu1 %3559  ;;  %v8241_v32 = vpop.permute.xlu0 %3709  ;;  %v8254_v0 = vadd.f32 %v7914_v57, %v4400_v30  ;;  %v1277_v57 = vmul.f32 %v8157_v29, %v7599_v27 }
 0x31c   :  { %12874 = vst [vmem:[#allocation42_spill] sm:$0xff] %v8239_v5  ;;  %12875 = vst [vmem:[#allocation43_spill] sm:$0xff] %v8241_v32  ;;  %v2699_v32 = vadd.f32 %v7916_v42, %v2319_v17  ;;  %v2203_v17 = vmul.f32 %v8025_v58, %v7851_v3 }
 0x31d   :  { %1882 = vrot.lane.b32.xlu1 %v12762_v38, %s6927_s0  ;;  %1542 = vrot.lane.b32.xlu0 %v1537_v8, %s6925_s14  ;;  %v3358_v8 = vmul.f32 %v8212_v55, %v7569_v26  ;;  %v12766_v30 = vrot.slane %v8254_v0, 1 }
 0x31f   :  { %v8256_v25 = vpop.permute.xlu1 %4599  ;;  %v8258_v7 = vpop.permute.xlu0 %2649  ;;  %v8273_v38 = vadd.f32 %v7931_v36, %v3358_v8  ;;  %v2317_v36 = vmul.f32 %v8142_v12, %v7619_v11 }
 0x320   :  { %12876 = vst [vmem:[#allocation44_spill] sm:$0xff] %v8256_v25  ;;  %v2918_v25 = vrot.slane %v2699_v32, 1 }
 0x321   :  { %3967 = vrot.lane.b32.xlu1 %v12763_v37, %s6927_s0  ;;  %2421 = vrot.lane.b32.xlu0 %v2179_v52, %s6924_s12  ;;  %v1658_v37 = vadd.f32 %v7933_v49, %v1277_v57  ;;  %v4398_v52 = vmul.f32 %v8231_v31, %v7569_v26  ;;  %v3956_v8 = vrot.slane %v8273_v38, 1  ;;  %v2697_v26 = vadd.f32 %v7953_v53, %v2317_v36 }
 0x322   :  { %v12880_v36 = vrot.slane %v8196_v33, 1 }
 0x323   :  { %v8275_v1 = vpop.permute.xlu1 %2651  ;;  %v8277_v42 = vpop.permute.xlu0 %1608  ;;  %v8292_v5 = vadd.f32 %v7951_v4, %v4398_v52  ;;  %v1877_v57 = vrot.slane %v1658_v37, 1  ;;  %v1275_v4 = vmul.f32 %v8157_v29, %v7619_v11  ;;  %v2915_v53 = vrot.slane %v2697_v26, 1 }
 0x324   :  { %12877 = vst [vmem:[#allocation45_spill] sm:$0xff] %v8277_v42  ;;  %v12878_v42 = vrot.slane %v8161_v47, 1  ;;  %v3359_v29 = vmul.f32 %v8212_v55, %v7599_v27  ;;  %v2204_v26 = vmul.f32 %v8025_v58, %v7755_v10 }
 0x325   :  { %5007 = vrot.lane.b32.xlu1 %v12766_v30, %s6927_s0  ;;  %2467 = vrot.lane.b32.xlu0 %v2203_v17, %s6924_s12  ;;  %v4996_v12 = vrot.slane %v8292_v5, 1  ;;  %v1656_v47 = vadd.f32 %v7970_v54, %v1275_v4  ;;  %v4399_v4 = vmul.f32 %v8231_v31, %v7599_v27  ;;  %v2263_v5 = vmul.f32 %v8052_v60, %v7693_v59 }
 0x326   :  { %v2920_v30 = vsel %vm177_vm0, %v2918_v25, %v12878_v42  ;;  %v12879_v25 = vrot.slane %v8179_v15, 1  ;;  %v3739_v15 = vadd.f32 %v7990_v41, %v3359_v29  ;;  %v2216_v41 = vmul.f32 %v8037_v56, %v7755_v10 }
 0x327   :  { %v8294_v32 = vpop.permute.xlu1 %1610  ;;  %v8296_v49 = vpop.permute.xlu0 %2645  ;;  %v1874_v54 = vrot.slane %v1656_v47, 1  ;;  %v4779_v33 = vadd.f32 %v8006_v35, %v4399_v4  ;;  %v3357_v29 = vmul.f32 %v8212_v55, %v7619_v11  ;;  %v2264_v35 = vmul.f32 %v8052_v60, %v7651_v9 }
 0x328   :  { %v1879_v42 = vsel %vm177_vm0, %v1877_v57, %v12879_v25  ;;  %v2917_v57 = vsel %vm177_vm0, %v2915_v53, %v12880_v36  ;;  %v3958_v58 = vrot.slane %v3739_v15, 1  ;;  %v12882_v53 = vrot.slane %v8217_v51, 1 }
 0x329   :  { %3963 = vrot.lane.b32.xlu1 %v3956_v8, %s6927_s0  ;;  %2925 = vrot.lane.b32.xlu0 %v2920_v30, %s6927_s0  ;;  %v2252_v15 = vmul.f32 %v8050_v28, %v7651_v9  ;;  %v4998_v51 = vrot.slane %v4779_v33, 1  ;;  %v8365_v55 = vstv %s6483_s20  ;;  %s6520_s20 = sld [smem:[#allocation9 + $0x5e]] }
 0x32a   :  { %v1876_v47 = vsel %vm177_vm0, %v1874_v54, %v12882_v53  ;;  %v3737_v54 = vadd.f32 %v8019_v46, %v3357_v29  ;;  %v8369_v53 = vstv %s6475_s21  ;;  %v2574_v46 = vrot.slane %v2264_v35, 1  ;;  %s6512_s21 = sld [smem:[#allocation9 + $0x56]] }
 0x32b   :  { %v8309_v17 = vpop.permute.xlu1 %2647  ;;  %v8311_v37 = vpop.permute.xlu0 %1604 }
 0x32c   :  { %v3955_v29 = vrot.slane %v3737_v54, 1 }
 0x32d   :  { %5003 = vrot.lane.b32.xlu1 %v4996_v12, %s6927_s0  ;;  %1884 = vrot.lane.b32.xlu0 %v1879_v42, %s6927_s0 }
 0x32f   :  { %v8323_v30 = vpop.permute.xlu1 %1606  ;;  %v8325_v52 = vpop.permute.xlu0 %2517 }
 0x331   :  { %2469 = vrot.lane.b32.xlu1 %v2204_v26, %s6924_s12  ;;  %2921 = vrot.lane.b32.xlu0 %v2917_v57, %s6927_s0  ;;  %v12883_v57 = vrot.slane %v8237_v20, 1 }
 0x333   :  { %v8337_v25 = vpop.permute.xlu1 %4751  ;;  %v8339_v42 = vpop.permute.xlu0 %1476  ;;  %v3960_v4 = vsel %vm177_vm0, %v3958_v58, %v12883_v57  ;;  %v12885_v58 = vrot.slane %v8254_v0, 1  ;;  %v2272_v57 = vmul.f32 %v8365_v55, %v7629_v24 }
 0x334   :  { %12881 = vst [vmem:[#allocation46_spill] sm:$0xff] %v8337_v25 }
 0x335   :  { %2489 = vrot.lane.b32.xlu1 %v2216_v41, %s6924_s12  ;;  %1880 = vrot.lane.b32.xlu0 %v1876_v47, %s6927_s0  ;;  %v4397_v41 = vmul.f32 %v8231_v31, %v7619_v11  ;;  %v2224_v31 = vmul.f32 %v8369_v53, %v7731_v16  ;;  %v2614_v35 = vadd.f32 %v7968_v61, %v2272_v57 }
 0x337   :  { %v8351_v26 = vpop.permute.xlu1 %3555  ;;  %v8353_v36 = vpop.permute.xlu0 %2513  ;;  %v4777_v20 = vadd.f32 %v8033_v48, %v4397_v41  ;;  %v2528_v54 = vadd.f32 %v8163_v45, %v2224_v31  ;;  %v2873_v41 = vrot.slane %v2614_v35, 1  ;;  %v8403_v45 = vstv %s6486_s22  ;;  %s6557_s22 = sld [smem:[#allocation9 + $0x82]] }
 0x338   :  { %v1138_v31 = vmul.f32 %v8081_v43, %v8145_v2  ;;  %v2251_v35 = vmul.f32 %v8050_v28, %v7693_v59  ;;  %v2223_v28 = vmul.f32 %v8369_v53, %v7834_v13 }
 0x339   :  { %2555 = vrot.lane.b32.xlu1 %v2252_v15, %s6924_s12  ;;  %3965 = vrot.lane.b32.xlu0 %v3960_v4, %s6927_s0  ;;  %v5000_v15 = vsel %vm177_vm0, %v4998_v51, %v12885_v58  ;;  %v4995_v51 = vrot.slane %v4777_v20, 1  ;;  %v3957_v4 = vsel %vm177_vm0, %v3955_v29, %v3956_v8  ;;  %v2290_v29 = vmul.f32 %v8403_v45, %v7629_v24 }
 0x33a   :  { %v2215_v20 = vmul.f32 %v8037_v56, %v7851_v3  ;;  %v2271_v56 = vmul.f32 %v8365_v55, %v7676_v62 }
 0x33b   :  { %v8371_v47 = vpop.permute.xlu1 %3707  ;;  %v8373_v33 = vpop.permute.xlu0 %1472  ;;  %v4997_v61 = vsel %vm177_vm0, %v4995_v51, %v4996_v12 }
 0x33c   :  { %12884 = vst [vmem:[#allocation47_spill] sm:$0xff] %v8371_v47 }
 0x33d   :  { %2581 = vrot.lane.b32.xlu1 %v2574_v46, %s6925_s14  ;;  %5005 = vrot.lane.b32.xlu0 %v5000_v15, %s6927_s0 }
 0x33f   :  { %v8387_v48 = vpop.permute.xlu1 %4595  ;;  %v8389_v0 = vpop.permute.xlu0 %3557 }
 0x341   :  { %2829 = vrot.lane.b32.xlu1 %v2528_v54, %s6926_s19  ;;  %3961 = vrot.lane.b32.xlu0 %v3957_v4, %s6927_s0  ;;  %v2573_v54 = vrot.slane %v2263_v5, 1  ;;  %v1162_v4 = vmul.f32 %v8092_v23, %v7755_v10 }
 0x343   :  { %v8396_v58 = vpop.permute.xlu1 %4747  ;;  %v8398_v15 = vpop.permute.xlu0 %4597 }
 0x344   :  { %12886 = vst [vmem:[#allocation48_spill] sm:$0xff] %v8396_v58 }
 0x345   :  { %2881 = vrot.lane.b32.xlu1 %v2873_v41, %s6927_s0  ;;  %5001 = vrot.lane.b32.xlu0 %v4997_v61, %s6927_s0  ;;  %v2613_v61 = vadd.f32 %v8046_v14, %v2271_v56  ;;  %v1174_v14 = vmul.f32 %v8106_v6, %v7755_v10  ;;  %v1210_v56 = vmul.f32 %v8119_v18, %v7651_v9 }
 0x347   :  { %v8407_v38 = vpop.permute.xlu1 %3691  ;;  %v8409_v8 = vpop.permute.xlu0 %4749 }
 0x348   :  { %12887 = vst [vmem:[#allocation49_spill] sm:$0xff] %v8409_v8 }
 0x349   :  { %2625 = vrot.lane.b32.xlu1 %v2290_v29, %s6924_s12  ;;  %2487 = vrot.lane.b32.xlu0 %v2215_v20, %s6924_s12  ;;  %v2575_v29 = vsel %vm177_vm0, %v2573_v54, %v2574_v46  ;;  %v2527_v20 = vadd.f32 %v8325_v52, %v2223_v28  ;;  %v1222_v52 = vmul.f32 %v8121_v39, %v7651_v9 }
 0x34b   :  { %v8419_v12 = vpop.permute.xlu1 %4731  ;;  %v8421_v57 = vpop.permute.xlu0 %3553 }
 0x34d   :  { %1381 = vrot.lane.b32.xlu1 %v1138_v31, %s6924_s12  ;;  %2553 = vrot.lane.b32.xlu0 %v2251_v35, %s6924_s12  ;;  %v2872_v35 = vrot.slane %v2613_v61, 1  ;;  %v8463_v61 = vstv %s6447_s23  ;;  %s6549_s23 = sld [smem:[#allocation9 + $0x7a]] }
 0x34e   :  { %v1230_v58 = vmul.f32 %v8463_v61, %v7629_v24 }
 0x34f   :  { %v8431_v60 = vpop.permute.xlu1 %3687  ;;  %v8433_v51 = vpop.permute.xlu0 %3705 }
 0x350   :  { %12888 = vst [vmem:[#allocation50_spill] sm:$0xff] %v8433_v51 }
 0x351   :  { %1428 = vrot.lane.b32.xlu1 %v1162_v4, %s6924_s12  ;;  %2579 = vrot.lane.b32.xlu0 %v2575_v29, %s6925_s14  ;;  %v2874_v4 = vsel %vm177_vm0, %v2872_v35, %v2873_v41  ;;  %v8465_v29 = vstv %s6439_s24  ;;  %v1573_v35 = vadd.f32 %v7988_v40, %v1230_v58  ;;  %v1161_v40 = vmul.f32 %v8092_v23, %v7851_v3  ;;  %s6523_s24 = sld [smem:[#allocation9 + $0x61]] }
 0x352   :  { %v1182_v41 = vmul.f32 %v8465_v29, %v7731_v16  ;;  %v2222_v58 = vmul.f32 %v8369_v53, %v7755_v10  ;;  %v1173_v23 = vmul.f32 %v8106_v6, %v7851_v3 }
 0x353   :  { %v8444_v5 = vpop.permute.xlu1 %4727  ;;  %v8446_v31 = vpop.permute.xlu0 %4593 }
 0x354   :  { %12889 = vst [vmem:[#allocation51_spill] sm:$0xff] %v8444_v5 }
 0x355   :  { %1448 = vrot.lane.b32.xlu1 %v1174_v14, %s6924_s12  ;;  %2827 = vrot.lane.b32.xlu0 %v2527_v20, %s6926_s19  ;;  %v1533_v14 = vrot.slane %v1222_v52, 1 }
 0x357   :  { %v8452_v46 = vpop.permute.xlu1 %2427  ;;  %v8454_v54 = vpop.permute.xlu0 %4745 }
 0x358   :  { %12890 = vst [vmem:[#allocation52_spill] sm:$0xff] %v8452_v46  ;;  %12891 = vst [vmem:[#allocation53_spill] sm:$0xff] %v8454_v54  ;;  %v2289_v46 = vmul.f32 %v8403_v45, %v7676_v62  ;;  %v1832_v54 = vrot.slane %v1573_v35, 1  ;;  %v1221_v35 = vmul.f32 %v8121_v39, %v7693_v59  ;;  %v1229_v39 = vmul.f32 %v8463_v61, %v7676_v62 }
 0x359   :  { %1514 = vrot.lane.b32.xlu1 %v1210_v56, %s6924_s12  ;;  %2879 = vrot.lane.b32.xlu0 %v2874_v4, %s6927_s0  ;;  %v1487_v56 = vadd.f32 %v8181_v50, %v1182_v41  ;;  %v2270_v50 = vmul.f32 %v8365_v55, %v7651_v9 }
 0x35b   :  { %v8467_v28 = vpop.permute.xlu1 %2473  ;;  %v8469_v20 = vpop.permute.xlu0 %3689 }
 0x35c   :  { %12892 = vst [vmem:[#allocation54_spill] sm:$0xff] %v8467_v28  ;;  %12893 = vst [vmem:[#allocation55_spill] sm:$0xff] %v8469_v20  ;;  %v1137_v28 = vmul.f32 %v8081_v43, %v8233_v21  ;;  %v2612_v43 = vadd.f32 %v8004_v63, %v2270_v50  ;;  %v8519_v50 = vstv %s6450_s25  ;;  %s6560_s25 = sld [smem:[#allocation9 + $0x85]] }
 0x35d   :  { %1540 = vrot.lane.b32.xlu1 %v1533_v14, %s6925_s14  ;;  %2623 = vrot.lane.b32.xlu0 %v2289_v46, %s6924_s12  ;;  %v2526_v46 = vadd.f32 %v8198_v44, %v2222_v58  ;;  %v1209_v44 = vmul.f32 %v8119_v18, %v7693_v59  ;;  %v1532_v58 = vrot.slane %v1221_v35, 1  ;;  %v1181_v35 = vmul.f32 %v8465_v29, %v7834_v13 }
 0x35f   :  { %v8481_v4 = vpop.permute.xlu1 %2493  ;;  %v8483_v52 = vpop.permute.xlu0 %4729  ;;  %v1534_v18 = vsel %vm177_vm0, %v1532_v58, %v1533_v14  ;;  %v2269_v58 = vmul.f32 %v8365_v55, %v7693_v59  ;;  %v2221_v55 = vmul.f32 %v8369_v53, %v7851_v3 }
 0x360   :  { %12894 = vst [vmem:[#allocation56_spill] sm:$0xff] %v8481_v4  ;;  %12895 = vst [vmem:[#allocation57_spill] sm:$0xff] %v8483_v52 }
 0x361   :  { %1788 = vrot.lane.b32.xlu1 %v1487_v56, %s6926_s19  ;;  %1379 = vrot.lane.b32.xlu0 %v1137_v28, %s6924_s12  ;;  %v2870_v56 = vrot.slane %v2612_v43, 1 }
 0x363   :  { %v8489_v47 = vpop.permute.xlu1 %2559  ;;  %v8491_v51 = vpop.permute.xlu0 %3685 }
 0x364   :  { %12896 = vst [vmem:[#allocation58_spill] sm:$0xff] %v8489_v47  ;;  %12897 = vst [vmem:[#allocation59_spill] sm:$0xff] %v8491_v51  ;;  %v8752_v51 = vstv %s6556_s2  ;;  %s6471_s2 = sld [smem:[#allocation9 + $0x2e]] }
 0x365   :  { %1840 = vrot.lane.b32.xlu1 %v1832_v54, %s6927_s0  ;;  %1426 = vrot.lane.b32.xlu0 %v1161_v40, %s6924_s12 }
 0x367   :  { %v8503_v28 = vpop.permute.xlu1 %2585  ;;  %v8505_v41 = vpop.permute.xlu0 %4725 }
 0x368   :  { %12898 = vst [vmem:[#allocation60_spill] sm:$0xff] %v8503_v28  ;;  %12899 = vst [vmem:[#allocation61_spill] sm:$0xff] %v8505_v41  ;;  %v1486_v28 = vadd.f32 %v8339_v42, %v1181_v35  ;;  %v12908_v35 = vld [vmem:[#allocation33_spill] sm:$0xff] }
 0x369   :  { %2825 = vrot.lane.b32.xlu1 %v2526_v46, %s6926_s19  ;;  %1446 = vrot.lane.b32.xlu0 %v1173_v23, %s6924_s12  ;;  %v1248_v46 = vmul.f32 %v8519_v50, %v7629_v24  ;;  %v1572_v23 = vadd.f32 %v8061_v34, %v1229_v39  ;;  %v2288_v34 = vmul.f32 %v8403_v45, %v7651_v9 }
 0x36b   :  { %v8513_v40 = vpop.permute.xlu1 %1385  ;;  %v8515_v63 = vpop.permute.xlu0 %2425  ;;  %v1831_v39 = vrot.slane %v1572_v23, 1 }
 0x36c   :  { %12900 = vst [vmem:[#allocation62_spill] sm:$0xff] %v8513_v40  ;;  %12901 = vst [vmem:[#allocation63_spill] sm:$0xff] %v8515_v63 }
 0x36d   :  { %2877 = vrot.lane.b32.xlu1 %v2870_v56, %s6927_s0  ;;  %1512 = vrot.lane.b32.xlu0 %v1209_v44, %s6924_s12  ;;  %v8537_v44 = vstv %s6487_s26  ;;  %v1833_v23 = vsel %vm177_vm0, %v1831_v39, %v1832_v54  ;;  %v2525_v54 = vadd.f32 %v8353_v36, %v2221_v55  ;;  %v1247_v55 = vmul.f32 %v8519_v50, %v7676_v62  ;;  %s6524_s26 = sld [smem:[#allocation9 + $0x62]] }
 0x36e   :  { %v2296_v14 = vmul.f32 %v8537_v44, %v7629_v24  ;;  %v2293_v41 = vmul.f32 %v8537_v44, %v7693_v59 }
 0x36f   :  { %v8525_v6 = vpop.permute.xlu1 %1432  ;;  %v8527_v43 = vpop.permute.xlu0 %2471 }
 0x370   :  { %12902 = vst [vmem:[#allocation64_spill] sm:$0xff] %v8525_v6  ;;  %12903 = vst [vmem:[#allocation65_spill] sm:$0xff] %v8527_v43  ;;  %v2660_v42 = vadd.f32 %v8275_v1, %v2296_v14  ;;  %v12909_v1 = vld [vmem:[#allocation24_spill] sm:$0xff] }
 0x371   :  { %1584 = vrot.lane.b32.xlu1 %v1248_v46, %s6924_s12  ;;  %1538 = vrot.lane.b32.xlu0 %v1534_v18, %s6925_s14 }
 0x373   :  { %v8540_v4 = vpop.permute.xlu1 %1452  ;;  %v8542_v6 = vpop.permute.xlu0 %2491 }
 0x374   :  { %12904 = vst [vmem:[#allocation66_spill] sm:$0xff] %v8540_v4  ;;  %12905 = vst [vmem:[#allocation67_spill] sm:$0xff] %v8542_v6  ;;  %v2611_v4 = vadd.f32 %v12908_v35, %v2269_v58  ;;  %v1228_v6 = vmul.f32 %v8463_v61, %v7651_v9 }
 0x375   :  { %2621 = vrot.lane.b32.xlu1 %v2288_v34, %s6924_s12  ;;  %1786 = vrot.lane.b32.xlu0 %v1486_v28, %s6926_s19  ;;  %v1180_v28 = vmul.f32 %v8465_v29, %v7755_v10 }
 0x376   :  { %v1571_v34 = vadd.f32 %v12909_v1, %v1228_v6  ;;  %v2869_v35 = vrot.slane %v2611_v4, 1 }
 0x377   :  { %v8553_v46 = vpop.permute.xlu1 %1518  ;;  %v8555_v18 = vpop.permute.xlu0 %2557  ;;  %v1485_v14 = vadd.f32 %v8219_v19, %v1180_v28  ;;  %v8581_v19 = vstv %s6496_s27  ;;  %s6561_s27 = sld [smem:[#allocation9 + $0x86]] }
 0x378   :  { %12906 = vst [vmem:[#allocation68_spill] sm:$0xff] %v8553_v46  ;;  %12907 = vst [vmem:[#allocation69_spill] sm:$0xff] %v8555_v18  ;;  %v1829_v53 = vrot.slane %v1571_v34, 1  ;;  %v2871_v6 = vsel %vm177_vm0, %v2869_v35, %v2870_v56  ;;  %v2350_v28 = vmul.f32 %v8581_v19, %v7555_v22  ;;  %v8595_v56 = vstv %s6451_s1  ;;  %v12917_v46 = vld [vmem:[#allocation35_spill] sm:$0xff]  ;;  %s6533_s1 = sld [smem:[#allocation9 + $0x6b]] }
 0x379   :  { %2901 = vrot.lane.b32.xlu1 %v2660_v42, %s6926_s19  ;;  %1838 = vrot.lane.b32.xlu0 %v1833_v23, %s6927_s0  ;;  %v2295_v35 = vmul.f32 %v8537_v44, %v7676_v62 }
 0x37b   :  { %v8570_v39 = vpop.permute.xlu1 %1544  ;;  %v8572_v58 = vpop.permute.xlu0 %2583 }
 0x37c   :  { %12910 = vst [vmem:[#allocation33_spill] sm:$0xff] %v8570_v39  ;;  %12911 = vst [vmem:[#allocation24_spill] sm:$0xff] %v8572_v58 }
 0x37d   :  { %1784 = vrot.lane.b32.xlu1 %v1485_v14, %s6926_s19  ;;  %2823 = vrot.lane.b32.xlu0 %v2525_v54, %s6926_s19  ;;  %v1246_v14 = vmul.f32 %v8519_v50, %v7651_v9  ;;  %v2287_v54 = vmul.f32 %v8403_v45, %v7693_v59 }
 0x37f   :  { %v8576_v42 = vpop.permute.xlu1 %2423  ;;  %v8578_v23 = vpop.permute.xlu0 %1383 }
 0x380   :  { %12912 = vst [vmem:[#allocation70_spill] sm:$0xff] %v8576_v42  ;;  %12913 = vst [vmem:[#allocation71_spill] sm:$0xff] %v8578_v23  ;;  %v8669_v42 = vstv %s6517_s10  ;;  %s6466_s10 = sld [smem:[#allocation9 + $0x29]] }
 0x381   :  { %1836 = vrot.lane.b32.xlu1 %v1829_v53, %s6927_s0  ;;  %2875 = vrot.lane.b32.xlu0 %v2871_v6, %s6927_s0  ;;  %v1254_v6 = vmul.f32 %v8595_v56, %v7629_v24  ;;  %v3294_v47 = vmul.f32 %v8669_v42, %v7629_v24 }
 0x383   :  { %v8585_v36 = vpop.permute.xlu1 %2927  ;;  %v8587_v4 = vpop.permute.xlu0 %1430  ;;  %v1619_v39 = vadd.f32 %v8294_v32, %v1254_v6 }
 0x384   :  { %12914 = vst [vmem:[#allocation72_spill] sm:$0xff] %v8587_v4 }
 0x385   :  { %2737 = vrot.lane.b32.xlu1 %v2350_v28, %s6924_s12  ;;  %1582 = vrot.lane.b32.xlu0 %v1247_v55, %s6924_s12  ;;  %v1227_v28 = vmul.f32 %v8463_v61, %v7693_v59  ;;  %v2659_v55 = vadd.f32 %v8258_v7, %v2295_v35 }
 0x387   :  { %v8597_v1 = vpop.permute.xlu1 %1886  ;;  %v8599_v34 = vpop.permute.xlu0 %1450  ;;  %v1570_v58 = vadd.f32 %v12917_v46, %v1227_v28 }
 0x388   :  { %12915 = vst [vmem:[#allocation73_spill] sm:$0xff] %v8599_v34 }
 0x389   :  { %1580 = vrot.lane.b32.xlu1 %v1246_v14, %s6924_s12  ;;  %2619 = vrot.lane.b32.xlu0 %v2287_v54, %s6924_s12  ;;  %v2294_v14 = vmul.f32 %v8537_v44, %v7651_v9  ;;  %v1179_v54 = vmul.f32 %v8465_v29, %v7851_v3  ;;  %v1828_v46 = vrot.slane %v1570_v58, 1  ;;  %v8634_v29 = vstv %s6505_s3  ;;  %s6526_s3 = sld [smem:[#allocation9 + $0x64]] }
 0x38b   :  { %v8615_v34 = vpop.permute.xlu1 %2923  ;;  %v8617_v45 = vpop.permute.xlu0 %1516  ;;  %v2658_v7 = vadd.f32 %v8309_v17, %v2294_v14  ;;  %v1484_v32 = vadd.f32 %v8373_v33, %v1179_v54  ;;  %v12920_v17 = vld [vmem:[#allocation20_spill] sm:$0xff]  ;;  %v1830_v28 = vsel %vm177_vm0, %v1828_v46, %v1829_v53  ;;  %v8659_v53 = vstv %s6489_s30  ;;  %s6470_s30 = sld [smem:[#allocation9 + $0x2d]] }
 0x38c   :  { %12916 = vst [vmem:[#allocation74_spill] sm:$0xff] %v8617_v45  ;;  %v3222_v33 = vmul.f32 %v8634_v29, %v12920_v17  ;;  %v12924_v45 = vld [vmem:[#allocation34_spill] sm:$0xff] }
 0x38d   :  { %1860 = vrot.lane.b32.xlu1 %v1619_v39, %s6926_s19  ;;  %2899 = vrot.lane.b32.xlu0 %v2659_v55, %s6926_s19  ;;  %v8643_v55 = vstv %s6509_s28  ;;  %s6570_s28 = sld [smem:[#allocation9 + $0x8f]] }
 0x38e   :  { %v3246_v54 = vmul.f32 %v8643_v55, %v7731_v16 }
 0x38f   :  { %v8628_v61 = vpop.permute.xlu1 %1882  ;;  %v8630_v35 = vpop.permute.xlu0 %1542 }
 0x390   :  { %12918 = vst [vmem:[#allocation35_spill] sm:$0xff] %v8630_v35  ;;  %v1245_v35 = vmul.f32 %v8519_v50, %v7693_v59  ;;  %v12925_v50 = vld [vmem:[#allocation45_spill] sm:$0xff] }
 0x391   :  { %2897 = vrot.lane.b32.xlu1 %v2658_v7, %s6926_s19  ;;  %1782 = vrot.lane.b32.xlu0 %v1484_v32, %s6926_s19  ;;  %v2349_v7 = vmul.f32 %v8581_v19, %v7599_v27  ;;  %v8655_v32 = vstv %s6511_s29  ;;  %s6563_s29 = sld [smem:[#allocation9 + $0x88]] }
 0x393   :  { %v8636_v39 = vpop.permute.xlu1 %3967  ;;  %v8638_v6 = vpop.permute.xlu0 %2421 }
 0x394   :  { %12919 = vst [vmem:[#allocation75_spill] sm:$0xff] %v8638_v6  ;;  %v8671_v6 = vstv %s6519_s4  ;;  %s6478_s4 = sld [smem:[#allocation9 + $0x35]] }
 0x395   :  { %3467 = vrot.lane.b32.xlu1 %v3222_v33, %s6924_s12  ;;  %1834 = vrot.lane.b32.xlu0 %v1830_v28, %s6927_s0  ;;  %v3258_v28 = vmul.f32 %v8655_v32, %v7731_v16  ;;  %v3306_v18 = vmul.f32 %v8671_v6, %v7629_v24 }
 0x397   :  { %v8647_v58 = vpop.permute.xlu1 %5007  ;;  %v8649_v14 = vpop.permute.xlu0 %2467 }
 0x398   :  { %12921 = vst [vmem:[#allocation76_spill] sm:$0xff] %v8647_v58  ;;  %12922 = vst [vmem:[#allocation77_spill] sm:$0xff] %v8649_v14  ;;  %v2307_v14 = vmul.f32 %v8659_v53, %v7599_v27  ;;  %v12946_v58 = vld [vmem:[#allocation18_spill] sm:$0xff] }
 0x399   :  { %3513 = vrot.lane.b32.xlu1 %v3246_v54, %s6924_s12  ;;  %2735 = vrot.lane.b32.xlu0 %v2349_v7, %s6924_s12  ;;  %v1253_v54 = vmul.f32 %v8595_v56, %v7676_v62  ;;  %v2308_v7 = vmul.f32 %v8659_v53, %v7555_v22 }
 0x39a   :  { %v2679_v4 = vadd.f32 %v12924_v45, %v2307_v14  ;;  %v2657_v14 = vadd.f32 %v8296_v49, %v2293_v41 }
 0x39b   :  { %v8661_v46 = vpop.permute.xlu1 %3963  ;;  %v2926_v33 = vpop.permute.xlu0 %2925  ;;  %v1618_v40 = vadd.f32 %v12925_v50, %v1253_v54 }
 0x39c   :  { %12923 = vst [vmem:[#allocation78_spill] sm:$0xff] %v8661_v46  ;;  %v4346_v46 = vmul.f32 %v8752_v51, %v7629_v24 }
 0x39d   :  { %3533 = vrot.lane.b32.xlu1 %v3258_v28, %s6924_s12  ;;  %1578 = vrot.lane.b32.xlu0 %v1245_v35, %s6924_s12  ;;  %v12927_v28 = vld [vmem:[#allocation29_spill] sm:$0xff]  ;;  %v8690_v35 = vadd.f32 %v2926_v33, %v2679_v4 }
 0x39e   :  { %v2680_v43 = vadd.f32 %v12927_v28, %v2308_v7  ;;  %v3245_v28 = vmul.f32 %v8643_v55, %v7834_v13 }
 0x39f   :  { %v8681_v23 = vpop.permute.xlu1 %5003  ;;  %v8683_v63 = vpop.permute.xlu0 %1884  ;;  %v3048_v4 = vrot.slane %v8690_v35, 6  ;;  %v8724_v35 = vstv %s6546_s13  ;;  %s6430_s13 = sld [smem:[#allocation9 + $0x5]] }
 0x3a0   :  { %12926 = vst [vmem:[#allocation34_spill] sm:$0xff] %v8681_v23  ;;  %v2936_v45 = vadd.f32 %v8585_v36, %v2680_v43  ;;  %v3617_v23 = vrot.slane %v3306_v18, 1  ;;  %v12930_v43 = vld [vmem:[#allocation25_spill] sm:$0xff]  ;;  %v8714_v18 = vstv %s6542_s11  ;;  %s6434_s11 = sld [smem:[#allocation9 + $0x9]] }
 0x3a1   :  { %3599 = vrot.lane.b32.xlu1 %v3294_v47, %s6924_s12  ;;  %1858 = vrot.lane.b32.xlu0 %v1618_v40, %s6926_s19  ;;  %v3221_v49 = vmul.f32 %v8634_v29, %v12930_v43  ;;  %v4262_v7 = vmul.f32 %v8714_v18, %v12920_v17 }
 0x3a2   :  { %v3049_v47 = vrot.slane %v2936_v45, 6 }
 0x3a3   :  { %v8698_v54 = vpop.permute.xlu1 %2469  ;;  %v8700_v50 = vpop.permute.xlu0 %2921 }
 0x3a4   :  { %12928 = vst [vmem:[#allocation45_spill] sm:$0xff] %v8698_v54  ;;  %v3050_v41 = vsel %vm1399_vm2, %v3048_v4, %v3049_v47  ;;  %v4286_v47 = vmul.f32 %v8724_v35, %v7731_v16  ;;  %v8750_v54 = vstv %s6554_s16  ;;  %s6467_s16 = sld [smem:[#allocation9 + $0x2a]] }
 0x3a5   :  { %3625 = vrot.lane.b32.xlu1 %v3617_v23, %s6925_s14  ;;  %2895 = vrot.lane.b32.xlu0 %v2657_v14, %s6926_s19 }
 0x3a7   :  { %v8705_v44 = vpop.permute.xlu1 %2489  ;;  %v8707_v40 = vpop.permute.xlu0 %1880 }
 0x3a8   :  { %12929 = vst [vmem:[#allocation29_spill] sm:$0xff] %v8705_v44  ;;  %v3305_v44 = vmul.f32 %v8671_v6, %v7676_v62 }
 0x3a9   :  { %3057 = vrot.lane.b32.xlu1 %v3050_v41, %s6924_s12  ;;  %3465 = vrot.lane.b32.xlu0 %v3221_v49, %s6924_s12  ;;  %v3257_v49 = vmul.f32 %v8655_v32, %v7834_v13  ;;  %v8736_v41 = vstv %s6548_s15  ;;  %s6442_s15 = sld [smem:[#allocation9 + $0x11]] }
 0x3aa   :  { %v3616_v17 = vrot.slane %v3305_v44, 1 }
 0x3ab   :  { %v8716_v36 = vpop.permute.xlu1 %2555  ;;  %v8718_v33 = vpop.permute.xlu0 %3965 }
 0x3ac   :  { %12931 = vst [vmem:[#allocation79_spill] sm:$0xff] %v8716_v36  ;;  %v3293_v36 = vmul.f32 %v8669_v42, %v7676_v62  ;;  %v3618_v44 = vsel %vm177_vm0, %v3616_v17, %v3617_v23 }
 0x3ad   :  { %4507 = vrot.lane.b32.xlu1 %v4262_v7, %s6924_s12  ;;  %3511 = vrot.lane.b32.xlu0 %v3245_v28, %s6924_s12 }
 0x3af   :  { %v8728_v45 = vpop.permute.xlu1 %2581  ;;  %v8730_v14 = vpop.permute.xlu0 %5005 }
 0x3b0   :  { %12932 = vst [vmem:[#allocation80_spill] sm:$0xff] %v8728_v45  ;;  %12933 = vst [vmem:[#allocation81_spill] sm:$0xff] %v8730_v14  ;;  %v4298_v45 = vmul.f32 %v8736_v41, %v7731_v16 }
 0x3b1   :  { %4553 = vrot.lane.b32.xlu1 %v4286_v47, %s6924_s12  ;;  %3531 = vrot.lane.b32.xlu0 %v3257_v49, %s6924_s12 }
 0x3b3   :  { %v8742_v7 = vpop.permute.xlu1 %2829  ;;  %v8744_v28 = vpop.permute.xlu0 %3961 }
 0x3b4   :  { %12934 = vst [vmem:[#allocation82_spill] sm:$0xff] %v8742_v7  ;;  %12935 = vst [vmem:[#allocation83_spill] sm:$0xff] %v8744_v28  ;;  %v4334_v7 = vmul.f32 %v8750_v54, %v7629_v24  ;;  %v4657_v28 = vrot.slane %v4346_v46, 1 }
 0x3b5   :  { %4573 = vrot.lane.b32.xlu1 %v4298_v45, %s6924_s12  ;;  %3597 = vrot.lane.b32.xlu0 %v3293_v36, %s6924_s12 }
 0x3b7   :  { %v8756_v47 = vpop.permute.xlu1 %2881  ;;  %v8758_v49 = vpop.permute.xlu0 %5001 }
 0x3b8   :  { %12936 = vst [vmem:[#allocation84_spill] sm:$0xff] %v8756_v47  ;;  %12937 = vst [vmem:[#allocation85_spill] sm:$0xff] %v8758_v49  ;;  %v8771_v47 = vstv %s6460_s17  ;;  %v8775_v49 = vstv %s6453_s18  ;;  %s6479_s17 = sld [smem:[#allocation9 + $0x36]] }
 0x3b9   :  { %4639 = vrot.lane.b32.xlu1 %v4334_v7, %s6924_s12  ;;  %3623 = vrot.lane.b32.xlu0 %v3618_v44, %s6925_s14  ;;  %v1308_v17 = vmul.f32 %v8771_v47, %v7555_v22  ;;  %v4261_v7 = vmul.f32 %v8714_v18, %v12930_v43  ;;  %v1265_v46 = vmul.f32 %v8775_v49, %v7599_v27  ;;  %v12942_v44 = vld [vmem:[#allocation36_spill] sm:$0xff]  ;;  %s6431_s18 = sld [smem:[#allocation9 + $0x6]] }
 0x3ba   :  { %v4285_v43 = vmul.f32 %v8724_v35, %v7834_v13 }
 0x3bb   :  { %v8767_v45 = vpop.permute.xlu1 %2625  ;;  %v8769_v36 = vpop.permute.xlu0 %2487 }
 0x3bc   :  { %12938 = vst [vmem:[#allocation86_spill] sm:$0xff] %v8767_v45  ;;  %12939 = vst [vmem:[#allocation87_spill] sm:$0xff] %v8769_v36  ;;  %v1638_v45 = vadd.f32 %v12942_v44, %v1265_v46  ;;  %v1252_v46 = vmul.f32 %v8595_v56, %v7651_v9 }
 0x3bd   :  { %4665 = vrot.lane.b32.xlu1 %v4657_v28, %s6925_s14  ;;  %3055 = vrot.lane.b32.xlu0 %v3048_v4, %s6924_s12  ;;  %v1266_v4 = vmul.f32 %v8775_v49, %v7555_v22 }
 0x3bf   :  { %v8777_v52 = vpop.permute.xlu1 %1381  ;;  %v8779_v23 = vpop.permute.xlu0 %2553  ;;  %v1639_v14 = vadd.f32 %v12946_v58, %v1266_v4  ;;  %v1617_v58 = vadd.f32 %v8323_v30, %v1252_v46 }
 0x3c0   :  { %12940 = vst [vmem:[#allocation88_spill] sm:$0xff] %v8777_v52  ;;  %12941 = vst [vmem:[#allocation89_spill] sm:$0xff] %v8779_v23  ;;  %v12945_v23 = vld [vmem:[#allocation30_spill] sm:$0xff] }
 0x3c1   :  { %1696 = vrot.lane.b32.xlu1 %v1308_v17, %s6924_s12  ;;  %4505 = vrot.lane.b32.xlu0 %v4261_v7, %s6924_s12  ;;  %v2348_v5 = vmul.f32 %v8581_v19, %v12945_v23  ;;  %v2305_v17 = vmul.f32 %v8659_v53, %v7619_v11  ;;  %v1894_v7 = vadd.f32 %v8683_v63, %v1638_v45  ;;  %v12949_v45 = vld [vmem:[#allocation28_spill] sm:$0xff] }
 0x3c2   :  { %v2306_v44 = vmul.f32 %v8659_v53, %v12945_v23  ;;  %v1895_v25 = vadd.f32 %v8597_v1, %v1639_v14  ;;  %v4297_v63 = vmul.f32 %v8736_v41, %v7834_v13  ;;  %v4345_v53 = vmul.f32 %v8752_v51, %v7676_v62 }
 0x3c3   :  { %v8792_v36 = vpop.permute.xlu1 %1428  ;;  %v8794_v52 = vpop.permute.xlu0 %2579  ;;  %v2008_v20 = vrot.slane %v1894_v7, 6 }
 0x3c4   :  { %12943 = vst [vmem:[#allocation36_spill] sm:$0xff] %v8792_v36  ;;  %12944 = vst [vmem:[#allocation90_spill] sm:$0xff] %v8794_v52  ;;  %v12947_v52 = vld [vmem:[#allocation38_spill] sm:$0xff]  ;;  %v2009_v30 = vrot.slane %v1895_v25, 6 }
 0x3c5   :  { %2733 = vrot.lane.b32.xlu1 %v2348_v5, %s6924_s12  ;;  %4551 = vrot.lane.b32.xlu0 %v4285_v43, %s6924_s12  ;;  %v2677_v36 = vadd.f32 %v12947_v52, %v2305_v17  ;;  %v2678_v5 = vadd.f32 %v12949_v45, %v2306_v44  ;;  %v4333_v17 = vmul.f32 %v8750_v54, %v7676_v62 }
 0x3c7   :  { %v8813_v4 = vpop.permute.xlu1 %1448  ;;  %v8815_v8 = vpop.permute.xlu0 %2827  ;;  %v2933_v43 = vadd.f32 %v8700_v50, %v2677_v36  ;;  %v2934_v52 = vadd.f32 %v8615_v34, %v2678_v5  ;;  %v2010_v50 = vsel %vm1399_vm2, %v2008_v20, %v2009_v30  ;;  %v4656_v36 = vrot.slane %v4345_v53, 1 }
 0x3c8   :  { %12948 = vst [vmem:[#allocation30_spill] sm:$0xff] %v8813_v4  ;;  %v3220_v5 = vmul.f32 %v8634_v29, %v8145_v2  ;;  %v3244_v30 = vmul.f32 %v8643_v55, %v7755_v10 }
 0x3c9   :  { %1856 = vrot.lane.b32.xlu1 %v1617_v58, %s6926_s19  ;;  %4571 = vrot.lane.b32.xlu0 %v4297_v63, %s6924_s12  ;;  %v3045_v7 = vrot.slane %v2933_v43, 6  ;;  %v3046_v46 = vrot.slane %v2934_v52, 6  ;;  %v4658_v58 = vsel %vm177_vm0, %v4656_v36, %v4657_v28  ;;  %v1307_v43 = vmul.f32 %v8771_v47, %v7599_v27 }
 0x3ca   :  { %v2347_v52 = vmul.f32 %v8581_v19, %v7619_v11 }
 0x3cb   :  { %v8826_v1 = vpop.permute.xlu1 %1514  ;;  %v8828_v14 = vpop.permute.xlu0 %2879  ;;  %v3047_v34 = vsel %vm1399_vm2, %v3045_v7, %v3046_v46 }
 0x3cd   :  { %2017 = vrot.lane.b32.xlu1 %v2010_v50, %s6924_s12  ;;  %4637 = vrot.lane.b32.xlu0 %v4333_v17, %s6924_s12  ;;  %v1251_v17 = vmul.f32 %v8595_v56, %v7693_v59 }
 0x3cf   :  { %v8835_v44 = vpop.permute.xlu1 %1540  ;;  %v8837_v25 = vpop.permute.xlu0 %2623  ;;  %v1616_v50 = vadd.f32 %v8311_v37, %v1251_v17  ;;  %v3304_v37 = vmul.f32 %v8671_v6, %v7651_v9 }
 0x3d0   :  { %12950 = vst [vmem:[#allocation18_spill] sm:$0xff] %v8835_v44  ;;  %v12957_v44 = vld [vmem:[#allocation42_spill] sm:$0xff] }
 0x3d1   :  { %3053 = vrot.lane.b32.xlu1 %v3047_v34, %s6924_s12  ;;  %4663 = vrot.lane.b32.xlu0 %v4658_v58, %s6925_s14  ;;  %v3256_v34 = vmul.f32 %v8655_v32, %v7755_v10  ;;  %v3292_v58 = vmul.f32 %v8669_v42, %v7651_v9  ;;  %v3614_v17 = vrot.slane %v3304_v37, 1  ;;  %v3219_v37 = vmul.f32 %v8634_v29, %v8233_v21 }
 0x3d2   :  { %v4260_v29 = vmul.f32 %v8714_v18, %v8145_v2 }
 0x3d3   :  { %v8843_v63 = vpop.permute.xlu1 %1788  ;;  %v8845_v45 = vpop.permute.xlu0 %1379 }
 0x3d5   :  { %3463 = vrot.lane.b32.xlu1 %v3220_v5, %s6924_s12  ;;  %1694 = vrot.lane.b32.xlu0 %v1307_v43, %s6924_s12  ;;  %v8884_v5 = vstv %s6520_s20  ;;  %v8886_v43 = vstv %s6512_s21  ;;  %s6435_s20 = sld [smem:[#allocation9 + $0xa]] }
 0x3d6   :  { %s6464_s21 = sld [smem:[#allocation9 + $0x27]] }
 0x3d7   :  { %v8853_v53 = vpop.permute.xlu1 %1840  ;;  %v8855_v28 = vpop.permute.xlu0 %1426 }
 0x3d9   :  { %3509 = vrot.lane.b32.xlu1 %v3244_v30, %s6924_s12  ;;  %2731 = vrot.lane.b32.xlu0 %v2347_v52, %s6924_s12 }
 0x3db   :  { %v8866_v36 = vpop.permute.xlu1 %2825  ;;  %v8868_v46 = vpop.permute.xlu0 %1446 }
 0x3dc   :  { %12951 = vst [vmem:[#allocation38_spill] sm:$0xff] %v8866_v36  ;;  %12952 = vst [vmem:[#allocation28_spill] sm:$0xff] %v8868_v46 }
 0x3dd   :  { %3529 = vrot.lane.b32.xlu1 %v3256_v34, %s6924_s12  ;;  %1854 = vrot.lane.b32.xlu0 %v1616_v50, %s6926_s19  ;;  %v3312_v50 = vmul.f32 %v8884_v5, %v7629_v24  ;;  %v3264_v34 = vmul.f32 %v8886_v43, %v7731_v16 }
 0x3df   :  { %v8874_v19 = vpop.permute.xlu1 %2877  ;;  %v8876_v56 = vpop.permute.xlu0 %1512  ;;  %v3568_v4 = vadd.f32 %v12957_v44, %v3264_v34  ;;  %v3303_v34 = vmul.f32 %v8671_v6, %v7693_v59  ;;  %v3311_v6 = vmul.f32 %v8884_v5, %v7676_v62 }
 0x3e0   :  { %12953 = vst [vmem:[#allocation91_spill] sm:$0xff] %v8874_v19 }
 0x3e1   :  { %3595 = vrot.lane.b32.xlu1 %v3292_v58, %s6924_s12  ;;  %2015 = vrot.lane.b32.xlu0 %v2008_v20, %s6924_s12  ;;  %v12956_v20 = vld [vmem:[#allocation21_spill] sm:$0xff] }
 0x3e2   :  { %v3654_v58 = vadd.f32 %v12956_v20, %v3312_v50 }
 0x3e3   :  { %v8888_v30 = vpop.permute.xlu1 %1584  ;;  %v8890_v52 = vpop.permute.xlu0 %1538 }
 0x3e4   :  { %12954 = vst [vmem:[#allocation92_spill] sm:$0xff] %v8888_v30  ;;  %12955 = vst [vmem:[#allocation93_spill] sm:$0xff] %v8890_v52  ;;  %v3913_v52 = vrot.slane %v3654_v58, 1  ;;  %v4284_v58 = vmul.f32 %v8724_v35, %v7755_v10 }
 0x3e5   :  { %3621 = vrot.lane.b32.xlu1 %v3614_v17, %s6925_s14  ;;  %3051 = vrot.lane.b32.xlu0 %v3045_v7, %s6924_s12  ;;  %v3243_v7 = vmul.f32 %v8643_v55, %v7851_v3 }
 0x3e7   :  { %v8900_v46 = vpop.permute.xlu1 %2621  ;;  %v8902_v30 = vpop.permute.xlu0 %1786 }
 0x3e8   :  { %12958 = vst [vmem:[#allocation21_spill] sm:$0xff] %v8900_v46 }
 0x3e9   :  { %3869 = vrot.lane.b32.xlu1 %v3568_v4, %s6926_s19  ;;  %3461 = vrot.lane.b32.xlu0 %v3219_v37, %s6924_s12  ;;  %v3255_v4 = vmul.f32 %v8655_v32, %v7851_v3  ;;  %v3291_v37 = vmul.f32 %v8669_v42, %v7693_v59 }
 0x3eb   :  { %v8908_v19 = vpop.permute.xlu1 %2901  ;;  %v8910_v36 = vpop.permute.xlu0 %1838 }
 0x3ed   :  { %3921 = vrot.lane.b32.xlu1 %v3913_v52, %s6927_s0  ;;  %3507 = vrot.lane.b32.xlu0 %v3243_v7, %s6924_s12  ;;  %v3613_v7 = vrot.slane %v3303_v34, 1  ;;  %v3263_v34 = vmul.f32 %v8886_v43, %v7834_v13 }
 0x3ef   :  { %v8916_v44 = vpop.permute.xlu1 %1784  ;;  %v8918_v50 = vpop.permute.xlu0 %2823  ;;  %v3615_v42 = vsel %vm177_vm0, %v3613_v7, %v3614_v17  ;;  %v8963_v7 = vstv %s6557_s22  ;;  %s6443_s22 = sld [smem:[#allocation9 + $0x12]] }
 0x3f0   :  { %12959 = vst [vmem:[#allocation42_spill] sm:$0xff] %v8916_v44 }
 0x3f1   :  { %4503 = vrot.lane.b32.xlu1 %v4260_v29, %s6924_s12  ;;  %3527 = vrot.lane.b32.xlu0 %v3255_v4, %s6924_s12  ;;  %v4296_v4 = vmul.f32 %v8736_v41, %v7755_v10 }
 0x3f3   :  { %v8928_v55 = vpop.permute.xlu1 %1836  ;;  %v8930_v20 = vpop.permute.xlu0 %2875 }
 0x3f4   :  { %12960 = vst [vmem:[#allocation94_spill] sm:$0xff] %v8928_v55  ;;  %v12963_v55 = vld [vmem:[#allocation19_spill] sm:$0xff] }
 0x3f5   :  { %4549 = vrot.lane.b32.xlu1 %v4284_v58, %s6924_s12  ;;  %3593 = vrot.lane.b32.xlu0 %v3291_v37, %s6924_s12  ;;  %v3653_v46 = vadd.f32 %v12963_v55, %v3311_v6  ;;  %v3567_v58 = vadd.f32 %v8389_v0, %v3263_v34  ;;  %v4344_v55 = vmul.f32 %v8752_v51, %v7651_v9  ;;  %v8965_v6 = vstv %s6549_s23  ;;  %s6473_s23 = sld [smem:[#allocation9 + $0x30]] }
 0x3f7   :  { %v8940_v32 = vpop.permute.xlu1 %2737  ;;  %v8942_v29 = vpop.permute.xlu0 %1582  ;;  %v3912_v17 = vrot.slane %v3653_v46, 1  ;;  %v4304_v46 = vmul.f32 %v8965_v6, %v7731_v16 }
 0x3f8   :  { %12961 = vst [vmem:[#allocation95_spill] sm:$0xff] %v8940_v32  ;;  %12962 = vst [vmem:[#allocation96_spill] sm:$0xff] %v8942_v29  ;;  %v4332_v32 = vmul.f32 %v8750_v54, %v7651_v9 }
 0x3f9   :  { %4569 = vrot.lane.b32.xlu1 %v4296_v4, %s6924_s12  ;;  %3619 = vrot.lane.b32.xlu0 %v3615_v42, %s6925_s14  ;;  %v4654_v42 = vrot.slane %v4344_v55, 1  ;;  %v3914_v34 = vsel %vm177_vm0, %v3912_v17, %v3913_v52  ;;  %v4259_v52 = vmul.f32 %v8714_v18, %v8233_v21 }
 0x3fb   :  { %v8953_v37 = vpop.permute.xlu1 %1580  ;;  %v8955_v44 = vpop.permute.xlu0 %2619 }
 0x3fc   :  { %12964 = vst [vmem:[#allocation19_spill] sm:$0xff] %v8953_v37  ;;  %12965 = vst [vmem:[#allocation97_spill] sm:$0xff] %v8955_v44  ;;  %v4352_v37 = vmul.f32 %v8963_v7, %v7629_v24  ;;  %v12968_v44 = vld [vmem:[#allocation44_spill] sm:$0xff] }
 0x3fd   :  { %4635 = vrot.lane.b32.xlu1 %v4332_v32, %s6924_s12  ;;  %3867 = vrot.lane.b32.xlu0 %v3567_v58, %s6926_s19  ;;  %v12967_v32 = vld [vmem:[#allocation27_spill] sm:$0xff] }
 0x3fe   :  { %v8979_v58 = vadd.f32 %v12967_v32, %v4352_v37  ;;  %v4295_v32 = vmul.f32 %v8736_v41, %v7851_v3 }
 0x3ff   :  { %v8967_v0 = vpop.permute.xlu1 %1860  ;;  %v8969_v4 = vpop.permute.xlu0 %2899 }
 0x400   :  { %12966 = vst [vmem:[#allocation98_spill] sm:$0xff] %v8967_v0  ;;  %v4608_v0 = vadd.f32 %v12968_v44, %v4304_v46  ;;  %v4953_v17 = vrot.slane %v8979_v58, 1  ;;  %v4283_v44 = vmul.f32 %v8724_v35, %v7851_v3  ;;  %v1263_v58 = vmul.f32 %v8775_v49, %v7619_v11 }
 0x401   :  { %4661 = vrot.lane.b32.xlu1 %v4654_v42, %s6925_s14  ;;  %3919 = vrot.lane.b32.xlu0 %v3914_v34, %s6927_s0  ;;  %v4343_v35 = vmul.f32 %v8752_v51, %v7693_v59  ;;  %v12978_v51 = vld [vmem:[#allocation32_spill] sm:$0xff] }
 0x403   :  { %v8982_v29 = vpop.permute.xlu1 %2897  ;;  %v8984_v55 = vpop.permute.xlu0 %1782 }
 0x404   :  { %12969 = vst [vmem:[#allocation27_spill] sm:$0xff] %v8982_v29  ;;  %12970 = vst [vmem:[#allocation44_spill] sm:$0xff] %v8984_v55 }
 0x405   :  { %4909 = vrot.lane.b32.xlu1 %v4608_v0, %s6926_s19  ;;  %4501 = vrot.lane.b32.xlu0 %v4259_v52, %s6924_s12  ;;  %v1306_v0 = vmul.f32 %v8771_v47, %v12945_v23  ;;  %v9009_v52 = vstv %s6523_s24  ;;  %s6481_s24 = sld [smem:[#allocation9 + $0x38]] }
 0x406   :  { %v3330_v29 = vmul.f32 %v9009_v52, %v7629_v24 }
 0x407   :  { %v8991_v34 = vpop.permute.xlu1 %3467  ;;  %v8993_v37 = vpop.permute.xlu0 %1834 }
 0x408   :  { %12971 = vst [vmem:[#allocation99_spill] sm:$0xff] %v8991_v34  ;;  %12972 = vst [vmem:[#allocation100_spill] sm:$0xff] %v8993_v37  ;;  %v4331_v37 = vmul.f32 %v8750_v54, %v7693_v59 }
 0x409   :  { %4961 = vrot.lane.b32.xlu1 %v4953_v17, %s6927_s0  ;;  %4547 = vrot.lane.b32.xlu0 %v4283_v44, %s6924_s12  ;;  %v1264_v44 = vmul.f32 %v8775_v49, %v12945_v23  ;;  %v4653_v49 = vrot.slane %v4343_v35, 1 }
 0x40b   :  { %v8999_v18 = vpop.permute.xlu1 %3513  ;;  %v9001_v46 = vpop.permute.xlu0 %2735  ;;  %v1637_v55 = vadd.f32 %v12978_v51, %v1264_v44 }
 0x40c   :  { %12973 = vst [vmem:[#allocation101_spill] sm:$0xff] %v8999_v18  ;;  %12974 = vst [vmem:[#allocation102_spill] sm:$0xff] %v9001_v46  ;;  %v12975_v18 = vld [vmem:[#allocation40_spill] sm:$0xff] }
 0x40d   :  { %1692 = vrot.lane.b32.xlu1 %v1306_v0, %s6924_s12  ;;  %4567 = vrot.lane.b32.xlu0 %v4295_v32, %s6924_s12  ;;  %v1636_v34 = vadd.f32 %v12975_v18, %v1263_v58  ;;  %v9030_v32 = vstv %s6560_s25  ;;  %v4351_v18 = vmul.f32 %v8963_v7, %v7676_v62  ;;  %v1893_v58 = vadd.f32 %v8628_v61, %v1637_v55  ;;  %s6428_s25 = sld [smem:[#allocation9 + $0x3]] }
 0x40f   :  { %v9018_v46 = vpop.permute.xlu1 %3533  ;;  %v9020_v41 = vpop.permute.xlu0 %1578  ;;  %v9028_v0 = vadd.f32 %v8707_v40, %v1636_v34  ;;  %v4370_v40 = vmul.f32 %v9030_v32, %v7629_v24  ;;  %v12980_v34 = vld [vmem:[#allocation26_spill] sm:$0xff]  ;;  %v2006_v61 = vrot.slane %v1893_v58, 6 }
 0x410   :  { %12976 = vst [vmem:[#allocation40_spill] sm:$0xff] %v9018_v46  ;;  %12977 = vst [vmem:[#allocation103_spill] sm:$0xff] %v9020_v41  ;;  %v4693_v44 = vadd.f32 %v12980_v34, %v4351_v18 }
 0x411   :  { %3665 = vrot.lane.b32.xlu1 %v3330_v29, %s6924_s12  ;;  %4633 = vrot.lane.b32.xlu0 %v4331_v37, %s6924_s12  ;;  %v2005_v35 = vrot.slane %v9028_v0, 6  ;;  %v4655_v29 = vsel %vm177_vm0, %v4653_v49, %v4654_v42  ;;  %v4303_v37 = vmul.f32 %v8965_v6, %v7834_v13  ;;  %v3310_v42 = vmul.f32 %v8884_v5, %v7651_v9  ;;  %v12983_v49 = vld [vmem:[#allocation22_spill] sm:$0xff] }
 0x412   :  { %v3262_v0 = vmul.f32 %v8886_v43, %v7755_v10 }
 0x413   :  { %v9037_v41 = vpop.permute.xlu1 %3599  ;;  %v9039_v54 = vpop.permute.xlu0 %1858  ;;  %v4607_v55 = vadd.f32 %v8398_v15, %v4303_v37  ;;  %v2007_v18 = vsel %vm1399_vm2, %v2005_v35, %v2006_v61  ;;  %v3652_v58 = vadd.f32 %v12983_v49, %v3310_v42 }
 0x414   :  { %12979 = vst [vmem:[#allocation32_spill] sm:$0xff] %v9037_v41  ;;  %v4952_v41 = vrot.slane %v4693_v44, 1  ;;  %v3566_v15 = vadd.f32 %v8351_v26, %v3262_v0  ;;  %v4350_v26 = vmul.f32 %v8963_v7, %v7651_v9 }
 0x415   :  { %4705 = vrot.lane.b32.xlu1 %v4370_v40, %s6924_s12  ;;  %4659 = vrot.lane.b32.xlu0 %v4655_v29, %s6925_s14  ;;  %v3910_v29 = vrot.slane %v3652_v58, 1 }
 0x416   :  { %v4954_v44 = vsel %vm177_vm0, %v4952_v41, %v4953_v17  ;;  %v12987_v17 = vld [vmem:[#allocation37_spill] sm:$0xff] }
 0x417   :  { %v9051_v51 = vpop.permute.xlu1 %3625  ;;  %v9053_v46 = vpop.permute.xlu0 %2895  ;;  %v4692_v41 = vadd.f32 %v12987_v17, %v4350_v26  ;;  %v9103_v26 = vstv %s6524_s26  ;;  %s6437_s26 = sld [smem:[#allocation9 + $0xc]] }
 0x418   :  { %12981 = vst [vmem:[#allocation26_spill] sm:$0xff] %v9051_v51  ;;  %12982 = vst [vmem:[#allocation104_spill] sm:$0xff] %v9053_v46 }
 0x419   :  { %2013 = vrot.lane.b32.xlu1 %v2007_v18, %s6924_s12  ;;  %4907 = vrot.lane.b32.xlu0 %v4607_v55, %s6926_s19  ;;  %v1305_v55 = vmul.f32 %v8771_v47, %v7619_v11  ;;  %v4302_v18 = vmul.f32 %v8965_v6, %v7755_v10  ;;  %v3329_v47 = vmul.f32 %v9009_v52, %v7676_v62  ;;  %v4950_v58 = vrot.slane %v4692_v41, 1 }
 0x41a   :  { %v3328_v41 = vmul.f32 %v9009_v52, %v7651_v9 }
 0x41b   :  { %v9064_v40 = vpop.permute.xlu1 %3057  ;;  %v9066_v34 = vpop.permute.xlu0 %3465  ;;  %v4606_v42 = vadd.f32 %v8387_v48, %v4302_v18  ;;  %v3309_v48 = vmul.f32 %v8884_v5, %v7693_v59 }
 0x41c   :  { %12984 = vst [vmem:[#allocation22_spill] sm:$0xff] %v9066_v34 }
 0x41d   :  { %3865 = vrot.lane.b32.xlu1 %v3566_v15, %s6926_s19  ;;  %4959 = vrot.lane.b32.xlu0 %v4954_v44, %s6927_s0 }
 0x41f   :  { %v9071_v37 = vpop.permute.xlu1 %4507  ;;  %v9073_v61 = vpop.permute.xlu0 %3511 }
 0x420   :  { %12985 = vst [vmem:[#allocation105_spill] sm:$0xff] %v9071_v37  ;;  %12986 = vst [vmem:[#allocation106_spill] sm:$0xff] %v9073_v61 }
 0x421   :  { %3917 = vrot.lane.b32.xlu1 %v3910_v29, %s6927_s0  ;;  %1690 = vrot.lane.b32.xlu0 %v1305_v55, %s6924_s12  ;;  %v4369_v55 = vmul.f32 %v9030_v32, %v7676_v62 }
 0x423   :  { %v9085_v0 = vpop.permute.xlu1 %4553  ;;  %v9087_v49 = vpop.permute.xlu0 %3531 }
 0x424   :  { %12988 = vst [vmem:[#allocation37_spill] sm:$0xff] %v9085_v0  ;;  %12989 = vst [vmem:[#allocation107_spill] sm:$0xff] %v9087_v49  ;;  %v13029_v0 = vld [vmem:[#allocation59_spill] sm:$0xff] }
 0x425   :  { %4905 = vrot.lane.b32.xlu1 %v4606_v42, %s6926_s19  ;;  %3663 = vrot.lane.b32.xlu0 %v3329_v47, %s6924_s12  ;;  %v12994_v42 = vld [vmem:[#allocation23_spill] sm:$0xff] }
 0x426   :  { %v3651_v47 = vadd.f32 %v12994_v42, %v3309_v48  ;;  %v9128_v48 = vstv %s6561_s27  ;;  %s9687_s27 = sld [smem:[#allocation9 + $0x14]] }
 0x427   :  { %v9093_v15 = vpop.permute.xlu1 %4573  ;;  %v9095_v44 = vpop.permute.xlu0 %3597 }
 0x428   :  { %12990 = vst [vmem:[#allocation108_spill] sm:$0xff] %v9093_v15  ;;  %12991 = vst [vmem:[#allocation109_spill] sm:$0xff] %v9095_v44  ;;  %v3336_v15 = vmul.f32 %v9103_v26, %v7629_v24 }
 0x429   :  { %4957 = vrot.lane.b32.xlu1 %v4950_v58, %s6927_s0  ;;  %4703 = vrot.lane.b32.xlu0 %v4369_v55, %s6924_s12  ;;  %v3261_v55 = vmul.f32 %v8886_v43, %v7851_v3  ;;  %v4349_v43 = vmul.f32 %v8963_v7, %v7693_v59  ;;  %v4301_v7 = vmul.f32 %v8965_v6, %v7851_v3  ;;  %v3344_v6 = vstv %s6526_s3  ;;  %s6485_s3 = sld [smem:[#allocation9 + $0x3c]] }
 0x42a   :  { %v3700_v5 = vadd.f32 %v8407_v38, %v3336_v15  ;;  %v12998_v15 = vld [vmem:[#allocation41_spill] sm:$0xff] }
 0x42b   :  { %v9105_v18 = vpop.permute.xlu1 %4639  ;;  %v9107_v17 = vpop.permute.xlu0 %3623  ;;  %v3565_v51 = vadd.f32 %v8421_v57, %v3261_v55  ;;  %v4368_v57 = vmul.f32 %v9030_v32, %v7651_v9  ;;  %v4605_v55 = vadd.f32 %v8446_v31, %v4301_v7  ;;  %v3347_v31 = vmul.f32 %v3344_v6, %v7599_v27  ;;  %v13003_v7 = vld [vmem:[#allocation43_spill] sm:$0xff] }
 0x42c   :  { %12992 = vst [vmem:[#allocation110_spill] sm:$0xff] %v9105_v18  ;;  %12993 = vst [vmem:[#allocation111_spill] sm:$0xff] %v9107_v17  ;;  %v3909_v18 = vrot.slane %v3651_v47, 1 }
 0x42d   :  { %3661 = vrot.lane.b32.xlu1 %v3328_v41, %s6924_s12  ;;  %2011 = vrot.lane.b32.xlu0 %v2005_v35, %s6924_s12  ;;  %v4691_v41 = vadd.f32 %v12998_v15, %v4349_v43 }
 0x42e   :  { %v3911_v42 = vsel %vm177_vm0, %v3909_v18, %v3910_v29  ;;  %v9150_v18 = vstv %s6533_s1  ;;  %s9754_s1 = sld [smem:[#allocation9 + $0x45]] }
 0x42f   :  { %v9120_v17 = vpop.permute.xlu1 %4665  ;;  %v9122_v49 = vpop.permute.xlu0 %3055  ;;  %v4949_v29 = vrot.slane %v4691_v41, 1  ;;  %v9162_v41 = vstv %s6570_s28  ;;  %s6503_s28 = sld [smem:[#allocation9 + $0x4d]] }
 0x430   :  { %12995 = vst [vmem:[#allocation23_spill] sm:$0xff] %v9120_v17 }
 0x431   :  { %3941 = vrot.lane.b32.xlu1 %v3700_v5, %s6926_s19  ;;  %3863 = vrot.lane.b32.xlu0 %v3565_v51, %s6926_s19  ;;  %v4376_v51 = vmul.f32 %v9128_v48, %v7629_v24 }
 0x433   :  { %v9130_v35 = vpop.permute.xlu1 %1696  ;;  %v9132_v38 = vpop.permute.xlu0 %4505  ;;  %v4740_v47 = vadd.f32 %v8419_v12, %v4376_v51  ;;  %v3390_v12 = vmul.f32 %v9150_v18, %v7555_v22  ;;  %v3348_v51 = vmul.f32 %v3344_v6, %v7555_v22 }
 0x434   :  { %12996 = vst [vmem:[#allocation112_spill] sm:$0xff] %v9130_v35  ;;  %12997 = vst [vmem:[#allocation113_spill] sm:$0xff] %v9132_v38  ;;  %v13007_v38 = vld [vmem:[#allocation55_spill] sm:$0xff] }
 0x435   :  { %4701 = vrot.lane.b32.xlu1 %v4368_v57, %s6924_s12  ;;  %3915 = vrot.lane.b32.xlu0 %v3911_v42, %s6927_s0  ;;  %v4951_v42 = vsel %vm177_vm0, %v4949_v29, %v4950_v58  ;;  %v3327_v58 = vmul.f32 %v9009_v52, %v7693_v59  ;;  %v13006_v29 = vld [vmem:[#allocation39_spill] sm:$0xff] }
 0x437   :  { %v9146_v5 = vpop.permute.xlu1 %2733  ;;  %v9148_v43 = vpop.permute.xlu0 %4551 }
 0x438   :  { %12999 = vst [vmem:[#allocation41_spill] sm:$0xff] %v9146_v5  ;;  %13000 = vst [vmem:[#allocation114_spill] sm:$0xff] %v9148_v43  ;;  %v3720_v5 = vadd.f32 %v13006_v29, %v3348_v51 }
 0x439   :  { %4981 = vrot.lane.b32.xlu1 %v4740_v47, %s6926_s19  ;;  %4903 = vrot.lane.b32.xlu0 %v4605_v55, %s6926_s19  ;;  %v3719_v47 = vadd.f32 %v13003_v7, %v3347_v31  ;;  %v3335_v31 = vmul.f32 %v9103_v26, %v7676_v62 }
 0x43a   :  { %v3976_v7 = vadd.f32 %v8636_v39, %v3720_v5  ;;  %v13010_v39 = vld [vmem:[#allocation49_spill] sm:$0xff] }
 0x43b   :  { %v9154_v57 = vpop.permute.xlu1 %1856  ;;  %v9156_v15 = vpop.permute.xlu0 %4571  ;;  %v3699_v51 = vadd.f32 %v13007_v38, %v3335_v31  ;;  %v13013_v31 = vld [vmem:[#allocation46_spill] sm:$0xff] }
 0x43c   :  { %13001 = vst [vmem:[#allocation115_spill] sm:$0xff] %v9154_v57  ;;  %13002 = vst [vmem:[#allocation116_spill] sm:$0xff] %v9156_v15  ;;  %v4430_v15 = vmul.f32 %v9162_v41, %v7555_v22  ;;  %v4384_v57 = vstv %s6563_s29  ;;  %s6507_s29 = sld [smem:[#allocation9 + $0x51]] }
 0x43d   :  { %3777 = vrot.lane.b32.xlu1 %v3390_v12, %s6924_s12  ;;  %4955 = vrot.lane.b32.xlu0 %v4951_v42, %s6927_s0  ;;  %v9178_v12 = vadd.f32 %v8718_v33, %v3719_v47  ;;  %v3334_v42 = vmul.f32 %v9103_v26, %v7651_v9  ;;  %v4387_v47 = vmul.f32 %v4384_v57, %v7599_v27 }
 0x43f   :  { %v9168_v55 = vpop.permute.xlu1 %2017  ;;  %v9170_v17 = vpop.permute.xlu0 %4637  ;;  %v3698_v52 = vadd.f32 %v8431_v60, %v3334_v42  ;;  %v4759_v5 = vadd.f32 %v13010_v39, %v4387_v47  ;;  %v4367_v42 = vmul.f32 %v9030_v32, %v7693_v59  ;;  %v4374_v47 = vmul.f32 %v9128_v48, %v7651_v9  ;;  %v13016_v32 = vld [vmem:[#allocation76_spill] sm:$0xff] }
 0x440   :  { %13004 = vst [vmem:[#allocation43_spill] sm:$0xff] %v9168_v55  ;;  %13005 = vst [vmem:[#allocation117_spill] sm:$0xff] %v9170_v17  ;;  %v13014_v17 = vld [vmem:[#allocation81_spill] sm:$0xff] }
 0x441   :  { %4817 = vrot.lane.b32.xlu1 %v4430_v15, %s6924_s12  ;;  %3659 = vrot.lane.b32.xlu0 %v3327_v58, %s6924_s12  ;;  %v4388_v15 = vmul.f32 %v4384_v57, %v7555_v22  ;;  %v4089_v58 = vrot.slane %v3976_v7, 6  ;;  %v9207_v35 = vadd.f32 %v13014_v17, %v4759_v5  ;;  %v4375_v7 = vmul.f32 %v9128_v48, %v7676_v62  ;;  %v13018_v17 = vld [vmem:[#allocation57_spill] sm:$0xff] }
 0x443   :  { %v9189_v29 = vpop.permute.xlu1 %3053  ;;  %v9191_v33 = vpop.permute.xlu0 %4663  ;;  %v4739_v5 = vadd.f32 %v13018_v17, %v4375_v7 }
 0x444   :  { %13008 = vst [vmem:[#allocation39_spill] sm:$0xff] %v9189_v29  ;;  %13009 = vst [vmem:[#allocation55_spill] sm:$0xff] %v9191_v33  ;;  %v4760_v33 = vadd.f32 %v13013_v31, %v4388_v15  ;;  %v13017_v15 = vld [vmem:[#allocation51_spill] sm:$0xff]  ;;  %v13131_v29 = vld [vmem:[#allocation66_spill] sm:$0xff] }
 0x445   :  { %3937 = vrot.lane.b32.xlu1 %v3698_v52, %s6926_s19  ;;  %3939 = vrot.lane.b32.xlu0 %v3699_v51, %s6926_s19  ;;  %v13015_v52 = vrot.slane %v9178_v12, 6  ;;  %v4738_v31 = vadd.f32 %v13017_v15, %v4374_v47  ;;  %v3345_v47 = vmul.f32 %v3344_v6, %v7619_v11 }
 0x446   :  { %v5016_v39 = vadd.f32 %v13016_v32, %v4760_v33  ;;  %v3389_v33 = vmul.f32 %v9150_v18, %v7599_v27  ;;  %v3346_v32 = vmul.f32 %v3344_v6, %v12945_v23  ;;  %v3333_v6 = vmul.f32 %v9103_v26, %v7693_v59  ;;  %v13032_v26 = vld [vmem:[#allocation48_spill] sm:$0xff] }
 0x447   :  { %v9199_v60 = vpop.permute.xlu1 %3463  ;;  %v9201_v38 = vpop.permute.xlu0 %1694  ;;  %v4090_v51 = vsel %vm1399_vm2, %v13015_v52, %v4089_v58  ;;  %v12769_v58 = vrot.slane %v9207_v35, 6 }
 0x448   :  { %13011 = vst [vmem:[#allocation49_spill] sm:$0xff] %v9199_v60  ;;  %13012 = vst [vmem:[#allocation118_spill] sm:$0xff] %v9201_v38  ;;  %v5129_v52 = vrot.slane %v5016_v39, 6  ;;  %v13023_v39 = vld [vmem:[#allocation50_spill] sm:$0xff] }
 0x449   :  { %4097 = vrot.lane.b32.xlu1 %v4090_v51, %s6924_s12  ;;  %4699 = vrot.lane.b32.xlu0 %v4367_v42, %s6924_s12  ;;  %v3717_v15 = vadd.f32 %v13023_v39, %v3345_v47  ;;  %v4386_v47 = vmul.f32 %v4384_v57, %v12945_v23  ;;  %v13027_v39 = vld [vmem:[#allocation53_spill] sm:$0xff] }
 0x44a   :  { %v5130_v7 = vsel %vm1399_vm2, %v12769_v58, %v5129_v52  ;;  %v13026_v58 = vld [vmem:[#allocation83_spill] sm:$0xff] }
 0x44b   :  { %v9221_v38 = vpop.permute.xlu1 %3509  ;;  %v9223_v60 = vpop.permute.xlu0 %2731 }
 0x44c   :  { %13019 = vst [vmem:[#allocation46_spill] sm:$0xff] %v9221_v38  ;;  %13020 = vst [vmem:[#allocation81_spill] sm:$0xff] %v9223_v60 }
 0x44d   :  { %4977 = vrot.lane.b32.xlu1 %v4738_v31, %s6926_s19  ;;  %4979 = vrot.lane.b32.xlu0 %v4739_v5, %s6926_s19  ;;  %v3388_v5 = vmul.f32 %v9150_v18, %v12945_v23 }
 0x44f   :  { %v9228_v51 = vpop.permute.xlu1 %3529  ;;  %v9230_v42 = vpop.permute.xlu0 %1854 }
 0x450   :  { %13021 = vst [vmem:[#allocation76_spill] sm:$0xff] %v9228_v51  ;;  %13022 = vst [vmem:[#allocation51_spill] sm:$0xff] %v9230_v42  ;;  %v4429_v51 = vmul.f32 %v9162_v41, %v7599_v27  ;;  %v13025_v42 = vld [vmem:[#allocation47_spill] sm:$0xff] }
 0x451   :  { %5137 = vrot.lane.b32.xlu1 %v5130_v7, %s6924_s12  ;;  %3775 = vrot.lane.b32.xlu0 %v3389_v33, %s6924_s12  ;;  %v3718_v52 = vadd.f32 %v13025_v42, %v3346_v32  ;;  %v4385_v7 = vmul.f32 %v4384_v57, %v7619_v11  ;;  %v9253_v33 = vadd.f32 %v13026_v58, %v3717_v15 }
 0x452   :  { %v3697_v42 = vadd.f32 %v13029_v0, %v3333_v6  ;;  %v4428_v58 = vmul.f32 %v9162_v41, %v12945_v23  ;;  %v4758_v15 = vadd.f32 %v13032_v26, %v4386_v47 }
 0x453   :  { %v9242_v31 = vpop.permute.xlu1 %3595  ;;  %v9244_v17 = vpop.permute.xlu0 %2015  ;;  %v4757_v60 = vadd.f32 %v13027_v39, %v4385_v7 }
 0x454   :  { %13024 = vst [vmem:[#allocation57_spill] sm:$0xff] %v9242_v31  ;;  %v13028_v31 = vld [vmem:[#allocation78_spill] sm:$0xff] }
 0x455   :  { %3773 = vrot.lane.b32.xlu1 %v3388_v5, %s6924_s12  ;;  %4815 = vrot.lane.b32.xlu0 %v4429_v51, %s6924_s12  ;;  %v3974_v38 = vadd.f32 %v13028_v31, %v3718_v52  ;;  %v4085_v51 = vrot.slane %v9253_v33, 6  ;;  %v13033_v5 = vld [vmem:[#allocation85_spill] sm:$0xff]  ;;  %v13034_v31 = vld [vmem:[#allocation34_spill] sm:$0xff]  ;;  %v13037_v33 = vrot.slane %v9178_v12, 6 }
 0x456   :  { %v9272_v57 = vadd.f32 %v13033_v5, %v4757_v60  ;;  %v5014_v52 = vadd.f32 %v13034_v31, %v4758_v15  ;;  %v4373_v60 = vmul.f32 %v9128_v48, %v7693_v59  ;;  %v2190_v5 = vstv %s6470_s30  ;;  %s6515_s30 = sld [smem:[#allocation9 + $0x59]] }
 0x457   :  { %v9263_v32 = vpop.permute.xlu1 %3621  ;;  %v9265_v43 = vpop.permute.xlu0 %3051  ;;  %v4086_v0 = vrot.slane %v3974_v38, 6  ;;  %v9298_v48 = vstv %s6466_s10  ;;  %v2194_v12 = vmul.f32 %v2190_v5, %v7731_v16  ;;  %s6540_s10 = sld [smem:[#allocation9 + $0x71]] }
 0x458   :  { %13030 = vst [vmem:[#allocation50_spill] sm:$0xff] %v9263_v32  ;;  %13031 = vst [vmem:[#allocation47_spill] sm:$0xff] %v9265_v43  ;;  %v5125_v39 = vrot.slane %v9272_v57, 6  ;;  %v5126_v38 = vrot.slane %v5014_v52, 6  ;;  %v3387_v32 = vmul.f32 %v9150_v18, %v7619_v11  ;;  %v13067_v43 = vld [vmem:[#allocation69_spill] sm:$0xff] }
 0x459   :  { %4813 = vrot.lane.b32.xlu1 %v4428_v58, %s6924_s12  ;;  %3935 = vrot.lane.b32.xlu0 %v3697_v42, %s6926_s19  ;;  %v4087_v47 = vsel %vm1399_vm2, %v4085_v51, %v4086_v0  ;;  %v13038_v42 = vld [vmem:[#allocation61_spill] sm:$0xff]  ;;  %v2193_v0 = vmul.f32 %v2190_v5, %v7834_v13 }
 0x45a   :  { %v4737_v58 = vadd.f32 %v13038_v42, %v4373_v60  ;;  %v5127_v57 = vsel %vm1399_vm2, %v5125_v39, %v5126_v38  ;;  %v13044_v38 = vrot.slane %v9207_v35, 6  ;;  %v2445_v42 = vrot.slane %v2194_v12, 6 }
 0x45b   :  { %v9277_v7 = vpop.permute.xlu1 %3869  ;;  %v9279_v6 = vpop.permute.xlu0 %3461 }
 0x45c   :  { %13035 = vst [vmem:[#allocation83_spill] sm:$0xff] %v9277_v7  ;;  %13036 = vst [vmem:[#allocation53_spill] sm:$0xff] %v9279_v6  ;;  %v9394_v7 = vstv %s6471_s2  ;;  %s6504_s2 = sld [smem:[#allocation9 + $0x4e]] }
 0x45d   :  { %4093 = vrot.lane.b32.xlu1 %v4087_v47, %s6924_s12  ;;  %4095 = vrot.lane.b32.xlu0 %v13037_v33, %s6924_s12  ;;  %v13043_v47 = vld [vmem:[#allocation20_spill] sm:$0xff]  ;;  %v2444_v33 = vrot.slane %v2193_v0, 6 }
 0x45e   :  { %v2170_v60 = vmul.f32 %v9298_v48, %v13043_v47 }
 0x45f   :  { %v9290_v26 = vpop.permute.xlu1 %3921  ;;  %v9292_v15 = vpop.permute.xlu0 %3507 }
 0x460   :  { %13039 = vst [vmem:[#allocation78_spill] sm:$0xff] %v9290_v26  ;;  %13040 = vst [vmem:[#allocation59_spill] sm:$0xff] %v9292_v15  ;;  %v9356_v26 = vstv %s6442_s15  ;;  %v9416_v15 = vstv %s6479_s17  ;;  %s6449_s15 = sld [smem:[#allocation9 + $0x18]] }
 0x461   :  { %5133 = vrot.lane.b32.xlu1 %v5127_v57, %s6924_s12  ;;  %4975 = vrot.lane.b32.xlu0 %v4737_v58, %s6926_s19  ;;  %s6508_s17 = sld [smem:[#allocation9 + $0x52]] }
 0x463   :  { %v9301_v31 = vpop.permute.xlu1 %4503  ;;  %v9303_v52 = vpop.permute.xlu0 %3527 }
 0x464   :  { %13041 = vst [vmem:[#allocation48_spill] sm:$0xff] %v9301_v31  ;;  %13042 = vst [vmem:[#allocation85_spill] sm:$0xff] %v9303_v52  ;;  %v2446_v52 = vsel %vm1399_vm2, %v2444_v33, %v2445_v42  ;;  %v9318_v31 = vstv %s6478_s4  ;;  %s6544_s4 = sld [smem:[#allocation9 + $0x75]] }
 0x465   :  { %2407 = vrot.lane.b32.xlu1 %v2170_v60, %s6924_s12  ;;  %5135 = vrot.lane.b32.xlu0 %v13044_v38, %s6924_s12  ;;  %v2242_v12 = vmul.f32 %v9318_v31, %v7731_v16  ;;  %v4427_v60 = vmul.f32 %v9162_v41, %v7619_v11  ;;  %v9330_v38 = vstv %s6434_s11  ;;  %s6458_s11 = sld [smem:[#allocation9 + $0x21]] }
 0x466   :  { %v9334_v18 = vmul.f32 %v9330_v38, %v7834_v13 }
 0x467   :  { %v9311_v58 = vpop.permute.xlu1 %4549  ;;  %v9313_v57 = vpop.permute.xlu0 %3593 }
 0x468   :  { %13045 = vst [vmem:[#allocation34_spill] sm:$0xff] %v9311_v58  ;;  %13046 = vst [vmem:[#allocation61_spill] sm:$0xff] %v9313_v57 }
 0x469   :  { %2453 = vrot.lane.b32.xlu1 %v2446_v52, %s6925_s14  ;;  %3771 = vrot.lane.b32.xlu0 %v3387_v32, %s6924_s12  ;;  %v9338_v32 = vstv %s6430_s13  ;;  %v1152_v52 = vmul.f32 %v9330_v38, %v7731_v16  ;;  %s6552_s13 = sld [smem:[#allocation9 + $0x7d]] }
 0x46a   :  { %v1128_v41 = vmul.f32 %v9338_v32, %v13043_v47 }
 0x46b   :  { %v9322_v0 = vpop.permute.xlu1 %4569  ;;  %v9324_v35 = vpop.permute.xlu0 %3619 }
 0x46c   :  { %13047 = vst [vmem:[#allocation119_spill] sm:$0xff] %v9322_v0  ;;  %13048 = vst [vmem:[#allocation120_spill] sm:$0xff] %v9324_v35  ;;  %v1403_v35 = vrot.slane %v9334_v18, 6 }
 0x46d   :  { %2539 = vrot.lane.b32.xlu1 %v2242_v12, %s6924_s12  ;;  %4811 = vrot.lane.b32.xlu0 %v4427_v60, %s6924_s12  ;;  %v1404_v12 = vrot.slane %v1152_v52, 6  ;;  %v13055_v52 = vld [vmem:[#allocation25_spill] sm:$0xff] }
 0x46f   :  { %v9342_v42 = vpop.permute.xlu1 %4635  ;;  %v9344_v0 = vpop.permute.xlu0 %3867  ;;  %v1405_v6 = vsel %vm1399_vm2, %v1403_v35, %v1404_v12 }
 0x470   :  { %13049 = vst [vmem:[#allocation121_spill] sm:$0xff] %v9342_v42  ;;  %13050 = vst [vmem:[#allocation122_spill] sm:$0xff] %v9344_v0  ;;  %v1127_v0 = vmul.f32 %v9338_v32, %v13055_v52 }
 0x471   :  { %1365 = vrot.lane.b32.xlu1 %v1128_v41, %s6924_s12  ;;  %4091 = vrot.lane.b32.xlu0 %v4085_v51, %s6924_s12  ;;  %v1200_v51 = vmul.f32 %v9356_v26, %v7731_v16  ;;  %v2169_v41 = vmul.f32 %v9298_v48, %v13055_v52 }
 0x473   :  { %v9351_v60 = vpop.permute.xlu1 %4661  ;;  %v9353_v58 = vpop.permute.xlu0 %3919 }
 0x474   :  { %13051 = vst [vmem:[#allocation123_spill] sm:$0xff] %v9351_v60  ;;  %13052 = vst [vmem:[#allocation124_spill] sm:$0xff] %v9353_v58  ;;  %v9369_v60 = vmul.f32 %v2190_v5, %v7851_v3 }
 0x475   :  { %1412 = vrot.lane.b32.xlu1 %v1405_v6, %s6925_s14  ;;  %5131 = vrot.lane.b32.xlu0 %v5125_v39, %s6924_s12  ;;  %v2192_v6 = vmul.f32 %v2190_v5, %v7755_v10  ;;  %v2241_v5 = vmul.f32 %v9318_v31, %v7834_v13 }
 0x477   :  { %v9360_v42 = vpop.permute.xlu1 %4909  ;;  %v9362_v18 = vpop.permute.xlu0 %4501  ;;  %v2442_v58 = vrot.slane %v2192_v6, 6 }
 0x478   :  { %13053 = vst [vmem:[#allocation125_spill] sm:$0xff] %v9360_v42  ;;  %13054 = vst [vmem:[#allocation126_spill] sm:$0xff] %v9362_v18  ;;  %v2168_v42 = vmul.f32 %v9298_v48, %v8145_v2  ;;  %v2441_v18 = vrot.slane %v9369_v60, 6 }
 0x479   :  { %1498 = vrot.lane.b32.xlu1 %v1200_v51, %s6924_s12  ;;  %2405 = vrot.lane.b32.xlu0 %v2169_v41, %s6924_s12 }
 0x47b   :  { %v9374_v39 = vpop.permute.xlu1 %4961  ;;  %v9376_v12 = vpop.permute.xlu0 %4547 }
 0x47c   :  { %13056 = vst [vmem:[#allocation25_spill] sm:$0xff] %v9374_v39  ;;  %13057 = vst [vmem:[#allocation127_spill] sm:$0xff] %v9376_v12  ;;  %v9389_v39 = vstv %s6467_s16  ;;  %v2443_v12 = vsel %vm1399_vm2, %v2441_v18, %v2442_v58  ;;  %v2240_v58 = vmul.f32 %v9318_v31, %v7755_v10  ;;  %s6495_s16 = sld [smem:[#allocation9 + $0x46]] }
 0x47d   :  { %2403 = vrot.lane.b32.xlu1 %v2168_v42, %s6924_s12  ;;  %2451 = vrot.lane.b32.xlu0 %v2444_v33, %s6925_s14  ;;  %v2176_v60 = vmul.f32 %v9389_v39, %v13043_v47  ;;  %v2199_v33 = vmul.f32 %v9394_v7, %v7834_v13  ;;  %v13060_v42 = vld [vmem:[#allocation52_spill] sm:$0xff] }
 0x47f   :  { %v9383_v51 = vpop.permute.xlu1 %1692  ;;  %v9385_v41 = vpop.permute.xlu0 %4567  ;;  %v9401_v6 = vadd.f32 %v13060_v42, %v2176_v60  ;;  %v13064_v60 = vld [vmem:[#allocation54_spill] sm:$0xff] }
 0x480   :  { %13058 = vst [vmem:[#allocation128_spill] sm:$0xff] %v9383_v51  ;;  %13059 = vst [vmem:[#allocation129_spill] sm:$0xff] %v9385_v41 }
 0x481   :  { %2449 = vrot.lane.b32.xlu1 %v2443_v12, %s6925_s14  ;;  %2537 = vrot.lane.b32.xlu0 %v2241_v5, %s6924_s12  ;;  %v2200_v12 = vmul.f32 %v9394_v7, %v7731_v16  ;;  %v13063_v5 = vld [vmem:[#allocation65_spill] sm:$0xff] }
 0x482   :  { %v9414_v57 = vadd.f32 %v13063_v5, %v2199_v33  ;;  %v2248_v33 = vmul.f32 %v9416_v15, %v7629_v24 }
 0x483   :  { %v9403_v41 = vpop.permute.xlu1 %3665  ;;  %v9405_v51 = vpop.permute.xlu0 %4633  ;;  %v2482_v42 = vadd.f32 %v13064_v60, %v2200_v12  ;;  %v13068_v12 = vld [vmem:[#allocation58_spill] sm:$0xff] }
 0x484   :  { %13061 = vst [vmem:[#allocation52_spill] sm:$0xff] %v9403_v41  ;;  %13062 = vst [vmem:[#allocation130_spill] sm:$0xff] %v9405_v51  ;;  %v2247_v41 = vmul.f32 %v9416_v15, %v7676_v62  ;;  %v2775_v51 = vrot.slane %v9401_v6, 1  ;;  %v2800_v5 = vrot.slane %v9414_v57, 6  ;;  %v2568_v60 = vadd.f32 %v13068_v12, %v2248_v33 }
 0x485   :  { %2535 = vrot.lane.b32.xlu1 %v2240_v58, %s6924_s12  ;;  %1363 = vrot.lane.b32.xlu0 %v1127_v0, %s6924_s12  ;;  %v2801_v0 = vrot.slane %v2482_v42, 6  ;;  %v2167_v42 = vmul.f32 %v9298_v48, %v8233_v21  ;;  %v9468_v48 = vmul.f32 %v9330_v38, %v7851_v3 }
 0x486   :  { %v9432_v58 = vadd.f32 %v13067_v43, %v2247_v41  ;;  %v2847_v43 = vrot.slane %v2568_v60, 6  ;;  %v1125_v60 = vmul.f32 %v9338_v32, %v8233_v21 }
 0x487   :  { %v9424_v37 = vpop.permute.xlu1 %4705  ;;  %v9426_v34 = vpop.permute.xlu0 %4659  ;;  %v2802_v57 = vsel %vm1399_vm2, %v2800_v5, %v2801_v0  ;;  %v2175_v0 = vmul.f32 %v9389_v39, %v13055_v52 }
 0x488   :  { %13065 = vst [vmem:[#allocation65_spill] sm:$0xff] %v9424_v37  ;;  %13066 = vst [vmem:[#allocation54_spill] sm:$0xff] %v9426_v34  ;;  %v1199_v34 = vmul.f32 %v9356_v26, %v7834_v13  ;;  %v12770_v46 = vrot.slane %v9432_v58, 6  ;;  %v13089_v55 = vrot.slane %v9432_v58, 6  ;;  %v2197_v58 = vmul.f32 %v9394_v7, %v7851_v3 }
 0x489   :  { %2783 = vrot.lane.b32.xlu1 %v2775_v51, %s6927_s0  ;;  %1410 = vrot.lane.b32.xlu0 %v1403_v35, %s6925_s14 }
 0x48a   :  { %v2848_v33 = vsel %vm1399_vm2, %v12770_v46, %v2847_v43 }
 0x48b   :  { %v9437_v6 = vpop.permute.xlu1 %2013  ;;  %v9439_v37 = vpop.permute.xlu0 %4907 }
 0x48c   :  { %13069 = vst [vmem:[#allocation69_spill] sm:$0xff] %v9437_v6  ;;  %13070 = vst [vmem:[#allocation58_spill] sm:$0xff] %v9439_v37  ;;  %v1197_v37 = vmul.f32 %v9356_v26, %v7851_v3 }
 0x48d   :  { %2809 = vrot.lane.b32.xlu1 %v2802_v57, %s6927_s0  ;;  %1496 = vrot.lane.b32.xlu0 %v1199_v34, %s6924_s12  ;;  %v13075_v57 = vld [vmem:[#allocation63_spill] sm:$0xff] }
 0x48e   :  { %v2435_v43 = vadd.f32 %v13075_v57, %v2175_v0 }
 0x48f   :  { %v9447_v35 = vpop.permute.xlu1 %3865  ;;  %v9449_v41 = vpop.permute.xlu0 %4959 }
 0x490   :  { %13071 = vst [vmem:[#allocation131_spill] sm:$0xff] %v9447_v35  ;;  %13072 = vst [vmem:[#allocation132_spill] sm:$0xff] %v9449_v41  ;;  %v2239_v35 = vmul.f32 %v9318_v31, %v7851_v3  ;;  %v2774_v57 = vrot.slane %v2435_v43, 1  ;;  %v9500_v43 = vstv %s6435_s20  ;;  %s6541_s20 = sld [smem:[#allocation9 + $0x72]] }
 0x491   :  { %2855 = vrot.lane.b32.xlu1 %v2848_v33, %s6927_s0  ;;  %2401 = vrot.lane.b32.xlu0 %v2167_v42, %s6924_s12  ;;  %v9471_v33 = vstv %s6431_s18  ;;  %s6516_s18 = sld [smem:[#allocation9 + $0x5a]] }
 0x492   :  { %v1133_v42 = vmul.f32 %v9471_v33, %v13055_v52  ;;  %v1134_v0 = vmul.f32 %v9471_v33, %v13043_v47 }
 0x493   :  { %v9460_v34 = vpop.permute.xlu1 %3917  ;;  %v9462_v12 = vpop.permute.xlu0 %1690 }
 0x494   :  { %13073 = vst [vmem:[#allocation133_spill] sm:$0xff] %v9460_v34  ;;  %13074 = vst [vmem:[#allocation134_spill] sm:$0xff] %v9462_v12  ;;  %v12771_v12 = vrot.slane %v9468_v48, 6 }
 0x495   :  { %2447 = vrot.lane.b32.xlu0 %v2441_v18, %s6925_s14  ;;  %1359 = vrot.lane.b32.xlu1 %v1125_v60, %s6924_s12  ;;  %v13078_v18 = vld [vmem:[#allocation71_spill] sm:$0xff] }
 0x496   :  { %v1393_v60 = vadd.f32 %v13078_v18, %v1133_v42  ;;  %v2776_v42 = vsel %vm177_vm0, %v2774_v57, %v2775_v51 }
 0x497   :  { %v9477_v46 = vpop.permute.xlu1 %4905  ;;  %v9479_v34 = vpop.permute.xlu0 %3663 }
 0x498   :  { %13076 = vst [vmem:[#allocation63_spill] sm:$0xff] %v9477_v46  ;;  %13077 = vst [vmem:[#allocation135_spill] sm:$0xff] %v9479_v34  ;;  %v13079_v46 = vld [vmem:[#allocation62_spill] sm:$0xff]  ;;  %v1733_v6 = vrot.slane %v1393_v60, 1  ;;  %v9517_v60 = vstv %s6443_s22  ;;  %s6553_s22 = sld [smem:[#allocation9 + $0x7e]] }
 0x499   :  { %2533 = vrot.lane.b32.xlu0 %v2239_v35, %s6924_s12  ;;  %1406 = vrot.lane.b32.xlu1 %v12771_v12, %s6925_s14  ;;  %v9492_v34 = vadd.f32 %v13079_v46, %v1134_v0  ;;  %v1157_v35 = vmul.f32 %v9500_v43, %v7834_v13  ;;  %v13082_v0 = vld [vmem:[#allocation72_spill] sm:$0xff]  ;;  %v1205_v57 = vmul.f32 %v9517_v60, %v7676_v62 }
 0x49b   :  { %v9494_v31 = vpop.permute.xlu1 %4957  ;;  %v9496_v41 = vpop.permute.xlu0 %4703  ;;  %v12772_v46 = vrot.slane %v9492_v34, 1  ;;  %v9509_v18 = vadd.f32 %v13082_v0, %v1157_v35 }
 0x49c   :  { %13080 = vst [vmem:[#allocation71_spill] sm:$0xff] %v9494_v31  ;;  %13081 = vst [vmem:[#allocation62_spill] sm:$0xff] %v9496_v41  ;;  %v9515_v41 = vstv %s6464_s21  ;;  %s6545_s21 = sld [smem:[#allocation9 + $0x76]] }
 0x49d   :  { %2781 = vrot.lane.b32.xlu0 %v2776_v42, %s6927_s0  ;;  %1492 = vrot.lane.b32.xlu1 %v1197_v37, %s6924_s12  ;;  %v1735_v51 = vsel %vm177_vm0, %v1733_v6, %v12772_v46  ;;  %v2157_v37 = vmul.f32 %v9515_v41, %v13055_v52  ;;  %v2173_v42 = vmul.f32 %v9389_v39, %v8233_v21  ;;  %v12773_v0 = vrot.slane %v9509_v18, 6  ;;  %v13085_v6 = vld [vmem:[#allocation74_spill] sm:$0xff] }
 0x49e   :  { %v9532_v35 = vmul.f32 %v9515_v41, %v13043_v47  ;;  %v9536_v46 = vadd.f32 %v13085_v6, %v1205_v57  ;;  %v13090_v57 = vld [vmem:[#allocation70_spill] sm:$0xff] }
 0x49f   :  { %v9511_v12 = vpop.permute.xlu1 %3661  ;;  %v9513_v31 = vpop.permute.xlu0 %2011  ;;  %v2378_v61 = vrot.slane %v2157_v37, 1 }
 0x4a0   :  { %13083 = vst [vmem:[#allocation72_spill] sm:$0xff] %v9511_v12  ;;  %13084 = vst [vmem:[#allocation136_spill] sm:$0xff] %v9513_v31 }
 0x4a1   :  { %2807 = vrot.lane.b32.xlu0 %v2800_v5, %s6927_s0  ;;  %1740 = vrot.lane.b32.xlu1 %v1735_v51, %s6927_s0  ;;  %v2174_v5 = vmul.f32 %v9389_v39, %v8145_v2  ;;  %v13088_v51 = vld [vmem:[#allocation75_spill] sm:$0xff] }
 0x4a2   :  { %v2433_v44 = vadd.f32 %v13088_v51, %v2173_v42  ;;  %v1150_v51 = vmul.f32 %v9330_v38, %v7755_v10  ;;  %v9588_v38 = vstv %s6473_s23  ;;  %s6459_s23 = sld [smem:[#allocation9 + $0x22]] }
 0x4a3   :  { %v9538_v12 = vpop.permute.xlu1 %3941  ;;  %v9540_v31 = vpop.permute.xlu0 %3863  ;;  %v9552_v6 = vadd.f32 %v13090_v57, %v2174_v5 }
 0x4a4   :  { %13086 = vst [vmem:[#allocation74_spill] sm:$0xff] %v9538_v12  ;;  %13087 = vst [vmem:[#allocation137_spill] sm:$0xff] %v9540_v31  ;;  %v12774_v12 = vrot.slane %v9532_v35, 1  ;;  %v12775_v31 = vrot.slane %v9536_v46, 6  ;;  %v2771_v37 = vrot.slane %v2433_v44, 1  ;;  %v13093_v44 = vld [vmem:[#allocation77_spill] sm:$0xff] }
 0x4a5   :  { %2853 = vrot.lane.b32.xlu0 %v13089_v55, %s6927_s0  ;;  %1766 = vrot.lane.b32.xlu1 %v12773_v0, %s6927_s0  ;;  %v12776_v5 = vrot.slane %v9552_v6, 1  ;;  %v9573_v57 = vadd.f32 %v13093_v44, %v2197_v58  ;;  %v1401_v58 = vrot.slane %v1150_v51, 6  ;;  %v2211_v44 = vmul.f32 %v9588_v38, %v7834_v13 }
 0x4a6   :  { %v2380_v55 = vsel %vm177_vm0, %v2378_v61, %v12774_v12  ;;  %v9608_v51 = vstv %s6481_s24  ;;  %s6538_s24 = sld [smem:[#allocation9 + $0x6f]] }
 0x4a7   :  { %v9556_v39 = vpop.permute.xlu1 %4701  ;;  %v9558_v42 = vpop.permute.xlu0 %3915  ;;  %v2773_v12 = vsel %vm177_vm0, %v2771_v37, %v12776_v5  ;;  %v13100_v5 = vld [vmem:[#allocation67_spill] sm:$0xff] }
 0x4a8   :  { %13091 = vst [vmem:[#allocation75_spill] sm:$0xff] %v9556_v39  ;;  %13092 = vst [vmem:[#allocation70_spill] sm:$0xff] %v9558_v42  ;;  %v12777_v39 = vrot.slane %v9573_v57, 6  ;;  %v2501_v42 = vadd.f32 %v13100_v5, %v2211_v44  ;;  %v1198_v5 = vmul.f32 %v9356_v26, %v7755_v10  ;;  %v1158_v44 = vmul.f32 %v9500_v43, %v7731_v16 }
 0x4a9   :  { %2385 = vrot.lane.b32.xlu0 %v2380_v55, %s6925_s14  ;;  %1812 = vrot.lane.b32.xlu1 %v12775_v31, %s6927_s0  ;;  %v1126_v55 = vmul.f32 %v9338_v32, %v8145_v2  ;;  %v2245_v31 = vmul.f32 %v9416_v15, %v7693_v59  ;;  %v13096_v32 = vld [vmem:[#allocation89_spill] sm:$0xff] }
 0x4ab   :  { %v9575_v0 = vpop.permute.xlu1 %4981  ;;  %v9577_v61 = vpop.permute.xlu0 %4903 }
 0x4ac   :  { %13094 = vst [vmem:[#allocation77_spill] sm:$0xff] %v9575_v0  ;;  %13095 = vst [vmem:[#allocation138_spill] sm:$0xff] %v9577_v61  ;;  %v9594_v0 = vadd.f32 %v13096_v32, %v2245_v31  ;;  %v2259_v31 = vmul.f32 %v9608_v51, %v7676_v62 }
 0x4ad   :  { %1361 = vrot.lane.b32.xlu0 %v1126_v55, %s6924_s12  ;;  %2777 = vrot.lane.b32.xlu1 %v2773_v12, %s6927_s0  ;;  %v13099_v55 = vrot.slane %v9468_v48, 6 }
 0x4ae   :  { %v12778_v32 = vrot.slane %v9594_v0, 6 }
 0x4af   :  { %v9596_v61 = vpop.permute.xlu1 %3777  ;;  %v9598_v37 = vpop.permute.xlu0 %4955  ;;  %v1402_v12 = vsel %vm1399_vm2, %v13099_v55, %v1401_v58  ;;  %v13103_v55 = vld [vmem:[#allocation24_spill] sm:$0xff] }
 0x4b0   :  { %13097 = vst [vmem:[#allocation89_spill] sm:$0xff] %v9596_v61  ;;  %13098 = vst [vmem:[#allocation139_spill] sm:$0xff] %v9598_v37  ;;  %v9614_v61 = vadd.f32 %v8815_v8, %v2501_v42  ;;  %v13104_v8 = vld [vmem:[#allocation64_spill] sm:$0xff]  ;;  %v9638_v37 = vstv %s6428_s25  ;;  %s6510_s25 = sld [smem:[#allocation9 + $0x54]] }
 0x4b1   :  { %1408 = vrot.lane.b32.xlu0 %v1402_v12, %s6925_s14  ;;  %2803 = vrot.lane.b32.xlu1 %v12777_v39, %s6927_s0  ;;  %v2593_v12 = vadd.f32 %v13103_v55, %v2259_v31  ;;  %v1441_v42 = vadd.f32 %v13104_v8, %v1158_v44  ;;  %v1206_v31 = vmul.f32 %v9517_v60, %v7629_v24  ;;  %v13107_v44 = vrot.slane %v9492_v34, 1  ;;  %v13108_v55 = vld [vmem:[#allocation68_spill] sm:$0xff] }
 0x4b2   :  { %v12781_v39 = vrot.slane %v9614_v61, 7  ;;  %v9653_v8 = vmul.f32 %v9638_v37, %v13043_v47  ;;  %v13111_v34 = vrot.slane %v9509_v18, 6  ;;  %v9674_v18 = vmul.f32 %v9515_v41, %v8145_v2 }
 0x4b3   :  { %v9616_v48 = vpop.permute.xlu1 %4817  ;;  %v9618_v58 = vpop.permute.xlu0 %3659 }
 0x4b4   :  { %13101 = vst [vmem:[#allocation67_spill] sm:$0xff] %v9616_v48  ;;  %13102 = vst [vmem:[#allocation140_spill] sm:$0xff] %v9618_v58  ;;  %v9632_v58 = vadd.f32 %v8828_v14, %v2593_v12  ;;  %v1760_v14 = vrot.slane %v1441_v42, 6  ;;  %v1527_v12 = vadd.f32 %v13108_v55, %v1206_v31  ;;  %v2155_v42 = vmul.f32 %v9515_v41, %v8233_v21 }
 0x4b5   :  { %1494 = vrot.lane.b32.xlu0 %v1198_v5, %s6924_s12  ;;  %2849 = vrot.lane.b32.xlu1 %v12778_v32, %s6927_s0  ;;  %v1115_v5 = vmul.f32 %v9638_v37, %v13055_v52  ;;  %v2198_v55 = vmul.f32 %v9394_v7, %v7755_v10  ;;  %13112 = vst [vmem:[#allocation142_spill] sm:$0xff] %v9674_v18 }
 0x4b6   :  { %v12782_v32 = vrot.slane %v9632_v58, 6  ;;  %v1806_v31 = vrot.slane %v1527_v12, 6  ;;  %v2375_v12 = vrot.slane %v2155_v42, 1  ;;  %v1132_v41 = vmul.f32 %v9471_v33, %v8145_v2 }
 0x4b7   :  { %v9634_v48 = vpop.permute.xlu1 %3937  ;;  %v9636_v26 = vpop.permute.xlu0 %3939  ;;  %v1336_v11 = vrot.slane %v1115_v5, 1 }
 0x4b8   :  { %13105 = vst [vmem:[#allocation24_spill] sm:$0xff] %v9634_v48  ;;  %13106 = vst [vmem:[#allocation64_spill] sm:$0xff] %v9636_v26 }
 0x4b9   :  { %1742 = vrot.lane.b32.xlu0 %v13107_v44, %s6927_s0  ;;  %3003 = vrot.lane.b32.xlu1 %v12781_v39, %s6925_s14  ;;  %v1761_v44 = vsel %vm1399_vm2, %v13111_v34, %v1760_v14  ;;  %v12783_v39 = vrot.slane %v9653_v8, 1  ;;  %v13115_v34 = vld [vmem:[#allocation45_spill] sm:$0xff] }
 0x4bb   :  { %v9656_v48 = vpop.permute.xlu1 %4097  ;;  %v9658_v26 = vpop.permute.xlu0 %4699  ;;  %v1338_v7 = vsel %vm177_vm0, %v1336_v11, %v12783_v39 }
 0x4bc   :  { %13109 = vst [vmem:[#allocation68_spill] sm:$0xff] %v9656_v48  ;;  %13110 = vst [vmem:[#allocation141_spill] sm:$0xff] %v9658_v26  ;;  %v13116_v26 = vrot.slane %v9536_v46, 6  ;;  %v12784_v46 = vrot.slane %v9674_v18, 1 }
 0x4bd   :  { %1768 = vrot.lane.b32.xlu0 %v1761_v44, %s6927_s0  ;;  %3029 = vrot.lane.b32.xlu1 %v12782_v32, %s6924_s12  ;;  %v2480_v44 = vadd.f32 %v13115_v34, %v2198_v55  ;;  %v1155_v55 = vmul.f32 %v9500_v43, %v7851_v3 }
 0x4be   :  { %v1807_v32 = vsel %vm1399_vm2, %v13116_v26, %v1806_v31  ;;  %v2246_v26 = vmul.f32 %v9416_v15, %v7651_v9  ;;  %v13117_v31 = vld [vmem:[#allocation88_spill] sm:$0xff]  ;;  %v13120_v15 = vrot.slane %v9552_v6, 1  ;;  %v1204_v6 = vmul.f32 %v9517_v60, %v7651_v9 }
 0x4bf   :  { %v9676_v5 = vpop.permute.xlu1 %4977  ;;  %v9678_v14 = vpop.permute.xlu0 %4979  ;;  %v9699_v11 = vadd.f32 %v13117_v31, %v1132_v41  ;;  %v2798_v39 = vrot.slane %v2480_v44, 6  ;;  %v2212_v44 = vmul.f32 %v9588_v38, %v7731_v16  ;;  %v1203_v31 = vmul.f32 %v9517_v60, %v7693_v59 }
 0x4c0   :  { %13113 = vst [vmem:[#allocation143_spill] sm:$0xff] %v9676_v5  ;;  %13114 = vst [vmem:[#allocation144_spill] sm:$0xff] %v9678_v14  ;;  %v2377_v5 = vsel %vm177_vm0, %v2375_v12, %v12784_v46  ;;  %v9713_v14 = vstv %s6437_s26  ;;  %v2260_v46 = vmul.f32 %v9608_v51, %v7629_v24  ;;  %s10406_s26 = sld [smem:[#allocation9 + $0x5c]] }
 0x4c1   :  { %1814 = vrot.lane.b32.xlu0 %v1807_v32, %s6927_s0  ;;  %1343 = vrot.lane.b32.xlu1 %v1338_v7, %s6925_s14  ;;  %v1156_v32 = vmul.f32 %v9500_v43, %v7755_v10  ;;  %v9708_v7 = vadd.f32 %v8855_v28, %v1155_v55  ;;  %v13121_v43 = vld [vmem:[#allocation79_spill] sm:$0xff]  ;;  %v13122_v28 = vld [vmem:[#allocation36_spill] sm:$0xff]  ;;  %v1169_v12 = vmul.f32 %v9713_v14, %v7834_v13 }
 0x4c2   :  { %v2566_v41 = vadd.f32 %v13121_v43, %v2246_v26  ;;  %v13126_v43 = vrot.slane %v9573_v57, 6  ;;  %v1170_v60 = vmul.f32 %v9713_v14, %v7731_v16 }
 0x4c3   :  { %v9701_v42 = vpop.permute.xlu1 %5137  ;;  %v9703_v34 = vpop.permute.xlu0 %3775  ;;  %v1439_v55 = vadd.f32 %v13122_v28, %v1156_v32  ;;  %v9737_v32 = vadd.f32 %v8876_v56, %v1203_v31  ;;  %v13128_v56 = vrot.slane %v9699_v11, 1  ;;  %v1525_v31 = vadd.f32 %v8826_v1, %v1204_v6  ;;  %v13134_v6 = vld [vmem:[#allocation35_spill] sm:$0xff] }
 0x4c4   :  { %13118 = vst [vmem:[#allocation45_spill] sm:$0xff] %v9701_v42  ;;  %13119 = vst [vmem:[#allocation88_spill] sm:$0xff] %v9703_v34  ;;  %v13125_v34 = vld [vmem:[#allocation56_spill] sm:$0xff]  ;;  %v2799_v28 = vsel %vm1399_vm2, %v13126_v43, %v2798_v39  ;;  %v2844_v57 = vrot.slane %v2566_v41, 6  ;;  %v13129_v39 = vld [vmem:[#allocation82_spill] sm:$0xff]  ;;  %v1461_v18 = vadd.f32 %v13131_v29, %v1170_v60 }
 0x4c5   :  { %2779 = vrot.lane.b32.xlu0 %v13120_v15, %s6927_s0  ;;  %2381 = vrot.lane.b32.xlu1 %v2377_v5, %s6925_s14  ;;  %v2502_v42 = vadd.f32 %v13125_v34, %v2212_v44  ;;  %v1757_v44 = vrot.slane %v1439_v55, 6  ;;  %v13130_v43 = vld [vmem:[#allocation60_spill] sm:$0xff] }
 0x4c6   :  { %v2594_v26 = vadd.f32 %v13130_v43, %v2260_v46  ;;  %v13133_v46 = vrot.slane %v9708_v7, 6  ;;  %v13136_v43 = vld [vmem:[#allocation33_spill] sm:$0xff] }
 0x4c7   :  { %v9730_v5 = vpop.permute.xlu1 %3773  ;;  %v9732_v15 = vpop.permute.xlu0 %4815  ;;  %v2838_v34 = vadd.f32 %v13129_v39, %v2502_v42  ;;  %v13132_v42 = vrot.slane %v9594_v0, 6  ;;  %v1803_v39 = vrot.slane %v1525_v31, 6 }
 0x4c8   :  { %13123 = vst [vmem:[#allocation79_spill] sm:$0xff] %v9730_v5  ;;  %13124 = vst [vmem:[#allocation36_spill] sm:$0xff] %v9732_v15  ;;  %v9747_v5 = vstv %s9687_s27  ;;  %v13127_v15 = vld [vmem:[#allocation73_spill] sm:$0xff]  ;;  %v1758_v29 = vsel %vm1399_vm2, %v13133_v46, %v1757_v44  ;;  %s10438_s27 = sld [smem:[#allocation9 + $0x4b]] }
 0x4c9   :  { %v1460_v48 = vadd.f32 %v13127_v15, %v1169_v12  ;;  %2805 = vrot.lane.b32.xlu0 %v2799_v28, %s6927_s0  ;;  %1738 = vrot.lane.b32.xlu1 %v13128_v56, %s6927_s0  ;;  %v1217_v12 = vmul.f32 %v9747_v5, %v7676_v62  ;;  %v1802_v56 = vrot.slane %v9737_v32, 6  ;;  %v2845_v1 = vsel %vm1399_vm2, %v13132_v42, %v2844_v57 }
 0x4ca   :  { %v1218_v55 = vmul.f32 %v9747_v5, %v7629_v24  ;;  %v1797_v57 = vadd.f32 %v8843_v63, %v1461_v18  ;;  %v9801_v63 = vstv %s9754_s1  ;;  %s6547_s1 = sld [smem:[#allocation9 + $0x78]] }
 0x4cb   :  { %v9762_v15 = vpop.permute.xlu1 %4813  ;;  %v9764_v28 = vpop.permute.xlu0 %3935  ;;  %v9768_v41 = vadd.f32 %v8902_v30, %v1460_v48  ;;  %v1552_v60 = vadd.f32 %v13134_v6, %v1217_v12  ;;  %v2997_v30 = vrot.slane %v2838_v34, 7  ;;  %v13135_v48 = vld [vmem:[#allocation84_spill] sm:$0xff] }
 0x4cc   :  { %v2890_v0 = vadd.f32 %v13135_v48, %v2594_v26  ;;  %v1553_v42 = vadd.f32 %v13136_v43, %v1218_v55  ;;  %v1804_v26 = vsel %vm1399_vm2, %v1802_v56, %v1803_v39  ;;  %v1957_v31 = vrot.slane %v1797_v57, 7 }
 0x4cd   :  { %2851 = vrot.lane.b32.xlu0 %v2845_v1, %s6927_s0  ;;  %1764 = vrot.lane.b32.xlu1 %v1758_v29, %s6927_s0  ;;  %v1956_v12 = vrot.slane %v9768_v41, 7  ;;  %v9790_v1 = vadd.f32 %v8910_v36, %v1552_v60  ;;  %v13137_v29 = vrot.slane %v9614_v61, 7  ;;  %v1131_v36 = vmul.f32 %v9471_v33, %v8233_v21 }
 0x4ce   :  { %v3023_v18 = vrot.slane %v2890_v0, 6  ;;  %v1849_v55 = vadd.f32 %v8853_v53, %v1553_v42  ;;  %v2337_v60 = vmul.f32 %v9801_v63, %v7599_v27  ;;  %v13138_v39 = vrot.slane %v9632_v58, 6 }
 0x4cf   :  { %v9784_v44 = vpop.permute.xlu1 %4093  ;;  %v9786_v46 = vpop.permute.xlu0 %4095  ;;  %v2998_v34 = vsel %vm1952_vm3, %v13137_v29, %v2997_v30  ;;  %v1391_v30 = vadd.f32 %v8845_v45, %v1131_v36  ;;  %v1982_v48 = vrot.slane %v9790_v1, 6  ;;  %v1958_v33 = vsel %vm1952_vm3, %v1956_v12, %v1957_v31 }
 0x4d0   :  { %v3024_v0 = vsel %vm1399_vm2, %v13138_v39, %v3023_v18  ;;  %v1983_v53 = vrot.slane %v1849_v55, 6  ;;  %v9824_v57 = vmul.f32 %v9801_v63, %v7555_v22  ;;  %v2209_v45 = vmul.f32 %v9588_v38, %v7851_v3 }
 0x4d1   :  { %3005 = vrot.lane.b32.xlu0 %v2998_v34, %s6925_s14  ;;  %1810 = vrot.lane.b32.xlu1 %v1804_v26, %s6927_s0  ;;  %v1730_v42 = vrot.slane %v1391_v30, 1  ;;  %v2708_v29 = vrot.slane %v2337_v60, 1  ;;  %v13140_v34 = vld [vmem:[#allocation87_spill] sm:$0xff]  ;;  %v13141_v18 = vrot.slane %v9653_v8, 1  ;;  %v2257_v36 = vmul.f32 %v9608_v51, %v7693_v59 }
 0x4d2   :  { %v1984_v1 = vsel %vm1399_vm2, %v1982_v48, %v1983_v53  ;;  %v2499_v26 = vadd.f32 %v13140_v34, %v2209_v45  ;;  %v2709_v31 = vrot.slane %v9824_v57, 1  ;;  %v13143_v60 = vrot.slane %v9699_v11, 1 }
 0x4d3   :  { %v9806_v61 = vpop.permute.xlu1 %5133  ;;  %v9808_v6 = vpop.permute.xlu0 %4975  ;;  %v9863_v11 = vstv %s6485_s3  ;;  %v2210_v41 = vmul.f32 %v9588_v38, %v7755_v10  ;;  %v13153_v38 = vrot.slane %v9532_v35, 1  ;;  %s6555_s3 = sld [smem:[#allocation9 + $0x80]] }
 0x4d4   :  { %v9842_v55 = vadd.f32 %v8918_v50, %v2499_v26  ;;  %v2710_v8 = vsel %vm177_vm0, %v2708_v29, %v2709_v31  ;;  %v13146_v29 = vrot.slane %v9708_v7, 6 }
 0x4d5   :  { %3031 = vrot.lane.b32.xlu0 %v3024_v0, %s6924_s12  ;;  %1965 = vrot.lane.b32.xlu1 %v1958_v33, %s6925_s14  ;;  %v1732_v0 = vsel %vm177_vm0, %v1730_v42, %v13143_v60  ;;  %v13144_v33 = vld [vmem:[#allocation90_spill] sm:$0xff]  ;;  %v2283_v42 = vmul.f32 %v9863_v11, %v7676_v62 }
 0x4d6   :  { %v2591_v53 = vadd.f32 %v13144_v33, %v2257_v36  ;;  %v2993_v57 = vrot.slane %v9842_v55, 7  ;;  %v1113_v36 = vmul.f32 %v9638_v37, %v8233_v21 }
 0x4d7   :  { %v9828_v43 = vpop.permute.xlu1 %2407  ;;  %v9830_v58 = vpop.permute.xlu0 %5135  ;;  %v2633_v34 = vadd.f32 %v8837_v25, %v2283_v42  ;;  %v9888_v25 = vmul.f32 %v9638_v37, %v8145_v2 }
 0x4d8   :  { %13139 = vst [vmem:[#allocation56_spill] sm:$0xff] %v9828_v43  ;;  %v9857_v50 = vadd.f32 %v8930_v20, %v2591_v53  ;;  %v10496_v43 = vstv %s10438_s27  ;;  %s6502_s27 = sld [smem:[#allocation9 + $0x4c]] }
 0x4d9   :  { %1345 = vrot.lane.b32.xlu0 %v13141_v18, %s6925_s14  ;;  %1991 = vrot.lane.b32.xlu1 %v1984_v1, %s6924_s12  ;;  %v2909_v55 = vadd.f32 %v8969_v4, %v2633_v34  ;;  %v1333_v4 = vrot.slane %v1113_v36, 1  ;;  %v12786_v32 = vrot.slane %v9888_v25, 1  ;;  %v2258_v36 = vmul.f32 %v9608_v51, %v7651_v9 }
 0x4da   :  { %v12787_v20 = vrot.slane %v9857_v50, 6 }
 0x4db   :  { %v9844_v30 = vpop.permute.xlu1 %2453  ;;  %v9846_v39 = vpop.permute.xlu0 %3771  ;;  %v3065_v7 = vadd.f32 %v9122_v49, %v2909_v55  ;;  %v1335_v49 = vsel %vm177_vm0, %v1333_v4, %v12786_v32  ;;  %v13154_v55 = vld [vmem:[#allocation38_spill] sm:$0xff] }
 0x4dc   :  { %13142 = vst [vmem:[#allocation73_spill] sm:$0xff] %v9844_v30 }
 0x4dd   :  { %1736 = vrot.lane.b32.xlu0 %v1732_v0, %s6927_s0  ;;  %2715 = vrot.lane.b32.xlu1 %v2710_v8, %s6925_s14  ;;  %v9913_v8 = vstv %s6507_s29  ;;  %s10687_s29 = sld [smem:[#allocation9 + $0x60]] }
 0x4df   :  { %v9859_v45 = vpop.permute.xlu1 %2539  ;;  %v9861_v1 = vpop.permute.xlu0 %4811 }
 0x4e0   :  { %13145 = vst [vmem:[#allocation82_spill] sm:$0xff] %v9859_v45 }
 0x4e1   :  { %1762 = vrot.lane.b32.xlu0 %v13146_v29, %s6927_s0  ;;  %2999 = vrot.lane.b32.xlu1 %v2993_v57, %s6925_s14  ;;  %v13152_v29 = vld [vmem:[#allocation29_spill] sm:$0xff] }
 0x4e2   :  { %v2500_v34 = vadd.f32 %v13152_v29, %v2210_v41  ;;  %v13157_v41 = vld [vmem:[#allocation80_spill] sm:$0xff] }
 0x4e3   :  { %v9873_v26 = vpop.permute.xlu1 %1365  ;;  %v9875_v18 = vpop.permute.xlu0 %4091  ;;  %v2592_v29 = vadd.f32 %v13157_v41, %v2258_v36  ;;  %v9957_v41 = vstv %s6540_s10  ;;  %s6559_s10 = sld [smem:[#allocation9 + $0x84]] }
 0x4e4   :  { %13147 = vst [vmem:[#allocation60_spill] sm:$0xff] %v9873_v26 }
 0x4e5   :  { %1808 = vrot.lane.b32.xlu0 %v1802_v56, %s6927_s0  ;;  %3025 = vrot.lane.b32.xlu1 %v12787_v20, %s6924_s12 }
 0x4e7   :  { %v9891_v60 = vpop.permute.xlu1 %1412  ;;  %v9893_v0 = vpop.permute.xlu0 %5131 }
 0x4e8   :  { %13148 = vst [vmem:[#allocation66_spill] sm:$0xff] %v9891_v60 }
 0x4e9   :  { %1963 = vrot.lane.b32.xlu0 %v1956_v12, %s6925_s14  ;;  %3101 = vrot.lane.b32.xlu1 %v3065_v7, %s6927_s0  ;;  %v9911_v12 = vstv %s6503_s28  ;;  %v2836_v7 = vadd.f32 %v13154_v55, %v2500_v34  ;;  %s6531_s28 = sld [smem:[#allocation9 + $0x69]] }
 0x4ea   :  { %v3209_v42 = vmul.f32 %v9911_v12, %v13055_v52 }
 0x4eb   :  { %v9900_v56 = vpop.permute.xlu1 %1498  ;;  %v9902_v37 = vpop.permute.xlu0 %2405  ;;  %v2994_v35 = vrot.slane %v2836_v7, 7 }
 0x4ec   :  { %13149 = vst [vmem:[#allocation35_spill] sm:$0xff] %v9900_v56 }
 0x4ed   :  { %1989 = vrot.lane.b32.xlu0 %v1982_v48, %s6924_s12  ;;  %1339 = vrot.lane.b32.xlu1 %v1335_v49, %s6925_s14  ;;  %v9923_v48 = vmul.f32 %v9913_v8, %v7834_v13  ;;  %v2995_v36 = vsel %vm1952_vm3, %v2993_v57, %v2994_v35  ;;  %v4249_v57 = vmul.f32 %v9957_v41, %v13055_v52 }
 0x4ef   :  { %v9915_v33 = vpop.permute.xlu1 %2403  ;;  %v9917_v53 = vpop.permute.xlu0 %2451  ;;  %v12788_v32 = vrot.slane %v9923_v48, 6 }
 0x4f0   :  { %13150 = vst [vmem:[#allocation84_spill] sm:$0xff] %v9915_v33  ;;  %13151 = vst [vmem:[#allocation33_spill] sm:$0xff] %v9917_v53  ;;  %v9984_v33 = vstv %s6458_s11  ;;  %s6569_s11 = sld [smem:[#allocation9 + $0x8e]] }
 0x4f1   :  { %2387 = vrot.lane.b32.xlu0 %v13153_v38, %s6925_s14  ;;  %3445 = vrot.lane.b32.xlu1 %v3209_v42, %s6924_s12  ;;  %v13158_v42 = vld [vmem:[#allocation91_spill] sm:$0xff]  ;;  %v9944_v38 = vstv %s6515_s30  ;;  %s6568_s30 = sld [smem:[#allocation9 + $0x8d]] }
 0x4f2   :  { %v2888_v51 = vadd.f32 %v13158_v42, %v2592_v29  ;;  %v3281_v20 = vmul.f32 %v9944_v38, %v7834_v13  ;;  %v9959_v29 = vstv %s6544_s4  ;;  %v13161_v42 = vld [vmem:[#allocation86_spill] sm:$0xff]  ;;  %s6532_s4 = sld [smem:[#allocation9 + $0x6a]] }
 0x4f3   :  { %v9933_v4 = vpop.permute.xlu1 %2449  ;;  %v9935_v49 = vpop.permute.xlu0 %2537  ;;  %v9970_v35 = vmul.f32 %v9959_v29, %v7834_v13 }
 0x4f4   :  { %13155 = vst [vmem:[#allocation87_spill] sm:$0xff] %v9933_v4  ;;  %13156 = vst [vmem:[#allocation90_spill] sm:$0xff] %v9935_v49  ;;  %v3020_v7 = vrot.slane %v2888_v51, 6 }
 0x4f5   :  { %2717 = vrot.lane.b32.xlu0 %v2709_v31, %s6925_s14  ;;  %3491 = vrot.lane.b32.xlu1 %v12788_v32, %s6925_s14  ;;  %v2284_v31 = vmul.f32 %v9863_v11, %v7629_v24 }
 0x4f7   :  { %v9946_v34 = vpop.permute.xlu1 %2535  ;;  %v9948_v55 = vpop.permute.xlu0 %1363  ;;  %v2634_v32 = vadd.f32 %v13161_v42, %v2284_v31 }
 0x4f8   :  { %13159 = vst [vmem:[#allocation29_spill] sm:$0xff] %v9946_v34  ;;  %13160 = vst [vmem:[#allocation38_spill] sm:$0xff] %v9948_v55  ;;  %v13171_v55 = vld [vmem:[#allocation44_spill] sm:$0xff] }
 0x4f9   :  { %3001 = vrot.lane.b32.xlu0 %v2995_v36, %s6925_s14  ;;  %3577 = vrot.lane.b32.xlu1 %v3281_v20, %s6924_s12  ;;  %v13164_v20 = vrot.slane %v9857_v50, 6  ;;  %v2910_v36 = vadd.f32 %v8908_v19, %v2634_v32  ;;  %v1295_v50 = vmul.f32 %v9984_v33, %v7599_v27  ;;  %v9990_v19 = vstv %s6552_s13  ;;  %s6426_s13 = sld [smem:[#allocation9 + $0x1]] }
 0x4fa   :  { %v1167_v32 = vmul.f32 %v9713_v14, %v7851_v3 }
 0x4fb   :  { %v9962_v34 = vpop.permute.xlu1 %2783  ;;  %v9964_v56 = vpop.permute.xlu0 %1410  ;;  %v3021_v51 = vsel %vm1399_vm2, %v13164_v20, %v3020_v7  ;;  %v3066_v31 = vadd.f32 %v9064_v40, %v2910_v36  ;;  %v9994_v40 = vmul.f32 %v9984_v33, %v7555_v22  ;;  %v1667_v20 = vrot.slane %v1295_v50, 1 }
 0x4fc   :  { %13162 = vst [vmem:[#allocation80_spill] sm:$0xff] %v9962_v34  ;;  %13163 = vst [vmem:[#allocation91_spill] sm:$0xff] %v9964_v56  ;;  %v4524_v56 = vrot.slane %v9970_v35, 6  ;;  %v4321_v35 = vmul.f32 %v9990_v19, %v7834_v13 }
 0x4fd   :  { %3027 = vrot.lane.b32.xlu0 %v3021_v51, %s6924_s12  ;;  %4485 = vrot.lane.b32.xlu1 %v4249_v57, %s6924_s12  ;;  %v13169_v51 = vld [vmem:[#allocation28_spill] sm:$0xff] }
 0x4fe   :  { %v1458_v36 = vadd.f32 %v13169_v51, %v1167_v32  ;;  %v13174_v51 = vld [vmem:[#allocation93_spill] sm:$0xff] }
 0x4ff   :  { %v9979_v42 = vpop.permute.xlu1 %2809  ;;  %v9981_v4 = vpop.permute.xlu0 %1496 }
 0x500   :  { %13165 = vst [vmem:[#allocation86_spill] sm:$0xff] %v9979_v42  ;;  %13166 = vst [vmem:[#allocation145_spill] sm:$0xff] %v9981_v4  ;;  %v12789_v4 = vrot.slane %v9994_v40, 1  ;;  %v10015_v49 = vadd.f32 %v13171_v55, %v1458_v36  ;;  %v13175_v36 = vld [vmem:[#allocation100_spill] sm:$0xff]  ;;  %v10037_v42 = vstv %s6449_s15  ;;  %s6462_s15 = sld [smem:[#allocation9 + $0x25]] }
 0x501   :  { %3103 = vrot.lane.b32.xlu0 %v3066_v31, %s6927_s0  ;;  %4531 = vrot.lane.b32.xlu1 %v4524_v56, %s6925_s14  ;;  %v13170_v31 = vrot.slane %v9888_v25, 1  ;;  %v3210_v25 = vmul.f32 %v9911_v12, %v13043_v47 }
 0x502   :  { %v1953_v55 = vrot.slane %v10015_v49, 7  ;;  %v13179_v49 = vld [vmem:[#allocation96_spill] sm:$0xff] }
 0x503   :  { %v9998_v7 = vpop.permute.xlu1 %2855  ;;  %v10000_v57 = vpop.permute.xlu0 %2401 }
 0x504   :  { %13167 = vst [vmem:[#allocation146_spill] sm:$0xff] %v9998_v7  ;;  %13168 = vst [vmem:[#allocation147_spill] sm:$0xff] %v10000_v57  ;;  %v3234_v7 = vmul.f32 %v9913_v8, %v7731_v16  ;;  %v1215_v57 = vmul.f32 %v9747_v5, %v7693_v59 }
 0x505   :  { %1341 = vrot.lane.b32.xlu0 %v13170_v31, %s6925_s14  ;;  %4617 = vrot.lane.b32.xlu1 %v4321_v35, %s6924_s12  ;;  %v1669_v35 = vsel %vm177_vm0, %v1667_v20, %v12789_v4  ;;  %v13178_v20 = vrot.slane %v9923_v48, 6  ;;  %v3282_v48 = vmul.f32 %v9944_v38, %v7731_v16 }
 0x506   :  { %v1550_v31 = vadd.f32 %v13174_v51, %v1215_v57  ;;  %v3485_v60 = vrot.slane %v3234_v7, 6 }
 0x507   :  { %v10017_v50 = vpop.permute.xlu0 %2447  ;;  %v10019_v32 = vpop.permute.xlu1 %1359 }
 0x508   :  { %13172 = vst [vmem:[#allocation28_spill] sm:$0xff] %v10017_v50  ;;  %13173 = vst [vmem:[#allocation44_spill] sm:$0xff] %v10019_v32  ;;  %v10031_v50 = vadd.f32 %v13175_v36, %v1550_v31  ;;  %v3486_v57 = vsel %vm1399_vm2, %v13178_v20, %v3485_v60  ;;  %v4274_v36 = vmul.f32 %v9959_v29, %v7731_v16 }
 0x509   :  { %3447 = vrot.lane.b32.xlu0 %v3210_v25, %s6924_s12  ;;  %1674 = vrot.lane.b32.xlu1 %v1669_v35, %s6925_s14  ;;  %v1241_v25 = vmul.f32 %v10037_v42, %v7676_v62 }
 0x50a   :  { %v1979_v35 = vrot.slane %v10031_v50, 6 }
 0x50b   :  { %v10033_v32 = vpop.permute.xlu0 %2533  ;;  %v10035_v45 = vpop.permute.xlu1 %1406  ;;  %v1592_v7 = vadd.f32 %v13179_v49, %v1241_v25  ;;  %v4250_v25 = vmul.f32 %v9957_v41, %v13043_v47  ;;  %v4525_v49 = vrot.slane %v4274_v36, 6  ;;  %v1168_v36 = vmul.f32 %v9713_v14, %v7755_v10 }
 0x50c   :  { %13176 = vst [vmem:[#allocation93_spill] sm:$0xff] %v10033_v32  ;;  %13177 = vst [vmem:[#allocation100_spill] sm:$0xff] %v10035_v45  ;;  %v1216_v14 = vmul.f32 %v9747_v5, %v7651_v9 }
 0x50d   :  { %3493 = vrot.lane.b32.xlu0 %v3486_v57, %s6925_s14  ;;  %1959 = vrot.lane.b32.xlu1 %v1953_v55, %s6925_s14  ;;  %v1868_v60 = vadd.f32 %v9039_v54, %v1592_v7  ;;  %v10068_v54 = vstv %s6495_s16  ;;  %s6465_s16 = sld [smem:[#allocation9 + $0x28]] }
 0x50e   :  { %v2344_v4 = vmul.f32 %v10068_v54, %v7555_v22 }
 0x50f   :  { %v10048_v51 = vpop.permute.xlu0 %2781  ;;  %v10050_v31 = vpop.permute.xlu1 %1492  ;;  %v2025_v20 = vadd.f32 %v9244_v17, %v1868_v60  ;;  %v10076_v17 = vmul.f32 %v9801_v63, %v12945_v23  ;;  %v4526_v60 = vsel %vm1399_vm2, %v4524_v56, %v4525_v49  ;;  %v4322_v56 = vmul.f32 %v9990_v19, %v7731_v16 }
 0x510   :  { %13180 = vst [vmem:[#allocation96_spill] sm:$0xff] %v10048_v51  ;;  %13181 = vst [vmem:[#allocation148_spill] sm:$0xff] %v10050_v31  ;;  %v13188_v31 = vld [vmem:[#allocation95_spill] sm:$0xff] }
 0x511   :  { %3579 = vrot.lane.b32.xlu0 %v3282_v48, %s6924_s12  ;;  %1985 = vrot.lane.b32.xlu1 %v1979_v35, %s6924_s12  ;;  %v10088_v32 = vadd.f32 %v13188_v31, %v2344_v4  ;;  %v2706_v49 = vrot.slane %v10076_v17, 1  ;;  %v13192_v4 = vld [vmem:[#allocation42_spill] sm:$0xff] }
 0x513   :  { %v10060_v57 = vpop.permute.xlu0 %2807  ;;  %v10062_v50 = vpop.permute.xlu1 %1740 }
 0x514   :  { %13182 = vst [vmem:[#allocation149_spill] sm:$0xff] %v10060_v57  ;;  %13183 = vst [vmem:[#allocation150_spill] sm:$0xff] %v10062_v50  ;;  %v12790_v50 = vrot.slane %v10088_v32, 1 }
 0x515   :  { %4487 = vrot.lane.b32.xlu0 %v4250_v25, %s6924_s12  ;;  %2061 = vrot.lane.b32.xlu1 %v2025_v20, %s6927_s0  ;;  %v13186_v20 = vld [vmem:[#allocation142_spill] sm:$0xff] }
 0x516   :  { %v13187_v25 = vrot.slane %v13186_v20, 1  ;;  %v2282_v20 = vmul.f32 %v9863_v11, %v7651_v9 }
 0x517   :  { %v10070_v7 = vpop.permute.xlu0 %2853  ;;  %v10072_v48 = vpop.permute.xlu1 %1766 }
 0x518   :  { %13184 = vst [vmem:[#allocation151_spill] sm:$0xff] %v10070_v7  ;;  %13185 = vst [vmem:[#allocation152_spill] sm:$0xff] %v10072_v48 }
 0x519   :  { %4533 = vrot.lane.b32.xlu0 %v4526_v60, %s6925_s14  ;;  %2383 = vrot.lane.b32.xlu1 %v13187_v25, %s6925_s14  ;;  %v13191_v60 = vld [vmem:[#allocation30_spill] sm:$0xff]  ;;  %v13193_v25 = vld [vmem:[#allocation21_spill] sm:$0xff] }
 0x51a   :  { %v1459_v7 = vadd.f32 %v13191_v60, %v1168_v36  ;;  %v13196_v36 = vld [vmem:[#allocation18_spill] sm:$0xff] }
 0x51b   :  { %v10090_v45 = vpop.permute.xlu0 %2385  ;;  %v10092_v48 = vpop.permute.xlu1 %1812  ;;  %v1551_v60 = vadd.f32 %v13196_v36, %v1216_v14  ;;  %v3232_v14 = vmul.f32 %v9913_v8, %v7755_v10 }
 0x51c   :  { %13189 = vst [vmem:[#allocation142_spill] sm:$0xff] %v10090_v45  ;;  %13190 = vst [vmem:[#allocation95_spill] sm:$0xff] %v10092_v48  ;;  %v1795_v31 = vadd.f32 %v13192_v4, %v1459_v7  ;;  %v2632_v48 = vadd.f32 %v13193_v25, %v2282_v20  ;;  %v13197_v45 = vld [vmem:[#allocation27_spill] sm:$0xff]  ;;  %v13199_v7 = vld [vmem:[#allocation94_spill] sm:$0xff] }
 0x51d   :  { %4619 = vrot.lane.b32.xlu0 %v4322_v56, %s6924_s12  ;;  %2713 = vrot.lane.b32.xlu1 %v2706_v49, %s6925_s14  ;;  %v13198_v56 = vrot.slane %v9994_v40, 1  ;;  %v1847_v20 = vadd.f32 %v13199_v7, %v1551_v60  ;;  %v13200_v4 = vld [vmem:[#allocation39_spill] sm:$0xff]  ;;  %v10128_v40 = vmul.f32 %v9913_v8, %v7851_v3  ;;  %v2343_v8 = vmul.f32 %v10068_v54, %v7599_v27 }
 0x51e   :  { %v2908_v53 = vadd.f32 %v13197_v45, %v2632_v48  ;;  %v1954_v5 = vrot.slane %v1795_v31, 7  ;;  %v1242_v48 = vmul.f32 %v10037_v42, %v7629_v24  ;;  %v13203_v31 = vld [vmem:[#allocation92_spill] sm:$0xff] }
 0x51f   :  { %v10107_v57 = vpop.permute.xlu0 %1361  ;;  %v10109_v17 = vpop.permute.xlu1 %2777 }
 0x520   :  { %13194 = vst [vmem:[#allocation30_spill] sm:$0xff] %v10107_v57  ;;  %13195 = vst [vmem:[#allocation42_spill] sm:$0xff] %v10109_v17  ;;  %v3064_v25 = vadd.f32 %v13200_v4, %v2908_v53  ;;  %v1955_v45 = vsel %vm1952_vm3, %v1953_v55, %v1954_v5  ;;  %v1980_v53 = vrot.slane %v1847_v20, 6  ;;  %v1593_v36 = vadd.f32 %v13203_v31, %v1242_v48  ;;  %v13206_v4 = vld [vmem:[#allocation31_spill] sm:$0xff]  ;;  %v13207_v20 = vld [vmem:[#allocation98_spill] sm:$0xff] }
 0x521   :  { %1676 = vrot.lane.b32.xlu0 %v13198_v56, %s6925_s14  ;;  %2953 = vrot.lane.b32.xlu1 %v12790_v50, %s6927_s0  ;;  %v3208_v56 = vmul.f32 %v9911_v12, %v8145_v2  ;;  %v3482_v48 = vrot.slane %v3232_v14, 6  ;;  %v13208_v31 = vld [vmem:[#allocation43_spill] sm:$0xff] }
 0x522   :  { %v1981_v5 = vsel %vm1399_vm2, %v1979_v35, %v1980_v53  ;;  %v10157_v53 = vstv %s6504_s2  ;;  %s6427_s2 = sld [smem:[#allocation9 + $0x2]] }
 0x523   :  { %v10121_v57 = vpop.permute.xlu0 %1408  ;;  %v10123_v17 = vpop.permute.xlu1 %2803 }
 0x524   :  { %13201 = vst [vmem:[#allocation21_spill] sm:$0xff] %v10121_v57  ;;  %13202 = vst [vmem:[#allocation18_spill] sm:$0xff] %v10123_v17  ;;  %v13217_v57 = vld [vmem:[#allocation101_spill] sm:$0xff] }
 0x525   :  { %1961 = vrot.lane.b32.xlu0 %v1955_v45, %s6925_s14  ;;  %3099 = vrot.lane.b32.xlu1 %v3064_v25, %s6927_s0  ;;  %v2335_v25 = vmul.f32 %v9801_v63, %v13206_v4  ;;  %v1869_v45 = vadd.f32 %v13207_v20, %v1593_v36  ;;  %v13211_v63 = vld [vmem:[#allocation102_spill] sm:$0xff]  ;;  %v13212_v36 = vrot.slane %v10128_v40, 6 }
 0x526   :  { %v2745_v7 = vadd.f32 %v13211_v63, %v2343_v8 }
 0x527   :  { %v10137_v60 = vpop.permute.xlu0 %1494  ;;  %v10139_v55 = vpop.permute.xlu1 %2849  ;;  %v2026_v50 = vadd.f32 %v13208_v31, %v1869_v45  ;;  %v2705_v20 = vrot.slane %v2335_v25, 1  ;;  %v13213_v45 = vld [vmem:[#allocation99_spill] sm:$0xff]  ;;  %v3280_v25 = vmul.f32 %v9944_v38, %v7755_v10 }
 0x528   :  { %13204 = vst [vmem:[#allocation27_spill] sm:$0xff] %v10137_v60  ;;  %13205 = vst [vmem:[#allocation94_spill] sm:$0xff] %v10139_v55  ;;  %v10165_v55 = vstv %s6508_s17  ;;  %s6469_s17 = sld [smem:[#allocation9 + $0x2c]] }
 0x529   :  { %1987 = vrot.lane.b32.xlu0 %v1981_v5, %s6924_s12  ;;  %3443 = vrot.lane.b32.xlu1 %v3208_v56, %s6924_s12  ;;  %v3483_v5 = vsel %vm1399_vm2, %v13212_v36, %v3482_v48  ;;  %v3216_v56 = vmul.f32 %v10157_v53, %v13043_v47  ;;  %v3239_v14 = vmul.f32 %v10165_v55, %v7834_v13  ;;  %v2944_v36 = vrot.slane %v2745_v7, 1  ;;  %v13218_v7 = vld [vmem:[#allocation97_spill] sm:$0xff] }
 0x52a   :  { %v3240_v48 = vmul.f32 %v10165_v55, %v7731_v16 }
 0x52b   :  { %v10153_v60 = vpop.permute.xlu0 %1742  ;;  %v10155_v35 = vpop.permute.xlu1 %3003  ;;  %v10172_v31 = vadd.f32 %v13213_v45, %v3216_v56  ;;  %v2281_v56 = vmul.f32 %v9863_v11, %v7693_v59  ;;  %v10188_v45 = vstv %s6516_s18  ;;  %s6429_s18 = sld [smem:[#allocation9 + $0x4]] }
 0x52c   :  { %13209 = vst [vmem:[#allocation39_spill] sm:$0xff] %v10153_v60  ;;  %13210 = vst [vmem:[#allocation92_spill] sm:$0xff] %v10155_v35  ;;  %v3288_v11 = vmul.f32 %v10188_v45, %v7629_v24  ;;  %v13223_v60 = vld [vmem:[#allocation104_spill] sm:$0xff] }
 0x52d   :  { %2063 = vrot.lane.b32.xlu0 %v2026_v50, %s6927_s0  ;;  %3489 = vrot.lane.b32.xlu1 %v3483_v5, %s6925_s14  ;;  %v13216_v50 = vld [vmem:[#allocation106_spill] sm:$0xff]  ;;  %v2707_v5 = vsel %vm177_vm0, %v2705_v20, %v2706_v49  ;;  %v2631_v35 = vadd.f32 %v13218_v7, %v2281_v56  ;;  %v13224_v7 = vld [vmem:[#allocation32_spill] sm:$0xff] }
 0x52e   :  { %v10183_v17 = vadd.f32 %v13216_v50, %v3239_v14  ;;  %v3815_v14 = vrot.slane %v10172_v31, 1 }
 0x52f   :  { %v10174_v8 = vpop.permute.xlu0 %1768  ;;  %v10176_v63 = vpop.permute.xlu1 %3029  ;;  %v2907_v56 = vadd.f32 %v13223_v60, %v2631_v35 }
 0x530   :  { %13214 = vst [vmem:[#allocation31_spill] sm:$0xff] %v10174_v8  ;;  %13215 = vst [vmem:[#allocation98_spill] sm:$0xff] %v10176_v63  ;;  %v3522_v63 = vadd.f32 %v13217_v57, %v3240_v48  ;;  %v3287_v8 = vmul.f32 %v10188_v45, %v7676_v62  ;;  %v13222_v57 = vrot.slane %v10088_v32, 1  ;;  %v13228_v32 = vrot.slane %v10183_v17, 6 }
 0x531   :  { %2711 = vrot.lane.b32.xlu0 %v2707_v5, %s6925_s14  ;;  %3575 = vrot.lane.b32.xlu1 %v3280_v25, %s6924_s12  ;;  %v13221_v5 = vld [vmem:[#allocation109_spill] sm:$0xff] }
 0x532   :  { %v10205_v25 = vadd.f32 %v13221_v5, %v3287_v8  ;;  %v2946_v48 = vsel %vm177_vm0, %v2944_v36, %v13222_v57  ;;  %v3841_v31 = vrot.slane %v3522_v63, 6  ;;  %v10236_v5 = vmul.f32 %v9959_v29, %v7851_v3 }
 0x533   :  { %v10197_v50 = vpop.permute.xlu0 %1814  ;;  %v10199_v49 = vpop.permute.xlu1 %1343 }
 0x534   :  { %13219 = vst [vmem:[#allocation43_spill] sm:$0xff] %v10197_v50  ;;  %13220 = vst [vmem:[#allocation102_spill] sm:$0xff] %v10199_v49  ;;  %v3608_v50 = vadd.f32 %v13224_v7, %v3288_v11  ;;  %v13225_v49 = vld [vmem:[#allocation47_spill] sm:$0xff]  ;;  %v12791_v8 = vrot.slane %v10205_v25, 6  ;;  %v3842_v36 = vsel %vm1399_vm2, %v13228_v32, %v3841_v31  ;;  %v12792_v7 = vrot.slane %v10236_v5, 6 }
 0x535   :  { %2951 = vrot.lane.b32.xlu0 %v2946_v48, %s6927_s0  ;;  %3823 = vrot.lane.b32.xlu1 %v3815_v14, %s6927_s0  ;;  %v3063_v26 = vadd.f32 %v13225_v49, %v2907_v56  ;;  %v3207_v49 = vmul.f32 %v9911_v12, %v8233_v21  ;;  %v4272_v12 = vmul.f32 %v9959_v29, %v7755_v10  ;;  %v13233_v56 = vld [vmem:[#allocation22_spill] sm:$0xff]  ;;  %v13234_v32 = vrot.slane %v10128_v40, 6 }
 0x536   :  { %v3887_v60 = vrot.slane %v3608_v50, 6  ;;  %v4248_v48 = vmul.f32 %v9957_v41, %v8145_v2 }
 0x537   :  { %v10215_v30 = vpop.permute.xlu0 %2779  ;;  %v10217_v20 = vpop.permute.xlu1 %2381 }
 0x538   :  { %13226 = vst [vmem:[#allocation99_spill] sm:$0xff] %v10215_v30  ;;  %13227 = vst [vmem:[#allocation106_spill] sm:$0xff] %v10217_v20  ;;  %v3888_v11 = vsel %vm1399_vm2, %v12791_v8, %v3887_v60  ;;  %v10262_v8 = vstv %s6541_s20  ;;  %s6433_s20 = sld [smem:[#allocation9 + $0x8]] }
 0x539   :  { %3097 = vrot.lane.b32.xlu0 %v3063_v26, %s6927_s0  ;;  %3849 = vrot.lane.b32.xlu1 %v3842_v36, %s6927_s0  ;;  %v3215_v26 = vmul.f32 %v10157_v53, %v13055_v52  ;;  %v4522_v36 = vrot.slane %v4272_v12, 6  ;;  %v4256_v40 = vmul.f32 %v10262_v8, %v13043_v47 }
 0x53b   :  { %v10225_v35 = vpop.permute.xlu0 %2805  ;;  %v10227_v63 = vpop.permute.xlu1 %1738  ;;  %v3475_v31 = vadd.f32 %v13233_v56, %v3215_v26  ;;  %v4523_v26 = vsel %vm1399_vm2, %v12792_v7, %v4522_v36  ;;  %v10269_v56 = vstv %s6545_s21  ;;  %v4320_v36 = vmul.f32 %v9990_v19, %v7755_v10  ;;  %s6536_s21 = sld [smem:[#allocation9 + $0x6d]] }
 0x53c   :  { %13229 = vst [vmem:[#allocation101_spill] sm:$0xff] %v10225_v35  ;;  %13230 = vst [vmem:[#allocation97_spill] sm:$0xff] %v10227_v63  ;;  %v4279_v12 = vmul.f32 %v10269_v56, %v7834_v13  ;;  %v4280_v7 = vmul.f32 %v10269_v56, %v7731_v16 }
 0x53d   :  { %3441 = vrot.lane.b32.xlu0 %v3207_v49, %s6924_s12  ;;  %3895 = vrot.lane.b32.xlu1 %v3888_v11, %s6927_s0  ;;  %v3279_v49 = vmul.f32 %v9944_v38, %v7851_v3  ;;  %v3814_v11 = vrot.slane %v3475_v31, 1  ;;  %v13237_v38 = vld [vmem:[#allocation105_spill] sm:$0xff] }
 0x53f   :  { %v10244_v50 = vpop.permute.xlu0 %2851  ;;  %v10246_v57 = vpop.permute.xlu1 %1764 }
 0x540   :  { %13231 = vst [vmem:[#allocation109_spill] sm:$0xff] %v10244_v50  ;;  %13232 = vst [vmem:[#allocation104_spill] sm:$0xff] %v10246_v57  ;;  %v10290_v50 = vstv %s6553_s22  ;;  %s6499_s22 = sld [smem:[#allocation9 + $0x49]] }
 0x541   :  { %3487 = vrot.lane.b32.xlu0 %v13234_v32, %s6925_s14  ;;  %4483 = vrot.lane.b32.xlu1 %v4248_v48, %s6924_s12  ;;  %v10276_v48 = vadd.f32 %v13237_v38, %v4256_v40  ;;  %v13241_v40 = vld [vmem:[#allocation37_spill] sm:$0xff]  ;;  %v4327_v57 = vmul.f32 %v10290_v50, %v7676_v62 }
 0x542   :  { %v4562_v38 = vadd.f32 %v13241_v40, %v4280_v7  ;;  %v13245_v7 = vrot.slane %v10183_v17, 6 }
 0x543   :  { %v10256_v29 = vpop.permute.xlu0 %3005  ;;  %v10258_v60 = vpop.permute.xlu1 %1810  ;;  %v4855_v35 = vrot.slane %v10276_v48, 1  ;;  %v13246_v48 = vld [vmem:[#allocation110_spill] sm:$0xff] }
 0x544   :  { %13235 = vst [vmem:[#allocation32_spill] sm:$0xff] %v10256_v29  ;;  %13236 = vst [vmem:[#allocation47_spill] sm:$0xff] %v10258_v60  ;;  %v13240_v60 = vld [vmem:[#allocation114_spill] sm:$0xff] }
 0x545   :  { %3573 = vrot.lane.b32.xlu0 %v3279_v49, %s6924_s12  ;;  %4529 = vrot.lane.b32.xlu1 %v4523_v26, %s6925_s14  ;;  %v10287_v49 = vadd.f32 %v13240_v60, %v4279_v12  ;;  %v3816_v26 = vsel %vm177_vm0, %v3814_v11, %v3815_v14  ;;  %v4328_v14 = vmul.f32 %v10290_v50, %v7629_v24  ;;  %v13244_v12 = vld [vmem:[#allocation117_spill] sm:$0xff] }
 0x547   :  { %v10278_v31 = vpop.permute.xlu0 %3031  ;;  %v10280_v32 = vpop.permute.xlu1 %1965  ;;  %v4880_v11 = vrot.slane %v10287_v49, 6  ;;  %v4648_v40 = vadd.f32 %v13246_v48, %v4328_v14  ;;  %v10333_v48 = vmul.f32 %v9984_v33, %v12945_v23 }
 0x548   :  { %13238 = vst [vmem:[#allocation22_spill] sm:$0xff] %v10278_v31  ;;  %13239 = vst [vmem:[#allocation105_spill] sm:$0xff] %v10280_v32 }
 0x549   :  { %3821 = vrot.lane.b32.xlu0 %v3816_v26, %s6927_s0  ;;  %4615 = vrot.lane.b32.xlu1 %v4320_v36, %s6924_s12  ;;  %v10306_v26 = vadd.f32 %v13244_v12, %v4327_v57  ;;  %v4881_v36 = vrot.slane %v4562_v38, 6  ;;  %v13249_v57 = vrot.slane %v10205_v25, 6  ;;  %v4927_v17 = vrot.slane %v4648_v40, 6 }
 0x54a   :  { %v10323_v12 = vstv %s6459_s23  ;;  %v4255_v40 = vmul.f32 %v10262_v8, %v13055_v52  ;;  %s6441_s23 = sld [smem:[#allocation9 + $0x10]] }
 0x54b   :  { %v10298_v30 = vpop.permute.xlu0 %1345  ;;  %v10300_v60 = vpop.permute.xlu1 %1991  ;;  %v12793_v31 = vrot.slane %v10306_v26, 6  ;;  %v4882_v49 = vsel %vm1399_vm2, %v4880_v11, %v4881_v36  ;;  %v1302_v36 = vmul.f32 %v10323_v12, %v7555_v22 }
 0x54c   :  { %13242 = vst [vmem:[#allocation114_spill] sm:$0xff] %v10298_v30  ;;  %13243 = vst [vmem:[#allocation37_spill] sm:$0xff] %v10300_v60  ;;  %v13281_v30 = vld [vmem:[#allocation103_spill] sm:$0xff] }
 0x54d   :  { %3847 = vrot.lane.b32.xlu0 %v13245_v7, %s6927_s0  ;;  %4863 = vrot.lane.b32.xlu1 %v4855_v35, %s6927_s0  ;;  %v4247_v7 = vmul.f32 %v9957_v41, %v8233_v21  ;;  %v4928_v25 = vsel %vm1399_vm2, %v12793_v31, %v4927_v17  ;;  %v13255_v17 = vld [vmem:[#allocation113_spill] sm:$0xff] }
 0x54e   :  { %v4515_v31 = vadd.f32 %v13255_v17, %v4255_v40  ;;  %v2342_v17 = vmul.f32 %v10068_v54, %v12945_v23 }
 0x54f   :  { %v10313_v32 = vpop.permute.xlu0 %1736  ;;  %v10315_v60 = vpop.permute.xlu1 %2715 }
 0x550   :  { %13247 = vst [vmem:[#allocation117_spill] sm:$0xff] %v10313_v32  ;;  %13248 = vst [vmem:[#allocation110_spill] sm:$0xff] %v10315_v60  ;;  %v1665_v60 = vrot.slane %v10333_v48, 1  ;;  %v4319_v48 = vmul.f32 %v9990_v19, %v7851_v3  ;;  %v4854_v40 = vrot.slane %v4515_v31, 1  ;;  %v13260_v32 = vld [vmem:[#allocation115_spill] sm:$0xff]  ;;  %v10382_v31 = vstv %s6538_s24  ;;  %s6500_s24 = sld [smem:[#allocation9 + $0x4a]] }
 0x551   :  { %3893 = vrot.lane.b32.xlu0 %v13249_v57, %s6927_s0  ;;  %4889 = vrot.lane.b32.xlu1 %v4882_v49, %s6927_s0  ;;  %v13252_v49 = vld [vmem:[#allocation112_spill] sm:$0xff] }
 0x552   :  { %v10345_v41 = vadd.f32 %v13252_v49, %v1302_v36  ;;  %v13257_v36 = vld [vmem:[#allocation19_spill] sm:$0xff]  ;;  %v4856_v63 = vsel %vm177_vm0, %v4854_v40, %v4855_v35  ;;  %v1293_v35 = vmul.f32 %v9984_v33, %v13206_v4  ;;  %v3237_v40 = vmul.f32 %v10165_v55, %v7851_v3  ;;  %v13267_v33 = vld [vmem:[#allocation49_spill] sm:$0xff] }
 0x553   :  { %v10325_v38 = vpop.permute.xlu0 %1762  ;;  %v10327_v14 = vpop.permute.xlu1 %2999 }
 0x554   :  { %13250 = vst [vmem:[#allocation153_spill] sm:$0xff] %v10325_v38  ;;  %13251 = vst [vmem:[#allocation154_spill] sm:$0xff] %v10327_v14 }
 0x555   :  { %4481 = vrot.lane.b32.xlu0 %v4247_v7, %s6924_s12  ;;  %4935 = vrot.lane.b32.xlu1 %v4928_v25, %s6927_s0  ;;  %v1240_v7 = vmul.f32 %v10037_v42, %v7651_v9  ;;  %v13256_v25 = vrot.slane %v10236_v5, 6 }
 0x557   :  { %v10347_v57 = vpop.permute.xlu0 %1808  ;;  %v10349_v38 = vpop.permute.xlu1 %3025  ;;  %v1591_v49 = vadd.f32 %v13257_v36, %v1240_v7  ;;  %v13261_v7 = vld [vmem:[#allocation41_spill] sm:$0xff] }
 0x558   :  { %13253 = vst [vmem:[#allocation112_spill] sm:$0xff] %v10347_v57  ;;  %13254 = vst [vmem:[#allocation155_spill] sm:$0xff] %v10349_v38  ;;  %v12794_v57 = vrot.slane %v10345_v41, 1  ;;  %v13262_v36 = vld [vmem:[#allocation69_spill] sm:$0xff] }
 0x559   :  { %4527 = vrot.lane.b32.xlu0 %v13256_v25, %s6925_s14  ;;  %1672 = vrot.lane.b32.xlu1 %v1665_v60, %s6925_s14  ;;  %v1867_v5 = vadd.f32 %v13260_v32, %v1591_v49  ;;  %v10375_v25 = vadd.f32 %v13261_v7, %v2342_v17  ;;  %v4237_v32 = vmul.f32 %v10382_v31, %v13055_v52 }
 0x55a   :  { %v10391_v49 = vmul.f32 %v10382_v31, %v13043_v47 }
 0x55b   :  { %v10361_v14 = vpop.permute.xlu0 %1963  ;;  %v10363_v38 = vpop.permute.xlu1 %3101  ;;  %v4458_v7 = vrot.slane %v4237_v32, 1 }
 0x55c   :  { %13258 = vst [vmem:[#allocation113_spill] sm:$0xff] %v10361_v14  ;;  %13259 = vst [vmem:[#allocation19_spill] sm:$0xff] %v10363_v38  ;;  %v2024_v14 = vadd.f32 %v13262_v36, %v1867_v5  ;;  %v12796_v36 = vrot.slane %v10391_v49, 1 }
 0x55d   :  { %4613 = vrot.lane.b32.xlu0 %v4319_v48, %s6924_s12  ;;  %1912 = vrot.lane.b32.xlu1 %v12794_v57, %s6927_s0  ;;  %v12795_v48 = vrot.slane %v10375_v25, 1 }
 0x55e   :  { %v4460_v29 = vsel %vm177_vm0, %v4458_v7, %v12796_v36  ;;  %v1239_v7 = vmul.f32 %v10037_v42, %v7693_v59 }
 0x55f   :  { %v10378_v38 = vpop.permute.xlu0 %1989  ;;  %v10380_v19 = vpop.permute.xlu1 %1339 }
 0x560   :  { %13263 = vst [vmem:[#allocation115_spill] sm:$0xff] %v10378_v38  ;;  %13264 = vst [vmem:[#allocation41_spill] sm:$0xff] %v10380_v19  ;;  %v13271_v19 = vld [vmem:[#allocation59_spill] sm:$0xff]  ;;  %v1590_v42 = vadd.f32 %v13281_v30, %v1239_v7 }
 0x561   :  { %4861 = vrot.lane.b32.xlu0 %v4856_v63, %s6927_s0  ;;  %2059 = vrot.lane.b32.xlu1 %v2024_v14, %s6927_s0  ;;  %v3214_v63 = vmul.f32 %v10157_v53, %v8145_v2  ;;  %v1301_v14 = vmul.f32 %v10323_v12, %v7599_v27  ;;  %v10424_v20 = vadd.f32 %v13271_v19, %v3237_v40  ;;  %v10465_v40 = vstv %s10406_s26  ;;  %s11281_s26 = sld [smem:[#allocation9 + $0x44]] }
 0x562   :  { %v3300_v7 = vmul.f32 %v10465_v40, %v7629_v24 }
 0x563   :  { %v10394_v17 = vpop.permute.xlu0 %2387  ;;  %v10396_v5 = vpop.permute.xlu1 %3445  ;;  %v10414_v32 = vadd.f32 %v13267_v33, %v3214_v63  ;;  %v13272_v63 = vrot.slane %v10306_v26, 6  ;;  %v13273_v33 = vld [vmem:[#allocation46_spill] sm:$0xff]  ;;  %v3286_v26 = vmul.f32 %v10188_v45, %v7651_v9  ;;  %v13287_v30 = vrot.slane %v10424_v20, 6 }
 0x564   :  { %13265 = vst [vmem:[#allocation69_spill] sm:$0xff] %v10394_v17  ;;  %13266 = vst [vmem:[#allocation156_spill] sm:$0xff] %v10396_v5  ;;  %v1664_v17 = vrot.slane %v1293_v35, 1 }
 0x565   :  { %4887 = vrot.lane.b32.xlu0 %v4880_v11, %s6927_s0  ;;  %2949 = vrot.lane.b32.xlu1 %v12795_v48, %s6927_s0  ;;  %v3238_v11 = vmul.f32 %v10165_v55, %v7755_v10  ;;  %v13270_v48 = vld [vmem:[#allocation118_spill] sm:$0xff]  ;;  %v10433_v55 = vstv %s6510_s25  ;;  %s6537_s25 = sld [smem:[#allocation9 + $0x6e]] }
 0x566   :  { %v1704_v5 = vadd.f32 %v13270_v48, %v1301_v14  ;;  %v3285_v48 = vmul.f32 %v10188_v45, %v7693_v59  ;;  %v3251_v19 = vmul.f32 %v10433_v55, %v7834_v13  ;;  %v3252_v36 = vmul.f32 %v10433_v55, %v7731_v16 }
 0x567   :  { %v10418_v57 = vpop.permute.xlu0 %2717  ;;  %v10420_v38 = vpop.permute.xlu1 %3491  ;;  %v2341_v45 = vmul.f32 %v10068_v54, %v13206_v4  ;;  %v3299_v54 = vmul.f32 %v10465_v40, %v7676_v62 }
 0x568   :  { %13268 = vst [vmem:[#allocation49_spill] sm:$0xff] %v10418_v57  ;;  %13269 = vst [vmem:[#allocation157_spill] sm:$0xff] %v10420_v38  ;;  %v3520_v38 = vadd.f32 %v13273_v33, %v3238_v11  ;;  %v1903_v14 = vrot.slane %v1704_v5, 1  ;;  %v13276_v11 = vld [vmem:[#allocation61_spill] sm:$0xff]  ;;  %v1666_v33 = vsel %vm177_vm0, %v1664_v17, %v1665_v60  ;;  %v13277_v5 = vrot.slane %v10414_v32, 1  ;;  %v13280_v57 = vld [vmem:[#allocation40_spill] sm:$0xff] }
 0x569   :  { %4933 = vrot.lane.b32.xlu0 %v13272_v63, %s6927_s0  ;;  %4465 = vrot.lane.b32.xlu1 %v4460_v29, %s6925_s14  ;;  %v10451_v63 = vadd.f32 %v13276_v11, %v3285_v48  ;;  %v13278_v48 = vld [vmem:[#allocation107_spill] sm:$0xff]  ;;  %v13279_v17 = vld [vmem:[#allocation57_spill] sm:$0xff] }
 0x56a   :  { %v3541_v11 = vadd.f32 %v13278_v48, %v3251_v19  ;;  %v3838_v60 = vrot.slane %v3520_v38, 6  ;;  %v13285_v19 = vld [vmem:[#allocation122_spill] sm:$0xff] }
 0x56b   :  { %v10445_v35 = vpop.permute.xlu0 %3001  ;;  %v10447_v29 = vpop.permute.xlu1 %3577 }
 0x56c   :  { %13274 = vst [vmem:[#allocation118_spill] sm:$0xff] %v10445_v35  ;;  %13275 = vst [vmem:[#allocation59_spill] sm:$0xff] %v10447_v29  ;;  %v3606_v29 = vadd.f32 %v13279_v17, %v3286_v26  ;;  %v3542_v35 = vadd.f32 %v13280_v57, %v3252_v36  ;;  %v10480_v38 = vadd.f32 %v13285_v19, %v3541_v11  ;;  %v13286_v26 = vrot.slane %v10345_v41, 1  ;;  %v13289_v17 = vld [vmem:[#allocation111_spill] sm:$0xff] }
 0x56d   :  { %1670 = vrot.lane.b32.xlu0 %v1666_v33, %s6925_s14  ;;  %3819 = vrot.lane.b32.xlu1 %v13277_v5, %s6927_s0  ;;  %v13282_v33 = vld [vmem:[#allocation81_spill] sm:$0xff]  ;;  %v3839_v36 = vsel %vm1399_vm2, %v13287_v30, %v3838_v60  ;;  %v3633_v11 = vadd.f32 %v13289_v17, %v3299_v54  ;;  %v13290_v19 = vld [vmem:[#allocation83_spill] sm:$0xff]  ;;  %v13294_v54 = vld [vmem:[#allocation124_spill] sm:$0xff] }
 0x56e   :  { %v2743_v34 = vadd.f32 %v13282_v33, %v2341_v45  ;;  %v1905_v57 = vsel %vm177_vm0, %v1903_v14, %v13286_v26  ;;  %v13288_v45 = vld [vmem:[#allocation51_spill] sm:$0xff]  ;;  %v3884_v33 = vrot.slane %v3606_v29, 6  ;;  %v3878_v41 = vadd.f32 %v13290_v19, %v3542_v35  ;;  %v13291_v14 = vld [vmem:[#allocation26_spill] sm:$0xff]  ;;  %v13297_v19 = vld [vmem:[#allocation53_spill] sm:$0xff] }
 0x56f   :  { %v10474_v51 = vpop.permute.xlu0 %3027  ;;  %v10476_v5 = vpop.permute.xlu1 %4485  ;;  %v1866_v48 = vadd.f32 %v13288_v45, %v1590_v42  ;;  %v3634_v26 = vadd.f32 %v13291_v14, %v3300_v7  ;;  %v3197_v42 = vmul.f32 %v10496_v43, %v13055_v52  ;;  %v10508_v29 = vadd.f32 %v13294_v54, %v3633_v11 }
 0x570   :  { %13283 = vst [vmem:[#allocation46_spill] sm:$0xff] %v10474_v51  ;;  %13284 = vst [vmem:[#allocation61_spill] sm:$0xff] %v10476_v5  ;;  %v13292_v51 = vld [vmem:[#allocation136_spill] sm:$0xff]  ;;  %v13295_v35 = vrot.slane %v10451_v63, 6  ;;  %v4037_v7 = vrot.slane %v3878_v41, 7  ;;  %v10522_v11 = vmul.f32 %v10496_v43, %v13043_v47 }
 0x571   :  { %1910 = vrot.lane.b32.xlu0 %v1905_v57, %s6927_s0  ;;  %3845 = vrot.lane.b32.xlu1 %v3839_v36, %s6927_s0  ;;  %v2023_v60 = vadd.f32 %v13292_v51, %v1866_v48  ;;  %v2941_v57 = vrot.slane %v2743_v34, 1  ;;  %v12799_v36 = vrot.slane %v10480_v38, 7  ;;  %v3213_v51 = vmul.f32 %v10157_v53, %v8233_v21  ;;  %v13296_v48 = vld [vmem:[#allocation78_spill] sm:$0xff] }
 0x572   :  { %v3885_v45 = vsel %vm1399_vm2, %v13295_v35, %v3884_v33  ;;  %v3930_v17 = vadd.f32 %v13296_v48, %v3634_v26  ;;  %v4253_v34 = vmul.f32 %v10262_v8, %v8233_v21  ;;  %v4254_v33 = vmul.f32 %v10262_v8, %v8145_v2  ;;  %v13299_v26 = vld [vmem:[#allocation126_spill] sm:$0xff] }
 0x573   :  { %v10500_v30 = vpop.permute.xlu0 %3103  ;;  %v10502_v5 = vpop.permute.xlu1 %4531  ;;  %v3473_v14 = vadd.f32 %v13297_v19, %v3213_v51  ;;  %v3418_v54 = vrot.slane %v3197_v42, 1  ;;  %v4062_v41 = vrot.slane %v10508_v29, 6  ;;  %v4038_v51 = vsel %vm1952_vm3, %v12799_v36, %v4037_v7  ;;  %v13301_v19 = vld [vmem:[#allocation48_spill] sm:$0xff]  ;;  %v13313_v36 = vld [vmem:[#allocation58_spill] sm:$0xff] }
 0x574   :  { %13293 = vst [vmem:[#allocation107_spill] sm:$0xff] %v10502_v5  ;;  %v4513_v35 = vadd.f32 %v13299_v26, %v4253_v34  ;;  %v4063_v8 = vrot.slane %v3930_v17, 6  ;;  %v10542_v42 = vadd.f32 %v13301_v19, %v4254_v33  ;;  %v12797_v29 = vrot.slane %v10522_v11, 1 }
 0x575   :  { %2057 = vrot.lane.b32.xlu0 %v2023_v60, %s6927_s0  ;;  %3891 = vrot.lane.b32.xlu1 %v3885_v45, %s6927_s0  ;;  %v13300_v45 = vrot.slane %v10375_v25, 1  ;;  %v4277_v17 = vmul.f32 %v10269_v56, %v7851_v3 }
 0x576   :  { %v4851_v26 = vrot.slane %v4513_v35, 1  ;;  %v3420_v7 = vsel %vm177_vm0, %v3418_v54, %v12797_v29  ;;  %v12798_v33 = vrot.slane %v10542_v42, 1  ;;  %v13307_v54 = vrot.slane %v10414_v32, 1  ;;  %v13311_v29 = vld [vmem:[#allocation116_spill] sm:$0xff] }
 0x577   :  { %v10527_v53 = vpop.permute.xlu0 %1341  ;;  %v10529_v60 = vpop.permute.xlu1 %4617  ;;  %v2943_v48 = vsel %vm177_vm0, %v2941_v57, %v13300_v45  ;;  %v3811_v57 = vrot.slane %v3473_v14, 1  ;;  %v4064_v45 = vsel %vm1399_vm2, %v4062_v41, %v4063_v8 }
 0x578   :  { %13298 = vst [vmem:[#allocation57_spill] sm:$0xff] %v10529_v60  ;;  %v4853_v19 = vsel %vm177_vm0, %v4851_v26, %v12798_v33 }
 0x579   :  { %2947 = vrot.lane.b32.xlu0 %v2943_v48, %s6927_s0  ;;  %4045 = vrot.lane.b32.xlu1 %v4038_v51, %s6925_s14  ;;  %v13304_v48 = vld [vmem:[#allocation127_spill] sm:$0xff]  ;;  %v3813_v8 = vsel %vm177_vm0, %v3811_v57, %v13307_v54 }
 0x57a   :  { %v10559_v51 = vadd.f32 %v13304_v48, %v4277_v17  ;;  %v13308_v48 = vld [vmem:[#allocation130_spill] sm:$0xff] }
 0x57b   :  { %v10545_v34 = vpop.permute.xlu0 %3447  ;;  %v10547_v25 = vpop.permute.xlu1 %1674 }
 0x57c   :  { %13302 = vst [vmem:[#allocation40_spill] sm:$0xff] %v10545_v34  ;;  %13303 = vst [vmem:[#allocation103_spill] sm:$0xff] %v10547_v25  ;;  %v12800_v32 = vrot.slane %v10559_v51, 6 }
 0x57d   :  { %3425 = vrot.lane.b32.xlu0 %v3420_v7, %s6925_s14  ;;  %4071 = vrot.lane.b32.xlu1 %v4064_v45, %s6924_s12  ;;  %v4325_v7 = vmul.f32 %v10290_v50, %v7693_v59  ;;  %v10575_v45 = vstv %s6547_s1  ;;  %s6539_s1 = sld [smem:[#allocation9 + $0x70]] }
 0x57e   :  { %v4291_v17 = vmul.f32 %v10575_v45, %v7834_v13 }
 0x57f   :  { %v10561_v14 = vpop.permute.xlu0 %3493  ;;  %v10563_v35 = vpop.permute.xlu1 %1959  ;;  %v10581_v57 = vadd.f32 %v13308_v48, %v4325_v7 }
 0x580   :  { %13305 = vst [vmem:[#allocation81_spill] sm:$0xff] %v10561_v14  ;;  %13306 = vst [vmem:[#allocation122_spill] sm:$0xff] %v10563_v35  ;;  %v4581_v33 = vadd.f32 %v13311_v29, %v4291_v17 }
 0x581   :  { %3817 = vrot.lane.b32.xlu0 %v3813_v8, %s6927_s0  ;;  %4857 = vrot.lane.b32.xlu1 %v4853_v19, %s6927_s0  ;;  %v13312_v8 = vrot.slane %v10424_v20, 6  ;;  %v10594_v19 = vstv %s6555_s3  ;;  %v12801_v48 = vrot.slane %v10581_v57, 6  ;;  %v13316_v20 = vld [vmem:[#allocation55_spill] sm:$0xff]  ;;  %s11432_s3 = sld [smem:[#allocation9 + $0x20]] }
 0x582   :  { %v4339_v7 = vmul.f32 %v10594_v19, %v7676_v62  ;;  %v10600_v5 = vadd.f32 %v13313_v36, %v4581_v33  ;;  %v13318_v33 = vld [vmem:[#allocation132_spill] sm:$0xff] }
 0x583   :  { %v10583_v54 = vpop.permute.xlu0 %3579  ;;  %v10585_v26 = vpop.permute.xlu1 %1985 }
 0x584   :  { %13309 = vst [vmem:[#allocation51_spill] sm:$0xff] %v10583_v54  ;;  %13310 = vst [vmem:[#allocation111_spill] sm:$0xff] %v10585_v26  ;;  %v4673_v17 = vadd.f32 %v13316_v20, %v4339_v7  ;;  %v12803_v36 = vrot.slane %v10600_v5, 7  ;;  %v13321_v7 = vld [vmem:[#allocation134_spill] sm:$0xff] }
 0x585   :  { %3843 = vrot.lane.b32.xlu0 %v13312_v8, %s6927_s0  ;;  %4883 = vrot.lane.b32.xlu1 %v12800_v32, %s6927_s0  ;;  %v13317_v8 = vrot.slane %v10451_v63, 6  ;;  %v1299_v32 = vmul.f32 %v10323_v12, %v13206_v4  ;;  %v1300_v63 = vmul.f32 %v10323_v12, %v12945_v23 }
 0x586   :  { %v10617_v54 = vadd.f32 %v13318_v33, %v4673_v17 }
 0x587   :  { %v10602_v14 = vpop.permute.xlu0 %4487  ;;  %v10604_v29 = vpop.permute.xlu1 %2061  ;;  %v1702_v20 = vadd.f32 %v13321_v7, %v1299_v32  ;;  %v3195_v32 = vmul.f32 %v10496_v43, %v8233_v21 }
 0x588   :  { %13314 = vst [vmem:[#allocation83_spill] sm:$0xff] %v10602_v14  ;;  %13315 = vst [vmem:[#allocation26_spill] sm:$0xff] %v10604_v29  ;;  %v12802_v33 = vrot.slane %v10617_v54, 6  ;;  %v3297_v29 = vmul.f32 %v10465_v40, %v7693_v59 }
 0x589   :  { %3889 = vrot.lane.b32.xlu0 %v13317_v8, %s6927_s0  ;;  %4929 = vrot.lane.b32.xlu1 %v12801_v48, %s6927_s0  ;;  %v13322_v8 = vrot.slane %v10480_v38, 7  ;;  %v13323_v48 = vld [vmem:[#allocation128_spill] sm:$0xff]  ;;  %v1900_v12 = vrot.slane %v1702_v20, 1  ;;  %v4235_v20 = vmul.f32 %v10382_v31, %v8233_v21 }
 0x58a   :  { %v10633_v17 = vadd.f32 %v13323_v48, %v1300_v63  ;;  %v10649_v48 = vmul.f32 %v10496_v43, %v8145_v2  ;;  %v10668_v43 = vmul.f32 %v10382_v31, %v8145_v2 }
 0x58b   :  { %v10619_v60 = vpop.permute.xlu0 %4533  ;;  %v10621_v25 = vpop.permute.xlu1 %2383 }
 0x58c   :  { %13319 = vst [vmem:[#allocation136_spill] sm:$0xff] %v10619_v60  ;;  %13320 = vst [vmem:[#allocation124_spill] sm:$0xff] %v10621_v25  ;;  %v12805_v38 = vrot.slane %v10633_v17, 1  ;;  %v13347_v25 = vld [vmem:[#allocation70_spill] sm:$0xff] }
 0x58d   :  { %4043 = vrot.lane.b32.xlu0 %v13322_v8, %s6925_s14  ;;  %5083 = vrot.lane.b32.xlu1 %v12803_v36, %s6925_s14  ;;  %v13328_v36 = vrot.slane %v10391_v49, 1  ;;  %v4326_v49 = vmul.f32 %v10290_v50, %v7651_v9  ;;  %v3250_v50 = vmul.f32 %v10433_v55, %v7755_v10 }
 0x58e   :  { %v1902_v8 = vsel %vm177_vm0, %v1900_v12, %v12805_v38  ;;  %v4455_v12 = vrot.slane %v4235_v20, 1  ;;  %v13332_v20 = vrot.slane %v10542_v42, 1  ;;  %v13334_v38 = vld [vmem:[#allocation121_spill] sm:$0xff] }
 0x58f   :  { %v10636_v60 = vpop.permute.xlu0 %4619  ;;  %v10638_v26 = vpop.permute.xlu1 %2713 }
 0x590   :  { %13324 = vst [vmem:[#allocation78_spill] sm:$0xff] %v10636_v60  ;;  %13325 = vst [vmem:[#allocation53_spill] sm:$0xff] %v10638_v26  ;;  %v13329_v60 = vld [vmem:[#allocation34_spill] sm:$0xff] }
 0x591   :  { %4069 = vrot.lane.b32.xlu0 %v4062_v41, %s6924_s12  ;;  %5109 = vrot.lane.b32.xlu1 %v12802_v33, %s6924_s12  ;;  %v4278_v41 = vmul.f32 %v10269_v56, %v7755_v10  ;;  %v3415_v33 = vrot.slane %v3195_v32, 1  ;;  %v3249_v32 = vmul.f32 %v10433_v55, %v7851_v3  ;;  %v13337_v55 = vld [vmem:[#allocation108_spill] sm:$0xff] }
 0x593   :  { %v10651_v63 = vpop.permute.xlu0 %1676  ;;  %v10653_v7 = vpop.permute.xlu1 %2953  ;;  %v4560_v26 = vadd.f32 %v13329_v60, %v4278_v41  ;;  %v4292_v60 = vmul.f32 %v10575_v45, %v7731_v16  ;;  %v12806_v41 = vrot.slane %v10668_v43, 1 }
 0x594   :  { %13326 = vst [vmem:[#allocation126_spill] sm:$0xff] %v10651_v63  ;;  %13327 = vst [vmem:[#allocation48_spill] sm:$0xff] %v10653_v7  ;;  %v12804_v63 = vrot.slane %v10649_v48, 1 }
 0x595   :  { %4467 = vrot.lane.b32.xlu0 %v13328_v36, %s6925_s14  ;;  %1906 = vrot.lane.b32.xlu1 %v1902_v8, %s6927_s0  ;;  %v10683_v36 = vstv %s6531_s28  ;;  %v13333_v8 = vld [vmem:[#allocation85_spill] sm:$0xff]  ;;  %v4457_v42 = vsel %vm177_vm0, %v4455_v12, %v12806_v41  ;;  %v3298_v12 = vmul.f32 %v10465_v40, %v7651_v9  ;;  %v13344_v41 = vld [vmem:[#allocation23_spill] sm:$0xff]  ;;  %s11567_s28 = sld [smem:[#allocation9 + $0x50]] }
 0x596   :  { %v3417_v31 = vsel %vm177_vm0, %v3415_v33, %v12804_v63  ;;  %v3539_v33 = vadd.f32 %v13333_v8, %v3249_v32  ;;  %v4878_v63 = vrot.slane %v4560_v26, 6  ;;  %v4582_v32 = vadd.f32 %v13337_v55, %v4292_v60  ;;  %v13338_v26 = vld [vmem:[#allocation76_spill] sm:$0xff] }
 0x597   :  { %v10672_v56 = vpop.permute.xlu0 %1961  ;;  %v10674_v14 = vpop.permute.xlu1 %3099  ;;  %v13340_v8 = vrot.slane %v10559_v51, 6  ;;  %v13341_v60 = vld [vmem:[#allocation120_spill] sm:$0xff] }
 0x598   :  { %13330 = vst [vmem:[#allocation127_spill] sm:$0xff] %v10672_v56  ;;  %13331 = vst [vmem:[#allocation130_spill] sm:$0xff] %v10674_v14  ;;  %v4646_v14 = vadd.f32 %v13334_v38, %v4326_v49  ;;  %v13339_v38 = vld [vmem:[#allocation137_spill] sm:$0xff]  ;;  %v13346_v56 = vld [vmem:[#allocation50_spill] sm:$0xff] }
 0x599   :  { %4859 = vrot.lane.b32.xlu0 %v13332_v20, %s6927_s0  ;;  %3421 = vrot.lane.b32.xlu1 %v3417_v31, %s6925_s14  ;;  %v10709_v31 = vmul.f32 %v10683_v36, %v7555_v22  ;;  %v3540_v20 = vadd.f32 %v13338_v26, %v3250_v50  ;;  %v10714_v49 = vadd.f32 %v13339_v38, %v3539_v33  ;;  %v13342_v33 = vld [vmem:[#allocation125_spill] sm:$0xff]  ;;  %v13343_v38 = vld [vmem:[#allocation131_spill] sm:$0xff] }
 0x59a   :  { %v3631_v50 = vadd.f32 %v13341_v60, %v3297_v29  ;;  %v4924_v55 = vrot.slane %v4646_v14, 6  ;;  %v4918_v26 = vadd.f32 %v13342_v33, %v4582_v32  ;;  %v13348_v14 = vrot.slane %v10581_v57, 6 }
 0x59b   :  { %v10700_v34 = vpop.permute.xlu0 %1987  ;;  %v10702_v35 = vpop.permute.xlu1 %3443  ;;  %v3876_v51 = vadd.f32 %v13343_v38, %v3540_v20  ;;  %v3749_v40 = vrot.slane %v10709_v31, 1  ;;  %v10743_v20 = vstv %s10687_s29  ;;  %s11576_s29 = sld [smem:[#allocation9 + $0x74]] }
 0x59c   :  { %13335 = vst [vmem:[#allocation116_spill] sm:$0xff] %v10700_v34  ;;  %13336 = vst [vmem:[#allocation58_spill] sm:$0xff] %v10702_v35  ;;  %v4879_v34 = vsel %vm1399_vm2, %v13340_v8, %v4878_v63  ;;  %v4340_v35 = vmul.f32 %v10594_v19, %v7629_v24  ;;  %v10737_v29 = vadd.f32 %v13347_v25, %v3631_v50  ;;  %v13353_v50 = vrot.slane %v10600_v5, 7 }
 0x59d   :  { %4885 = vrot.lane.b32.xlu0 %v4879_v34, %s6927_s0  ;;  %4461 = vrot.lane.b32.xlu1 %v4457_v42, %s6925_s14  ;;  %v3632_v34 = vadd.f32 %v13346_v56, %v3298_v12  ;;  %v12807_v42 = vrot.slane %v10714_v49, 7  ;;  %v4925_v32 = vsel %vm1399_vm2, %v13348_v14, %v4924_v55  ;;  %v4034_v60 = vrot.slane %v3876_v51, 7  ;;  %v13350_v56 = vld [vmem:[#allocation133_spill] sm:$0xff] }
 0x59e   :  { %v4674_v63 = vadd.f32 %v13344_v41, %v4340_v35  ;;  %v5077_v35 = vrot.slane %v4918_v26, 7  ;;  %v13349_v41 = vld [vmem:[#allocation25_spill] sm:$0xff]  ;;  %v4059_v57 = vrot.slane %v10737_v29, 6  ;;  %v3324_v26 = vmul.f32 %v10743_v20, %v7629_v24 }
 0x59f   :  { %v10729_v8 = vpop.permute.xlu0 %2063  ;;  %v10731_v7 = vpop.permute.xlu1 %3489  ;;  %v3928_v12 = vadd.f32 %v13350_v56, %v3632_v34  ;;  %v4035_v38 = vsel %vm1952_vm3, %v12807_v42, %v4034_v60  ;;  %v13354_v34 = vld [vmem:[#allocation52_spill] sm:$0xff] }
 0x5a0   :  { %13345 = vst [vmem:[#allocation55_spill] sm:$0xff] %v10731_v7  ;;  %v4970_v31 = vadd.f32 %v13349_v41, %v4674_v63  ;;  %v5078_v55 = vsel %vm1952_vm3, %v13353_v50, %v5077_v35  ;;  %v3674_v14 = vadd.f32 %v13354_v34, %v3324_v26  ;;  %v13355_v35 = vrot.slane %v10617_v54, 6  ;;  %v13356_v50 = vld [vmem:[#allocation74_spill] sm:$0xff] }
 0x5a1   :  { %4931 = vrot.lane.b32.xlu0 %v4925_v32, %s6927_s0  ;;  %3757 = vrot.lane.b32.xlu1 %v3749_v40, %s6925_s14  ;;  %v4060_v63 = vrot.slane %v3928_v12, 6  ;;  %v10769_v32 = vstv %s6568_s30  ;;  %v4289_v54 = vmul.f32 %v10575_v45, %v7851_v3  ;;  %v3377_v34 = vmul.f32 %v10683_v36, %v7599_v27  ;;  %s11581_s30 = sld [smem:[#allocation9 + $0x58]] }
 0x5a2   :  { %v5103_v51 = vrot.slane %v4970_v31, 6  ;;  %v4417_v56 = vmul.f32 %v10769_v32, %v7599_v27  ;;  %v3950_v31 = vadd.f32 %v13356_v50, %v3674_v14  ;;  %v10782_v12 = vmul.f32 %v10769_v32, %v7555_v22  ;;  %v13359_v14 = vld [vmem:[#allocation129_spill] sm:$0xff] }
 0x5a3   :  { %v10749_v33 = vpop.permute.xlu0 %2711  ;;  %v10751_v25 = vpop.permute.xlu1 %3575  ;;  %v4061_v60 = vsel %vm1399_vm2, %v4059_v57, %v4060_v63  ;;  %v4337_v50 = vmul.f32 %v10594_v19, %v7693_v59 }
 0x5a4   :  { %13351 = vst [vmem:[#allocation132_spill] sm:$0xff] %v10749_v33  ;;  %13352 = vst [vmem:[#allocation134_spill] sm:$0xff] %v10751_v25  ;;  %v5104_v41 = vsel %vm1399_vm2, %v13355_v35, %v5103_v51  ;;  %v4788_v63 = vrot.slane %v4417_v56, 1  ;;  %v4579_v35 = vadd.f32 %v13359_v14, %v4289_v54  ;;  %v3748_v14 = vrot.slane %v3377_v34, 1  ;;  %v13364_v25 = vld [vmem:[#allocation54_spill] sm:$0xff] }
 0x5a5   :  { %5085 = vrot.lane.b32.xlu0 %v5078_v55, %s6925_s14  ;;  %4041 = vrot.lane.b32.xlu1 %v4035_v38, %s6925_s14  ;;  %v13357_v55 = vld [vmem:[#allocation68_spill] sm:$0xff] }
 0x5a6   :  { %v4106_v38 = vadd.f32 %v13357_v55, %v3950_v31  ;;  %v13361_v31 = vld [vmem:[#allocation138_spill] sm:$0xff] }
 0x5a7   :  { %v10765_v29 = vpop.permute.xlu0 %2951  ;;  %v10767_v5 = vpop.permute.xlu1 %3823  ;;  %v10802_v55 = vadd.f32 %v13361_v31, %v4579_v35 }
 0x5a9   :  { %5111 = vrot.lane.b32.xlu0 %v5104_v41, %s6924_s12  ;;  %4067 = vrot.lane.b32.xlu1 %v4061_v60, %s6924_s12  ;;  %v13360_v41 = vrot.slane %v10633_v17, 1  ;;  %v4789_v60 = vrot.slane %v10782_v12, 1  ;;  %v4671_v17 = vadd.f32 %v13364_v25, %v4337_v50  ;;  %v5073_v12 = vrot.slane %v10802_v55, 7 }
 0x5ab   :  { %v10787_v26 = vpop.permute.xlu0 %3097  ;;  %v10789_v51 = vpop.permute.xlu1 %3849  ;;  %v4790_v54 = vsel %vm177_vm0, %v4788_v63, %v4789_v60  ;;  %v3750_v63 = vsel %vm177_vm0, %v3748_v14, %v3749_v40  ;;  %v13371_v40 = vld [vmem:[#allocation144_spill] sm:$0xff] }
 0x5ac   :  { %13358 = vst [vmem:[#allocation128_spill] sm:$0xff] %v10789_v51 }
 0x5ad   :  { %1908 = vrot.lane.b32.xlu0 %v13360_v41, %s6927_s0  ;;  %4143 = vrot.lane.b32.xlu1 %v4106_v38, %s6927_s0  ;;  %v13365_v38 = vrot.slane %v10522_v11, 1  ;;  %v13366_v41 = vld [vmem:[#allocation139_spill] sm:$0xff]  ;;  %v13368_v11 = vld [vmem:[#allocation62_spill] sm:$0xff] }
 0x5ae   :  { %v10816_v35 = vadd.f32 %v13366_v41, %v4671_v17  ;;  %v3323_v17 = vmul.f32 %v10743_v20, %v7676_v62  ;;  %v13373_v41 = vld [vmem:[#allocation135_spill] sm:$0xff] }
 0x5af   :  { %v10804_v56 = vpop.permute.xlu0 %3441  ;;  %v10806_v42 = vpop.permute.xlu1 %3895 }
 0x5b0   :  { %13362 = vst [vmem:[#allocation34_spill] sm:$0xff] %v10804_v56  ;;  %13363 = vst [vmem:[#allocation85_spill] sm:$0xff] %v10806_v42  ;;  %v10822_v42 = vstv %s6559_s10  ;;  %v5099_v50 = vrot.slane %v10816_v35, 6  ;;  %s11598_s10 = sld [smem:[#allocation9 + $0x7c]] }
 0x5b1   :  { %3427 = vrot.lane.b32.xlu0 %v13365_v38, %s6925_s14  ;;  %4795 = vrot.lane.b32.xlu1 %v4790_v54, %s6925_s14  ;;  %v4363_v25 = vmul.f32 %v10822_v42, %v7676_v62  ;;  %v13372_v38 = vrot.slane %v10714_v49, 7  ;;  %v10851_v62 = vstv %s6532_s4  ;;  %s11731_s4 = sld [smem:[#allocation9 + $0x68]] }
 0x5b3   :  { %v10818_v31 = vpop.permute.xlu0 %3487  ;;  %v10820_v51 = vpop.permute.xlu1 %4483  ;;  %v4713_v34 = vadd.f32 %v13368_v11, %v4363_v25 }
 0x5b4   :  { %13367 = vst [vmem:[#allocation121_spill] sm:$0xff] %v10818_v31 }
 0x5b5   :  { %3755 = vrot.lane.b32.xlu0 %v3750_v63, %s6925_s14  ;;  %5079 = vrot.lane.b32.xlu1 %v5073_v12, %s6925_s14  ;;  %v4989_v14 = vadd.f32 %v13371_v40, %v4713_v34  ;;  %v3673_v63 = vadd.f32 %v13373_v41, %v3323_v17  ;;  %v3384_v17 = vmul.f32 %v10851_v62, %v7555_v22 }
 0x5b7   :  { %v10831_v55 = vpop.permute.xlu0 %3573  ;;  %v10833_v54 = vpop.permute.xlu1 %4529  ;;  %v5145_v25 = vadd.f32 %v9830_v58, %v4989_v14  ;;  %v10860_v58 = vmul.f32 %v10683_v36, %v12945_v23 }
 0x5b8   :  { %13369 = vst [vmem:[#allocation108_spill] sm:$0xff] %v10831_v55  ;;  %13370 = vst [vmem:[#allocation76_spill] sm:$0xff] %v10833_v54  ;;  %v13375_v54 = vld [vmem:[#allocation64_spill] sm:$0xff] }
 0x5b9   :  { %4039 = vrot.lane.b32.xlu0 %v13372_v38, %s6925_s14  ;;  %5105 = vrot.lane.b32.xlu1 %v5099_v50, %s6924_s12  ;;  %v3949_v55 = vadd.f32 %v13375_v54, %v3673_v63  ;;  %v3746_v41 = vrot.slane %v10860_v58, 1  ;;  %v13381_v63 = vld [vmem:[#allocation119_spill] sm:$0xff] }
 0x5bb   :  { %v10844_v35 = vpop.permute.xlu0 %3821  ;;  %v10846_v11 = vpop.permute.xlu1 %4615  ;;  %v4105_v49 = vadd.f32 %v9786_v46, %v3949_v55  ;;  %v4290_v46 = vmul.f32 %v10575_v45, %v7755_v10  ;;  %v13378_v55 = vld [vmem:[#allocation89_spill] sm:$0xff]  ;;  %v4338_v45 = vmul.f32 %v10594_v19, %v7651_v9  ;;  %v13388_v19 = vld [vmem:[#allocation71_spill] sm:$0xff] }
 0x5bc   :  { %13374 = vst [vmem:[#allocation137_spill] sm:$0xff] %v10846_v11  ;;  %v10871_v54 = vadd.f32 %v13378_v55, %v3384_v17  ;;  %v13383_v17 = vld [vmem:[#allocation63_spill] sm:$0xff]  ;;  %v13384_v55 = vld [vmem:[#allocation72_spill] sm:$0xff] }
 0x5bd   :  { %4065 = vrot.lane.b32.xlu0 %v4059_v57, %s6924_s12  ;;  %5181 = vrot.lane.b32.xlu1 %v5145_v25, %s6927_s0  ;;  %v13377_v57 = vrot.slane %v10649_v48, 1  ;;  %v4580_v25 = vadd.f32 %v13381_v63, %v4290_v46  ;;  %v13382_v48 = vrot.slane %v10668_v43, 1  ;;  %v13386_v63 = vld [vmem:[#allocation123_spill] sm:$0xff] }
 0x5be   :  { %v3985_v58 = vrot.slane %v10871_v54, 1 }
 0x5bf   :  { %v10854_v34 = vpop.permute.xlu0 %3847  ;;  %v10856_v40 = vpop.permute.xlu1 %4863 }
 0x5c0   :  { %13376 = vst [vmem:[#allocation120_spill] sm:$0xff] %v10854_v34  ;;  %v4672_v34 = vadd.f32 %v13386_v63, %v4338_v45  ;;  %v10908_v45 = vmul.f32 %v10769_v32, %v12945_v23 }
 0x5c1   :  { %4141 = vrot.lane.b32.xlu0 %v4105_v49, %s6927_s0  ;;  %3423 = vrot.lane.b32.xlu1 %v13377_v57, %s6925_s14  ;;  %v3322_v49 = vmul.f32 %v10743_v20, %v7651_v9  ;;  %v4916_v57 = vadd.f32 %v13383_v17, %v4580_v25  ;;  %v10899_v25 = vstv %s6569_s11  ;;  %s6567_s11 = sld [smem:[#allocation9 + $0x8c]] }
 0x5c2   :  { %v4968_v7 = vadd.f32 %v13388_v19, %v4672_v34  ;;  %v4424_v34 = vmul.f32 %v10899_v25, %v7555_v22 }
 0x5c3   :  { %v10873_v14 = vpop.permute.xlu0 %3893  ;;  %v10875_v38 = vpop.permute.xlu1 %4889  ;;  %v3672_v11 = vadd.f32 %v13384_v55, %v3322_v49  ;;  %v13392_v55 = vld [vmem:[#allocation67_spill] sm:$0xff] }
 0x5c4   :  { %13379 = vst [vmem:[#allocation125_spill] sm:$0xff] %v10873_v14  ;;  %13380 = vst [vmem:[#allocation131_spill] sm:$0xff] %v10875_v38  ;;  %v13387_v14 = vld [vmem:[#allocation24_spill] sm:$0xff]  ;;  %v10919_v63 = vadd.f32 %v13392_v55, %v4424_v34  ;;  %v13395_v34 = vld [vmem:[#allocation75_spill] sm:$0xff] }
 0x5c5   :  { %4463 = vrot.lane.b32.xlu0 %v13382_v48, %s6925_s14  ;;  %3753 = vrot.lane.b32.xlu1 %v3746_v41, %s6925_s14  ;;  %v3948_v43 = vadd.f32 %v13387_v14, %v3672_v11  ;;  %v5074_v48 = vrot.slane %v4916_v57, 7  ;;  %v13391_v14 = vld [vmem:[#allocation65_spill] sm:$0xff] }
 0x5c7   :  { %v10890_v38 = vpop.permute.xlu0 %4481  ;;  %v10892_v46 = vpop.permute.xlu1 %4935  ;;  %v4104_v49 = vadd.f32 %v9784_v44, %v3948_v43  ;;  %v5075_v11 = vsel %vm1952_vm3, %v5073_v12, %v5074_v48  ;;  %v5100_v44 = vrot.slane %v4968_v7, 6  ;;  %v4786_v12 = vrot.slane %v10908_v45, 1  ;;  %v13394_v7 = vld [vmem:[#allocation77_spill] sm:$0xff] }
 0x5c8   :  { %13385 = vst [vmem:[#allocation23_spill] sm:$0xff] %v10892_v46  ;;  %v3375_v48 = vmul.f32 %v10683_v36, %v13206_v4  ;;  %v5025_v45 = vrot.slane %v10919_v63, 1 }
 0x5c9   :  { %4797 = vrot.lane.b32.xlu0 %v4789_v60, %s6925_s14  ;;  %3993 = vrot.lane.b32.xlu1 %v3985_v58, %s6927_s0  ;;  %v4364_v60 = vmul.f32 %v10822_v42, %v7629_v24  ;;  %v5101_v24 = vsel %vm1399_vm2, %v5099_v50, %v5100_v44  ;;  %v13396_v50 = vld [vmem:[#allocation45_spill] sm:$0xff]  ;;  %vm5794_vm2 = vcmask 490496  }
 0x5cb   :  { %v10902_v54 = vpop.permute.xlu0 %4527  ;;  %v10904_v17 = vpop.permute.xlu1 %1672  ;;  %v4714_v57 = vadd.f32 %v13391_v14, %v4364_v60  ;;  %v3383_v60 = vmul.f32 %v10851_v62, %v7599_v27 }
 0x5cc   :  { %13389 = vst [vmem:[#allocation50_spill] sm:$0xff] %v10902_v54  ;;  %13390 = vst [vmem:[#allocation70_spill] sm:$0xff] %v10904_v17  ;;  %v3382_v54 = vmul.f32 %v10851_v62, %v12945_v23  ;;  %v13453_v17 = vld [vmem:[#allocation150_spill] sm:$0xff] }
 0x5cd   :  { %5081 = vrot.lane.b32.xlu0 %v5075_v11, %s6925_s14  ;;  %4139 = vrot.lane.b32.xlu1 %v4104_v49, %s6927_s0  ;;  %v4362_v49 = vmul.f32 %v10822_v42, %v7651_v9  ;;  %v4990_v11 = vadd.f32 %v13394_v7, %v4714_v57  ;;  %v13397_v9 = vld [vmem:[#allocation88_spill] sm:$0xff]  ;;  %v3745_v57 = vrot.slane %v3375_v48, 1  ;;  %v13398_v7 = vld [vmem:[#allocation143_spill] sm:$0xff] }
 0x5cf   :  { %v10921_v43 = vpop.permute.xlu0 %4613  ;;  %v10923_v19 = vpop.permute.xlu1 %1912  ;;  %v4712_v14 = vadd.f32 %v13395_v34, %v4362_v49  ;;  %v5146_v44 = vadd.f32 %v13396_v50, %v4990_v11  ;;  %v13399_v49 = vld [vmem:[#allocation79_spill] sm:$0xff]  ;;  %v3747_v48 = vsel %vm177_vm0, %v3745_v57, %v3746_v41  ;;  %v4415_v57 = vmul.f32 %v10769_v32, %v13206_v4  ;;  %v13406_v32 = vld [vmem:[#allocation36_spill] sm:$0xff] }
 0x5d0   :  { %13393 = vst [vmem:[#allocation25_spill] sm:$0xff] %v10921_v43  ;;  %v3785_v43 = vadd.f32 %v13397_v9, %v3383_v60  ;;  %v10950_v63 = vadd.f32 %v13399_v49, %v3382_v54  ;;  %v13402_v54 = vld [vmem:[#allocation140_spill] sm:$0xff] }
 0x5d1   :  { %5107 = vrot.lane.b32.xlu0 %v5101_v24, %s6924_s12  ;;  %4793 = vrot.lane.b32.xlu1 %v4786_v12, %s6925_s14  ;;  %v4988_v24 = vadd.f32 %v13398_v7, %v4712_v14  ;;  %v3321_v14 = vmul.f32 %v10743_v20, %v7693_v59 }
 0x5d2   :  { %v3984_v60 = vrot.slane %v3785_v43, 1  ;;  %v3982_v9 = vrot.slane %v10950_v63, 1 }
 0x5d3   :  { %v10939_v55 = vpop.permute.xlu0 %4861  ;;  %v10941_v36 = vpop.permute.xlu1 %2059  ;;  %v5144_v11 = vadd.f32 %v9806_v61, %v4988_v24  ;;  %v3671_v61 = vadd.f32 %v13402_v54, %v3321_v14  ;;  %v10994_v14 = vstv %s6426_s13  ;;  %s6461_s13 = sld [smem:[#allocation9 + $0x24]] }
 0x5d4   :  { %v3986_v20 = vsel %vm177_vm0, %v3984_v60, %v3985_v58 }
 0x5d5   :  { %5183 = vrot.lane.b32.xlu0 %v5146_v44, %s6927_s0  ;;  %5033 = vrot.lane.b32.xlu1 %v5025_v45, %s6927_s0  ;;  %v4422_v44 = vmul.f32 %v10899_v25, %v12945_v23  ;;  %v3947_v24 = vadd.f32 %v9764_v28, %v3671_v61 }
 0x5d7   :  { %v10953_v34 = vpop.permute.xlu0 %4887  ;;  %v10955_v50 = vpop.permute.xlu1 %2949  ;;  %v10967_v7 = vadd.f32 %v9762_v15, %v4422_v44  ;;  %v4423_v15 = vmul.f32 %v10899_v25, %v7599_v27 }
 0x5d8   :  { %13400 = vst [vmem:[#allocation133_spill] sm:$0xff] %v10953_v34  ;;  %13401 = vst [vmem:[#allocation52_spill] sm:$0xff] %v10955_v50  ;;  %v13449_v50 = vld [vmem:[#allocation38_spill] sm:$0xff] }
 0x5d9   :  { %3751 = vrot.lane.b32.xlu0 %v3747_v48, %s6925_s14  ;;  %5179 = vrot.lane.b32.xlu1 %v5144_v11, %s6927_s0  ;;  %v12808_v49 = vrot.slane %v10967_v7, 1  ;;  %v4103_v11 = vadd.f32 %v9875_v18, %v3947_v24  ;;  %v4825_v28 = vadd.f32 %v13406_v32, %v4423_v15  ;;  %v4785_v48 = vrot.slane %v4415_v57, 1 }
 0x5da   :  { %v1103_v18 = vmul.f32 %v10994_v14, %v13055_v52  ;;  %v4361_v57 = vmul.f32 %v10822_v42, %v7693_v59  ;;  %v3381_v24 = vmul.f32 %v10851_v62, %v13206_v4  ;;  %v11009_v15 = vstv %s6462_s15  ;;  %s1093_s15 = sld [smem:[#allocation9]] }
 0x5db   :  { %v10969_v43 = vpop.permute.xlu0 %4933  ;;  %v10971_v41 = vpop.permute.xlu1 %4465  ;;  %v5024_v61 = vrot.slane %v4825_v28, 1  ;;  %v4421_v62 = vmul.f32 %v10899_v25, %v13206_v4 }
 0x5dc   :  { %13403 = vst [vmem:[#allocation74_spill] sm:$0xff] %v10969_v43  ;;  %v3783_v59 = vadd.f32 %v9846_v39, %v3381_v24  ;;  %v2146_v39 = vmul.f32 %v11009_v15, %v13043_v47  ;;  %v11042_v24 = vstv %s6427_s2  ;;  %s2125_s2 = sld [smem:[#allocation10]] }
 0x5dd   :  { %3991 = vrot.lane.b32.xlu0 %v3986_v20, %s6927_s0  ;;  %3989 = vrot.lane.b32.xlu1 %v3982_v9, %s6927_s0  ;;  %v4787_v20 = vsel %vm177_vm0, %v4785_v48, %v4786_v12  ;;  %v2143_v12 = vmul.f32 %v11009_v15, %v8233_v21  ;;  %v5026_v42 = vsel %vm177_vm0, %v5024_v61, %v5025_v45 }
 0x5de   :  { %v3981_v45 = vrot.slane %v3783_v59, 1  ;;  %v13413_v59 = vld [vmem:[#allocation56_spill] sm:$0xff] }
 0x5df   :  { %v10985_v58 = vpop.permute.xlu0 %1670  ;;  %v10987_v60 = vpop.permute.xlu1 %3819 }
 0x5e0   :  { %13404 = vst [vmem:[#allocation68_spill] sm:$0xff] %v10985_v58  ;;  %13405 = vst [vmem:[#allocation129_spill] sm:$0xff] %v10987_v60  ;;  %v13430_v60 = vld [vmem:[#allocation39_spill] sm:$0xff]  ;;  %v1107_v58 = vmul.f32 %v11042_v24, %v8233_v21 }
 0x5e1   :  { %4137 = vrot.lane.b32.xlu0 %v4103_v11, %s6927_s0  ;;  %5029 = vrot.lane.b32.xlu1 %v12808_v49, %s6927_s0  ;;  %v13408_v11 = vld [vmem:[#allocation141_spill] sm:$0xff] }
 0x5e2   :  { %v4711_v32 = vadd.f32 %v13408_v11, %v4361_v57 }
 0x5e3   :  { %v10996_v44 = vpop.permute.xlu0 %1910  ;;  %v10998_v54 = vpop.permute.xlu1 %3845 }
 0x5e4   :  { %13407 = vst [vmem:[#allocation138_spill] sm:$0xff] %v10998_v54  ;;  %v4987_v48 = vadd.f32 %v9808_v6, %v4711_v32  ;;  %v4823_v6 = vadd.f32 %v9861_v1, %v4421_v62  ;;  %v1102_v1 = vmul.f32 %v10994_v14, %v8145_v2  ;;  %v13414_v62 = vld [vmem:[#allocation96_spill] sm:$0xff] }
 0x5e5   :  { %4791 = vrot.lane.b32.xlu0 %v4787_v20, %s6925_s14  ;;  %1317 = vrot.lane.b32.xlu1 %v1103_v18, %s6924_s12  ;;  %v11025_v18 = vstv %s6465_s16  ;;  %s6463_s14 = sld [smem:[#allocation9 + $0x26]] }
 0x5e6   :  { %v5143_v20 = vadd.f32 %v9893_v0, %v4987_v48  ;;  %v2163_v61 = vmul.f32 %v11025_v18, %v13055_v52  ;;  %v2164_v0 = vmul.f32 %v11025_v18, %v13043_v47  ;;  %v5021_v48 = vrot.slane %v4823_v6, 1  ;;  %v13416_v6 = vld [vmem:[#allocation114_spill] sm:$0xff]  ;;  %s6497_s16 = sld [smem:[#allocation10 + $0x1]] }
 0x5e7   :  { %v11012_v49 = vpop.permute.xlu0 %2057  ;;  %v11014_v28 = vpop.permute.xlu1 %3891 }
 0x5e8   :  { %13409 = vst [vmem:[#allocation54_spill] sm:$0xff] %v11014_v28  ;;  %v2415_v25 = vadd.f32 %v9902_v37, %v2163_v61  ;;  %v1110_v37 = vmul.f32 %v11042_v24, %v13043_v47  ;;  %v13415_v61 = vld [vmem:[#allocation80_spill] sm:$0xff] }
 0x5e9   :  { %5031 = vrot.lane.b32.xlu0 %v5026_v42, %s6927_s0  ;;  %2355 = vrot.lane.b32.xlu1 %v2143_v12, %s6924_s12  ;;  %v2416_v42 = vadd.f32 %v13413_v59, %v2164_v0 }
 0x5ea   :  { %v1354_v0 = vadd.f32 %v13416_v6, %v1110_v37  ;;  %v11092_v6 = vstv %s6429_s18  ;;  %s6571_s18 = sld [smem:[#allocation10 + $0x3]] }
 0x5eb   :  { %v11028_v57 = vpop.permute.xlu0 %2947  ;;  %v11030_v11 = vpop.permute.xlu1 %4045  ;;  %v11060_v28 = vadd.f32 %v13415_v61, %v2416_v42  ;;  %v11079_v37 = vstv %s6463_s14  ;;  %s6498_s14 = sld [smem:[#allocation9 + $0x48]] }
 0x5ec   :  { %13410 = vst [vmem:[#allocation139_spill] sm:$0xff] %v11028_v57  ;;  %13411 = vst [vmem:[#allocation62_spill] sm:$0xff] %v11030_v11  ;;  %v13426_v11 = vld [vmem:[#allocation60_spill] sm:$0xff] }
 0x5ed   :  { %5177 = vrot.lane.b32.xlu0 %v5143_v20, %s6927_s0  ;;  %2361 = vrot.lane.b32.xlu1 %v2146_v39, %s6924_s12  ;;  %v2791_v20 = vadd.f32 %v13414_v62, %v2415_v25  ;;  %v3983_v39 = vsel %vm177_vm0, %v3981_v45, %v3982_v9  ;;  %v13419_v9 = vrot.slane %v10967_v7, 1 }
 0x5ef   :  { %v11044_v32 = vpop.permute.xlu0 %3425  ;;  %v11046_v12 = vpop.permute.xlu1 %4071  ;;  %v2970_v63 = vrot.slane %v2791_v20, 1  ;;  %v5023_v45 = vsel %vm177_vm0, %v5021_v48, %v13419_v9  ;;  %v11084_v48 = vstv %s6469_s17  ;;  %v2152_v20 = vmul.f32 %v11079_v37, %v13043_v47  ;;  %v13422_v9 = vld [vmem:[#allocation69_spill] sm:$0xff]  ;;  %s6534_s17 = sld [smem:[#allocation10 + $0x2]] }
 0x5f0   :  { %13412 = vst [vmem:[#allocation144_spill] sm:$0xff] %v11046_v12  ;;  %v2188_v61 = vmul.f32 %v11084_v48, %v13043_v47  ;;  %v2151_v12 = vmul.f32 %v11079_v37, %v13055_v52 }
 0x5f1   :  { %3987 = vrot.lane.b32.xlu0 %v3983_v39, %s6927_s0  ;;  %1315 = vrot.lane.b32.xlu1 %v1102_v1, %s6924_s12  ;;  %v12809_v1 = vrot.slane %v11060_v28, 1  ;;  %v2145_v39 = vmul.f32 %v11009_v15, %v13055_v52 }
 0x5f3   :  { %v11063_v25 = vpop.permute.xlu0 %3817  ;;  %v11065_v59 = vpop.permute.xlu1 %4857  ;;  %v2972_v7 = vsel %vm177_vm0, %v2970_v63, %v12809_v1 }
 0x5f4   :  { %13417 = vst [vmem:[#allocation135_spill] sm:$0xff] %v11063_v25  ;;  %13418 = vst [vmem:[#allocation64_spill] sm:$0xff] %v11065_v59 }
 0x5f5   :  { %5027 = vrot.lane.b32.xlu0 %v5023_v45, %s6927_s0  ;;  %1716 = vrot.lane.b32.xlu1 %v1354_v0, %s6926_s19  ;;  %v1122_v0 = vmul.f32 %v11092_v6, %v13043_v47  ;;  %v2396_v45 = vadd.f32 %v13422_v9, %v2152_v20  ;;  %v1108_v20 = vmul.f32 %v11042_v24, %v8145_v2  ;;  %v13427_v9 = vld [vmem:[#allocation33_spill] sm:$0xff]  ;;  %s6477_s0 = sld [smem:[#allocation9 + $0x34]] }
 0x5f7   :  { %v11073_v62 = vpop.permute.xlu0 %3843  ;;  %v11075_v42 = vpop.permute.xlu1 %4883  ;;  %v1374_v43 = vadd.f32 %v13426_v11, %v1122_v0  ;;  %v1352_v11 = vadd.f32 %v10527_v53, %v1108_v20 }
 0x5f8   :  { %13420 = vst [vmem:[#allocation89_spill] sm:$0xff] %v11073_v62  ;;  %13421 = vst [vmem:[#allocation119_spill] sm:$0xff] %v11075_v42  ;;  %v1104_v42 = vmul.f32 %v10994_v14, %v13043_v47  ;;  %v13433_v62 = vld [vmem:[#allocation149_spill] sm:$0xff] }
 0x5f9   :  { %2359 = vrot.lane.b32.xlu0 %v2145_v39, %s6924_s12  ;;  %2977 = vrot.lane.b32.xlu1 %v2972_v7, %s6924_s12  ;;  %v13425_v39 = vld [vmem:[#allocation73_spill] sm:$0xff]  ;;  %v2187_v7 = vmul.f32 %v11084_v48, %v13055_v52  ;;  %v11117_v54 = vadd.f32 %v13430_v60, %v1374_v43 }
 0x5fa   :  { %v2462_v34 = vadd.f32 %v13425_v39, %v2188_v61  ;;  %v13429_v61 = vld [vmem:[#allocation142_spill] sm:$0xff] }
 0x5fb   :  { %v11097_v63 = vpop.permute.xlu0 %3889  ;;  %v11099_v1 = vpop.permute.xlu1 %4929  ;;  %v2395_v39 = vadd.f32 %v13429_v61, %v2151_v12  ;;  %v12811_v43 = vrot.slane %v11117_v54, 1  ;;  %v2149_v61 = vmul.f32 %v11079_v37, %v8233_v21 }
 0x5fc   :  { %13423 = vst [vmem:[#allocation63_spill] sm:$0xff] %v11097_v63  ;;  %13424 = vst [vmem:[#allocation72_spill] sm:$0xff] %v11099_v1  ;;  %v2461_v1 = vadd.f32 %v13427_v9, %v2187_v7  ;;  %v13428_v63 = vld [vmem:[#allocation86_spill] sm:$0xff]  ;;  %v11153_v9 = vstv %s6477_s0  ;;  %s6931_s0 = smov 6  }
 0x5fd   :  { %1319 = vrot.lane.b32.xlu0 %v1104_v42, %s6924_s12  ;;  %2757 = vrot.lane.b32.xlu1 %v2396_v45, %s6926_s19  ;;  %v2818_v46 = vadd.f32 %v13428_v63, %v2462_v34  ;;  %v13434_v42 = vld [vmem:[#allocation32_spill] sm:$0xff]  ;;  %v1101_v45 = vmul.f32 %v10994_v14, %v8233_v21 }
 0x5fe   :  { %v2817_v56 = vadd.f32 %v13433_v62, %v2461_v1  ;;  %v13435_v34 = vld [vmem:[#allocation92_spill] sm:$0xff]  ;;  %v1109_v1 = vmul.f32 %v11042_v24, %v13055_v52  ;;  %v13438_v62 = vld [vmem:[#allocation102_spill] sm:$0xff] }
 0x5ff   :  { %v11120_v0 = vpop.permute.xlu0 %4043  ;;  %v11122_v25 = vpop.permute.xlu1 %5083  ;;  %v11126_v31 = vadd.f32 %v13434_v42, %v2818_v46 }
 0x600   :  { %13431 = vst [vmem:[#allocation123_spill] sm:$0xff] %v11120_v0  ;;  %13432 = vst [vmem:[#allocation24_spill] sm:$0xff] %v11122_v25  ;;  %v3013_v12 = vadd.f32 %v13435_v34, %v2817_v56  ;;  %v1353_v63 = vadd.f32 %v13438_v62, %v1109_v1  ;;  %v11168_v1 = vstv %s6433_s20  ;;  %v13442_v62 = vld [vmem:[#allocation30_spill] sm:$0xff]  ;;  %v11182_v25 = vstv %s6536_s21  ;;  %s6932_s20 = smov 18   ;;  %s6933_s21 = smov 24  }
 0x601   :  { %2755 = vrot.lane.b32.xlu0 %v2395_v39, %s6926_s19  ;;  %1712 = vrot.lane.b32.xlu1 %v1352_v11, %s6926_s19  ;;  %v12810_v46 = vrot.slane %v11126_v31, 2  ;;  %v1120_v39 = vmul.f32 %v11092_v6, %v8145_v2  ;;  %v13440_v11 = vld [vmem:[#allocation106_spill] sm:$0xff] }
 0x602   :  { %v3074_v56 = vrot.slane %v3013_v12, 2  ;;  %v2393_v42 = vadd.f32 %v13440_v11, %v2149_v61  ;;  %v13444_v61 = vld [vmem:[#allocation82_spill] sm:$0xff] }
 0x603   :  { %v11132_v60 = vpop.permute.xlu0 %4069  ;;  %v11134_v53 = vpop.permute.xlu1 %5109 }
 0x604   :  { %13436 = vst [vmem:[#allocation71_spill] sm:$0xff] %v11132_v60  ;;  %13437 = vst [vmem:[#allocation65_spill] sm:$0xff] %v11134_v53  ;;  %v3076_v14 = vsel %vm316_vm1, %v3074_v56, %v12810_v46  ;;  %v1146_v56 = vmul.f32 %v11168_v1, %v13043_v47  ;;  %v2235_v46 = vmul.f32 %v11153_v9, %v7834_v13  ;;  %v13445_v53 = vld [vmem:[#allocation66_spill] sm:$0xff]  ;;  %v13446_v60 = vld [vmem:[#allocation97_spill] sm:$0xff] }
 0x605   :  { %1938 = vrot.lane.b32.xlu1 %v12811_v43, %s6924_s12  ;;  %1313 = vrot.lane.b32.xlu0 %v1101_v45, %s6924_s12  ;;  %v2236_v45 = vmul.f32 %v11153_v9, %v7731_v16  ;;  %v1121_v43 = vmul.f32 %v11092_v6, %v13055_v52 }
 0x606   :  { %v1421_v0 = vadd.f32 %v13445_v53, %v1146_v56  ;;  %v13450_v56 = vld [vmem:[#allocation146_spill] sm:$0xff] }
 0x607   :  { %v11146_v7 = vpop.permute.xlu0 %4467  ;;  %v11148_v20 = vpop.permute.xlu1 %1906  ;;  %v2548_v11 = vadd.f32 %v13444_v61, %v2236_v45  ;;  %v2144_v45 = vmul.f32 %v11009_v15, %v8145_v2  ;;  %v13448_v61 = vld [vmem:[#allocation90_spill] sm:$0xff]  ;;  %v1373_v53 = vadd.f32 %v13449_v50, %v1121_v43  ;;  %v13452_v15 = vld [vmem:[#allocation84_spill] sm:$0xff] }
 0x608   :  { %13439 = vst [vmem:[#allocation67_spill] sm:$0xff] %v11148_v20  ;;  %v2547_v20 = vadd.f32 %v13448_v61, %v2235_v46  ;;  %v13454_v61 = vld [vmem:[#allocation151_spill] sm:$0xff]  ;;  %v13455_v43 = vld [vmem:[#allocation22_spill] sm:$0xff] }
 0x609   :  { %3081 = vrot.lane.b32.xlu1 %v3076_v14, %s6926_s19  ;;  %1714 = vrot.lane.b32.xlu0 %v1353_v63, %s6926_s19  ;;  %v1372_v14 = vadd.f32 %v13442_v62, %v1120_v39  ;;  %v13443_v63 = vrot.slane %v11060_v28, 1  ;;  %v1750_v46 = vadd.f32 %v13453_v17, %v1373_v53  ;;  %v13462_v17 = vld [vmem:[#allocation99_spill] sm:$0xff] }
 0x60a   :  { %v2863_v50 = vadd.f32 %v13454_v61, %v2547_v20  ;;  %v13464_v61 = vld [vmem:[#allocation19_spill] sm:$0xff] }
 0x60b   :  { %v11162_v34 = vpop.permute.xlu0 %4859  ;;  %v11164_v12 = vpop.permute.xlu1 %3421  ;;  %v11186_v39 = vadd.f32 %v13446_v60, %v1372_v14  ;;  %v2864_v60 = vadd.f32 %v13450_v56, %v2548_v11  ;;  %v2161_v14 = vmul.f32 %v11025_v18, %v8233_v21 }
 0x60c   :  { %13441 = vst [vmem:[#allocation77_spill] sm:$0xff] %v11162_v34 }
 0x60d   :  { %2979 = vrot.lane.b32.xlu1 %v13443_v63, %s6924_s12  ;;  %2751 = vrot.lane.b32.xlu0 %v2393_v42, %s6926_s19  ;;  %v4225_v42 = vmul.f32 %v11182_v25, %v13055_v52  ;;  %v2162_v63 = vmul.f32 %v11025_v18, %v8145_v2  ;;  %v3040_v11 = vadd.f32 %v13455_v43, %v2864_v60  ;;  %v12814_v56 = vrot.slane %v11186_v39, 1  ;;  %v13456_v18 = vld [vmem:[#allocation105_spill] sm:$0xff] }
 0x60f   :  { %v11188_v62 = vpop.permute.xlu0 %4885  ;;  %v11190_v28 = vpop.permute.xlu1 %4461  ;;  %v2414_v59 = vadd.f32 %v13452_v15, %v2162_v63  ;;  %v13461_v63 = vld [vmem:[#allocation98_spill] sm:$0xff]  ;;  %v11225_v20 = vadd.f32 %v10500_v30, %v3040_v11  ;;  %v13467_v11 = vrot.slane %v11117_v54, 1 }
 0x610   :  { %13447 = vst [vmem:[#allocation75_spill] sm:$0xff] %v11188_v62  ;;  %v13451_v62 = vld [vmem:[#allocation31_spill] sm:$0xff]  ;;  %v3039_v15 = vadd.f32 %v13461_v63, %v2863_v50  ;;  %v1119_v63 = vmul.f32 %v11092_v6, %v8233_v21  ;;  %v13471_v6 = vld [vmem:[#allocation124_spill] sm:$0xff] }
 0x611   :  { %v1777_v57 = vadd.f32 %v13451_v62, %v1421_v0  ;;  %4439 = vrot.lane.b32.xlu1 %v4225_v42, %s6924_s12  ;;  %2357 = vrot.lane.b32.xlu0 %v2144_v45, %s6924_s12  ;;  %v13457_v0 = vld [vmem:[#allocation41_spill] sm:$0xff]  ;;  %v13460_v45 = vld [vmem:[#allocation147_spill] sm:$0xff]  ;;  %v2790_v53 = vadd.f32 %v13462_v17, %v2414_v59  ;;  %v12812_v30 = vrot.slane %v11225_v20, 2  ;;  %v2150_v17 = vmul.f32 %v11079_v37, %v8145_v2 }
 0x612   :  { %v1351_v62 = vadd.f32 %v13457_v0, %v1107_v58  ;;  %v2413_v34 = vadd.f32 %v13460_v45, %v2161_v14  ;;  %v1929_v58 = vrot.slane %v1750_v46, 1  ;;  %v3111_v43 = vadd.f32 %v13464_v61, %v3039_v15 }
 0x613   :  { %v11214_v33 = vadd.f32 %v13456_v18, %v1777_v57  ;;  %v11217_v24 = vpop.permute.xlu0 %4931  ;;  %v11219_v42 = vpop.permute.xlu1 %3757  ;;  %v13463_v57 = vld [vmem:[#allocation42_spill] sm:$0xff]  ;;  %v2968_v59 = vrot.slane %v2790_v53, 1  ;;  %v1145_v53 = vmul.f32 %v11168_v1, %v13055_v52 }
 0x614   :  { %13458 = vst [vmem:[#allocation45_spill] sm:$0xff] %v11217_v24  ;;  %13459 = vst [vmem:[#allocation88_spill] sm:$0xff] %v11219_v42  ;;  %v2789_v60 = vadd.f32 %v13463_v57, %v2413_v34  ;;  %v1931_v0 = vsel %vm177_vm0, %v1929_v58, %v13467_v11  ;;  %v3120_v46 = vrot.slane %v3111_v43, 2  ;;  %v13470_v58 = vld [vmem:[#allocation44_spill] sm:$0xff]  ;;  %v13473_v11 = vld [vmem:[#allocation91_spill] sm:$0xff] }
 0x615   :  { %1934 = vrot.lane.b32.xlu1 %v12814_v56, %s6924_s12  ;;  %1710 = vrot.lane.b32.xlu0 %v1351_v62, %s6926_s19  ;;  %v12813_v14 = vrot.slane %v11214_v33, 2  ;;  %v1371_v57 = vadd.f32 %v13470_v58, %v1119_v63  ;;  %v2185_v58 = vmul.f32 %v11084_v48, %v8233_v21  ;;  %v13479_v56 = vld [vmem:[#allocation28_spill] sm:$0xff] }
 0x616   :  { %v2967_v34 = vrot.slane %v2789_v60, 1  ;;  %v3122_v54 = vsel %vm316_vm1, %v3120_v46, %v12812_v30  ;;  %v2394_v60 = vadd.f32 %v13471_v6, %v2150_v17  ;;  %v2186_v46 = vmul.f32 %v11084_v48, %v8145_v2 }
 0x617   :  { %v11234_v18 = vpop.permute.xlu0 %5085  ;;  %v11236_v50 = vpop.permute.xlu1 %4041  ;;  %v11277_v17 = vstv %s6441_s23  ;;  %v11293_v30 = vstv %s6500_s24  ;;  %v1144_v48 = vmul.f32 %v11168_v1, %v8145_v2  ;;  %v2459_v24 = vadd.f32 %v13479_v56, %v2185_v58  ;;  %v13485_v56 = vld [vmem:[#allocation118_spill] sm:$0xff]  ;;  %s6935_s23 = smov 36   ;;  %s6936_s24 = smov 42  }
 0x618   :  { %13465 = vst [vmem:[#allocation143_spill] sm:$0xff] %v11234_v18  ;;  %13466 = vst [vmem:[#allocation79_spill] sm:$0xff] %v11236_v50  ;;  %v2969_v15 = vsel %vm177_vm0, %v2967_v34, %v2968_v59  ;;  %v13474_v34 = vld [vmem:[#allocation117_spill] sm:$0xff] }
 0x619   :  { %2043 = vrot.lane.b32.xlu1 %v12813_v14, %s6926_s19  ;;  %1936 = vrot.lane.b32.xlu0 %v1931_v0, %s6924_s12  ;;  %v1420_v0 = vadd.f32 %v13473_v11, %v1145_v53  ;;  %v1748_v37 = vadd.f32 %v13474_v34, %v1371_v57  ;;  %v13478_v34 = vld [vmem:[#allocation113_spill] sm:$0xff]  ;;  %v3191_v14 = vmul.f32 %v11293_v30, %v13055_v52 }
 0x61b   :  { %v11246_v62 = vpop.permute.xlu0 %5111  ;;  %v11248_v45 = vpop.permute.xlu1 %4067 }
 0x61c   :  { %13468 = vst [vmem:[#allocation140_spill] sm:$0xff] %v11246_v62  ;;  %13469 = vst [vmem:[#allocation36_spill] sm:$0xff] %v11248_v45  ;;  %v13488_v62 = vld [vmem:[#allocation104_spill] sm:$0xff] }
 0x61d   :  { %3127 = vrot.lane.b32.xlu1 %v3122_v54, %s6924_s12  ;;  %2973 = vrot.lane.b32.xlu0 %v2969_v15, %s6924_s12  ;;  %v13475_v54 = vld [vmem:[#allocation152_spill] sm:$0xff]  ;;  %v11275_v15 = vstv %s6499_s22  ;;  %s6934_s22 = smov 30  }
 0x61e   :  { %v1776_v63 = vadd.f32 %v13475_v54, %v1420_v0  ;;  %v3185_v6 = vmul.f32 %v11275_v15, %v13055_v52  ;;  %v1926_v0 = vrot.slane %v1748_v37, 1  ;;  %v1194_v37 = vmul.f32 %v11277_v17, %v7731_v16 }
 0x61f   :  { %v11264_v61 = vpop.permute.xlu0 %1908  ;;  %v11266_v43 = vpop.permute.xlu1 %4143 }
 0x620   :  { %13472 = vst [vmem:[#allocation141_spill] sm:$0xff] %v11266_v43  ;;  %v1973_v54 = vadd.f32 %v13478_v34, %v1776_v63  ;;  %v3435_v34 = vadd.f32 %v11044_v32, %v3191_v14 }
 0x621   :  { %2975 = vrot.lane.b32.xlu1 %v2968_v59, %s6924_s12  ;;  %2753 = vrot.lane.b32.xlu0 %v2394_v60, %s6926_s19  ;;  %v3183_v59 = vmul.f32 %v11275_v15, %v8233_v21  ;;  %v13477_v60 = vld [vmem:[#allocation87_spill] sm:$0xff] }
 0x622   :  { %v2460_v11 = vadd.f32 %v13477_v60, %v2186_v46  ;;  %v13481_v46 = vld [vmem:[#allocation21_spill] sm:$0xff]  ;;  %v11306_v60 = vstv %s6537_s25  ;;  %v2034_v43 = vrot.slane %v1973_v54, 2  ;;  %v13490_v54 = vld [vmem:[#allocation43_spill] sm:$0xff]  ;;  %s6937_s25 = smov 48  }
 0x623   :  { %v11283_v53 = vpop.permute.xlu0 %3427  ;;  %v11285_v57 = vpop.permute.xlu1 %4795  ;;  %v1419_v63 = vadd.f32 %v13481_v46, %v1144_v48  ;;  %v13487_v48 = vld [vmem:[#allocation35_spill] sm:$0xff]  ;;  %v4231_v32 = vmul.f32 %v11306_v60, %v13055_v52 }
 0x624   :  { %13476 = vst [vmem:[#allocation56_spill] sm:$0xff] %v11285_v57  ;;  %v13480_v57 = vld [vmem:[#allocation101_spill] sm:$0xff]  ;;  %v1507_v46 = vadd.f32 %v13487_v48, %v1194_v37 }
 0x625   :  { %3395 = vrot.lane.b32.xlu1 %v3183_v59, %s6924_s12  ;;  %3399 = vrot.lane.b32.xlu0 %v3185_v6, %s6924_s12  ;;  %v2816_v42 = vadd.f32 %v13480_v57, %v2460_v11  ;;  %v13484_v59 = vld [vmem:[#allocation18_spill] sm:$0xff]  ;;  %v13486_v57 = vrot.slane %v11186_v39, 1  ;;  %v1775_v50 = vadd.f32 %v13488_v62, %v1419_v63  ;;  %v13491_v39 = vld [vmem:[#allocation127_spill] sm:$0xff] }
 0x626   :  { %v2815_v6 = vadd.f32 %v13484_v59, %v2459_v24  ;;  %v13489_v24 = vld [vmem:[#allocation154_spill] sm:$0xff]  ;;  %v11329_v59 = vstv %s11281_s26  ;;  %s6938_s26 = smov 60  }
 0x627   :  { %v11309_v45 = vpop.permute.xlu0 %3755  ;;  %v11311_v18 = vpop.permute.xlu1 %5079  ;;  %v11315_v58 = vadd.f32 %v13485_v56, %v2816_v42  ;;  %v1928_v11 = vsel %vm177_vm0, %v1926_v0, %v13486_v57  ;;  %v1823_v42 = vadd.f32 %v13490_v54, %v1507_v46  ;;  %v11332_v56 = vadd.f32 %v13491_v39, %v1775_v50 }
 0x628   :  { %13482 = vst [vmem:[#allocation96_spill] sm:$0xff] %v11309_v45  ;;  %13483 = vst [vmem:[#allocation80_spill] sm:$0xff] %v11311_v18  ;;  %v3011_v14 = vadd.f32 %v13489_v24, %v2815_v6  ;;  %v4475_v0 = vadd.f32 %v10971_v41, %v4231_v32  ;;  %v2331_v63 = vmul.f32 %v11329_v59, %v7599_v27  ;;  %v13493_v6 = vrot.slane %v11214_v33, 2  ;;  %v13495_v41 = vld [vmem:[#allocation110_spill] sm:$0xff]  ;;  %v13512_v45 = vld [vmem:[#allocation29_spill] sm:$0xff] }
 0x629   :  { %3795 = vrot.lane.b32.xlu1 %v3435_v34, %s6926_s19  ;;  %1932 = vrot.lane.b32.xlu0 %v1928_v11, %s6924_s12  ;;  %v12815_v34 = vrot.slane %v11315_v58, 2  ;;  %v13494_v11 = vld [vmem:[#allocation37_spill] sm:$0xff]  ;;  %v2332_v32 = vmul.f32 %v11329_v59, %v7555_v22  ;;  %v12818_v24 = vrot.slane %v11332_v56, 2 }
 0x62a   :  { %v2036_v57 = vsel %vm316_vm1, %v2034_v43, %v13493_v6  ;;  %v2000_v48 = vadd.f32 %v13494_v11, %v1823_v42  ;;  %v2725_v50 = vadd.f32 %v13495_v41, %v2331_v63  ;;  %v3071_v46 = vrot.slane %v3011_v14, 2  ;;  %v13498_v42 = vld [vmem:[#allocation49_spill] sm:$0xff] }
 0x62b   :  { %v11335_v37 = vpop.permute.xlu0 %4039  ;;  %v11337_v62 = vpop.permute.xlu1 %5105  ;;  %v2726_v39 = vadd.f32 %v13498_v42, %v2332_v32  ;;  %v1143_v32 = vmul.f32 %v11168_v1, %v8233_v21  ;;  %v2233_v1 = vmul.f32 %v11153_v9, %v7851_v3 }
 0x62c   :  { %13492 = vst [vmem:[#allocation114_spill] sm:$0xff] %v11337_v62  ;;  %v11353_v54 = vadd.f32 %v10729_v8, %v2000_v48  ;;  %v3073_v14 = vsel %vm316_vm1, %v3071_v46, %v12815_v34  ;;  %v13499_v8 = vld [vmem:[#allocation48_spill] sm:$0xff]  ;;  %v11403_v34 = vstv %s6502_s27 }
 0x62d   :  { %4835 = vrot.lane.b32.xlu1 %v4475_v0, %s6926_s19  ;;  %2041 = vrot.lane.b32.xlu0 %v2036_v57, %s6926_s19  ;;  %v2961_v0 = vadd.f32 %v10765_v29, %v2725_v50  ;;  %v11369_v63 = vadd.f32 %v13499_v8, %v2726_v39  ;;  %v4226_v29 = vmul.f32 %v11182_v25, %v13043_v47  ;;  %v13503_v8 = vld [vmem:[#allocation100_spill] sm:$0xff] }
 0x62e   :  { %v12817_v6 = vrot.slane %v11353_v54, 2  ;;  %v4232_v39 = vmul.f32 %v11306_v60, %v13043_v47 }
 0x62f   :  { %v11355_v33 = vpop.permute.xlu0 %4065  ;;  %v11357_v43 = vpop.permute.xlu1 %5181  ;;  %13500 = vst [vmem:[#allocation60_spill] sm:$0xff] %v11369_v63  ;;  %v3146_v48 = vrot.slane %v2961_v0, 1  ;;  %v12816_v41 = vrot.slane %v11369_v63, 1  ;;  %v13502_v0 = vrot.slane %v11126_v31, 2  ;;  %v3186_v31 = vmul.f32 %v11275_v15, %v13043_v47 }
 0x630   :  { %13496 = vst [vmem:[#allocation69_spill] sm:$0xff] %v11355_v33  ;;  %13497 = vst [vmem:[#allocation73_spill] sm:$0xff] %v11357_v43 }
 0x631   :  { %2039 = vrot.lane.b32.xlu1 %v12818_v24, %s6926_s19  ;;  %3077 = vrot.lane.b32.xlu0 %v3073_v14, %s6926_s19  ;;  %v3148_v42 = vsel %vm177_vm0, %v3146_v48, %v12816_v41  ;;  %v1193_v14 = vmul.f32 %v11277_v17, %v7834_v13  ;;  %v4476_v48 = vadd.f32 %v11146_v7, %v4232_v39  ;;  %v13507_v24 = vld [vmem:[#allocation153_spill] sm:$0xff]  ;;  %v11419_v7 = vstv %s6539_s1  ;;  %v13509_v39 = vld [vmem:[#allocation95_spill] sm:$0xff]  ;;  %s6944_s1 = smov 90  }
 0x633   :  { %v11372_v57 = vpop.permute.xlu0 %4141  ;;  %v11374_v11 = vpop.permute.xlu1 %3423 }
 0x635   :  { %2089 = vrot.lane.b32.xlu1 %v12817_v6, %s6924_s12  ;;  %4441 = vrot.lane.b32.xlu0 %v4226_v29, %s6924_s12  ;;  %v1418_v29 = vadd.f32 %v13503_v8, %v1143_v32  ;;  %v3203_v32 = vmul.f32 %v11403_v34, %v13055_v52  ;;  %v2234_v8 = vmul.f32 %v11153_v9, %v7755_v10  ;;  %v13513_v9 = vld [vmem:[#allocation94_spill] sm:$0xff] }
 0x637   :  { %v11383_v50 = vpop.permute.xlu0 %4463  ;;  %v11385_v46 = vpop.permute.xlu1 %3753  ;;  %v1774_v62 = vadd.f32 %v13507_v24, %v1418_v29  ;;  %v3204_v24 = vmul.f32 %v11403_v34, %v13043_v47  ;;  %v13511_v29 = vld [vmem:[#allocation122_spill] sm:$0xff]  ;;  %v2546_v33 = vadd.f32 %v13512_v45, %v2234_v8  ;;  %v4244_v45 = vmul.f32 %v11419_v7, %v13043_v47  ;;  %v13518_v8 = vld [vmem:[#allocation109_spill] sm:$0xff] }
 0x638   :  { %13501 = vst [vmem:[#allocation33_spill] sm:$0xff] %v11385_v46  ;;  %v13508_v46 = vld [vmem:[#allocation93_spill] sm:$0xff] }
 0x639   :  { %3153 = vrot.lane.b32.xlu1 %v3148_v42, %s6926_s19  ;;  %3083 = vrot.lane.b32.xlu0 %v13502_v0, %s6926_s19  ;;  %v13506_v42 = vld [vmem:[#allocation145_spill] sm:$0xff]  ;;  %v2545_v18 = vadd.f32 %v13508_v46, %v2233_v1  ;;  %v4243_v46 = vmul.f32 %v11419_v7, %v13055_v52 }
 0x63a   :  { %v1506_v0 = vadd.f32 %v13506_v42, %v1193_v14  ;;  %v1971_v42 = vadd.f32 %v13511_v29, %v1774_v62  ;;  %v13519_v29 = vld [vmem:[#allocation155_spill] sm:$0xff] }
 0x63b   :  { %v11406_v41 = vpop.permute.xlu0 %4797  ;;  %v11408_v6 = vpop.permute.xlu1 %3993  ;;  %v2861_v43 = vadd.f32 %v13513_v9, %v2545_v18 }
 0x63c   :  { %13504 = vst [vmem:[#allocation86_spill] sm:$0xff] %v11406_v41  ;;  %13505 = vst [vmem:[#allocation142_spill] sm:$0xff] %v11408_v6  ;;  %v1822_v41 = vadd.f32 %v13509_v39, %v1506_v0  ;;  %v13510_v6 = vld [vmem:[#allocation156_spill] sm:$0xff]  ;;  %v2862_v39 = vadd.f32 %v13518_v8, %v2546_v33  ;;  %v1192_v33 = vmul.f32 %v11277_v17, %v7755_v10  ;;  %v13524_v8 = vld [vmem:[#allocation83_spill] sm:$0xff] }
 0x63d   :  { %4837 = vrot.lane.b32.xlu1 %v4476_v48, %s6926_s19  ;;  %3401 = vrot.lane.b32.xlu0 %v3186_v31, %s6924_s12  ;;  %v3455_v14 = vadd.f32 %v13510_v6, %v3203_v32  ;;  %v4223_v6 = vmul.f32 %v11182_v25, %v8233_v21  ;;  %v13516_v31 = vld [vmem:[#allocation115_spill] sm:$0xff]  ;;  %v13517_v32 = vld [vmem:[#allocation40_spill] sm:$0xff]  ;;  %v3037_v9 = vadd.f32 %v13519_v29, %v2861_v43  ;;  %v13523_v43 = vld [vmem:[#allocation46_spill] sm:$0xff] }
 0x63e   :  { %v1999_v0 = vadd.f32 %v13516_v31, %v1822_v41  ;;  %v3456_v62 = vadd.f32 %v13517_v32, %v3204_v24  ;;  %v13521_v41 = vld [vmem:[#allocation61_spill] sm:$0xff]  ;;  %v2031_v31 = vrot.slane %v1971_v42, 2  ;;  %v13522_v32 = vld [vmem:[#allocation26_spill] sm:$0xff]  ;;  %v4496_v29 = vadd.f32 %v13524_v8, %v4244_v45 }
 0x63f   :  { %v11434_v1 = vpop.permute.xlu0 %5081  ;;  %v11436_v48 = vpop.permute.xlu1 %4139  ;;  %v3831_v18 = vadd.f32 %v10844_v35, %v3455_v14  ;;  %v4495_v24 = vadd.f32 %v13521_v41, %v4243_v46  ;;  %v3038_v14 = vadd.f32 %v13523_v43, %v2862_v39  ;;  %v3109_v42 = vadd.f32 %v10787_v26, %v3037_v9  ;;  %v13526_v41 = vld [vmem:[#allocation27_spill] sm:$0xff] }
 0x640   :  { %13514 = vst [vmem:[#allocation39_spill] sm:$0xff] %v11434_v1  ;;  %13515 = vst [vmem:[#allocation149_spill] sm:$0xff] %v11436_v48  ;;  %v3189_v1 = vmul.f32 %v11293_v30, %v8233_v21  ;;  %v13520_v48 = vrot.slane %v11225_v20, 2  ;;  %v2071_v63 = vadd.f32 %v13522_v32, %v1999_v0  ;;  %v11456_v35 = vadd.f32 %v10767_v5, %v3456_v62 }
 0x641   :  { %4435 = vrot.lane.b32.xlu0 %v4223_v6, %s6924_s12  ;;  %v4010_v46 = vrot.slane %v3831_v18, 1  ;;  %v4871_v5 = vadd.f32 %v10939_v55, %v4495_v24  ;;  %v13525_v0 = vrot.slane %v11332_v56, 2  ;;  %v1505_v39 = vadd.f32 %v13526_v41, %v1192_v33  ;;  %v13528_v18 = vld [vmem:[#allocation47_spill] sm:$0xff]  ;;  %v13531_v41 = vld [vmem:[#allocation126_spill] sm:$0xff] }
 0x642   :  { %3129 = vrot.lane.b32.xlu1 %v13520_v48, %s6924_s12  ;;  %v3433_v20 = vadd.f32 %v11164_v12, %v3189_v1  ;;  %v2080_v12 = vrot.slane %v2071_v63, 2  ;;  %v13527_v1 = vld [vmem:[#allocation130_spill] sm:$0xff]  ;;  %v4011_v32 = vrot.slane %v11456_v35, 1  ;;  %v11478_v26 = vadd.f32 %v10856_v40, %v4496_v29  ;;  %v13530_v40 = vld [vmem:[#allocation116_spill] sm:$0xff] }
 0x643   :  { %v11463_v48 = vpop.permute.xlu0 %5107  ;;  %v11465_v6 = vpop.permute.xlu1 %4793  ;;  %v2033_v62 = vsel %vm316_vm1, %v2031_v31, %v13525_v0  ;;  %v3110_v45 = vadd.f32 %v13527_v1, %v3038_v14  ;;  %v1821_v55 = vadd.f32 %v13528_v18, %v1505_v39  ;;  %v11482_v9 = vstv %s11432_s3 }
 0x644   :  { %v3117_v31 = vrot.slane %v3109_v42, 2  ;;  %v5050_v33 = vrot.slane %v4871_v5, 1  ;;  %v4012_v63 = vsel %vm177_vm0, %v4010_v46, %v4011_v32  ;;  %v13529_v43 = vrot.slane %v11353_v54, 2 }
 0x645   :  { %2037 = vrot.lane.b32.xlu0 %v2033_v62, %s6926_s19  ;;  %v1998_v8 = vadd.f32 %v13530_v40, %v1821_v55  ;;  %v3118_v29 = vrot.slane %v3110_v45, 2  ;;  %v1290_v42 = vmul.f32 %v11482_v9, %v7555_v22  ;;  %v4224_v18 = vmul.f32 %v11182_v25, %v8145_v2 }
 0x646   :  { %3791 = vrot.lane.b32.xlu1 %v3433_v20, %s6926_s19  ;;  %v2082_v14 = vsel %vm316_vm1, %v2080_v12, %v13529_v43  ;;  %v12820_v20 = vrot.slane %v11478_v26, 1  ;;  %v13532_v25 = vrot.slane %v11315_v58, 2  ;;  %v13533_v43 = vld [vmem:[#allocation148_spill] sm:$0xff]  ;;  %v13536_v58 = vld [vmem:[#allocation111_spill] sm:$0xff] }
 0x647   :  { %v11484_v56 = vpop.permute.xlu0 %5183  ;;  %v11486_v24 = vpop.permute.xlu1 %5033  ;;  %v11501_v5 = vadd.f32 %v10941_v36, %v1998_v8  ;;  %v3119_v62 = vsel %vm316_vm1, %v3117_v31, %v3118_v29  ;;  %v1685_v39 = vadd.f32 %v13531_v41, %v1290_v42  ;;  %v3192_v41 = vmul.f32 %v11293_v30, %v13043_v47 }
 0x648   :  { %v5052_v0 = vsel %vm177_vm0, %v5050_v33, %v12820_v20  ;;  %v1191_v33 = vmul.f32 %v11277_v17, %v7851_v3  ;;  %v3184_v17 = vmul.f32 %v11275_v15, %v8145_v2  ;;  %v4242_v15 = vmul.f32 %v11419_v7, %v8145_v2  ;;  %v13554_v20 = vld [vmem:[#allocation34_spill] sm:$0xff] }
 0x649   :  { %2087 = vrot.lane.b32.xlu0 %v2082_v14, %s6924_s12  ;;  %v11515_v12 = vadd.f32 %v10923_v19, %v1685_v39  ;;  %v2078_v36 = vrot.slane %v11501_v5, 2 }
 0x64a   :  { %4017 = vrot.lane.b32.xlu1 %v4012_v63, %s6924_s12  ;;  %v4230_v63 = vmul.f32 %v11306_v60, %v8145_v2  ;;  %v1504_v14 = vadd.f32 %v13533_v43, %v1191_v33  ;;  %v13538_v43 = vld [vmem:[#allocation103_spill] sm:$0xff] }
 0x64b   :  { %v11503_v46 = vpop.permute.xlu0 %3751  ;;  %v11505_v54 = vpop.permute.xlu1 %5179  ;;  %v2107_v55 = vrot.slane %v11515_v12, 1 }
 0x64c   :  { %v4474_v40 = vadd.f32 %v11383_v50, %v4230_v63  ;;  %v1289_v50 = vmul.f32 %v11482_v9, %v7599_v27 }
 0x64d   :  { %3123 = vrot.lane.b32.xlu0 %v3119_v62, %s6924_s12 }
 0x64e   :  { %5057 = vrot.lane.b32.xlu1 %v5052_v0, %s6924_s12  ;;  %v13535_v0 = vld [vmem:[#allocation112_spill] sm:$0xff] }
 0x64f   :  { %v11518_v1 = vpop.permute.xlu0 %3991  ;;  %v11520_v45 = vpop.permute.xlu1 %3989  ;;  %v1820_v62 = vadd.f32 %v13535_v0, %v1504_v14  ;;  %v1684_v14 = vadd.f32 %v13538_v43, %v1289_v50  ;;  %v2329_v0 = vmul.f32 %v11329_v59, %v13206_v4 }
 0x651   :  { %4437 = vrot.lane.b32.xlu0 %v4224_v18, %s6924_s12  ;;  %v1997_v39 = vadd.f32 %v13536_v58, %v1820_v62  ;;  %v3436_v18 = vadd.f32 %v11283_v53, %v3192_v41  ;;  %v4494_v53 = vadd.f32 %v10820_v51, %v4242_v15 }
 0x652   :  { %2085 = vrot.lane.b32.xlu1 %v2078_v36, %s6924_s12 }
 0x653   :  { %v11529_v31 = vpop.permute.xlu0 %4137  ;;  %v11531_v19 = vpop.permute.xlu1 %5029 }
 0x655   :  { %3079 = vrot.lane.b32.xlu0 %v13532_v25, %s6926_s19  ;;  %v2069_v25 = vadd.f32 %v11012_v49, %v1997_v39  ;;  %v4241_v49 = vmul.f32 %v11419_v7, %v8233_v21  ;;  %v1288_v7 = vmul.f32 %v11482_v9, %v12945_v23  ;;  %v13540_v39 = vld [vmem:[#allocation77_spill] sm:$0xff] }
 0x656   :  { %2115 = vrot.lane.b32.xlu1 %v2107_v55, %s6926_s19  ;;  %v11596_v50 = vadd.f32 %v13540_v39, %v4494_v53 }
 0x657   :  { %v11545_v8 = vpop.permute.xlu0 %4791  ;;  %v11547_v42 = vpop.permute.xlu1 %1317  ;;  %v4493_v51 = vadd.f32 %v10890_v38, %v4241_v49  ;;  %v2077_v58 = vrot.slane %v2069_v25, 2  ;;  %v13541_v38 = vld [vmem:[#allocation132_spill] sm:$0xff] }
 0x658   :  { %13534 = vst [vmem:[#allocation32_spill] sm:$0xff] %v11547_v42  ;;  %v13543_v25 = vld [vmem:[#allocation64_spill] sm:$0xff]  ;;  %v13559_v42 = vld [vmem:[#allocation57_spill] sm:$0xff] }
 0x659   :  { %3397 = vrot.lane.b32.xlu0 %v3184_v17, %s6924_s12  ;;  %v3190_v17 = vmul.f32 %v11293_v30, %v8145_v2  ;;  %v4869_v43 = vadd.f32 %v13543_v25, %v4493_v51  ;;  %v2079_v51 = vsel %vm316_vm1, %v2077_v58, %v2078_v36 }
 0x65a   :  { %4833 = vrot.lane.b32.xlu1 %v4474_v40, %s6926_s19  ;;  %v4229_v40 = vmul.f32 %v11306_v60, %v8233_v21  ;;  %v1920_v60 = vadd.f32 %v10996_v44, %v1684_v14  ;;  %v2330_v44 = vmul.f32 %v11329_v59, %v12945_v23  ;;  %v13544_v14 = vld [vmem:[#allocation53_spill] sm:$0xff] }
 0x65b   :  { %v11560_v33 = vpop.permute.xlu0 %5031  ;;  %v11562_v63 = vpop.permute.xlu1 %2355 }
 0x65c   :  { %13537 = vst [vmem:[#allocation92_spill] sm:$0xff] %v11562_v63  ;;  %v4473_v30 = vadd.f32 %v11190_v28, %v4229_v40  ;;  %v1287_v28 = vmul.f32 %v11482_v9, %v13206_v4  ;;  %v2724_v40 = vadd.f32 %v13544_v14, %v2330_v44  ;;  %v2106_v53 = vrot.slane %v1920_v60, 1  ;;  %v13548_v60 = vld [vmem:[#allocation52_spill] sm:$0xff]  ;;  %v13558_v63 = vld [vmem:[#allocation157_spill] sm:$0xff] }
 0x65d   :  { %3797 = vrot.lane.b32.xlu0 %v3436_v18, %s6926_s19  ;;  %v13542_v18 = vld [vmem:[#allocation70_spill] sm:$0xff]  ;;  %v5047_v44 = vrot.slane %v4869_v43, 1  ;;  %v11653_v14 = vstv %s11598_s10  ;;  %s6939_s10 = smov 54  }
 0x65e   :  { %3125 = vrot.lane.b32.xlu1 %v3118_v29, %s6924_s12  ;;  %v3434_v29 = vadd.f32 %v11374_v11, %v3190_v17  ;;  %v2723_v11 = vadd.f32 %v13541_v38, %v2329_v0  ;;  %v1683_v15 = vadd.f32 %v13542_v18, %v1288_v7  ;;  %v13545_v17 = vld [vmem:[#allocation68_spill] sm:$0xff]  ;;  %v5048_v0 = vrot.slane %v11596_v50, 1 }
 0x65f   :  { %v11588_v62 = vpop.permute.xlu0 %5177  ;;  %v11590_v41 = vpop.permute.xlu1 %2361  ;;  %v1682_v59 = vadd.f32 %v13545_v17, %v1287_v28  ;;  %v11628_v39 = vadd.f32 %v13548_v60, %v2724_v40  ;;  %v13549_v28 = vld [vmem:[#allocation67_spill] sm:$0xff]  ;;  %v3224_v38 = vstv %s11567_s28  ;;  %v2108_v18 = vsel %vm177_vm0, %v2106_v53, %v2107_v55 }
 0x660   :  { %13539 = vst [vmem:[#allocation102_spill] sm:$0xff] %v11590_v41  ;;  %v11618_v7 = vadd.f32 %v11264_v61, %v1683_v15  ;;  %v11633_v61 = vstv %s11581_s30  ;;  %v5049_v58 = vsel %vm177_vm0, %v5047_v44, %v5048_v0  ;;  %v3227_v15 = vmul.f32 %v3224_v38, %v13055_v52  ;;  %v13553_v44 = vld [vmem:[#allocation121_spill] sm:$0xff] }
 0x661   :  { %4831 = vrot.lane.b32.xlu0 %v4473_v30, %s6926_s19  ;;  %v1918_v50 = vadd.f32 %v13549_v28, %v1682_v59  ;;  %v3275_v25 = vmul.f32 %v11633_v61, %v7834_v13  ;;  %v4315_v40 = vmul.f32 %v11653_v14, %v7834_v13  ;;  %v3225_v12 = vmul.f32 %v3224_v38, %v8233_v21 }
 0x662   :  { %3793 = vrot.lane.b32.xlu1 %v3434_v29, %s6926_s19  ;;  %v13547_v29 = vld [vmem:[#allocation139_spill] sm:$0xff]  ;;  %v3144_v55 = vrot.slane %v11628_v39, 1  ;;  %v3228_v59 = vmul.f32 %v3224_v38, %v13043_v47  ;;  %v3276_v53 = vmul.f32 %v11633_v61, %v7731_v16  ;;  %v3226_v13 = vmul.f32 %v3224_v38, %v8145_v2 }
 0x663   :  { %v11611_v49 = vpop.permute.xlu0 %3987  ;;  %v11613_v9 = vpop.permute.xlu1 %1315  ;;  %v2959_v30 = vadd.f32 %v13547_v29, %v2723_v11  ;;  %v11636_v11 = vstv %s11576_s29  ;;  %v2103_v17 = vrot.slane %v1918_v50, 1  ;;  %v3499_v39 = vadd.f32 %v13553_v44, %v3225_v12  ;;  %v13555_v38 = vld [vmem:[#allocation59_spill] sm:$0xff] }
 0x664   :  { %13546 = vst [vmem:[#allocation106_spill] sm:$0xff] %v11613_v9  ;;  %v4267_v43 = vmul.f32 %v11636_v11, %v13055_v52  ;;  %v4268_v29 = vmul.f32 %v11636_v11, %v13043_v47  ;;  %v3587_v12 = vadd.f32 %v13555_v38, %v3275_v25  ;;  %v13556_v44 = vld [vmem:[#allocation55_spill] sm:$0xff]  ;;  %v13564_v47 = vld [vmem:[#allocation138_spill] sm:$0xff] }
 0x665   :  { %2083 = vrot.lane.b32.xlu0 %v2079_v51, %s6924_s12  ;;  %v3143_v35 = vrot.slane %v2959_v30, 1  ;;  %v3201_v30 = vmul.f32 %v11403_v34, %v8233_v21  ;;  %v3500_v41 = vadd.f32 %v13556_v44, %v3226_v13  ;;  %v13562_v25 = vld [vmem:[#allocation51_spill] sm:$0xff]  ;;  %v13563_v13 = vld [vmem:[#allocation125_spill] sm:$0xff] }
 0x666   :  { %4019 = vrot.lane.b32.xlu1 %v4011_v32, %s6924_s12  ;;  %v12821_v32 = vrot.slane %v11618_v7, 1  ;;  %v3588_v38 = vadd.f32 %v13562_v25, %v3276_v53  ;;  %v3903_v44 = vadd.f32 %v13563_v13, %v3587_v12  ;;  %v13569_v53 = vld [vmem:[#allocation78_spill] sm:$0xff]  ;;  %v13570_v12 = vld [vmem:[#allocation85_spill] sm:$0xff]  ;;  %v13574_v25 = vld [vmem:[#allocation128_spill] sm:$0xff] }
 0x667   :  { %v11638_v5 = vpop.permute.xlu0 %5027  ;;  %v11640_v36 = vpop.permute.xlu1 %1716  ;;  %v3145_v50 = vsel %vm177_vm0, %v3143_v35, %v3144_v55  ;;  %v3453_v9 = vadd.f32 %v13554_v20, %v3201_v30  ;;  %v13557_v35 = vld [vmem:[#allocation89_spill] sm:$0xff]  ;;  %v13561_v20 = vld [vmem:[#allocation135_spill] sm:$0xff] }
 0x668   :  { %13550 = vst [vmem:[#allocation30_spill] sm:$0xff] %v11640_v36  ;;  %v2105_v28 = vsel %vm177_vm0, %v2103_v17, %v12821_v32  ;;  %v3273_v17 = vmul.f32 %v11633_v61, %v7851_v3  ;;  %v3855_v32 = vadd.f32 %v13557_v35, %v3499_v39  ;;  %v4627_v36 = vadd.f32 %v13559_v42, %v4315_v40  ;;  %v13565_v35 = vld [vmem:[#allocation81_spill] sm:$0xff] }
 0x669   :  { %2113 = vrot.lane.b32.xlu0 %v2108_v18, %s6926_s19  ;;  %v3202_v18 = vmul.f32 %v11403_v34, %v8145_v2  ;;  %v13560_v34 = vld [vmem:[#allocation58_spill] sm:$0xff]  ;;  %v3829_v30 = vadd.f32 %v13561_v20, %v3453_v9  ;;  %v13567_v40 = vld [vmem:[#allocation129_spill] sm:$0xff]  ;;  %v13568_v9 = vrot.slane %v11478_v26, 1  ;;  %v3904_v20 = vadd.f32 %v13570_v12, %v3588_v38 }
 0x66a   :  { %5053 = vrot.lane.b32.xlu1 %v5049_v58, %s6924_s12  ;;  %v4316_v58 = vmul.f32 %v11653_v14, %v7731_v16  ;;  %v3501_v16 = vadd.f32 %v13558_v63, %v3227_v15  ;;  %v4051_v39 = vadd.f32 %v11335_v37, %v3855_v32  ;;  %v3502_v63 = vadd.f32 %v13565_v35, %v3228_v59  ;;  %v13566_v15 = vld [vmem:[#allocation120_spill] sm:$0xff]  ;;  %v13572_v37 = vld [vmem:[#allocation79_spill] sm:$0xff] }
 0x66b   :  { %v11668_v51 = vpop.permute.xlu0 %2359  ;;  %v11670_v60 = vpop.permute.xlu1 %2977  ;;  %v13573_v59 = vld [vmem:[#allocation136_spill] sm:$0xff]  ;;  %v4007_v13 = vrot.slane %v3829_v30, 1  ;;  %v13575_v35 = vld [vmem:[#allocation123_spill] sm:$0xff] }
 0x66c   :  { %13551 = vst [vmem:[#allocation82_spill] sm:$0xff] %v11668_v51  ;;  %13552 = vst [vmem:[#allocation66_spill] sm:$0xff] %v11670_v60  ;;  %v3454_v60 = vadd.f32 %v13560_v34, %v3202_v18  ;;  %v3856_v51 = vadd.f32 %v13564_v47, %v3500_v41  ;;  %v3857_v42 = vadd.f32 %v13566_v15, %v3501_v16  ;;  %v13571_v47 = vld [vmem:[#allocation71_spill] sm:$0xff] }
 0x66d   :  { %3149 = vrot.lane.b32.xlu0 %v3145_v50, %s6926_s19  ;;  %v4628_v34 = vadd.f32 %v13569_v53, %v4316_v58  ;;  %v4079_v41 = vadd.f32 %v13571_v47, %v3903_v44  ;;  %v4542_v16 = vadd.f32 %v13573_v59, %v4268_v29  ;;  %v4111_v53 = vrot.slane %v4051_v39, 2  ;;  %v13579_v47 = vld [vmem:[#allocation131_spill] sm:$0xff]  ;;  %v13585_v59 = vld [vmem:[#allocation141_spill] sm:$0xff] }
 0x66e   :  { %2109 = vrot.lane.b32.xlu1 %v2105_v28, %s6926_s19  ;;  %v11705_v18 = vadd.f32 %v13567_v40, %v3454_v60  ;;  %v11715_v32 = vadd.f32 %v13572_v37, %v3856_v51  ;;  %v3858_v60 = vadd.f32 %v13574_v25, %v3502_v63  ;;  %v13576_v40 = vld [vmem:[#allocation23_spill] sm:$0xff]  ;;  %v13580_v37 = vld [vmem:[#allocation74_spill] sm:$0xff] }
 0x66f   :  { %v11694_v28 = vpop.permute.xlu0 %1319  ;;  %v11696_v50 = vpop.permute.xlu1 %2757  ;;  %v4944_v58 = vadd.f32 %v13576_v40, %v4628_v34  ;;  %v4151_v44 = vadd.f32 %v11372_v57, %v4079_v41  ;;  %v13578_v51 = vld [vmem:[#allocation107_spill] sm:$0xff]  ;;  %v4898_v29 = vadd.f32 %v13579_v47, %v4542_v16  ;;  %v4943_v63 = vadd.f32 %v13580_v37, %v4627_v36  ;;  %v13586_v36 = vld [vmem:[#allocation133_spill] sm:$0xff] }
 0x670   :  { %v4541_v12 = vadd.f32 %v13578_v51, %v4267_v43  ;;  %v4008_v30 = vrot.slane %v11705_v18, 1  ;;  %v4112_v57 = vrot.slane %v11715_v32, 2  ;;  %v13584_v43 = vld [vmem:[#allocation140_spill] sm:$0xff]  ;;  %v13587_v40 = vld [vmem:[#allocation65_spill] sm:$0xff]  ;;  %v13588_v47 = vld [vmem:[#allocation143_spill] sm:$0xff] }
 0x671   :  { %5059 = vrot.lane.b32.xlu0 %v13568_v9, %s6924_s12  ;;  %v13577_v9 = vld [vmem:[#allocation144_spill] sm:$0xff]  ;;  %v5120_v41 = vadd.f32 %v13584_v43, %v4944_v58  ;;  %v11755_v37 = vadd.f32 %v13588_v47, %v4898_v29  ;;  %v4160_v58 = vrot.slane %v4151_v44, 2  ;;  %v13592_v43 = vld [vmem:[#allocation134_spill] sm:$0xff] }
 0x672   :  { %5055 = vrot.lane.b32.xlu1 %v5048_v0, %s6924_s12  ;;  %v4053_v0 = vadd.f32 %v13575_v35, %v3857_v42  ;;  %v4080_v38 = vadd.f32 %v13577_v9, %v3904_v20  ;;  %v13581_v42 = vld [vmem:[#allocation60_spill] sm:$0xff]  ;;  %v13583_v20 = vld [vmem:[#allocation62_spill] sm:$0xff]  ;;  %v4897_v25 = vadd.f32 %v13586_v36, %v4541_v12  ;;  %v5119_v9 = vadd.f32 %v13587_v40, %v4943_v63 }
 0x673   :  { %v11720_v15 = vpop.permute.xlu0 %2755  ;;  %v11722_v26 = vpop.permute.xlu1 %1712  ;;  %v13582_v34 = vrot.slane %v13581_v42, 1  ;;  %v11738_v39 = vadd.f32 %v13583_v20, %v3858_v60  ;;  %v4009_v60 = vsel %vm177_vm0, %v4007_v13, %v4008_v30  ;;  %v3274_v12 = vmul.f32 %v11633_v61, %v7755_v10  ;;  %v13589_v63 = vld [vmem:[#allocation108_spill] sm:$0xff]  ;;  %v13594_v47 = vld [vmem:[#allocation54_spill] sm:$0xff] }
 0x674   :  { %v11743_v16 = vadd.f32 %v13585_v59, %v4080_v38  ;;  %v4114_v35 = vrot.slane %v4053_v0, 2  ;;  %v5192_v38 = vadd.f32 %v11484_v56, %v5120_v41  ;;  %v4113_v0 = vsel %vm316_vm1, %v4111_v53, %v4112_v57  ;;  %v13590_v29 = vld [vmem:[#allocation24_spill] sm:$0xff]  ;;  %v13593_v41 = vld [vmem:[#allocation63_spill] sm:$0xff] }
 0x675   :  { %3155 = vrot.lane.b32.xlu0 %v13582_v34, %s6926_s19  ;;  %v3585_v42 = vadd.f32 %v13589_v63, %v3273_v17  ;;  %v4115_v13 = vrot.slane %v11738_v39, 2  ;;  %v5093_v44 = vadd.f32 %v13590_v29, %v4897_v25  ;;  %v13591_v34 = vld [vmem:[#allocation73_spill] sm:$0xff]  ;;  %v3586_v53 = vadd.f32 %v13592_v43, %v3274_v12 }
 0x676   :  { %3151 = vrot.lane.b32.xlu1 %v3144_v55, %s6926_s19  ;;  %v12823_v56 = vrot.slane %v11743_v16, 2  ;;  %v5191_v20 = vadd.f32 %v13591_v34, %v5119_v9  ;;  %v5155_v36 = vrot.slane %v11755_v37, 2  ;;  %v5201_v40 = vrot.slane %v5192_v38, 2  ;;  %v13595_v63 = vld [vmem:[#allocation69_spill] sm:$0xff]  ;;  %v13596_v34 = vld [vmem:[#allocation36_spill] sm:$0xff] }
 0x677   :  { %v11747_v55 = vpop.permute.xlu1 %1938  ;;  %v11749_v51 = vpop.permute.xlu0 %1313  ;;  %v3901_v59 = vadd.f32 %v13593_v41, %v3585_v42  ;;  %v4116_v9 = vsel %vm316_vm1, %v4114_v35, %v4115_v13  ;;  %v5154_v12 = vrot.slane %v5093_v44, 2 }
 0x678   :  { %v4162_v25 = vsel %vm316_vm1, %v4160_v58, %v12823_v56  ;;  %v5200_v37 = vrot.slane %v5191_v20, 2  ;;  %v13597_v20 = vld [vmem:[#allocation96_spill] sm:$0xff] }
 0x679   :  { %4013 = vrot.lane.b32.xlu0 %v4009_v60, %s6924_s12  ;;  %v3368_v60 = vstv %s11731_s4  ;;  %v4077_v42 = vadd.f32 %v13595_v63, %v3901_v59  ;;  %v13598_v59 = vld [vmem:[#allocation149_spill] sm:$0xff]  ;;  %s6942_s4 = smov 84  }
 0x67a   :  { %4117 = vrot.lane.b32.xlu1 %v4113_v0, %s6926_s19  ;;  %v3902_v0 = vadd.f32 %v13594_v47, %v3586_v53  ;;  %v3371_v38 = vmul.f32 %v3368_v60, %v7599_v27  ;;  %v5202_v41 = vsel %vm316_vm1, %v5200_v37, %v5201_v40  ;;  %v3372_v44 = vmul.f32 %v3368_v60, %v7555_v22 }
 0x67b   :  { %v11772_v61 = vpop.permute.xlu1 %3081  ;;  %v11774_v17 = vpop.permute.xlu0 %1714  ;;  %v4149_v35 = vadd.f32 %v11529_v31, %v4077_v42  ;;  %v4408_v47 = vstv %s6567_s11  ;;  %v13599_v31 = vld [vmem:[#allocation88_spill] sm:$0xff] }
 0x67c   :  { %v4078_v43 = vadd.f32 %v13596_v34, %v3902_v0  ;;  %v3765_v53 = vadd.f32 %v13597_v20, %v3371_v38  ;;  %v3766_v42 = vadd.f32 %v13599_v31, %v3372_v44  ;;  %v13600_v38 = vrot.slane %v11618_v7, 1  ;;  %v13604_v7 = vld [vmem:[#allocation86_spill] sm:$0xff] }
 0x67d   :  { %4121 = vrot.lane.b32.xlu0 %v4116_v9, %s6926_s19  ;;  %v4157_v34 = vrot.slane %v4149_v35, 2  ;;  %v4412_v20 = vmul.f32 %v4408_v47, %v7555_v22 }
 0x67e   :  { %4167 = vrot.lane.b32.xlu1 %v4162_v25, %s6924_s12  ;;  %v5156_v25 = vsel %vm316_vm1, %v5154_v12, %v5155_v36  ;;  %v11802_v9 = vadd.f32 %v13598_v59, %v4078_v43  ;;  %v4411_v12 = vmul.f32 %v4408_v47, %v7599_v27  ;;  %v4001_v37 = vadd.f32 %v11518_v1, %v3765_v53  ;;  %v13601_v43 = vld [vmem:[#allocation56_spill] sm:$0xff]  ;;  %v13602_v59 = vld [vmem:[#allocation142_spill] sm:$0xff] }
 0x67f   :  { %v11789_v29 = vpop.permute.xlu1 %2979  ;;  %v11791_v58 = vpop.permute.xlu0 %2751  ;;  %v11820_v44 = vadd.f32 %v13602_v59, %v3766_v42  ;;  %v13603_v1 = vld [vmem:[#allocation76_spill] sm:$0xff]  ;;  %v4265_v53 = vmul.f32 %v11636_v11, %v8233_v21  ;;  %v13605_v42 = vld [vmem:[#allocation50_spill] sm:$0xff] }
 0x680   :  { %v12824_v27 = vrot.slane %v11802_v9, 2  ;;  %v4186_v56 = vrot.slane %v4001_v37, 1  ;;  %v3369_v37 = vmul.f32 %v3368_v60, %v13206_v4 }
 0x681   :  { %5161 = vrot.lane.b32.xlu0 %v5156_v25, %s6926_s19  ;;  %v4805_v25 = vadd.f32 %v13601_v43, %v4411_v12  ;;  %v4187_v59 = vrot.slane %v11820_v44, 1  ;;  %v13622_v44 = vld [vmem:[#allocation20_spill] sm:$0xff] }
 0x682   :  { %5207 = vrot.lane.b32.xlu1 %v5202_v41, %s6924_s12  ;;  %v4266_v41 = vmul.f32 %v11636_v11, %v8145_v2  ;;  %v4159_v22 = vsel %vm316_vm1, %v4157_v34, %v12824_v27  ;;  %v13606_v11 = vld [vmem:[#allocation75_spill] sm:$0xff] }
 0x683   :  { %v11804_v63 = vpop.permute.xlu1 %4439  ;;  %v11806_v0 = vpop.permute.xlu0 %2357  ;;  %v5041_v12 = vadd.f32 %v11560_v33, %v4805_v25  ;;  %v13607_v25 = vld [vmem:[#allocation119_spill] sm:$0xff] }
 0x684   :  { %v4540_v35 = vadd.f32 %v13603_v1, %v4266_v41  ;;  %v4539_v41 = vadd.f32 %v13605_v42, %v4265_v53  ;;  %v3370_v53 = vmul.f32 %v3368_v60, %v12945_v23  ;;  %v3763_v42 = vadd.f32 %v11503_v46, %v3369_v37 }
 0x685   :  { %2111 = vrot.lane.b32.xlu0 %v13600_v38, %s6926_s19  ;;  %v4806_v38 = vadd.f32 %v13604_v7, %v4412_v20  ;;  %v13608_v7 = vld [vmem:[#allocation39_spill] sm:$0xff]  ;;  %v5226_v27 = vrot.slane %v5041_v12, 1 }
 0x686   :  { %5209 = vrot.lane.b32.xlu1 %v5201_v40, %s6924_s12  ;;  %v4896_v43 = vadd.f32 %v13606_v11, %v4540_v35  ;;  %v4895_v34 = vadd.f32 %v13607_v25, %v4539_v41  ;;  %v4409_v41 = vmul.f32 %v4408_v47, %v13206_v4  ;;  %v4410_v4 = vmul.f32 %v4408_v47, %v12945_v23 }
 0x687   :  { %v11826_v31 = vpop.permute.xlu1 %1934  ;;  %v11828_v40 = vpop.permute.xlu0 %1710  ;;  %v5042_v1 = vadd.f32 %v11486_v24, %v4806_v38  ;;  %v13609_v24 = vld [vmem:[#allocation80_spill] sm:$0xff]  ;;  %v4314_v23 = vmul.f32 %v11653_v14, %v7755_v10  ;;  %v13615_v10 = vld [vmem:[#allocation45_spill] sm:$0xff] }
 0x688   :  { %v5091_v35 = vadd.f32 %v13609_v24, %v4895_v34  ;;  %v4803_v60 = vadd.f32 %v11545_v8, %v4409_v41  ;;  %v13614_v24 = vld [vmem:[#allocation72_spill] sm:$0xff] }
 0x689   :  { %5163 = vrot.lane.b32.xlu0 %v5155_v36, %s6926_s19  ;;  %v4188_v36 = vsel %vm177_vm0, %v4186_v56, %v4187_v59  ;;  %v5227_v38 = vrot.slane %v5042_v1, 1  ;;  %v13610_v56 = vld [vmem:[#allocation33_spill] sm:$0xff]  ;;  %v4313_v1 = vmul.f32 %v11653_v14, %v7851_v3 }
 0x68a   :  { %4163 = vrot.lane.b32.xlu1 %v4159_v22, %s6924_s12  ;;  %v5092_v22 = vadd.f32 %v13608_v7, %v4896_v43  ;;  %v3764_v43 = vadd.f32 %v13610_v56, %v3370_v53  ;;  %v3999_v7 = vadd.f32 %v11611_v49, %v3763_v42  ;;  %v5151_v46 = vrot.slane %v5091_v35, 2  ;;  %v13616_v42 = vld [vmem:[#allocation114_spill] sm:$0xff] }
 0x68b   :  { %v11842_v20 = vpop.permute.xlu1 %2043  ;;  %v11844_v33 = vpop.permute.xlu0 %1936  ;;  %v5228_v18 = vsel %vm177_vm0, %v5226_v27, %v5227_v38  ;;  %v4804_v27 = vadd.f32 %v11465_v6, %v4410_v4  ;;  %v5039_v39 = vadd.f32 %v11638_v5, %v4803_v60 }
 0x68c   :  { %v5152_v25 = vrot.slane %v5092_v22, 2  ;;  %v4183_v34 = vrot.slane %v3999_v7, 1 }
 0x68d   :  { %4015 = vrot.lane.b32.xlu0 %v4008_v30, %s6924_s12  ;;  %v4000_v30 = vadd.f32 %v11520_v45, %v3764_v43  ;;  %v13611_v45 = vld [vmem:[#allocation25_spill] sm:$0xff]  ;;  %v5040_v47 = vadd.f32 %v11531_v19, %v4804_v27  ;;  %v5223_v53 = vrot.slane %v5039_v39, 1 }
 0x68e   :  { %4193 = vrot.lane.b32.xlu1 %v4188_v36, %s6926_s19  ;;  %v4625_v3 = vadd.f32 %v13611_v45, %v4313_v1  ;;  %v13613_v36 = vld [vmem:[#allocation137_spill] sm:$0xff]  ;;  %v11937_v45 = vstv %s6461_s13 }
 0x68f   :  { %v11859_v12 = vpop.permute.xlu1 %3127  ;;  %v11861_v11 = vpop.permute.xlu0 %2973  ;;  %v4184_v8 = vrot.slane %v4000_v30, 1  ;;  %v4626_v5 = vadd.f32 %v13613_v36, %v4314_v23  ;;  %v5224_v19 = vrot.slane %v5040_v47, 1 }
 0x690   :  { %v4941_v35 = vadd.f32 %v13614_v24, %v4625_v3  ;;  %v2139_v3 = vmul.f32 %v11937_v45, %v13055_v52 }
 0x691   :  { %4123 = vrot.lane.b32.xlu0 %v4115_v13, %s6926_s19  ;;  %v5153_v13 = vsel %vm316_vm1, %v5151_v46, %v5152_v25  ;;  %v4942_v14 = vadd.f32 %v13615_v10, %v4626_v5  ;;  %v5225_v46 = vsel %vm177_vm0, %v5223_v53, %v5224_v19  ;;  %v11955_v53 = vstv %s1093_s15 }
 0x692   :  { %5233 = vrot.lane.b32.xlu1 %v5228_v18, %s6926_s19  ;;  %v5117_v41 = vadd.f32 %v13616_v42, %v4941_v35 }
 0x693   :  { %v11875_v37 = vpop.permute.xlu1 %2975  ;;  %v11877_v49 = vpop.permute.xlu0 %2753  ;;  %v5118_v7 = vadd.f32 %v11463_v48, %v4942_v14  ;;  %v13617_v48 = vrot.slane %v11743_v16, 2  ;;  %v13618_v16 = vrot.slane %v11802_v9, 2  ;;  %v13620_v9 = vld [vmem:[#allocation82_spill] sm:$0xff] }
 0x694   :  { %v5189_v18 = vadd.f32 %v11588_v62, %v5117_v41  ;;  %v2369_v36 = vadd.f32 %v13620_v9, %v2139_v3 }
 0x695   :  { %5157 = vrot.lane.b32.xlu0 %v5153_v13, %s6926_s19 }
 0x696   :  { %5235 = vrot.lane.b32.xlu1 %v5227_v38, %s6926_s19  ;;  %v4185_v38 = vsel %vm177_vm0, %v4183_v34, %v4184_v8  ;;  %v5197_v60 = vrot.slane %v5189_v18, 2  ;;  %v2765_v5 = vadd.f32 %v11720_v15, %v2369_v36 }
 0x697   :  { %v11888_v22 = vpop.permute.xlu1 %3395  ;;  %v11890_v6 = vpop.permute.xlu0 %3399 }
 0x698   :  { %13612 = vst [vmem:[#allocation97_spill] sm:$0xff] %v11888_v22 }
 0x699   :  { %5159 = vrot.lane.b32.xlu0 %v5152_v25, %s6926_s19  ;;  %v5190_v25 = vadd.f32 %v11505_v54, %v5118_v7 }
 0x69a   :  { %4189 = vrot.lane.b32.xlu1 %v4185_v38, %s6926_s19  ;;  %v13623_v38 = vld [vmem:[#allocation66_spill] sm:$0xff] }
 0x69b   :  { %v11899_v56 = vpop.permute.xlu1 %3795  ;;  %v11901_v43 = vpop.permute.xlu0 %1932  ;;  %v5198_v62 = vrot.slane %v5190_v25, 2  ;;  %v2987_v10 = vadd.f32 %v13623_v38, %v2765_v5  ;;  %v11984_v38 = vstv %s2125_s2 }
 0x69d   :  { %4119 = vrot.lane.b32.xlu0 %v4112_v57, %s6926_s19  ;;  %v5199_v32 = vsel %vm316_vm1, %v5197_v60, %v5198_v62  ;;  %v3091_v15 = vadd.f32 %v11772_v61, %v2987_v10  ;;  %vm5791_vm1 = vcmask 441344  }
 0x69e   :  { %5229 = vrot.lane.b32.xlu1 %v5225_v46, %s6926_s19  ;;  %v13624_v46 = vld [vmem:[#allocation30_spill] sm:$0xff] }
 0x69f   :  { %v11911_v4 = vpop.permute.xlu1 %4835  ;;  %v11913_v30 = vpop.permute.xlu0 %2041 }
 0x6a1   :  { %4169 = vrot.lane.b32.xlu0 %v13617_v48, %s6924_s12  ;;  %v11972_v48 = vstv %s6497_s16 }
 0x6a2   :  { %4191 = vrot.lane.b32.xlu1 %v4184_v8, %s6926_s19 }
 0x6a3   :  { %v11919_v1 = vpop.permute.xlu1 %2039  ;;  %v11921_v27 = vpop.permute.xlu0 %3077 }
 0x6a5   :  { %5203 = vrot.lane.b32.xlu0 %v5199_v32, %s6924_s12  ;;  %v5344_v32 = vlaneseq }
 0x6a7   :  { %v2090_v54 = vpop.permute.xlu1 %2089  ;;  %v11925_v57 = vpop.permute.xlu0 %4441  ;;  %v11979_v3 = vshrl.u32 %v5344_v32, 7  ;;  %v5348_v9 = vand.u32 127, %v5344_v32 }
 0x6a9   :  { %5205 = vrot.lane.b32.xlu0 %v5198_v62, %s6924_s12 }
 0x6ab   :  { %v3154_v34 = vpop.permute.xlu1 %3153  ;;  %v11928_v39 = vpop.permute.xlu0 %3083 }
 0x6ad   :  { %4165 = vrot.lane.b32.xlu0 %v13618_v16, %s6924_s12 }
 0x6af   :  { %v11933_v13 = vpop.permute.xlu1 %4837  ;;  %v11935_v23 = vpop.permute.xlu0 %3401 }
 0x6b0   :  { %13619 = vst [vmem:[#allocation90_spill] sm:$0xff] %v11933_v13 }
 0x6b1   :  { %4195 = vrot.lane.b32.xlu0 %v4187_v59, %s6926_s19  ;;  %v1098_v59 = vmul.f32 %v11955_v53, %v13622_v44 }
 0x6b3   :  { %v11946_v47 = vpop.permute.xlu0 %4435  ;;  %v1328_v41 = vadd.f32 %v11694_v28, %v1098_v59  ;;  %v5349_v59 = vmul.u32 2, %v5348_v9  ;;  %v11995_v9 = vstv %s6498_s14 }
 0x6b4   :  { %v11944_v8 = vpop.permute.xlu1 %3129 }
 0x6b5   :  { %5231 = vrot.lane.b32.xlu0 %v5224_v19, %s6926_s19  ;;  %s6535_s19 = sld [smem:[#allocation9 + $0x6c]]  ;;  %v3137_v19 = vadd.f32 %v11859_v12, %v3091_v15  ;;  %v1725_v25 = vadd.f32 %v13624_v46, %v1328_v41  ;;  %vm5350_vm7 = vcmp.eq.s32.totalorder %v11979_v3, %v5349_v59 }
 0x6b7   :  { %v11953_v35 = vpop.permute.xlu0 %2037  ;;  %v3163_v60 = vadd.f32 %v3154_v34, %v3137_v19  ;;  %v1947_v62 = vadd.f32 %v11747_v55, %v1725_v25  ;;  %v5346_v34 = vadd.s32 8, %v11979_v3  ;;  %v6928_v19 = vmov 0.0  }
 0x6b8   :  { %v11951_v24 = vpop.permute.xlu1 %3791 }
 0x6b9   :  { %13621 = vst [vmem:[#allocation38_spill] sm:$0xff] %v11951_v24  ;;  %v2052_v61 = vadd.f32 %v11842_v20, %v1947_v62  ;;  %v3169_v12 = vadd.f32 %v11972_v48, %v3163_v60  ;;  %vm5351_vm5 = vcmp.eq.s32.totalorder %v5346_v34, %v5349_v59 }
 0x6ba   :  { %v6573_v46 = vsel %vm5351_vm5, 1.0, %v6928_v19  ;;  %v3180_v19 = vmul.f32 %v11995_v9, %v13622_v44  ;;  %vm5800_vm5 = vcmask 588800  }
 0x6bb   :  { %v11962_v42 = vpop.permute.xlu0 %2087  ;;  %v11981_v36 = vstv %s6535_s19  ;;  %v2098_v5 = vadd.f32 %v2090_v54, %v2052_v61  ;;  %v3173_v41 = vmax.f32 %v3169_v12, 0.0  ;;  %6692 = vmatprep.subr.msk.mxu1 %vm5375_vm4, %v6573_v46  ;;  %6679 = vmatprep.subr.msk.mxu0 %vm5375_vm4, %v6573_v46  ;;  %s6943_s19 = smov 78  }
 0x6bc   :  { %v11960_v14 = vpop.permute.xlu1 %4017  ;;  %v4218_v20 = vmul.f32 %v11981_v36, %v8145_v2  ;;  %6693 = vmatpush3.msk.msra.mxu1 %vm5375_vm4, %v6573_v46  ;;  %6680 = vmatpush3.msk.msra.mxu0 %vm5375_vm4, %v6573_v46  ;;  %v4217_v24 = vmul.f32 %v11981_v36, %v8233_v21  ;;  %vm5797_vm4 = vcmask 539648  }
 0x6bd   :  { %v11991_v32 = vrot.slane %v3173_v41, 4  ;;  %v3178_v41 = vmul.f32 %v11995_v9, %v8145_v2 }
 0x6bf   :  { %v11969_v18 = vpop.permute.xlu0 %3123 }
 0x6c0   :  { %v11967_v7 = vpop.permute.xlu1 %5057 }
 0x6c3   :  { %v4438_v28 = vpop.permute.xlu0 %4437 }
 0x6c4   :  { %v11975_v16 = vpop.permute.xlu1 %2085  ;;  %v4448_v25 = vadd.f32 %v4438_v28, %v4218_v20  ;;  %v13627_v20 = vld [vmem:[#allocation32_spill] sm:$0xff] }
 0x6c7   :  { %v11986_v10 = vpop.permute.xlu0 %3079 }
 0x6c8   :  { %v2116_v55 = vpop.permute.xlu1 %2115 }
 0x6c9   :  { %v2124_v15 = vadd.f32 %v2116_v55, %v2098_v5  ;;  %v1097_v55 = vmul.f32 %v11955_v53, %v13055_v52 }
 0x6cb   :  { %v2130_v54 = vadd.f32 %v11984_v38, %v2124_v15  ;;  %v3398_v62 = vpop.permute.xlu0 %3397  ;;  %v1327_v15 = vadd.f32 %v13627_v20, %v1097_v55  ;;  %v6929_v20 = vmov 1.0  }
 0x6cc   :  { %v4834_v60 = vpop.permute.xlu1 %4833  ;;  %v3408_v46 = vadd.f32 %v3398_v62, %v3178_v41  ;;  %6694 = vmatprep.subr.msk.mxu1 %vm5350_vm7, %v6929_v20  ;;  %6681 = vmatprep.subr.msk.mxu0 %vm5350_vm7, %v6929_v20 }
 0x6cd   :  { %v2134_v61 = vmax.f32 %v2130_v54, 0.0  ;;  %v11993_v12 = vadd.f32 %v4834_v60, %v4448_v25  ;;  %v1095_v60 = vmul.f32 %v11955_v53, %v8233_v21  ;;  %6695 = vmatpush3.msk.msra.mxu1 %vm5350_vm7, %v6929_v20  ;;  %6682 = vmatpush3.msk.msra.mxu0 %vm5350_vm7, %v6929_v20  ;;  %vm5806_vm7 = vcmask 687104  }
 0x6cf   :  { %13625 = vst [vmem:[#allocation146_spill] sm:$0xff] %v11993_v12  ;;  %v11999_v5 = vsel %vm5259_vm6, %v2134_v61, %v11991_v32  ;;  %v3798_v34 = vpop.permute.xlu0 %3797  ;;  %v1724_v61 = vadd.f32 %v11774_v17, %v1327_v15  ;;  %v1325_v55 = vadd.f32 %v11749_v51, %v1095_v60  ;;  %v4447_v15 = vadd.f32 %v11946_v47, %v4217_v24 }
 0x6d0   :  { %13626 = vst [vmem:[#allocation31_spill] sm:$0xff] %v11999_v5  ;;  %5310 = vrot.lane.b32.xlu1 %v11999_v5, %s6924_s12  ;;  %v12003_v28 = vpop.permute.xlu1 %3125  ;;  %v3410_v5 = vadd.f32 %v11935_v23, %v3180_v19  ;;  %v2137_v51 = vmul.f32 %v11937_v45, %v8233_v21 }
 0x6d1   :  { %v1946_v62 = vadd.f32 %v11844_v33, %v1724_v61  ;;  %v1722_v17 = vadd.f32 %v11828_v40, %v1325_v55  ;;  %v2138_v33 = vmul.f32 %v11937_v45, %v8145_v2  ;;  %v2140_v40 = vmul.f32 %v11937_v45, %v13622_v44  ;;  %v13629_v55 = vld [vmem:[#allocation102_spill] sm:$0xff] }
 0x6d2   :  { %v3806_v41 = vadd.f32 %v3798_v34, %v3410_v5 }
 0x6d3   :  { %v4832_v54 = vpop.permute.xlu0 %4831  ;;  %v2051_v23 = vadd.f32 %v11913_v30, %v1946_v62  ;;  %v1944_v59 = vadd.f32 %v11901_v43, %v1722_v17  ;;  %v2370_v62 = vadd.f32 %v13629_v55, %v2140_v40 }
 0x6d4   :  { %v3794_v25 = vpop.permute.xlu1 %3793  ;;  %v4843_v34 = vadd.f32 %v4832_v54, %v4447_v15 }
 0x6d5   :  { %v12016_v12 = vadd.f32 %v3794_v25, %v3408_v46  ;;  %v2097_v5 = vadd.f32 %v11962_v42, %v2051_v23  ;;  %v13628_v46 = vld [vmem:[#allocation92_spill] sm:$0xff]  ;;  %v2049_v24 = vadd.f32 %v11953_v35, %v1944_v59  ;;  %v2766_v17 = vadd.f32 %v11696_v50, %v2370_v62 }
 0x6d6   :  { %v2367_v25 = vadd.f32 %v13628_v46, %v2137_v51 }
 0x6d7   :  { %v2084_v13 = vpop.permute.xlu0 %2083  ;;  %v2988_v15 = vadd.f32 %v11789_v29, %v2766_v17 }
 0x6d8   :  { %v4020_v22 = vpop.permute.xlu1 %4019  ;;  %v2763_v43 = vadd.f32 %v11791_v58, %v2367_v25  ;;  %v2095_v54 = vadd.f32 %v2084_v13, %v2049_v24  ;;  %v13630_v24 = vld [vmem:[#allocation106_spill] sm:$0xff] }
 0x6d9   :  { %v12026_v19 = vadd.f32 %v4020_v22, %v3806_v41  ;;  %v2368_v22 = vadd.f32 %v11806_v0, %v2138_v33 }
 0x6da   :  { %v2985_v0 = vadd.f32 %v11861_v11, %v2763_v43  ;;  %v3092_v11 = vadd.f32 %v11928_v39, %v2988_v15 }
 0x6db   :  { %v2114_v47 = vpop.permute.xlu0 %2113  ;;  %v2764_v42 = vadd.f32 %v11877_v49, %v2368_v22 }
 0x6dc   :  { %v5054_v30 = vpop.permute.xlu1 %5053  ;;  %v2123_v61 = vadd.f32 %v2114_v47, %v2097_v5  ;;  %v3089_v51 = vadd.f32 %v11921_v27, %v2985_v0 }
 0x6dd   :  { %v12039_v60 = vadd.f32 %v5054_v30, %v4843_v34  ;;  %v2986_v58 = vadd.f32 %v11875_v37, %v2764_v42  ;;  %v3138_v37 = vadd.f32 %v11944_v8, %v3092_v11 }
 0x6de   :  { %v12045_v41 = vadd.f32 %v11984_v38, %v2123_v61  ;;  %v3135_v33 = vadd.f32 %v11969_v18, %v3089_v51 }
 0x6df   :  { %v3150_v20 = vpop.permute.xlu0 %3149  ;;  %v3090_v29 = vadd.f32 %v11986_v10, %v2986_v58 }
 0x6e0   :  { %v2110_v45 = vpop.permute.xlu1 %2109  ;;  %v2133_v35 = vmax.f32 %v12045_v41, 0.0  ;;  %v3161_v5 = vadd.f32 %v3150_v20, %v3135_v33 }
 0x6e1   :  { %v2121_v23 = vadd.f32 %v2110_v45, %v2095_v54  ;;  %v3136_v59 = vadd.f32 %v12003_v28, %v3090_v29  ;;  %v1096_v28 = vmul.f32 %v11955_v53, %v8145_v2  ;;  %v3179_v53 = vmul.f32 %v11995_v9, %v13055_v52 }
 0x6e2   :  { %5308 = vrot.lane.b32.xlu0 %v2133_v35, %s6924_s12  ;;  %v3167_v39 = vadd.f32 %v11972_v48, %v3161_v5 }
 0x6e3   :  { %v12054_v49 = vadd.f32 %v11984_v38, %v2121_v23  ;;  %v12061_v50 = vpop.permute.xlu0 %5059  ;;  %v1326_v61 = vadd.f32 %v13630_v24, %v1096_v28  ;;  %v3409_v23 = vadd.f32 %v11890_v6, %v3179_v53  ;;  %v5246_v24 = vstv %s6571_s18 }
 0x6e4   :  { %v12059_v13 = vpop.permute.xlu1 %5055  ;;  %v3171_v55 = vmax.f32 %v3167_v39, 0.0  ;;  %v13632_v39 = vld [vmem:[#allocation97_spill] sm:$0xff] }
 0x6e5   :  { %v2131_v27 = vmax.f32 %v12054_v49, 0.0  ;;  %v1723_v54 = vadd.f32 %v11722_v26, %v1326_v61 }
 0x6e6   :  { %v5260_v20 = vrot.slane %v3171_v55, 4 }
 0x6e7   :  { %5296 = vrot.lane.b32.xlu0 %v2131_v27, %s6924_s12  ;;  %v3156_v46 = vpop.permute.xlu0 %3155  ;;  %v1945_v2 = vadd.f32 %v11826_v31, %v1723_v54  ;;  %v3805_v31 = vadd.f32 %v11899_v56, %v3409_v23 }
 0x6e8   :  { %v3152_v34 = vpop.permute.xlu1 %3151  ;;  %v3164_v40 = vadd.f32 %v3156_v46, %v3138_v37  ;;  %v4220_v37 = vmul.f32 %v11981_v36, %v13622_v44 }
 0x6e9   :  { %v3162_v25 = vadd.f32 %v3152_v34, %v3136_v59  ;;  %v2050_v26 = vadd.f32 %v11919_v1, %v1945_v2  ;;  %v4027_v1 = vadd.f32 %v11960_v14, %v3805_v31  ;;  %v13631_v14 = vld [vmem:[#allocation90_spill] sm:$0xff] }
 0x6ea   :  { %v3170_v10 = vadd.f32 %v11972_v48, %v3164_v40 }
 0x6eb   :  { %v3168_v18 = vadd.f32 %v11972_v48, %v3162_v25  ;;  %v4014_v8 = vpop.permute.xlu0 %4013  ;;  %v2096_v51 = vadd.f32 %v11975_v16, %v2050_v26  ;;  %v4450_v16 = vadd.f32 %v11925_v57, %v4220_v37 }
 0x6ec   :  { %v12075_v30 = vpop.permute.xlu1 %4117  ;;  %v3174_v22 = vmax.f32 %v3170_v10, 0.0 }
 0x6ed   :  { %v3172_v47 = vmax.f32 %v3168_v18, 0.0  ;;  %v4846_v25 = vadd.f32 %v13631_v14, %v4450_v16 }
 0x6ee   :  { %v5264_v62 = vrot.slane %v3174_v22, 4 }
 0x6ef   :  { %v4122_v42 = vpop.permute.xlu0 %4121  ;;  %v5261_v45 = vrot.slane %v3172_v47, 4  ;;  %v5068_v18 = vadd.f32 %v12061_v50, %v4846_v25 }
 0x6f0   :  { %v4168_v43 = vpop.permute.xlu1 %4167  ;;  %v12083_v48 = vsel %vm5259_vm6, %v11991_v32, %v5264_v62  ;;  %v4219_v32 = vmul.f32 %v11981_v36, %v13055_v52  ;;  %v4131_v59 = vadd.f32 %v4122_v42, %v4027_v1  ;;  %v12115_v36 = vstv %s6534_s17 }
 0x6f1   :  { %5312 = vrot.lane.b32.xlu0 %v12083_v48, %s6924_s12  ;;  %v12093_v15 = vsel %vm5259_vm6, %v5260_v20, %v5261_v45 }
 0x6f2   :  { %v4449_v6 = vadd.f32 %v11804_v63, %v4219_v32  ;;  %v3177_v63 = vmul.f32 %v11995_v9, %v8233_v21  ;;  %v4177_v40 = vadd.f32 %v4168_v43, %v4131_v59  ;;  %v13633_v21 = vld [vmem:[#allocation38_spill] sm:$0xff] }
 0x6f3   :  { %v5162_v0 = vpop.permute.xlu0 %5161 }
 0x6f4   :  { %v5208_v17 = vpop.permute.xlu1 %5207  ;;  %v4845_v29 = vadd.f32 %v11911_v4, %v4449_v6 }
 0x6f5   :  { %5300 = vrot.lane.b32.xlu0 %v12093_v15, %s6924_s12 }
 0x6f6   :  { %v5067_v34 = vadd.f32 %v11967_v7, %v4845_v29  ;;  %v3407_v7 = vadd.f32 %v13632_v39, %v3177_v63 }
 0x6f7   :  { %v2112_v11 = vpop.permute.xlu0 %2111 }
 0x6f8   :  { %v5210_v58 = vpop.permute.xlu1 %5209  ;;  %v2122_v33 = vadd.f32 %v2112_v11, %v2096_v51  ;;  %v5171_v4 = vadd.f32 %v5162_v0, %v5067_v34  ;;  %v3803_v9 = vadd.f32 %v13633_v21, %v3407_v7 }
 0x6fa   :  { %v2128_v52 = vadd.f32 %v11984_v38, %v2122_v33  ;;  %v5217_v22 = vadd.f32 %v5208_v17, %v5171_v4  ;;  %v4025_v62 = vadd.f32 %v4014_v8, %v3803_v9 }
 0x6fb   :  { %v5164_v56 = vpop.permute.xlu0 %5163 }
 0x6fc   :  { %v4164_v5 = vpop.permute.xlu1 %4163  ;;  %v2132_v46 = vmax.f32 %v2128_v52, 0.0  ;;  %v5172_v28 = vadd.f32 %v5164_v56, %v5068_v18  ;;  %v4129_v53 = vadd.f32 %v12075_v30, %v4025_v62 }
 0x6fe   :  { %v12113_v44 = vsel %vm5259_vm6, %v2132_v46, %v5260_v20  ;;  %v5218_v50 = vadd.f32 %v5210_v58, %v5172_v28  ;;  %v4175_v0 = vadd.f32 %v4164_v5, %v4129_v53 }
 0x6ff   :  { %5298 = vrot.lane.b32.xlu1 %v12113_v44, %s6924_s12  ;;  %v4016_v57 = vpop.permute.xlu0 %4015 }
 0x700   :  { %v4194_v38 = vpop.permute.xlu1 %4193  ;;  %v4026_v16 = vadd.f32 %v4016_v57, %v12016_v12 }
 0x701   :  { %v4203_v10 = vadd.f32 %v4194_v38, %v4177_v40  ;;  %v13634_v40 = vld [vmem:[#allocation146_spill] sm:$0xff] }
 0x703   :  { %v12123_v47 = vadd.f32 %v12115_v36, %v4203_v10  ;;  %v4124_v55 = vpop.permute.xlu0 %4123 }
 0x704   :  { %v5234_v61 = vpop.permute.xlu1 %5233  ;;  %v4132_v14 = vadd.f32 %v4124_v55, %v12026_v19 }
 0x705   :  { %v4213_v43 = vmax.f32 %v12123_v47, 0.0  ;;  %v5243_v42 = vadd.f32 %v5234_v61, %v5217_v22 }
 0x707   :  { %v5249_v54 = vadd.f32 %v5246_v24, %v5243_v42  ;;  %5314 = vrot.lane.b32.xlu1 %v4213_v43, %s6924_s12  ;;  %v5158_v2 = vpop.permute.xlu0 %5157 }
 0x708   :  { %v5236_v45 = vpop.permute.xlu1 %5235  ;;  %v5169_v29 = vadd.f32 %v5158_v2, %v12039_v60  ;;  %v5066_v60 = vadd.f32 %v12059_v13, %v13634_v40 }
 0x709   :  { %v5244_v20 = vadd.f32 %v5236_v45, %v5218_v50  ;;  %v5253_v17 = vmax.f32 %v5249_v54, 0.0 }
 0x70b   :  { %v5250_v23 = vadd.f32 %v5246_v24, %v5244_v20  ;;  %v5160_v32 = vpop.permute.xlu0 %5159  ;;  %v5277_v51 = vrot.slane %v5253_v17, 4  ;;  %v13635_v20 = vld [vmem:[#allocation31_spill] sm:$0xff] }
 0x70c   :  { %v4190_v26 = vpop.permute.xlu1 %4189  ;;  %v5170_v10 = vadd.f32 %v5160_v32, %v5066_v60 }
 0x70d   :  { %v5254_v8 = vmax.f32 %v5250_v23, 0.0  ;;  %v4201_v31 = vadd.f32 %v4190_v26, %v4175_v0 }
 0x70f   :  { %v5278_v11 = vrot.slane %v5254_v8, 4  ;;  %v12131_v6 = vadd.f32 %v12115_v36, %v4201_v31  ;;  %v4120_v1 = vpop.permute.xlu0 %4119 }
 0x710   :  { %v5230_v52 = vpop.permute.xlu1 %5229  ;;  %v4130_v34 = vadd.f32 %v4120_v1, %v4026_v16 }
 0x711   :  { %v4211_v58 = vmax.f32 %v12131_v6, 0.0  ;;  %v12135_v33 = vsel %vm5259_vm6, %v5277_v51, %v5278_v11 }
 0x713   :  { %5302 = vrot.lane.b32.xlu1 %v4211_v58, %s6924_s12  ;;  %v4170_v30 = vpop.permute.xlu0 %4169 }
 0x714   :  { %v4192_v4 = vpop.permute.xlu1 %4191  ;;  %v4178_v38 = vadd.f32 %v4170_v30, %v4132_v14 }
 0x717   :  { %5318 = vrot.lane.b32.xlu1 %v12135_v33, %s6924_s12  ;;  %v5204_v37 = vpop.permute.xlu0 %5203 }
 0x718   :  { %v5215_v59 = vadd.f32 %v5204_v37, %v5169_v29 }
 0x71a   :  { %v5241_v5 = vadd.f32 %v5230_v52, %v5215_v59 }
 0x71b   :  { %v5206_v56 = vpop.permute.xlu0 %5205 }
 0x71c   :  { %v5247_v46 = vadd.f32 %v5246_v24, %v5241_v5  ;;  %v5216_v12 = vadd.f32 %v5206_v56, %v5170_v10 }
 0x71e   :  { %v5251_v39 = vmax.f32 %v5247_v46, 0.0 }
 0x71f   :  { %v4166_v63 = vpop.permute.xlu0 %4165 }
 0x720   :  { %v4176_v25 = vadd.f32 %v4166_v63, %v4130_v34  ;;  %v5274_v28 = vrot.slane %v5251_v39, 4 }
 0x722   :  { %v4202_v7 = vadd.f32 %v4192_v4, %v4176_v25 }
 0x723   :  { %v4196_v18 = vpop.permute.xlu0 %4195 }
 0x724   :  { %v4208_v21 = vadd.f32 %v12115_v36, %v4202_v7  ;;  %v4204_v9 = vadd.f32 %v4196_v18, %v4178_v38 }
 0x726   :  { %v4212_v57 = vmax.f32 %v4208_v21, 0.0  ;;  %v4210_v22 = vadd.f32 %v12115_v36, %v4204_v9 }
 0x727   :  { %v5232_v61 = vpop.permute.xlu0 %5231 }
 0x728   :  { %v4214_v19 = vmax.f32 %v4210_v22, 0.0  ;;  %v5242_v55 = vadd.f32 %v5232_v61, %v5216_v12  ;;  %v5286_v62 = vsel %vm5259_vm6, %v4212_v57, %v5274_v28 }
 0x72a   :  { %v5248_v42 = vadd.f32 %v5246_v24, %v5242_v55  ;;  %v5287_v13 = vsel %vm5259_vm6, %v4214_v19, %v5277_v51 }
 0x72b   :  { %5316 = vrot.lane.b32.xlu0 %v5287_v13, %s6924_s12 }
 0x72c   :  { %v5252_v54 = vmax.f32 %v5248_v42, 0.0 }
 0x72e   :  { %v5275_v50 = vrot.slane %v5252_v54, 4 }
 0x72f   :  { %5304 = vrot.lane.b32.xlu0 %v5286_v62, %s6924_s12 }
 0x730   :  { %v5276_v45 = vsel %vm5259_vm6, %v5274_v28, %v5275_v50  ;;  %vm5803_vm6 = vcmask 637952  }
 0x731   :  { %5306 = vrot.lane.b32.xlu1 %v5276_v45, %s6924_s12  ;;  %s6930_s12 = smov 12  }
 0x742   :  { %v5311_v2 = vpop.permute.xlu1 %5310 }
 0x743   :  { %v5339_v24 = vmax.f32 %v13635_v20, %v5311_v2 }
 0x754   :  { %v5309_v36 = vpop.permute.xlu0 %5308 }
 0x755   :  { %v5338_v53 = vmax.f32 %v2133_v35, %v5309_v36 }
 0x757   :  { %6696 = vmatprep.mubr.msk.f32.mxu1 %vm5356_vm8, %v5338_v53 }
 0x758   :  { %6697 = vmatmul.mubr.msk.f32.vlgmr.msra.gmra.mxu1 %vm5356_vm8, %v5339_v24 }
 0x759   :  { %v5297_v0 = vpop.permute.xlu0 %5296 }
 0x75a   :  { %v5332_v17 = vmax.f32 %v2131_v27, %v5297_v0 }
 0x75c   :  { %6683 = vmatprep.mubr.msk.f32.mxu0 %vm5356_vm8, %v5332_v17 }
 0x763   :  { %v5313_v23 = vpop.permute.xlu0 %5312 }
 0x764   :  { %v5340_v26 = vmax.f32 %v12083_v48, %v5313_v23 }
 0x766   :  { %6699 = vmatprep.mubr.msk.f32.mxu1 %vm5356_vm8, %v5340_v26 }
 0x767   :  { %v5301_v32 = vpop.permute.xlu0 %5300 }
 0x768   :  { %v5334_v8 = vmax.f32 %v12093_v15, %v5301_v32 }
 0x771   :  { %v5299_v41 = vpop.permute.xlu1 %5298 }
 0x772   :  { %v5333_v35 = vmax.f32 %v12113_v44, %v5299_v41 }
 0x774   :  { %6684 = vmatmul.mubr.msk.f32.vlgmr.msra.gmra.mxu0 %vm5356_vm8, %v5333_v35 }
 0x775   :  { %6686 = vmatprep.mubr.msk.f32.mxu0 %vm5356_vm8, %v5334_v8 }
 0x779   :  { %v5315_v31 = vpop.permute.xlu1 %5314 }
 0x77a   :  { %v5341_v49 = vmax.f32 %v4213_v43, %v5315_v31 }
 0x77c   :  { %6700 = vmatmul.mubr.msk.f32.gmra.mxu1 %vm5356_vm8, %v5341_v49 }
 0x785   :  { %v5303_v27 = vpop.permute.xlu1 %5302 }
 0x786   :  { %v5335_v48 = vmax.f32 %v4211_v58, %v5303_v27 }
 0x788   :  { %6687 = vmatmul.mubr.msk.f32.gmra.mxu0 %vm5356_vm8, %v5335_v48 }
 0x789   :  { %v5319_v51 = vpop.permute.xlu1 %5318 }
 0x78a   :  { %v5343_v15 = vmax.f32 %v12135_v33, %v5319_v51 }
 0x79d   :  { %v5317_v44 = vpop.permute.xlu0 %5316 }
 0x79e   :  { %v5342_v11 = vmax.f32 %v5287_v13, %v5317_v44 }
 0x7a0   :  { %6702 = vmatprep.mubr.msk.f32.mxu1 %vm5356_vm8, %v5342_v11 }
 0x7a1   :  { %6703 = vmatmul.mubr.msk.f32.gmra.mxu1 %vm5356_vm8, %v5343_v15  ;;  %v5305_v1 = vpop.permute.xlu0 %5304 }
 0x7a2   :  { %v5336_v47 = vmax.f32 %v5286_v62, %v5305_v1 }
 0x7a3   :  { %v5307_v43 = vpop.permute.xlu1 %5306 }
 0x7a4   :  { %v5337_v30 = vmax.f32 %v5276_v45, %v5307_v43  ;;  %6689 = vmatprep.mubr.msk.f32.mxu0 %vm5356_vm8, %v5336_v47 }
 0x7a6   :  { %6690 = vmatmul.mubr.msk.f32.gmra.mxu0 %vm5356_vm8, %v5337_v30  ;;  %vm5809_vm8 = vcmask 736256  }
 0x818   :  { %v12180_v6 = vpop.f32.mrf.mxu1 }
 0x819   :  { %v5611_v62 = vrot.slane %v12180_v6, 1 }
 0x81a   :  { %v5558_v58 = vpop.f32.mrf.mxu1 }
 0x81b   :  { %v5610_v61 = vrot.slane %v5558_v58, 1 }
 0x81d   :  { %v5612_v54 = vsel %vm177_vm0, %v5610_v61, %v5611_v62  ;;  %v5959_v61 = vld [vmem:[%s12750_s5 + $0x1c8] sm:$0xff] }
 0x81e   :  { %v12233_v53 = vmax.f32 %v5558_v58, %v5612_v54 }
 0x820   :  { %v5656_v32 = vrot.slane %v12233_v53, 4  ;;  %v5648_v35 = vrot.slane %v12233_v53, 2  ;;  %v5664_v44 = vrot.slane %v12233_v53, 6 }
 0x834   :  { %v12182_v29 = vpop.f32.mrf.mxu0 }
 0x835   :  { %v5600_v19 = vrot.slane %v12182_v29, 1 }
 0x836   :  { %v5445_v33 = vpop.f32.mrf.mxu0 }
 0x837   :  { %v5599_v57 = vrot.slane %v5445_v33, 1 }
 0x839   :  { %v5601_v42 = vsel %vm177_vm0, %v5599_v57, %v5600_v19 }
 0x83a   :  { %v12230_v50 = vmax.f32 %v5445_v33, %v5601_v42  ;;  %v5958_v42 = vld [vmem:[%s12750_s5 + $0x1c0] sm:$0xff] }
 0x83c   :  { %v12184_v37 = vpop.f32.mrf.mxu1  ;;  %v5655_v0 = vrot.slane %v12230_v50, 4  ;;  %v5647_v26 = vrot.slane %v12230_v50, 2  ;;  %v5663_v27 = vrot.slane %v12230_v50, 6 }
 0x83d   :  { %v5615_v1 = vrot.slane %v12184_v37, 1 }
 0x83e   :  { %v12186_v59 = vpop.f32.mrf.mxu1  ;;  %v6740_v31 = vpack.i.bf16 %v5655_v0, %v5656_v32  ;;  %v6735_v49 = vpack.i.bf16 %v5647_v26, %v5648_v35  ;;  %v6745_v43 = vpack.i.bf16 %v5663_v27, %v5664_v44  ;;  %v5951_v26 = vld [vmem:[%s12750_s5 + $0x188] sm:$0xff]  ;;  %v5953_v35 = vld [vmem:[%s12750_s5 + $0x198] sm:$0xff]  ;;  %v5948_v44 = vld [vmem:[%s12750_s5 + $0x170] sm:$0xff] }
 0x83f   :  { %v5613_v20 = vrot.slane %v12186_v59, 1 }
 0x841   :  { %v5614_v41 = vsel %vm177_vm0, %v5611_v62, %v5613_v20 }
 0x842   :  { %v5640_v48 = vmax.f32 %v12180_v6, %v5614_v41  ;;  %v5616_v6 = vsel %vm177_vm0, %v5613_v20, %v5615_v1  ;;  %v5957_v20 = vld [vmem:[%s12750_s5 + $0x1b8] sm:$0xff] }
 0x844   :  { %v5688_v58 = vrot.slane %v5640_v48, 4 }
 0x848   :  { %v12188_v52 = vpop.f32.mrf.mxu0 }
 0x849   :  { %v5604_v51 = vrot.slane %v12188_v52, 1 }
 0x84a   :  { %v12192_v16 = vpop.f32.mrf.mxu0 }
 0x84b   :  { %v5602_v2 = vrot.slane %v12192_v16, 1 }
 0x84d   :  { %v5603_v17 = vsel %vm177_vm0, %v5600_v19, %v5602_v2  ;;  %v5605_v47 = vsel %vm177_vm0, %v5602_v2, %v5604_v51  ;;  %v5961_v19 = vld [vmem:[%s12750_s5 + $0x1d8] sm:$0xff]  ;;  %v5955_v2 = vld [vmem:[%s12750_s5 + $0x1a8] sm:$0xff] }
 0x84e   :  { %v5634_v8 = vmax.f32 %v12182_v29, %v5603_v17  ;;  %v5680_v29 = vrot.slane %v5640_v48, 2  ;;  %v5635_v33 = vmax.f32 %v12192_v16, %v5605_v47  ;;  %v5956_v17 = vld [vmem:[%s12750_s5 + $0x1b0] sm:$0xff]  ;;  %v5942_v47 = vld [vmem:[%s12750_s5 + $0x140] sm:$0xff] }
 0x850   :  { %v6750_v11 = vpack.i.bf16 %v5634_v8, %v5640_v48  ;;  %v5687_v15 = vrot.slane %v5634_v8, 4  ;;  %v5679_v30 = vrot.slane %v5634_v8, 2 }
 0x861   :  { %v6704_v5 = vpop.f32.mrf.mxu1 }
 0x862   :  { %v5619_v34 = vrot.slane %v6704_v5, 1 }
 0x863   :  { %v12190_v56 = vpop.f32.mrf.mxu1 }
 0x864   :  { %v5617_v46 = vrot.slane %v12190_v56, 1  ;;  %v5644_v9 = vmax.f32 %v6704_v5, %v5619_v34  ;;  %v6760_v5 = vpack.i.bf16 %v5687_v15, %v5688_v58  ;;  %v5943_v15 = vld [vmem:[%s12750_s5 + $0x148] sm:$0xff]  ;;  %v5941_v58 = vld [vmem:[%s12750_s5 + $0x138] sm:$0xff] }
 0x866   :  { %v5620_v63 = vsel %vm177_vm0, %v5617_v46, %v5619_v34  ;;  %v6691_v14 = vpop.f32.mrf.mxu0  ;;  %v5847_v12 = vrot.slane %v5644_v9, 2  ;;  %v5855_v55 = vrot.slane %v5644_v9, 4  ;;  %v5863_v45 = vrot.slane %v5644_v9, 6 }
 0x867   :  { %v12199_v25 = vmax.f32 %v12190_v56, %v5620_v63  ;;  %v5608_v40 = vrot.slane %v6691_v14, 1  ;;  %v6755_v34 = vpack.i.bf16 %v5679_v30, %v5680_v29  ;;  %v5695_v63 = vrot.slane %v5634_v8, 6  ;;  %v5965_v56 = vld [vmem:[%s12750_s5 + $0x1f8] sm:$0xff]  ;;  %v5950_v8 = vld [vmem:[%s12750_s5 + $0x180] sm:$0xff]  ;;  %v5939_v30 = vld [vmem:[%s12750_s5 + $0x128] sm:$0xff] }
 0x868   :  { %v12201_v4 = vpop.f32.mrf.mxu0  ;;  %6071 = vmatprep.subr.mxu1 %v5965_v56  ;;  %v5940_v29 = vld [vmem:[%s12750_s5 + $0x130] sm:$0xff]  ;;  %v5915_v56 = vld [vmem:[%s12750_s5 + $0x68] sm:$0xff] }
 0x869   :  { %v5606_v60 = vrot.slane %v12201_v4, 1  ;;  %v5823_v38 = vrot.slane %v12199_v25, 4  ;;  %v5815_v39 = vrot.slane %v12199_v25, 2  ;;  %v5831_v10 = vrot.slane %v12199_v25, 6 }
 0x86a   :  { %v5638_v13 = vmax.f32 %v6691_v14, %v5608_v40  ;;  %v5641_v14 = vmax.f32 %v12186_v59, %v5616_v6  ;;  %v5618_v59 = vsel %vm177_vm0, %v5615_v1, %v5617_v46  ;;  %v5945_v1 = vld [vmem:[%s12750_s5 + $0x158] sm:$0xff]  ;;  %v5938_v6 = vld [vmem:[%s12750_s5 + $0x120] sm:$0xff] }
 0x86b   :  { %v5609_v7 = vsel %vm177_vm0, %v5606_v60, %v5608_v40  ;;  %5826 = vrot.lane.b32.xlu1 %v5823_v38, %s6930_s12  ;;  %5818 = vrot.lane.b32.xlu0 %v5815_v39, %s6931_s0  ;;  %v5696_v40 = vrot.slane %v5640_v48, 6  ;;  %v5719_v39 = vrot.slane %v5635_v33, 4  ;;  %v5949_v48 = vld [vmem:[%s12750_s5 + $0x178] sm:$0xff] }
 0x86c   :  { %v12212_v18 = vmax.f32 %v12201_v4, %v5609_v7  ;;  %v5846_v36 = vrot.slane %v5638_v13, 2  ;;  %v5862_v24 = vrot.slane %v5638_v13, 6  ;;  %v5854_v23 = vrot.slane %v5638_v13, 4 }
 0x86d   :  { %v6770_v38 = vpack.i.bf16 %v5635_v33, %v5641_v14  ;;  %v5607_v7 = vsel %vm177_vm0, %v5604_v51, %v5606_v60  ;;  %v5720_v16 = vrot.slane %v5641_v14, 4  ;;  %v5727_v4 = vrot.slane %v5635_v33, 6  ;;  %v5946_v51 = vld [vmem:[%s12750_s5 + $0x160] sm:$0xff] }
 0x86e   :  { %v5814_v21 = vrot.slane %v12212_v18, 2  ;;  %v5822_v28 = vrot.slane %v12212_v18, 4  ;;  %v5830_v22 = vrot.slane %v12212_v18, 6  ;;  %v5642_v60 = vmax.f32 %v12184_v37, %v5618_v59  ;;  %v5964_v37 = vld [vmem:[%s12750_s5 + $0x1f0] sm:$0xff]  ;;  %v5923_v59 = vld [vmem:[%s12750_s5 + $0xa8] sm:$0xff] }
 0x86f   :  { %5834 = vrot.lane.b32.xlu1 %v5831_v10, %s6932_s20  ;;  %v6765_v10 = vpack.i.bf16 %v5695_v63, %v5696_v40  ;;  %v5728_v46 = vrot.slane %v5641_v14, 6  ;;  %6072 = vmatpush1.msra.mxu1 %v5964_v37  ;;  %v5936_v63 = vld [vmem:[%s12750_s5 + $0x110] sm:$0xff]  ;;  %v5933_v40 = vld [vmem:[%s12750_s5 + $0xf8] sm:$0xff]  ;;  %vm5788_vm0 = vcmask 392192  }
 0x870   :  { %5816 = vrot.lane.b32.xlu0 %v5814_v21, %s6931_s0  ;;  %v5711_v21 = vrot.slane %v5635_v33, 2  ;;  %6073 = vmatprep.subr.mxu1 %v5961_v19  ;;  %v5744_v0 = vrot.slane %v5642_v60, 2  ;;  %v5760_v27 = vrot.slane %v5642_v60, 6  ;;  %v5935_v33 = vld [vmem:[%s12750_s5 + $0x108] sm:$0xff]  ;;  %v5916_v37 = vld [vmem:[%s12750_s5 + $0x70] sm:$0xff]  ;;  %v5913_v19 = vld [vmem:[%s12750_s5 + $0x58] sm:$0xff] }
 0x873   :  { %5842 = vrot.lane.b32.xlu1 %v5644_v9, %s6933_s21  ;;  %v5712_v9 = vrot.slane %v5641_v14, 2  ;;  %v5931_v14 = vld [vmem:[%s12750_s5 + $0xe8] sm:$0xff] }
 0x874   :  { %5824 = vrot.lane.b32.xlu0 %v5822_v28, %s6930_s12  ;;  %v12270_v28 = vmax.f32 %v12188_v52, %v5607_v7  ;;  %v5962_v52 = vld [vmem:[%s12750_s5 + $0x1e0] sm:$0xff]  ;;  %v5927_v7 = vld [vmem:[%s12750_s5 + $0xc8] sm:$0xff] }
 0x875   :  { %v6775_v57 = vpack.i.bf16 %v5711_v21, %v5712_v9  ;;  %v5926_v21 = vld [vmem:[%s12750_s5 + $0xc0] sm:$0xff]  ;;  %v5925_v9 = vld [vmem:[%s12750_s5 + $0xb8] sm:$0xff] }
 0x876   :  { %v5751_v62 = vrot.slane %v12270_v28, 4  ;;  %v5743_v54 = vrot.slane %v12270_v28, 2  ;;  %v5759_v41 = vrot.slane %v12270_v28, 6 }
 0x877   :  { %5850 = vrot.lane.b32.xlu1 %v5847_v12, %s6934_s22  ;;  %v6780_v12 = vpack.i.bf16 %v5719_v39, %v5720_v16  ;;  %v5932_v39 = vld [vmem:[%s12750_s5 + $0xf0] sm:$0xff] }
 0x878   :  { %5832 = vrot.lane.b32.xlu0 %v5830_v22, %s6932_s20  ;;  %v5963_v22 = vld [vmem:[%s12750_s5 + $0x1e8] sm:$0xff]  ;;  %v6795_v32 = vpack.i.bf16 %v5743_v54, %v5744_v0  ;;  %v5928_v16 = vld [vmem:[%s12750_s5 + $0xd0] sm:$0xff]  ;;  %v5906_v0 = vld [vmem:[%s12750_s5 + $0x20] sm:$0xff] }
 0x879   :  { %6000 = vmatprep.subr.mxu0 %v5963_v22  ;;  %v5920_v22 = vld [vmem:[%s12750_s5 + $0x90] sm:$0xff] }
 0x87a   :  { %6001 = vmatpush1.msra.mxu0 %v5962_v52  ;;  %v5917_v52 = vld [vmem:[%s12750_s5 + $0x78] sm:$0xff] }
 0x87b   :  { %5858 = vrot.lane.b32.xlu1 %v5855_v55, %s6935_s23  ;;  %v6790_v55 = vpack.i.bf16 %v12270_v28, %v5642_v60  ;;  %6002 = vmatprep.subr.mxu0 %v5959_v61  ;;  %v5922_v28 = vld [vmem:[%s12750_s5 + $0xa0] sm:$0xff]  ;;  %v5911_v61 = vld [vmem:[%s12750_s5 + $0x48] sm:$0xff] }
 0x87c   :  { %5840 = vrot.lane.b32.xlu0 %v5638_v13, %s6933_s21  ;;  %v6785_v13 = vpack.i.bf16 %v5727_v4, %v5728_v46  ;;  %6003 = vmatpush1.msra.mxu0 %v5958_v42  ;;  %v5921_v4 = vld [vmem:[%s12750_s5 + $0x98] sm:$0xff]  ;;  %v5914_v46 = vld [vmem:[%s12750_s5 + $0x60] sm:$0xff] }
 0x87d   :  { %6004 = vmatprep.subr.mxu0 %v5955_v2 }
 0x87f   :  { %5866 = vrot.lane.b32.xlu1 %v5863_v45, %s6936_s24  ;;  %v5960_v45 = vld [vmem:[%s12750_s5 + $0x1d0] sm:$0xff] }
 0x880   :  { %5848 = vrot.lane.b32.xlu0 %v5846_v36, %s6934_s22  ;;  %v5752_v36 = vrot.slane %v5642_v60, 4  ;;  %6074 = vmatpush1.msra.mxu1 %v5960_v45  ;;  %v5918_v60 = vld [vmem:[%s12750_s5 + $0x80] sm:$0xff] }
 0x881   :  { %6075 = vmatprep.subr.mxu1 %v5957_v20  ;;  %v5907_v20 = vld [vmem:[%s12750_s5 + $0x28] sm:$0xff] }
 0x882   :  { %6076 = vmatpush1.msra.mxu1 %v5956_v17  ;;  %v5908_v17 = vld [vmem:[%s12750_s5 + $0x30] sm:$0xff] }
 0x883   :  { %5864 = vrot.lane.b32.xlu1 %v5862_v24, %s6936_s24  ;;  %v5954_v24 = vld [vmem:[%s12750_s5 + $0x1a0] sm:$0xff]  ;;  %6077 = vmatprep.subr.mxu1 %v5953_v35  ;;  %v5904_v35 = vld [vmem:[%s12750_s5 + $0x10] sm:$0xff] }
 0x884   :  { %5856 = vrot.lane.b32.xlu0 %v5854_v23, %s6935_s23  ;;  %v6800_v23 = vpack.i.bf16 %v5751_v62, %v5752_v36  ;;  %6005 = vmatpush1.msra.mxu0 %v5954_v24  ;;  %v5912_v62 = vld [vmem:[%s12750_s5 + $0x50] sm:$0xff]  ;;  %v5909_v24 = vld [vmem:[%s12750_s5 + $0x38] sm:$0xff] }
 0x885   :  { %6006 = vmatprep.subr.mxu0 %v5951_v26  ;;  %v5905_v26 = vld [vmem:[%s12750_s5 + $0x18] sm:$0xff] }
 0x886   :  { %6007 = vmatpush1.msra.mxu0 %v5950_v8  ;;  %v5971_v8 = vld [vmem:[%s12750_s5 + $0x228] sm:$0xff] }
 0x887   :  { %6741 = vrot.lane.b32.xlu1 %v6740_v31, %s6930_s12  ;;  %v5952_v31 = vld [vmem:[%s12750_s5 + $0x190] sm:$0xff] }
 0x888   :  { %6736 = vrot.lane.b32.xlu0 %v6735_v49, %s6931_s0  ;;  %v5947_v49 = vld [vmem:[%s12750_s5 + $0x168] sm:$0xff]  ;;  %6078 = vmatpush1.msra.mxu1 %v5952_v31 }
 0x889   :  { %6008 = vmatprep.subr.mxu0 %v5947_v49  ;;  %6079 = vmatprep.subr.mxu1 %v5949_v48  ;;  %v5970_v48 = vld [vmem:[%s12750_s5 + $0x220] sm:$0xff] }
 0x88a   :  { %6009 = vmatpush1.msra.mxu0 %v5946_v51  ;;  %6080 = vmatpush1.msra.mxu1 %v5948_v44  ;;  %v5972_v51 = vld [vmem:[%s12750_s5 + $0x230] sm:$0xff] }
 0x88b   :  { %6751 = vrot.lane.b32.xlu1 %v6750_v11, %s6933_s21  ;;  %v6805_v11 = vpack.i.bf16 %v5759_v41, %v5760_v27  ;;  %6010 = vmatprep.subr.mxu0 %v5943_v15  ;;  %v5902_v41 = vld [vmem:[%s12750_s5] sm:$0xff]  ;;  %v5973_v27 = vld [vmem:[%s12750_s5 + $0x238] sm:$0xff] }
 0x88c   :  { %6746 = vrot.lane.b32.xlu0 %v6745_v43, %s6932_s20  ;;  %s6940_s20 = smov 72   ;;  %v5944_v43 = vld [vmem:[%s12750_s5 + $0x150] sm:$0xff]  ;;  %6081 = vmatprep.subr.mxu1 %v5945_v1  ;;  %v5969_v15 = vld [vmem:[%s12750_s5 + $0x218] sm:$0xff]  ;;  %v5966_v1 = vld [vmem:[%s12750_s5 + $0x200] sm:$0xff] }
 0x88d   :  { %6011 = vmatpush1.msra.mxu0 %v5942_v47  ;;  %6082 = vmatpush1.msra.mxu1 %v5944_v43 }
 0x88e   :  { %6012 = vmatprep.subr.mxu0 %v5939_v30  ;;  %6083 = vmatprep.subr.mxu1 %v5941_v58  ;;  %v5968_v30 = vld [vmem:[%s12750_s5 + $0x210] sm:$0xff]  ;;  %v6177_v58 = vld [vmem:[%s12752_s7 + $0xf8] sm:$0xff] }
 0x88f   :  { %6761 = vrot.lane.b32.xlu1 %v6760_v5, %s6935_s23  ;;  %v5937_v5 = vld [vmem:[%s12750_s5 + $0x118] sm:$0xff]  ;;  %6013 = vmatpush1.msra.mxu0 %v5938_v6 }
 0x890   :  { %6756 = vrot.lane.b32.xlu0 %v6755_v34, %s6934_s22  ;;  %v5934_v34 = vld [vmem:[%s12750_s5 + $0x100] sm:$0xff]  ;;  %6084 = vmatpush1.msra.mxu1 %v5940_v29  ;;  %v6209_v6 = vld [vmem:[%s12752_s7 + $0x1f8] sm:$0xff] }
 0x891   :  { %6014 = vmatprep.subr.mxu0 %v5935_v33  ;;  %6085 = vmatprep.subr.mxu1 %v5937_v5 }
 0x892   :  { %6015 = vmatpush1.msra.mxu0 %v5934_v34  ;;  %6086 = vmatpush1.msra.mxu1 %v5936_v63 }
 0x893   :  { %6771 = vrot.lane.b32.xlu1 %v6770_v38, %s6937_s25  ;;  %s6941_s25 = smov 66   ;;  %v5930_v38 = vld [vmem:[%s12750_s5 + $0xe0] sm:$0xff]  ;;  %6016 = vmatprep.subr.mxu0 %v5931_v14 }
 0x894   :  { %6766 = vrot.lane.b32.xlu0 %v6765_v10, %s6936_s24  ;;  %v5929_v10 = vld [vmem:[%s12750_s5 + $0xd8] sm:$0xff]  ;;  %6087 = vmatprep.subr.mxu1 %v5933_v40 }
 0x895   :  { %6017 = vmatpush1.msra.mxu0 %v5930_v38  ;;  %6088 = vmatpush1.msra.mxu1 %v5932_v39 }
 0x896   :  { %6018 = vmatprep.subr.mxu0 %v5927_v7  ;;  %6089 = vmatprep.subr.mxu1 %v5929_v10 }
 0x897   :  { %6781 = vrot.lane.b32.xlu1 %v6780_v12, %s6938_s26  ;;  %v5924_v12 = vld [vmem:[%s12750_s5 + $0xb0] sm:$0xff]  ;;  %6019 = vmatpush1.msra.mxu0 %v5926_v21 }
 0x898   :  { %6776 = vrot.lane.b32.xlu0 %v6775_v57, %s6939_s10  ;;  %6090 = vmatpush1.msra.mxu1 %v5928_v16  ;;  %v5919_v57 = vld [vmem:[%s12750_s5 + $0x88] sm:$0xff] }
 0x899   :  { %6020 = vmatprep.subr.mxu0 %v5923_v59  ;;  %6091 = vmatprep.subr.mxu1 %v5925_v9 }
 0x89a   :  { %6021 = vmatpush1.msra.mxu0 %v5922_v28  ;;  %6092 = vmatpush1.msra.mxu1 %v5924_v12 }
 0x89b   :  { %6791 = vrot.lane.b32.xlu1 %v6790_v55, %s6940_s20  ;;  %6022 = vmatprep.subr.mxu0 %v5919_v57  ;;  %v5910_v55 = vld [vmem:[%s12750_s5 + $0x40] sm:$0xff] }
 0x89c   :  { %6786 = vrot.lane.b32.xlu0 %v6785_v13, %s6941_s25  ;;  %6093 = vmatprep.subr.mxu1 %v5921_v4 }
 0x89d   :  { %6023 = vmatpush1.msra.mxu0 %v5918_v60  ;;  %6094 = vmatpush1.msra.mxu1 %v5920_v22 }
 0x89e   :  { %6024 = vmatprep.subr.mxu0 %v5915_v56  ;;  %6095 = vmatprep.subr.mxu1 %v5917_v52 }
 0x89f   :  { %6801 = vrot.lane.b32.xlu1 %v6800_v23, %s6942_s4  ;;  %6025 = vmatpush1.msra.mxu0 %v5914_v46  ;;  %v5903_v23 = vld [vmem:[%s12750_s5 + $0x8] sm:$0xff] }
 0x8a0   :  { %6796 = vrot.lane.b32.xlu0 %v6795_v32, %s6943_s19  ;;  %6096 = vmatpush1.msra.mxu1 %v5916_v37 }
 0x8a1   :  { %6026 = vmatprep.subr.mxu0 %v5911_v61  ;;  %6097 = vmatprep.subr.mxu1 %v5913_v19 }
 0x8a2   :  { %6027 = vmatpush1.msra.mxu0 %v5910_v55  ;;  %6098 = vmatpush1.msra.mxu1 %v5912_v62 }
 0x8a3   :  { %6028 = vmatprep.subr.mxu0 %v5907_v20  ;;  %6099 = vmatprep.subr.mxu1 %v5909_v24 }
 0x8a4   :  { %6806 = vrot.lane.b32.xlu0 %v6805_v11, %s6944_s1  ;;  %6029 = vmatpush1.msra.mxu0 %v5906_v0  ;;  %v5967_v11 = vld [vmem:[%s12750_s5 + $0x208] sm:$0xff]  ;;  %s6945_s5 = smov 96  }
 0x8a5   :  { %6100 = vmatpush1.msra.mxu1 %v5908_v17  ;;  %6030 = vmatprep.subr.mxu0 %v5903_v23 }
 0x8a6   :  { %6101 = vmatprep.subr.mxu1 %v5905_v26  ;;  %6031 = vmatpush1.msra.mxu0 %v5902_v41 }
 0x8a7   :  { %6102 = vmatpush1.msra.mxu1 %v5904_v35  ;;  %6060 = vmatprep.subr.mxu0 %v5971_v8 }
 0x8a8   :  { %6131 = vmatprep.subr.mxu1 %v5973_v27  ;;  %6061 = vmatpush2.msra.mxu0 %v5970_v48 }
 0x8a9   :  { %6132 = vmatpush2.msra.mxu1 %v5972_v51  ;;  %6062 = vmatprep.subr.mxu0 %v5967_v11 }
 0x8aa   :  { %6133 = vmatprep.subr.mxu1 %v5969_v15  ;;  %6063 = vmatpush2.msra.mxu0 %v5966_v1 }
 0x8ab   :  { %6134 = vmatpush2.msra.mxu1 %v5968_v30  ;;  %6609 = vmatprep.subr.mxu0 %v6177_v58 }
 0x8ac   :  { %6644 = vmatprep.subr.mxu1 %v6209_v6 }
 0x8dd   :  { %v5827_v42 = vpop.permute.xlu1 %5826  ;;  %v5819_v13 = vpop.permute.xlu0 %5818 }
 0x8de   :  { %v5871_v31 = vsel %vm5767_vm9, %v12199_v25, %v5819_v13 }
 0x8df   :  { %v5873_v25 = vsel %vm5770_vm10, %v5871_v31, %v5827_v42 }
 0x8e1   :  { %v5835_v54 = vpop.permute.xlu1 %5834 }
 0x8e2   :  { %v5817_v45 = vpop.permute.xlu0 %5816  ;;  %v5875_v47 = vsel %vm5773_vm11, %v5873_v25, %v5835_v54 }
 0x8e3   :  { %v5870_v63 = vsel %vm5767_vm9, %v12212_v18, %v5817_v45 }
 0x8e5   :  { %v5843_v2 = vpop.permute.xlu1 %5842 }
 0x8e6   :  { %v5825_v36 = vpop.permute.xlu0 %5824  ;;  %v5877_v29 = vsel %vm5776_vm12, %v5875_v47, %v5843_v2 }
 0x8e7   :  { %v5872_v38 = vsel %vm5770_vm10, %v5870_v63, %v5825_v36 }
 0x8e9   :  { %v5851_v32 = vpop.permute.xlu1 %5850 }
 0x8ea   :  { %v5833_v49 = vpop.permute.xlu0 %5832  ;;  %v5879_v33 = vsel %vm5779_vm13, %v5877_v29, %v5851_v32 }
 0x8eb   :  { %v5874_v39 = vsel %vm5773_vm11, %v5872_v38, %v5833_v49 }
 0x8ed   :  { %v5859_v44 = vpop.permute.xlu1 %5858 }
 0x8ee   :  { %v5841_v43 = vpop.permute.xlu0 %5840  ;;  %v5881_v5 = vsel %vm5782_vm14, %v5879_v33, %v5859_v44 }
 0x8ef   :  { %v5876_v7 = vsel %vm5776_vm12, %v5874_v39, %v5841_v43 }
 0x8f1   :  { %v5867_v34 = vpop.permute.xlu1 %5866 }
 0x8f2   :  { %v5883_v14 = vsel %vm5785_vm15, %v5881_v5, %v5867_v34  ;;  %v5849_v40 = vpop.permute.xlu0 %5848 }
 0x8f3   :  { %5888 = vrot.lane.b32.xlu1 %v5883_v14, %s6945_s5  ;;  %v5878_v21 = vsel %vm5779_vm13, %v5876_v7, %v5849_v40 }
 0x8f5   :  { %v5865_v10 = vpop.permute.xlu1 %5864 }
 0x8f6   :  { %v5857_v16 = vpop.permute.xlu0 %5856 }
 0x8f7   :  { %v5880_v59 = vsel %vm5782_vm14, %v5878_v21, %v5857_v16 }
 0x8f8   :  { %v5882_v9 = vsel %vm5785_vm15, %v5880_v59, %v5865_v10 }
 0x8f9   :  { %v6742_v18 = vpop.permute.xlu1 %6741  ;;  %5886 = vrot.lane.b32.xlu0 %v5882_v9, %s6945_s5 }
 0x8fa   :  { %v6737_v28 = vpop.permute.xlu0 %6736  ;;  %v6744_v4 = vunpack.i.h.bf16 %v6742_v18  ;;  %v6743_v60 = vunpack.i.l.bf16 %v6742_v18 }
 0x8fb   :  { %v6739_v12 = vunpack.i.h.bf16 %v6737_v28  ;;  %v6738_v57 = vunpack.i.l.bf16 %v6737_v28 }
 0x8fd   :  { %v5768_v22 = vsel %vm5767_vm9, %v12230_v50, %v6739_v12  ;;  %v5769_v56 = vsel %vm5767_vm9, %v12233_v53, %v6738_v57  ;;  %v6752_v52 = vpop.permute.xlu1 %6751  ;;  %vm5892_vm9 = vcmask 785408  }
 0x8fe   :  { %v6747_v46 = vpop.permute.xlu0 %6746  ;;  %v5771_v37 = vsel %vm5770_vm10, %v5768_v22, %v6744_v4  ;;  %v5772_v61 = vsel %vm5770_vm10, %v5769_v56, %v6743_v60  ;;  %v6754_v62 = vunpack.i.h.bf16 %v6752_v52  ;;  %v6753_v42 = vunpack.i.l.bf16 %v6752_v52 }
 0x8ff   :  { %v6749_v19 = vunpack.i.h.bf16 %v6747_v46  ;;  %v6748_v55 = vunpack.i.l.bf16 %v6747_v46  ;;  %vm5996_vm10 = vcmask 130048  }
 0x901   :  { %v5774_v13 = vsel %vm5773_vm11, %v5771_v37, %v6749_v19  ;;  %v5775_v54 = vsel %vm5773_vm11, %v5772_v61, %v6748_v55  ;;  %v6762_v45 = vpop.permute.xlu1 %6761 }
 0x902   :  { %v6757_v2 = vpop.permute.xlu0 %6756  ;;  %v5777_v50 = vsel %vm5776_vm12, %v5774_v13, %v6754_v62  ;;  %v5778_v53 = vsel %vm5776_vm12, %v5775_v54, %v6753_v42  ;;  %v6764_v24 = vunpack.i.h.bf16 %v6762_v45  ;;  %v6763_v0 = vunpack.i.l.bf16 %v6762_v45 }
 0x903   :  { %v6759_v36 = vunpack.i.h.bf16 %v6757_v2  ;;  %v6758_v20 = vunpack.i.l.bf16 %v6757_v2  ;;  %v6161_v2 = vld [vmem:[%s12752_s7 + $0x78] sm:$0xff] }
 0x905   :  { %v5780_v17 = vsel %vm5779_vm13, %v5777_v50, %v6759_v36  ;;  %v5781_v23 = vsel %vm5779_vm13, %v5778_v53, %v6758_v20  ;;  %v6772_v48 = vpop.permute.xlu1 %6771  ;;  %v6193_v50 = vld [vmem:[%s12752_s7 + $0x178] sm:$0xff]  ;;  %v6176_v36 = vld [vmem:[%s12752_s7 + $0xf0] sm:$0xff] }
 0x906   :  { %v6767_v26 = vpop.permute.xlu0 %6766  ;;  %v5783_v32 = vsel %vm5782_vm14, %v5780_v17, %v6764_v24  ;;  %v5784_v41 = vsel %vm5782_vm14, %v5781_v23, %v6763_v0  ;;  %v6773_v11 = vunpack.i.l.bf16 %v6772_v48  ;;  %v6774_v6 = vunpack.i.h.bf16 %v6772_v48  ;;  %v6208_v20 = vld [vmem:[%s12752_s7 + $0x1f0] sm:$0xff]  ;;  %v6175_v17 = vld [vmem:[%s12752_s7 + $0xe8] sm:$0xff]  ;;  %v6157_v48 = vld [vmem:[%s12752_s7 + $0x58] sm:$0xff] }
 0x907   :  { %v6769_v35 = vunpack.i.h.bf16 %v6767_v26  ;;  %v6768_v8 = vunpack.i.l.bf16 %v6767_v26  ;;  %v6160_v24 = vld [vmem:[%s12752_s7 + $0x70] sm:$0xff]  ;;  %v6207_v23 = vld [vmem:[%s12752_s7 + $0x1e8] sm:$0xff] }
 0x908   :  { %v6192_v0 = vld [vmem:[%s12752_s7 + $0x170] sm:$0xff]  ;;  %v6159_v26 = vld [vmem:[%s12752_s7 + $0x68] sm:$0xff] }
 0x909   :  { %v5786_v31 = vsel %vm5785_vm15, %v5783_v32, %v6769_v35  ;;  %v5787_v49 = vsel %vm5785_vm15, %v5784_v41, %v6768_v8  ;;  %v6782_v25 = vpop.permute.xlu1 %6781  ;;  %v6191_v32 = vld [vmem:[%s12752_s7 + $0x168] sm:$0xff]  ;;  %v6174_v41 = vld [vmem:[%s12752_s7 + $0xe0] sm:$0xff] }
 0x90a   :  { %v6777_v27 = vpop.permute.xlu0 %6776  ;;  %v5790_v15 = vsel %vm5788_vm0, %v5787_v49, %v6773_v11  ;;  %v6783_v29 = vunpack.i.l.bf16 %v6782_v25  ;;  %v5789_v33 = vsel %vm5788_vm0, %v5786_v31, %v6774_v6  ;;  %v6784_v38 = vunpack.i.h.bf16 %v6782_v25  ;;  %v6206_v35 = vld [vmem:[%s12752_s7 + $0x1e0] sm:$0xff]  ;;  %v6173_v49 = vld [vmem:[%s12752_s7 + $0xd8] sm:$0xff]  ;;  %v6172_v25 = vld [vmem:[%s12752_s7 + $0xd0] sm:$0xff] }
 0x90b   :  { %v6778_v44 = vunpack.i.l.bf16 %v6777_v27  ;;  %v6779_v47 = vunpack.i.h.bf16 %v6777_v27  ;;  %v6158_v8 = vld [vmem:[%s12752_s7 + $0x60] sm:$0xff]  ;;  %v6205_v27 = vld [vmem:[%s12752_s7 + $0x1d8] sm:$0xff]  ;;  %v6156_v11 = vld [vmem:[%s12752_s7 + $0x50] sm:$0xff] }
 0x90c   :  { %v6190_v31 = vld [vmem:[%s12752_s7 + $0x160] sm:$0xff] }
 0x90d   :  { %v5793_v43 = vsel %vm5791_vm1, %v5790_v15, %v6778_v44  ;;  %v6792_v30 = vpop.permute.xlu1 %6791  ;;  %v5792_v34 = vsel %vm5791_vm1, %v5789_v33, %v6779_v47  ;;  %v6204_v44 = vld [vmem:[%s12752_s7 + $0x1d0] sm:$0xff]  ;;  %v6203_v47 = vld [vmem:[%s12752_s7 + $0x1c8] sm:$0xff]  ;;  %v6202_v6 = vld [vmem:[%s12752_s7 + $0x1c0] sm:$0xff] }
 0x90e   :  { %v6787_v51 = vpop.permute.xlu0 %6786  ;;  %v5796_v5 = vsel %vm5794_vm2, %v5793_v43, %v6783_v29  ;;  %v6793_v39 = vunpack.i.l.bf16 %v6792_v30  ;;  %v5795_v21 = vsel %vm5794_vm2, %v5792_v34, %v6784_v38  ;;  %v6794_v12 = vunpack.i.h.bf16 %v6792_v30  ;;  %v6188_v15 = vld [vmem:[%s12752_s7 + $0x150] sm:$0xff]  ;;  %v6155_v43 = vld [vmem:[%s12752_s7 + $0x48] sm:$0xff]  ;;  %v6154_v29 = vld [vmem:[%s12752_s7 + $0x40] sm:$0xff] }
 0x90f   :  { %v6788_v58 = vunpack.i.l.bf16 %v6787_v51  ;;  %v6789_v63 = vunpack.i.h.bf16 %v6787_v51  ;;  %v6189_v51 = vld [vmem:[%s12752_s7 + $0x158] sm:$0xff]  ;;  %v6187_v30 = vld [vmem:[%s12752_s7 + $0x148] sm:$0xff]  ;;  %v6186_v33 = vld [vmem:[%s12752_s7 + $0x140] sm:$0xff] }
 0x910   :  { %v6201_v34 = vld [vmem:[%s12752_s7 + $0x1b8] sm:$0xff]  ;;  %v6200_v38 = vld [vmem:[%s12752_s7 + $0x1b0] sm:$0xff] }
 0x911   :  { %v5799_v14 = vsel %vm5797_vm4, %v5796_v5, %v6788_v58  ;;  %v6802_v10 = vpop.permute.xlu1 %6801  ;;  %v5798_v59 = vsel %vm5797_vm4, %v5795_v21, %v6789_v63  ;;  %v6170_v58 = vld [vmem:[%s12752_s7 + $0xc0] sm:$0xff]  ;;  %v6169_v5 = vld [vmem:[%s12752_s7 + $0xb8] sm:$0xff]  ;;  %v6199_v21 = vld [vmem:[%s12752_s7 + $0x1a8] sm:$0xff] }
 0x912   :  { %v6797_v1 = vpop.permute.xlu0 %6796  ;;  %v5802_v16 = vsel %vm5800_vm5, %v5799_v14, %v6793_v39  ;;  %v6803_v57 = vunpack.i.l.bf16 %v6802_v10  ;;  %v5801_v60 = vsel %vm5800_vm5, %v5798_v59, %v6794_v12  ;;  %v6804_v37 = vunpack.i.h.bf16 %v6802_v10  ;;  %v6153_v63 = vld [vmem:[%s12752_s7 + $0x38] sm:$0xff]  ;;  %v6152_v39 = vld [vmem:[%s12752_s7 + $0x30] sm:$0xff]  ;;  %v6167_v10 = vld [vmem:[%s12752_s7 + $0xa8] sm:$0xff] }
 0x913   :  { %v6798_v40 = vunpack.i.l.bf16 %v6797_v1  ;;  %v6799_v9 = vunpack.i.h.bf16 %v6797_v1  ;;  %v6171_v1 = vld [vmem:[%s12752_s7 + $0xc8] sm:$0xff]  ;;  %v6185_v14 = vld [vmem:[%s12752_s7 + $0x138] sm:$0xff]  ;;  %v6182_v12 = vld [vmem:[%s12752_s7 + $0x120] sm:$0xff] }
 0x914   :  { %v6183_v59 = vld [vmem:[%s12752_s7 + $0x128] sm:$0xff] }
 0x915   :  { %v5805_v18 = vsel %vm5803_vm6, %v5802_v16, %v6798_v40  ;;  %v5804_v56 = vsel %vm5803_vm6, %v5801_v60, %v6799_v9  ;;  %v6168_v40 = vld [vmem:[%s12752_s7 + $0xb0] sm:$0xff]  ;;  %v6151_v16 = vld [vmem:[%s12752_s7 + $0x28] sm:$0xff]  ;;  %v6166_v9 = vld [vmem:[%s12752_s7 + $0xa0] sm:$0xff] }
 0x916   :  { %v6807_v7 = vpop.permute.xlu0 %6806  ;;  %v5808_v22 = vsel %vm5806_vm7, %v5805_v18, %v6803_v57  ;;  %v5807_v55 = vsel %vm5806_vm7, %v5804_v56, %v6804_v37  ;;  %v6198_v18 = vld [vmem:[%s12752_s7 + $0x1a0] sm:$0xff]  ;;  %v6165_v57 = vld [vmem:[%s12752_s7 + $0x98] sm:$0xff]  ;;  %v6164_v56 = vld [vmem:[%s12752_s7 + $0x90] sm:$0xff] }
 0x917   :  { %v6808_v28 = vunpack.i.l.bf16 %v6807_v7  ;;  %v6809_v52 = vunpack.i.h.bf16 %v6807_v7  ;;  %v6184_v7 = vld [vmem:[%s12752_s7 + $0x130] sm:$0xff]  ;;  %v6149_v60 = vld [vmem:[%s12752_s7 + $0x18] sm:$0xff] }
 0x918   :  { %v6180_v37 = vld [vmem:[%s12752_s7 + $0x110] sm:$0xff] }
 0x919   :  { %v5811_v46 = vsel %vm5809_vm8, %v5808_v22, %v6808_v28  ;;  %v5810_v13 = vsel %vm5809_vm8, %v5807_v55, %v6809_v52  ;;  %v6150_v28 = vld [vmem:[%s12752_s7 + $0x20] sm:$0xff]  ;;  %v6181_v22 = vld [vmem:[%s12752_s7 + $0x118] sm:$0xff]  ;;  %v6196_v52 = vld [vmem:[%s12752_s7 + $0x190] sm:$0xff] }
 0x91a   :  { %v6147_v55 = vld [vmem:[%s12752_s7 + $0x8] sm:$0xff] }
 0x965   :  { %v5889_v4 = vpop.permute.xlu1 %5888 }
 0x966   :  { %v5894_v61 = vsel %vm5892_vm9, %v5811_v46, %v5889_v4  ;;  %v5897_v19 = vrot.slane %v5889_v4, 7  ;;  %v6197_v4 = vld [vmem:[%s12752_s7 + $0x198] sm:$0xff]  ;;  %v6148_v46 = vld [vmem:[%s12752_s7 + $0x10] sm:$0xff] }
 0x967   :  { %v5896_v62 = vrot.slane %v5894_v61, 7  ;;  %v6163_v61 = vld [vmem:[%s12752_s7 + $0x88] sm:$0xff] }
 0x96b   :  { %v5887_v42 = vpop.permute.xlu0 %5886 }
 0x96c   :  { %v5893_v54 = vsel %vm5892_vm9, %v5810_v13, %v5887_v42  ;;  %v5901_v45 = vsel %vm1952_vm3, %v5887_v42, %v5897_v19  ;;  %v6195_v19 = vld [vmem:[%s12752_s7 + $0x188] sm:$0xff]  ;;  %v6162_v42 = vld [vmem:[%s12752_s7 + $0x80] sm:$0xff] }
 0x96d   :  { %v5900_v53 = vsel %vm1952_vm3, %v5893_v54, %v5896_v62  ;;  %6590 = vmatprep.mubr.msk.f32.mxu0 %vm5996_vm10, %v5901_v45  ;;  %6591 = vmatprep.mubr.msk.f32.mxu1 %vm5996_vm10, %v5901_v45  ;;  %v6179_v62 = vld [vmem:[%s12752_s7 + $0x108] sm:$0xff]  ;;  %v6194_v13 = vld [vmem:[%s12752_s7 + $0x180] sm:$0xff]  ;;  %vm6357_vm3 = vcmask 74752  }
 0x96e   :  { %6065 = vmatmul.mubr.f32.vlgmr.msra.gmra.mxu0 %v5900_v53  ;;  %6136 = vmatmul.mubr.f32.vlgmr.msra.gmra.mxu1 %v5900_v53  ;;  %v6146_v54 = vld [vmem:[%s12752_s7] sm:$0xff] }
 0x96f   :  { %6610 = vmatpush3.msra.mxu0 %v6161_v2  ;;  %6645 = vmatpush3.msra.mxu1 %v6193_v50  ;;  %v6178_v45 = vld [vmem:[%s12752_s7 + $0x100] sm:$0xff]  ;;  %v5978_v2 = vsub.s32 0, %v11979_v3  ;;  %v5986_v50 = vsub.s32 2, %v11979_v3 }
 0x970   :  { %6611 = vmatprep.subr.mxu0 %v6176_v36  ;;  %6646 = vmatprep.subr.mxu1 %v6208_v20  ;;  %v5974_v53 = vld [vmem:[%s12751_s6] sm:$0xf]  ;;  %v5982_v36 = vsub.s32 1, %v11979_v3  ;;  %v5990_v20 = vsub.s32 3, %v11979_v3 }
 0x971   :  { %6612 = vmatpush3.msra.mxu0 %v6160_v24  ;;  %6647 = vmatpush3.msra.mxu1 %v6192_v0  ;;  %v5979_v24 = vrot.slane %v5974_v53, %v5978_v2  ;;  %v5987_v0 = vrot.slane %v5974_v53, %v5986_v50 }
 0x972   :  { %6613 = vmatprep.subr.mxu0 %v6175_v17  ;;  %6648 = vmatprep.subr.mxu1 %v6207_v23  ;;  %v5983_v17 = vrot.slane %v5974_v53, %v5982_v36  ;;  %v5991_v23 = vrot.slane %v5974_v53, %v5990_v20 }
 0x973   :  { %6614 = vmatpush3.msra.mxu0 %v6159_v26  ;;  %6649 = vmatpush3.msra.mxu1 %v6191_v32 }
 0x974   :  { %6615 = vmatprep.subr.mxu0 %v6174_v41  ;;  %6650 = vmatprep.subr.mxu1 %v6206_v35 }
 0x975   :  { %6616 = vmatpush3.msra.mxu0 %v6158_v8  ;;  %6651 = vmatpush3.msra.mxu1 %v6190_v31 }
 0x976   :  { %6617 = vmatprep.subr.mxu0 %v6173_v49  ;;  %6652 = vmatprep.subr.mxu1 %v6205_v27 }
 0x977   :  { %6618 = vmatpush3.msra.mxu0 %v6157_v48  ;;  %6653 = vmatpush3.msra.mxu1 %v6189_v51 }
 0x978   :  { %6619 = vmatprep.subr.mxu0 %v6172_v25  ;;  %6654 = vmatprep.subr.mxu1 %v6204_v44 }
 0x979   :  { %6620 = vmatpush3.msra.mxu0 %v6156_v11  ;;  %6655 = vmatpush3.msra.mxu1 %v6188_v15  ;;  %v6592_v15 = vld [vmem:[%s12753_s8] ss:$0 sm:$0xff]  ;;  %s6946_s8 = smov [#allocation12]  }
 0x97a   :  { %6621 = vmatprep.subr.mxu0 %v6171_v1  ;;  %6656 = vmatprep.subr.mxu1 %v6203_v47  ;;  %s6376_s18 = sshll.u32 %s6946_s8, 4  ;;  %s6377_s18 = int_to_ptr.vmem [resolvable:$true] %s6376_s18 }
 0x97b   :  { %6622 = vmatpush3.msra.mxu0 %v6155_v43  ;;  %6657 = vmatpush3.msra.mxu1 %v6187_v30  ;;  %s6887_s12 = scalar_lea.vmem %s6377_s18, 32  ;;  %p6892_p12 = scmp.lt.s32.totalorder %s6377_s18, %s6377_s18 }
 0x97c   :  { %6623 = vmatprep.subr.mxu0 %v6170_v58  ;;  %6658 = vmatprep.subr.mxu1 %v6202_v6  ;;  %p6888_p11 = scmp.ne.s32.totalorder %s6377_s18, %s6887_s12  ;;  %p6893_p13 = scmp.lt.s32.totalorder %s6887_s12, %s6887_s12 }
 0x97d   :  { %6624 = vmatpush3.msra.mxu0 %v6154_v29  ;;  %6659 = vmatpush3.msra.mxu1 %v6186_v33 }
 0x97e   :  { %6625 = vmatprep.subr.mxu0 %v6169_v5  ;;  %6660 = vmatprep.subr.mxu1 %v6201_v34  ;;  %p6894_p0 = por %p6893_p13, %p6892_p12 }
 0x97f   :  { %6626 = vmatpush3.msra.mxu0 %v6153_v63  ;;  %6661 = vmatpush3.msra.mxu1 %v6185_v14 }
 0x980   :  { %6627 = vmatprep.subr.mxu0 %v6168_v40  ;;  %6662 = vmatprep.subr.mxu1 %v6200_v38  ;;  %p6895_p1 = pnand %p6894_p0, %p6888_p11 }
 0x981   :  { %6628 = vmatpush3.msra.mxu0 %v6152_v39  ;;  %6663 = vmatpush3.msra.mxu1 %v6184_v7 }
 0x982   :  { %6629 = vmatprep.subr.mxu0 %v6167_v10  ;;  %6664 = vmatprep.subr.mxu1 %v6199_v21 }
 0x983   :  { %6630 = vmatpush3.msra.mxu0 %v6151_v16  ;;  %6665 = vmatpush3.msra.mxu1 %v6183_v59 }
 0x984   :  { %6631 = vmatprep.subr.mxu0 %v6166_v9  ;;  %6666 = vmatprep.subr.mxu1 %v6198_v18 }
 0x985   :  { %6632 = vmatpush3.msra.mxu0 %v6150_v28  ;;  %6667 = vmatpush3.msra.mxu1 %v6182_v12 }
 0x986   :  { %6633 = vmatprep.subr.mxu0 %v6165_v57  ;;  %6668 = vmatprep.subr.mxu1 %v6197_v4 }
 0x987   :  { %6634 = vmatpush3.msra.mxu0 %v6149_v60  ;;  %6669 = vmatpush3.msra.mxu1 %v6181_v22 }
 0x988   :  { %6635 = vmatprep.subr.mxu0 %v6164_v56  ;;  %6670 = vmatprep.subr.mxu1 %v6196_v52 }
 0x989   :  { %6636 = vmatpush3.msra.mxu0 %v6148_v46  ;;  %6671 = vmatpush3.msra.mxu1 %v6180_v37 }
 0x98a   :  { %6637 = vmatprep.subr.mxu0 %v6163_v61  ;;  %6672 = vmatprep.subr.mxu1 %v6195_v19 }
 0x98b   :  { %6638 = vmatpush3.msra.mxu0 %v6147_v55  ;;  %6673 = vmatpush3.msra.mxu1 %v6179_v62 }
 0x98c   :  { %6639 = vmatprep.subr.mxu0 %v6162_v42  ;;  %6674 = vmatprep.subr.mxu1 %v6194_v13 }
 0x98d   :  { %6640 = vmatpush3.msra.mxu0 %v6146_v54  ;;  %6675 = vmatpush3.msra.mxu1 %v6178_v45 }
 0xa2e   :  { %v6066_v26 = vpop.f32.mrf.mxu0  ;;  %v6137_v32 = vpop.f32.mrf.mxu1 }
 0xa2f   :  { %v6067_v41 = vadd.f32 %v6066_v26, %v5979_v24  ;;  %v6138_v35 = vadd.f32 %v6137_v32, %v5987_v0 }
 0xa30   :  { %v6068_v8 = vpop.f32.mrf.mxu0  ;;  %v6139_v31 = vpop.f32.mrf.mxu1 }
 0xa31   :  { %v6069_v49 = vadd.f32 %v6068_v8, %v5983_v17  ;;  %v6140_v27 = vadd.f32 %v6139_v31, %v5991_v23  ;;  %v6142_v25 = vmax.f32 %v6067_v41, 0.0  ;;  %v6144_v44 = vmax.f32 %v6138_v35, 0.0 }
 0xa33   :  { %v6143_v48 = vmax.f32 %v6069_v49, 0.0  ;;  %v6145_v51 = vmax.f32 %v6140_v27, 0.0 }
 0xa35   :  { %6281 = vmatprep.mubr.f32.mxu0 %v6143_v48  ;;  %6351 = vmatprep.mubr.f32.mxu1 %v6145_v51 }
 0xa36   :  { %6282 = vmatmul.mubr.f32.vlgmr.msra.gmra.mxu0 %v6142_v25  ;;  %6352 = vmatmul.mubr.f32.vlgmr.msra.gmra.mxu1 %v6144_v44 }
 0xaf6   :  { %v6641_v3 = vpop.f32.mrf.mxu0  ;;  %v6676_v11 = vpop.f32.mrf.mxu1 }
 0xaf8   :  { %v6642_v1 = vpop.f32.mrf.mxu0  ;;  %v6677_v47 = vpop.f32.mrf.mxu1 }
 0xaf9   :  { %v6643_v43 = vadd.f32 %v6642_v1, %v6641_v3  ;;  %v6678_v58 = vadd.f32 %v6677_v47, %v6676_v11 }
 0xafb   :  { %v6284_v30 = vadd.f32 %v6643_v43, %v6592_v15 }
 0xafd   :  { %v6354_v6 = vadd.f32 %v6678_v58, %v6284_v30 }
 0xaff   :  { %v6358_v29 = vsel %vm6357_vm3, %v6354_v6, -inf }
 0xb00   :  { %6359 = vmax.xlane.f32.xlu1 %v6358_v29 }
 0xb89   :  { %v6360_v33 = vpop.xlane.xlu1 %6359 }
 0xb8a   :  { %v6361_v5 = vsub.f32 %v6354_v6, %v6360_v33 }
 0xb8c   :  { %v6362_v34 = vmul.f32 1.442695, %v6361_v5 }
 0xb8e   :  { %6810 = vpow2.f32 %v6362_v34 }
 0xb9b   :  { %v6811_v63 = vpop.eup %6810 }
 0xb9c   :  { %v6364_v14 = vsel %vm6357_vm3, %v6811_v63, 0.0 }
 0xb9d   :  { %6365 = vadd.xlane.f32.xlu0 %v6364_v14 }
 0xc26   :  { %v6366_v40 = vpop.xlane.xlu0 %6365 }
 0xc27   :  { %6812 = vrcp.f32 %v6366_v40 }
 0xc34   :  { %v6813_v38 = vpop.eup %6812 }
 0xc35   :  { %v6368_v39 = vmul.f32 %v6813_v38, %v6811_v63 }
 0xc37   :  { %6369 = vst.msk [vmem:[#allocation12] sm:$0x3] %vm6357_vm3, %v6368_v39 }
 0xc38   :  { %6898 = shalt.err (!%p6895_p1)
}
 0xc39   :  { %6379 = dma.vmem_to_hbm [thread:$0]  %s6377_s18, 32, %s12754_s9, [#allocation4]  }
 0xc3a   :  { %6915 = dma.done.wait [#allocation4], 32  }
 0xc3b   :  { %6916 = vsyncadd [#allocation4], 4294967264 }
 0xc3c   :  { %6383 = vsyncpa [#allocation3], 1 }
 0xc3d   :  { %6384 = vsyncpa [#allocation4], 1 }
 0xc3e   :  { %6385 = vsyncpa [#allocation5], 1 }
 0xc3f   :  { %6386 = vsyncpa [#allocation8], 1 }
 0xc40   :  { %6387 = vsyncpa [#allocation11], 1 }

</bundles_post_ra>
